<compile_context>
chip_gen: v7x
topology: tpu7x:2x2x1
jax: 0.10.0
libtpu: 0.0.40
codegen_flags: <defaults>
</compile_context>

<pallas_src>
import functools

import jax
import jax.numpy as jnp
from jax.experimental import pallas as pl
from jax.experimental.pallas import tpu as pltpu

IN_FEATURES = 2560   # EfficientNet-B7 feature size (fixed by the module)
HIDDEN = 1024
NUM_CLASSES = 10     # small, synthetic
LANE = 128
BF16_SUBLANE = 16    # bf16 packs 16 rows per (sublane, lane) tile
TB_CANDIDATES = (256, 128, 64, 32, 16)


def _round_up(x, m):
    return ((x + m - 1) // m) * m


def _classifier_kernel(num_classes, x_ref, w1_ref, b1_ref, w2_ref, b2_ref,
                       o_ref):
    # x_ref : [TB, 2560]       bf16     w1_ref: [2560, HIDDEN]   bf16 (resident)
    # b1_ref: [1, HIDDEN]      f32      w2_ref: [HIDDEN, C_pad]  bf16 (resident)
    # b2_ref: [1, C_pad]       f32      o_ref : [TB, C_pad]      f32

    # Linear(2560 -> 1024) on the MXU: bf16 inputs, f32 accumulation.
    h = jnp.dot(x_ref[...], w1_ref[...], preferred_element_type=jnp.float32)
    # Bias + ReLU in f32. Dropout(0.2) is identity in eval mode.
    h = jnp.maximum(h + b1_ref[...], 0.0)

    # Linear(1024 -> num_classes): bf16 MXU inputs, f32 accumulation + f32 bias.
    # (bf16 cast of h adds small quantization error vs. the f32 reference.)
    logits = jnp.dot(h.astype(jnp.bfloat16), w2_ref[...],
                     preferred_element_type=jnp.float32) + b2_ref[...]

    # Mask lane-padding columns so softmax is only over the real classes.
    # Large finite negative -> exp underflows to exactly 0 (no -inf involved).
    col = jax.lax.broadcasted_iota(jnp.int32, logits.shape, 1)
    logits = jnp.where(col < num_classes, logits, jnp.float32(-1e30))

    # Softmax over dim=1 in f32 with exact normalization (rows sum to ~1).
    m = jnp.max(logits, axis=-1, keepdims=True)
    e = jnp.exp(logits - m)
    s = jnp.sum(e, axis=-1, keepdims=True)
    o_ref[...] = (e / s).astype(o_ref.dtype)


def prepare_classifier_params(w1, b1, w2, b2, num_classes):
    """One-time (model-load) weight prep: pad to lane multiples, cast to bf16."""
    c_pad = _round_up(num_classes, LANE)
    w1_p = w1.astype(jnp.bfloat16)                                    # [F, H]
    b1_p = b1.reshape(1, HIDDEN).astype(jnp.float32)                  # [1, H]
    w2_p = (jnp.zeros((HIDDEN, c_pad), jnp.bfloat16)
            .at[:, :num_classes].set(w2.astype(jnp.bfloat16)))        # [H, C_pad]
    b2_p = (jnp.zeros((1, c_pad), jnp.float32)
            .at[:, :num_classes].set(b2.reshape(1, -1).astype(jnp.float32)))
    return w1_p, b1_p, w2_p, b2_p, c_pad


def cnn_classifier_forward(x, params, num_classes=NUM_CLASSES):
    """x: [B, IN_FEATURES] features from the (frozen) backbone."""
    w1_p, b1_p, w2_p, b2_p, c_pad = params
    B, F = x.shape
    assert F == IN_FEATURES

    # Minimal batch padding (<= 15 rows); largest tile that divides it.
    b_pad = _round_up(max(B, BF16_SUBLANE), BF16_SUBLANE)
    tb = next(t for t in TB_CANDIDATES if b_pad % t == 0)
    n_b = b_pad // tb

    # Skip the pad/cast when the backbone already hands us aligned bf16.
    x_p = x if x.dtype == jnp.bfloat16 else x.astype(jnp.bfloat16)
    if b_pad != B:
        x_p = jnp.pad(x_p, ((0, b_pad - B), (0, 0)))

    kernel = functools.partial(_classifier_kernel, num_classes)

    out = pl.pallas_call(
        kernel,
        out_shape=jax.ShapeDtypeStruct((b_pad, c_pad), jnp.float32),
        grid=(n_b,),
        in_specs=[
            pl.BlockSpec((tb, F), lambda i: (i, 0)),            # x (per block)
            pl.BlockSpec((F, HIDDEN), lambda i: (0, 0)),        # w1 (resident)
            pl.BlockSpec((1, HIDDEN), lambda i: (0, 0)),        # b1 (resident)
            pl.BlockSpec((HIDDEN, c_pad), lambda i: (0, 0)),    # w2 (resident)
            pl.BlockSpec((1, c_pad), lambda i: (0, 0)),         # b2 (resident)
        ],
        out_specs=pl.BlockSpec((tb, c_pad), lambda i: (i, 0)),
        compiler_params=pltpu.CompilerParams(
            dimension_semantics=("parallel",),
            vmem_limit_bytes=32 << 20,
        ),
    )(x_p, w1_p, b1_p, w2_p, b2_p)

    return out[:B, :num_classes]


def _init_linear(key, fan_in, fan_out):
    # Mimic torch.nn.Linear default init: U(-1/sqrt(fan_in), 1/sqrt(fan_in)).
    kw, kb = jax.random.split(key)
    bound = 1.0 / jnp.sqrt(float(fan_in))
    w = jax.random.uniform(kw, (fan_in, fan_out), jnp.float32, -bound, bound)
    b = jax.random.uniform(kb, (fan_out,), jnp.float32, -bound, bound)
    return w, b


if __name__ == "__main__":
    key = jax.random.PRNGKey(0)
    kx, k1, k2 = jax.random.split(key, 3)

    B = 8
    # Synthetic backbone features (base_model output would be [B, 2560]).
    x = jax.random.normal(kx, (B, IN_FEATURES), jnp.float32)

    w1, b1 = _init_linear(k1, IN_FEATURES, HIDDEN)
    w2, b2 = _init_linear(k2, HIDDEN, NUM_CLASSES)

    # One-time weight prep (padding + bf16 cast) hoisted out of the hot path.
    params = prepare_classifier_params(w1, b1, w2, b2, NUM_CLASSES)

    out = cnn_classifier_forward(x, params, NUM_CLASSES)
    out = jax.block_until_ready(out)

    # Pure-JAX f32 reference (loose element tolerance: bf16 MXU inputs).
    h_ref = jnp.maximum(x @ w1 + b1, 0.0)
    ref = jax.nn.softmax(h_ref @ w2 + b2, axis=-1)

    row_sums = jnp.sum(out, axis=-1)
    assert out.shape == (B, NUM_CLASSES)
    assert bool(jnp.all(jnp.abs(row_sums - 1.0) < 1e-3))
    assert bool(jnp.max(jnp.abs(out - ref)) < 3e-2)

    print("KERNEL_OK")
</pallas_src>

<mosaic_0001>
module attributes {stable_mosaic.version = 11 : i64} {
  func.func @_classifier_kernel(%arg0: i32, %arg1: memref<16x2560xbf16, #tpu.memory_space<vmem>>, %arg2: memref<2560x1024xbf16, #tpu.memory_space<vmem>>, %arg3: memref<1x1024xf32, #tpu.memory_space<vmem>>, %arg4: memref<1024x128xbf16, #tpu.memory_space<vmem>>, %arg5: memref<1x128xf32, #tpu.memory_space<vmem>>, %arg6: memref<16x128xf32, #tpu.memory_space<vmem>>) attributes {dimension_semantics = [#tpu.dimension_semantics<parallel>], iteration_bounds = array<i64: 1>, scalar_prefetch = 0 : i64, scratch_operands = 0 : i64, tpu.core_type = #tpu.core_type<tc>, window_params = [{transform_indices = @transform_0, window_bounds = array<i64: 16, 2560>}, {pipeline_mode = #tpu.pipeline_mode<synchronous>, transform_indices = @transform_1, window_bounds = array<i64: 2560, 1024>}, {pipeline_mode = #tpu.pipeline_mode<synchronous>, transform_indices = @transform_2, window_bounds = array<i64: 1, 1024>}, {pipeline_mode = #tpu.pipeline_mode<synchronous>, transform_indices = @transform_3, window_bounds = array<i64: 1024, 128>}, {pipeline_mode = #tpu.pipeline_mode<synchronous>, transform_indices = @transform_4, window_bounds = array<i64: 1, 128>}, {transform_indices = @transform_5, window_bounds = array<i64: 16, 128>}]} {
    %c0 = arith.constant 0 : index
    %c0_0 = arith.constant 0 : index
    %0 = vector.load %arg1[%c0, %c0_0] : memref<16x2560xbf16, #tpu.memory_space<vmem>>, vector<16x2560xbf16>
    %c0_1 = arith.constant 0 : index
    %c0_2 = arith.constant 0 : index
    %1 = vector.load %arg2[%c0_1, %c0_2] : memref<2560x1024xbf16, #tpu.memory_space<vmem>>, vector<2560x1024xbf16>
    %cst = arith.constant dense<0.000000e+00> : vector<16x1024xf32>
    %2 = tpu.matmul %0, %1, %cst {dimension_numbers = #tpu.dot_dimension_numbers<[1], [0], [0], [1], [0, 0, 1, 1], [], []>} : vector<16x2560xbf16>, vector<2560x1024xbf16>, vector<16x1024xf32> -> vector<16x1024xf32>
    %c0_3 = arith.constant 0 : index
    %c0_4 = arith.constant 0 : index
    %3 = vector.load %arg3[%c0_3, %c0_4] : memref<1x1024xf32, #tpu.memory_space<vmem>>, vector<1x1024xf32>
    %4 = vector.broadcast %3 : vector<1x1024xf32> to vector<16x1024xf32>
    %5 = arith.addf %2, %4 : vector<16x1024xf32>
    %cst_5 = arith.constant 0.000000e+00 : f32
    %6 = vector.broadcast %cst_5 : f32 to vector<16x1024xf32>
    %7 = arith.maximumf %5, %6 : vector<16x1024xf32>
    %8 = arith.truncf %7 : vector<16x1024xf32> to vector<16x1024xbf16>
    %c0_6 = arith.constant 0 : index
    %c0_7 = arith.constant 0 : index
    %9 = vector.load %arg4[%c0_6, %c0_7] : memref<1024x128xbf16, #tpu.memory_space<vmem>>, vector<1024x128xbf16>
    %cst_8 = arith.constant dense<0.000000e+00> : vector<16x128xf32>
    %10 = tpu.matmul %8, %9, %cst_8 {dimension_numbers = #tpu.dot_dimension_numbers<[1], [0], [0], [1], [0, 0, 1, 1], [], []>} : vector<16x1024xbf16>, vector<1024x128xbf16>, vector<16x128xf32> -> vector<16x128xf32>
    %c0_9 = arith.constant 0 : index
    %c0_10 = arith.constant 0 : index
    %11 = vector.load %arg5[%c0_9, %c0_10] : memref<1x128xf32, #tpu.memory_space<vmem>>, vector<1x128xf32>
    %12 = vector.broadcast %11 : vector<1x128xf32> to vector<16x128xf32>
    %13 = arith.addf %10, %12 : vector<16x128xf32>
    %14 = tpu.iota {dimensions = array<i32: 1>} : vector<16x128xi32>
    %c10_i32 = arith.constant 10 : i32
    %15 = vector.broadcast %c10_i32 : i32 to vector<16x128xi32>
    %16 = arith.cmpi slt, %14, %15 : vector<16x128xi32>
    %cst_11 = arith.constant -1.000000e+30 : f32
    %17 = vector.broadcast %cst_11 : f32 to vector<16x128xf32>
    %18 = arith.select %16, %13, %17 : vector<16x128xi1>, vector<16x128xf32>
    %cst_12 = arith.constant dense<0xFF800000> : vector<16xf32>
    %19 = vector.multi_reduction <maximumf>, %18, %cst_12 [1] : vector<16x128xf32> to vector<16xf32>
    %20 = vector.shape_cast %19 : vector<16xf32> to vector<16x1xf32>
    %21 = vector.broadcast %20 : vector<16x1xf32> to vector<16x128xf32>
    %22 = arith.subf %18, %21 : vector<16x128xf32>
    %23 = math.exp %22 : vector<16x128xf32>
    %cst_13 = arith.constant dense<0.000000e+00> : vector<16xf32>
    %24 = vector.multi_reduction <add>, %23, %cst_13 [1] : vector<16x128xf32> to vector<16xf32>
    %25 = vector.shape_cast %24 : vector<16xf32> to vector<16x1xf32>
    %26 = vector.broadcast %25 : vector<16x1xf32> to vector<16x128xf32>
    %27 = arith.divf %23, %26 : vector<16x128xf32>
    %c0_14 = arith.constant 0 : index
    %c0_15 = arith.constant 0 : index
    %28 = vector.load %arg6[%c0_14, %c0_15] : memref<16x128xf32, #tpu.memory_space<vmem>>, vector<16x128xf32>
    tpu.vector_store %arg6[%c0_14, %c0_15], %27 {strides = array<i32>} : memref<16x128xf32, #tpu.memory_space<vmem>>, vector<16x128xf32>,
    return
  }
  func.func @transform_0(%arg0: i32) -> (i32, i32) {
    %c0_i32 = arith.constant 0 : i32
    %c0_i32_0 = arith.constant 0 : i32
    return %arg0, %c0_i32 : i32, i32
  }
  func.func @transform_1(%arg0: i32) -> (i32, i32) {
    %c0_i32 = arith.constant 0 : i32
    %c0_i32_0 = arith.constant 0 : i32
    %c0_i32_1 = arith.constant 0 : i32
    return %c0_i32, %c0_i32_0 : i32, i32
  }
  func.func @transform_2(%arg0: i32) -> (i32, i32) {
    %c0_i32 = arith.constant 0 : i32
    %c0_i32_0 = arith.constant 0 : i32
    %c0_i32_1 = arith.constant 0 : i32
    return %c0_i32, %c0_i32_0 : i32, i32
  }
  func.func @transform_3(%arg0: i32) -> (i32, i32) {
    %c0_i32 = arith.constant 0 : i32
    %c0_i32_0 = arith.constant 0 : i32
    %c0_i32_1 = arith.constant 0 : i32
    return %c0_i32, %c0_i32_0 : i32, i32
  }
  func.func @transform_4(%arg0: i32) -> (i32, i32) {
    %c0_i32 = arith.constant 0 : i32
    %c0_i32_0 = arith.constant 0 : i32
    %c0_i32_1 = arith.constant 0 : i32
    return %c0_i32, %c0_i32_0 : i32, i32
  }
  func.func @transform_5(%arg0: i32) -> (i32, i32) {
    %c0_i32 = arith.constant 0 : i32
    %c0_i32_0 = arith.constant 0 : i32
    return %arg0, %c0_i32 : i32, i32
  }
}

</mosaic_0001>

<bundles_post_ra>
// kernel: tpu_custom_call.1
= control target key start
LH: loop header
LB: loop body
LE: loop exit
PB: predicated region body
PF: predicated region fallthrough
CT: control target
= control target key end

     0   :  { %10 = vsyncpa [#allocation3], 0  ;;  %s12429_s0 = inlined_call_operand.hbm [shape: bf16[16,2560], index: 0, kind: input, shape index: {}]   ;;  %s12430_s1 = inlined_call_operand.hbm [shape: bf16[2560,1024], index: 1, kind: input, shape index: {}]   ;;  %s12431_s2 = inlined_call_operand.hbm [shape: f32[1,1024], index: 2, kind: input, shape index: {}]   ;;  %s12432_s3 = inlined_call_operand.hbm [shape: bf16[1024,128], index: 3, kind: input, shape index: {}]   ;;  %s12433_s4 = inlined_call_operand.hbm [shape: f32[1,128], index: 4, kind: input, shape index: {}]   ;;  %s12434_s5 = inlined_call_operand.hbm [shape: f32[16,128], index: 5, kind: output, shape index: {}]  }
   0x1   :  { %11 = vsyncpa [#allocation6], 0 }
   0x2   :  { %12 = vsyncpa [#allocation9], 0 }
   0x3   :  { %13 = vsyncpa [#allocation4], 0  ;;  %s12289_s18 = smov [#allocation5]   ;;  %s12149_s22 = scalar_lea.hbm %s12430_s1, 163840 }
   0x4   :  { %s31_s19 = sshll.u32 %s12289_s18, 4  ;;  %p12150_p0 = scmp.ne.s32.totalorder %s12430_s1, %s12149_s22  ;;  %s32_s19 = int_to_ptr.vmem [resolvable:$true] %s31_s19 }
   0x5   :  { %p12153_p1 = scmp.lt.u32.totalorder %s12149_s22, %s12430_s1 }
   0x7   :  { %p12155_p2 = pnand %p12153_p1, %p12150_p0 }
   0x9   :  { %12158 = shalt.err (!%p12155_p2)
}
   0xa   :  { %s12159_s27 = scalar_lea.vmem %s32_s19, 163840  ;;  %p12164_p4 = scmp.lt.s32.totalorder %s32_s19, %s32_s19 }
   0xb   :  { %p12160_p3 = scmp.ne.s32.totalorder %s32_s19, %s12159_s27  ;;  %p12165_p5 = scmp.lt.s32.totalorder %s12159_s27, %s12159_s27 }
   0xd   :  { %p12166_p6 = por %p12165_p5, %p12164_p4 }
   0xf   :  { %p12167_p7 = pnand %p12166_p6, %p12160_p3 }
  0x11   :  { %12170 = shalt.err (!%p12167_p7)
}
  0x12   :  { %s12290_s28 = smov 512   ;;  %s12291_s29 = smov 32  }
  0x13   :  { %37 = dma.hbm_to_vmem [thread:$0]  %s12430_s1, 163840, %s32_s19, [#allocation6], %s12290_s28, %s12290_s28, %s12291_s29  }
  0x14   :  { %s12292_s7 = smov [#allocation8]   ;;  %s12171_s11 = scalar_lea.hbm %s12432_s3, 8192 }
  0x15   :  { %s53_s8 = sshll.u32 %s12292_s7, 4  ;;  %p12172_p8 = scmp.ne.s32.totalorder %s12432_s3, %s12171_s11  ;;  %s54_s8 = int_to_ptr.vmem [resolvable:$true] %s53_s8 }
  0x16   :  { %p12175_p9 = scmp.lt.u32.totalorder %s12171_s11, %s12432_s3 }
  0x18   :  { %p12177_p10 = pnand %p12175_p9, %p12172_p8 }
  0x1a   :  { %12180 = shalt.err (!%p12177_p10)
}
  0x1b   :  { %s12181_s16 = scalar_lea.vmem %s54_s8, 8192  ;;  %p12186_p12 = scmp.lt.s32.totalorder %s54_s8, %s54_s8 }
  0x1c   :  { %p12182_p11 = scmp.ne.s32.totalorder %s54_s8, %s12181_s16  ;;  %p12187_p13 = scmp.lt.s32.totalorder %s12181_s16, %s12181_s16 }
  0x1e   :  { %p12188_p0 = por %p12187_p13, %p12186_p12 }
  0x20   :  { %p12189_p1 = pnand %p12188_p0, %p12182_p11 }
  0x22   :  { %12192 = shalt.err (!%p12189_p1)
}
  0x23   :  { %s12293_s1 = smov 64   ;;  %s12294_s17 = smov 4  }
  0x24   :  { %59 = dma.hbm_to_vmem [thread:$0]  %s12432_s3, 8192, %s54_s8, [#allocation9], %s12293_s1, %s12293_s1, %s12294_s17  }
  0x25   :  { %s12295_s20 = smov [#allocation2]   ;;  %s12193_s24 = scalar_lea.hbm %s12429_s0, 2560 }
  0x26   :  { %s19_s21 = sshll.u32 %s12295_s20, 4  ;;  %p12194_p2 = scmp.ne.s32.totalorder %s12429_s0, %s12193_s24  ;;  %s20_s21 = int_to_ptr.vmem [resolvable:$true] %s19_s21 }
  0x27   :  { %p12197_p3 = scmp.lt.u32.totalorder %s12193_s24, %s12429_s0 }
  0x29   :  { %p12199_p4 = pnand %p12197_p3, %p12194_p2 }
  0x2b   :  { %12202 = shalt.err (!%p12199_p4)
}
  0x2c   :  { %s12203_s29 = scalar_lea.vmem %s20_s21, 2560  ;;  %p12208_p6 = scmp.lt.s32.totalorder %s20_s21, %s20_s21 }
  0x2d   :  { %p12204_p5 = scmp.ne.s32.totalorder %s20_s21, %s12203_s29  ;;  %p12209_p7 = scmp.lt.s32.totalorder %s12203_s29, %s12203_s29 }
  0x2f   :  { %p12210_p8 = por %p12209_p7, %p12208_p6 }
  0x31   :  { %p12211_p9 = pnand %p12210_p8, %p12204_p5 }
  0x33   :  { %12214 = shalt.err (!%p12211_p9)
}
  0x34   :  { %s12296_s3 = smov 1280   ;;  %s12297_s30 = smov 80  }
  0x35   :  { %25 = dma.hbm_to_vmem [thread:$0]  %s12429_s0, 2560, %s20_s21, [#allocation3], %s12296_s3, %s12296_s3, %s12297_s30  }
  0x36   :  { %s12298_s8 = smov [#allocation7]   ;;  %s12299_s10 = smov [#allocation10]  }
  0x37   :  { %s44_s9 = sshll.u32 %s12298_s8, 4  ;;  %s66_s11 = sshll.u32 %s12299_s10, 4  ;;  %s45_s9 = int_to_ptr.vmem [resolvable:$true] %s44_s9  ;;  %s67_s11 = int_to_ptr.vmem [resolvable:$true] %s66_s11 }
  0x38   :  { %s12215_s14 = scalar_lea.hbm %s12431_s2, 128 }
  0x39   :  { %p12216_p10 = scmp.ne.s32.totalorder %s12431_s2, %s12215_s14  ;;  %p12219_p11 = scmp.lt.u32.totalorder %s12215_s14, %s12431_s2 }
  0x3b   :  { %p12221_p12 = pnand %p12219_p11, %p12216_p10 }
  0x3d   :  { %12224 = shalt.err (!%p12221_p12)
}
  0x3e   :  { %s12225_s0 = scalar_lea.vmem %s45_s9, 128  ;;  %p12230_p0 = scmp.lt.s32.totalorder %s45_s9, %s45_s9 }
  0x3f   :  { %p12226_p13 = scmp.ne.s32.totalorder %s45_s9, %s12225_s0  ;;  %p12231_p1 = scmp.lt.s32.totalorder %s12225_s0, %s12225_s0 }
  0x41   :  { %p12232_p2 = por %p12231_p1, %p12230_p0 }
  0x43   :  { %p12233_p3 = pnand %p12232_p2, %p12226_p13 }
  0x45   :  { %12236 = shalt.err (!%p12233_p3)
}
  0x46   :  { %47 = dma.hbm_to_vmem [thread:$0]  %s12431_s2, 128, %s45_s9, [#allocation6]  }
  0x47   :  { %s12237_s22 = scalar_lea.hbm %s12433_s4, 16 }
  0x48   :  { %p12238_p4 = scmp.ne.s32.totalorder %s12433_s4, %s12237_s22  ;;  %p12241_p5 = scmp.lt.u32.totalorder %s12237_s22, %s12433_s4 }
  0x4a   :  { %p12243_p6 = pnand %p12241_p5, %p12238_p4 }
  0x4c   :  { %12246 = shalt.err (!%p12243_p6)
}
  0x4d   :  { %s12247_s27 = scalar_lea.vmem %s67_s11, 16  ;;  %s12251_s28 = scalar_lea.vmem %s67_s11, 32 }
  0x4e   :  { %p12248_p7 = scmp.ne.s32.totalorder %s67_s11, %s12247_s27  ;;  %p12252_p8 = scmp.lt.s32.totalorder %s67_s11, %s67_s11 }
  0x4f   :  { %p12253_p9 = scmp.lt.s32.totalorder %s12251_s28, %s12247_s27 }
  0x51   :  { %p12254_p10 = por %p12253_p9, %p12252_p8 }
  0x53   :  { %p12255_p11 = pnand %p12254_p10, %p12248_p7 }
  0x55   :  { %12258 = shalt.err (!%p12255_p11)
}
  0x56   :  { %69 = dma.hbm_to_vmem [thread:$0]  %s12433_s4, 16, %s67_s11, [#allocation9]  }
  0x57   :  { %12281 = dma.done.wait [#allocation3], 2560  }
  0x58   :  { %12282 = vsyncadd [#allocation3], 4294964736 }
  0x59   :  { %12283 = dma.done.wait [#allocation6], 163968  }
  0x5a   :  { %12284 = vsyncadd [#allocation6], 4294803328 }
  0x5b   :  { %12285 = dma.done.wait [#allocation9], 8208  }
  0x5c   :  { %12286 = vsyncadd [#allocation9], 4294959088  ;;  %v106_v0 = vld [vmem:[#allocation5] sm:$0xff]  ;;  %v107_v2 = vld [vmem:[#allocation5 + $0x8] sm:$0xff]  ;;  %s12300_s4 = smov [#allocation11]  }
  0x5d   :  { %v110_v1 = vld [vmem:[#allocation5 + $0x20] sm:$0xff]  ;;  %v111_v4 = vld [vmem:[#allocation5 + $0x28] sm:$0xff]  ;;  %s10385_s3 = sshll.u32 %s12300_s4, 4  ;;  %s10386_s3 = int_to_ptr.vmem [resolvable:$true] %s10385_s3 }
  0x5e   :  { %v10420_v3 = vcombine.high %v106_v0, %v110_v1  ;;  %v10419_v5 = vcombine.low %v106_v0, %v110_v1  ;;  %v114_v6 = vld [vmem:[#allocation5 + $0x40] sm:$0xff]  ;;  %v10422_v8 = vcombine.high %v107_v2, %v111_v4  ;;  %v10421_v9 = vcombine.low %v107_v2, %v111_v4  ;;  %v115_v11 = vld [vmem:[#allocation5 + $0x48] sm:$0xff]  ;;  %s12259_s30 = scalar_lea.vmem %s10386_s3, 256  ;;  %p12264_p13 = scmp.lt.s32.totalorder %s10386_s3, %s10386_s3 }
  0x5f   :  { %v118_v7 = vld [vmem:[#allocation5 + $0x60] sm:$0xff]  ;;  %v119_v12 = vld [vmem:[#allocation5 + $0x68] sm:$0xff]  ;;  %p12260_p12 = scmp.ne.s32.totalorder %s10386_s3, %s12259_s30  ;;  %p12265_p0 = scmp.lt.s32.totalorder %s12259_s30, %s12259_s30 }
  0x60   :  { %v10428_v10 = vcombine.high %v114_v6, %v118_v7  ;;  %v122_v13 = vld [vmem:[#allocation5 + $0x80] sm:$0xff]  ;;  %7928 = vmatprep.subr.bf16.mxu0 %v10420_v3  ;;  %v10430_v14 = vcombine.high %v115_v11, %v119_v12  ;;  %v123_v16 = vld [vmem:[#allocation5 + $0x88] sm:$0xff]  ;;  %8358 = vmatprep.subr.bf16.mxu1 %v10422_v8  ;;  %v10427_v18 = vcombine.low %v114_v6, %v118_v7 }
  0x61   :  { %v126_v15 = vld [vmem:[#allocation5 + $0xa0] sm:$0xff]  ;;  %v127_v17 = vld [vmem:[#allocation5 + $0xa8] sm:$0xff]  ;;  %7929 = vmatpush1.bf16.msra.mxu0 %v10419_v5  ;;  %8359 = vmatpush1.bf16.msra.mxu1 %v10421_v9  ;;  %v10429_v19 = vcombine.low %v115_v11, %v119_v12  ;;  %p12266_p1 = por %p12265_p0, %p12264_p13 }
  0x62   :  { %7930 = vmatprep.subr.bf16.mxu0 %v10428_v10  ;;  %v10436_v20 = vcombine.high %v122_v13, %v126_v15  ;;  %8360 = vmatprep.subr.bf16.mxu1 %v10430_v14  ;;  %v10438_v21 = vcombine.high %v123_v16, %v127_v17  ;;  %v130_v22 = vld [vmem:[#allocation5 + $0xc0] sm:$0xff]  ;;  %v131_v24 = vld [vmem:[#allocation5 + $0xc8] sm:$0xff]  ;;  %v10435_v26 = vcombine.low %v122_v13, %v126_v15 }
  0x63   :  { %v134_v23 = vld [vmem:[#allocation5 + $0xe0] sm:$0xff]  ;;  %v135_v25 = vld [vmem:[#allocation5 + $0xe8] sm:$0xff]  ;;  %v10437_v27 = vcombine.low %v123_v16, %v127_v17  ;;  %p12267_p2 = pnand %p12266_p1, %p12260_p12 }
  0x64   :  { %v10444_v28 = vcombine.high %v130_v22, %v134_v23  ;;  %v10446_v29 = vcombine.high %v131_v24, %v135_v25  ;;  %v138_v30 = vld [vmem:[#allocation5 + $0x100] sm:$0xff]  ;;  %v139_v32 = vld [vmem:[#allocation5 + $0x108] sm:$0xff]  ;;  %v10443_v34 = vcombine.low %v130_v22, %v134_v23  ;;  %v10445_v35 = vcombine.low %v131_v24, %v135_v25 }
  0x65   :  { %7931 = vmatpush1.bf16.msra.mxu0 %v10427_v18  ;;  %8361 = vmatpush1.bf16.msra.mxu1 %v10429_v19  ;;  %v142_v31 = vld [vmem:[#allocation5 + $0x120] sm:$0xff]  ;;  %v143_v33 = vld [vmem:[#allocation5 + $0x128] sm:$0xff] }
  0x66   :  { %7932 = vmatprep.subr.bf16.mxu0 %v10436_v20  ;;  %8362 = vmatprep.subr.bf16.mxu1 %v10438_v21  ;;  %v10452_v36 = vcombine.high %v138_v30, %v142_v31  ;;  %v10454_v37 = vcombine.high %v139_v32, %v143_v33  ;;  %v146_v38 = vld [vmem:[#allocation5 + $0x140] sm:$0xff]  ;;  %v147_v40 = vld [vmem:[#allocation5 + $0x148] sm:$0xff]  ;;  %v10451_v42 = vcombine.low %v138_v30, %v142_v31 }
  0x67   :  { %v150_v39 = vld [vmem:[#allocation5 + $0x160] sm:$0xff]  ;;  %v151_v41 = vld [vmem:[#allocation5 + $0x168] sm:$0xff]  ;;  %v10453_v43 = vcombine.low %v139_v32, %v143_v33 }
  0x68   :  { %v10460_v44 = vcombine.high %v146_v38, %v150_v39  ;;  %v10462_v45 = vcombine.high %v147_v40, %v151_v41  ;;  %v154_v46 = vld [vmem:[#allocation5 + $0x180] sm:$0xff]  ;;  %v155_v48 = vld [vmem:[#allocation5 + $0x188] sm:$0xff]  ;;  %v10459_v50 = vcombine.low %v146_v38, %v150_v39  ;;  %v10461_v51 = vcombine.low %v147_v40, %v151_v41 }
  0x69   :  { %7933 = vmatpush1.bf16.msra.mxu0 %v10435_v26  ;;  %8363 = vmatpush1.bf16.msra.mxu1 %v10437_v27  ;;  %v158_v47 = vld [vmem:[#allocation5 + $0x1a0] sm:$0xff]  ;;  %v159_v49 = vld [vmem:[#allocation5 + $0x1a8] sm:$0xff] }
  0x6a   :  { %7934 = vmatprep.subr.bf16.mxu0 %v10444_v28  ;;  %8364 = vmatprep.subr.bf16.mxu1 %v10446_v29  ;;  %v10468_v52 = vcombine.high %v154_v46, %v158_v47  ;;  %v10470_v53 = vcombine.high %v155_v48, %v159_v49  ;;  %v162_v54 = vld [vmem:[#allocation5 + $0x1c0] sm:$0xff]  ;;  %v163_v57 = vld [vmem:[#allocation5 + $0x1c8] sm:$0xff]  ;;  %v10467_v59 = vcombine.low %v154_v46, %v158_v47 }
  0x6b   :  { %v166_v55 = vld [vmem:[#allocation5 + $0x1e0] sm:$0xff]  ;;  %v167_v58 = vld [vmem:[#allocation5 + $0x1e8] sm:$0xff]  ;;  %v10469_v60 = vcombine.low %v155_v48, %v159_v49 }
  0x6c   :  { %v12026_v56 = vld [vmem:[#allocation2 + $0x4] ss:$80 sps:$4 sm:$0xff]   ;;  %v10476_v61 = vcombine.high %v162_v54, %v166_v55  ;;  %v10478_v62 = vcombine.high %v163_v57, %v167_v58  ;;  %v171_v1 = vld [vmem:[#allocation5 + $0x208] sm:$0xff]  ;;  %v10475_v3 = vcombine.low %v162_v54, %v166_v55  ;;  %v10477_v4 = vcombine.low %v163_v57, %v167_v58 }
  0x6d   :  { %7935 = vmatpush1.bf16.msra.mxu0 %v10443_v34  ;;  %8365 = vmatpush1.bf16.msra.mxu1 %v10445_v35  ;;  %v170_v63 = vld [vmem:[#allocation5 + $0x200] sm:$0xff]  ;;  %v175_v2 = vld [vmem:[#allocation5 + $0x228] sm:$0xff] }
  0x6e   :  { %7936 = vmatprep.subr.bf16.mxu0 %v10452_v36  ;;  %8366 = vmatprep.subr.bf16.mxu1 %v10454_v37  ;;  %v174_v0 = vld [vmem:[#allocation5 + $0x220] sm:$0xff]  ;;  %v10486_v6 = vcombine.high %v171_v1, %v175_v2  ;;  %v179_v9 = vld [vmem:[#allocation5 + $0x248] sm:$0xff]  ;;  %v10485_v12 = vcombine.low %v171_v1, %v175_v2 }
  0x6f   :  { %7960 = vmatprep.mubr.bf16.mxu0 %v12026_v56  ;;  %8390 = vmatprep.mubr.bf16.mxu1 %v12026_v56  ;;  %v10484_v5 = vcombine.high %v170_v63, %v174_v0  ;;  %v178_v7 = vld [vmem:[#allocation5 + $0x240] sm:$0xff]  ;;  %v183_v10 = vld [vmem:[#allocation5 + $0x268] sm:$0xff]  ;;  %v10483_v11 = vcombine.low %v170_v63, %v174_v0 }
  0x70   :  { %v182_v8 = vld [vmem:[#allocation5 + $0x260] sm:$0xff]  ;;  %v10494_v14 = vcombine.high %v179_v9, %v183_v10  ;;  %v187_v17 = vld [vmem:[#allocation5 + $0x288] sm:$0xff]  ;;  %v10493_v20 = vcombine.low %v179_v9, %v183_v10 }
  0x71   :  { %7937 = vmatpush1.bf16.msra.mxu0 %v10451_v42  ;;  %8367 = vmatpush1.bf16.msra.mxu1 %v10453_v43  ;;  %v10492_v13 = vcombine.high %v178_v7, %v182_v8  ;;  %v186_v15 = vld [vmem:[#allocation5 + $0x280] sm:$0xff]  ;;  %v191_v18 = vld [vmem:[#allocation5 + $0x2a8] sm:$0xff]  ;;  %v10491_v19 = vcombine.low %v178_v7, %v182_v8 }
  0x72   :  { %7938 = vmatprep.subr.bf16.mxu0 %v10460_v44  ;;  %8368 = vmatprep.subr.bf16.mxu1 %v10462_v45  ;;  %v190_v16 = vld [vmem:[#allocation5 + $0x2a0] sm:$0xff]  ;;  %v10502_v22 = vcombine.high %v187_v17, %v191_v18  ;;  %v195_v25 = vld [vmem:[#allocation5 + $0x2c8] sm:$0xff]  ;;  %v10501_v28 = vcombine.low %v187_v17, %v191_v18 }
  0x73   :  { %v10500_v21 = vcombine.high %v186_v15, %v190_v16  ;;  %v194_v23 = vld [vmem:[#allocation5 + $0x2c0] sm:$0xff]  ;;  %v199_v26 = vld [vmem:[#allocation5 + $0x2e8] sm:$0xff]  ;;  %v10499_v27 = vcombine.low %v186_v15, %v190_v16 }
  0x74   :  { %v198_v24 = vld [vmem:[#allocation5 + $0x2e0] sm:$0xff]  ;;  %v10510_v30 = vcombine.high %v195_v25, %v199_v26  ;;  %v203_v33 = vld [vmem:[#allocation5 + $0x308] sm:$0xff]  ;;  %v10509_v36 = vcombine.low %v195_v25, %v199_v26 }
  0x75   :  { %7939 = vmatpush1.bf16.msra.mxu0 %v10459_v50  ;;  %8369 = vmatpush1.bf16.msra.mxu1 %v10461_v51  ;;  %v10508_v29 = vcombine.high %v194_v23, %v198_v24  ;;  %v202_v31 = vld [vmem:[#allocation5 + $0x300] sm:$0xff]  ;;  %v207_v34 = vld [vmem:[#allocation5 + $0x328] sm:$0xff]  ;;  %v10507_v35 = vcombine.low %v194_v23, %v198_v24 }
  0x76   :  { %7940 = vmatprep.subr.bf16.mxu0 %v10468_v52  ;;  %8370 = vmatprep.subr.bf16.mxu1 %v10470_v53  ;;  %v206_v32 = vld [vmem:[#allocation5 + $0x320] sm:$0xff]  ;;  %v10518_v38 = vcombine.high %v203_v33, %v207_v34  ;;  %v211_v41 = vld [vmem:[#allocation5 + $0x348] sm:$0xff]  ;;  %v10517_v44 = vcombine.low %v203_v33, %v207_v34 }
  0x77   :  { %v10516_v37 = vcombine.high %v202_v31, %v206_v32  ;;  %v210_v39 = vld [vmem:[#allocation5 + $0x340] sm:$0xff]  ;;  %v215_v42 = vld [vmem:[#allocation5 + $0x368] sm:$0xff]  ;;  %v10515_v43 = vcombine.low %v202_v31, %v206_v32 }
  0x78   :  { %v214_v40 = vld [vmem:[#allocation5 + $0x360] sm:$0xff]  ;;  %v10526_v46 = vcombine.high %v211_v41, %v215_v42  ;;  %v219_v49 = vld [vmem:[#allocation5 + $0x388] sm:$0xff]  ;;  %v10525_v52 = vcombine.low %v211_v41, %v215_v42 }
  0x79   :  { %7941 = vmatpush1.bf16.msra.mxu0 %v10467_v59  ;;  %8371 = vmatpush1.bf16.msra.mxu1 %v10469_v60  ;;  %v10524_v45 = vcombine.high %v210_v39, %v214_v40  ;;  %v218_v47 = vld [vmem:[#allocation5 + $0x380] sm:$0xff]  ;;  %v223_v50 = vld [vmem:[#allocation5 + $0x3a8] sm:$0xff]  ;;  %v10523_v51 = vcombine.low %v210_v39, %v214_v40 }
  0x7a   :  { %7942 = vmatprep.subr.bf16.mxu0 %v10476_v61  ;;  %8372 = vmatprep.subr.bf16.mxu1 %v10478_v62  ;;  %v222_v48 = vld [vmem:[#allocation5 + $0x3a0] sm:$0xff]  ;;  %v10534_v54 = vcombine.high %v219_v49, %v223_v50  ;;  %v227_v57 = vld [vmem:[#allocation5 + $0x3c8] sm:$0xff]  ;;  %v10533_v60 = vcombine.low %v219_v49, %v223_v50 }
  0x7b   :  { %v10532_v53 = vcombine.high %v218_v47, %v222_v48  ;;  %v226_v55 = vld [vmem:[#allocation5 + $0x3c0] sm:$0xff]  ;;  %v231_v58 = vld [vmem:[#allocation5 + $0x3e8] sm:$0xff]  ;;  %v10531_v59 = vcombine.low %v218_v47, %v222_v48 }
  0x7c   :  { %v230_v56 = vld [vmem:[#allocation5 + $0x3e0] sm:$0xff]  ;;  %v10542_v62 = vcombine.high %v227_v57, %v231_v58  ;;  %v235_v1 = vld [vmem:[#allocation5 + $0x408] sm:$0xff] }
  0x7d   :  { %7943 = vmatpush1.bf16.msra.mxu0 %v10475_v3  ;;  %8373 = vmatpush1.bf16.msra.mxu1 %v10477_v4  ;;  %v10540_v61 = vcombine.high %v226_v55, %v230_v56  ;;  %v234_v63 = vld [vmem:[#allocation5 + $0x400] sm:$0xff]  ;;  %v239_v2 = vld [vmem:[#allocation5 + $0x428] sm:$0xff]  ;;  %v10539_v3 = vcombine.low %v226_v55, %v230_v56  ;;  %v10541_v4 = vcombine.low %v227_v57, %v231_v58 }
  0x7e   :  { %7944 = vmatprep.subr.bf16.mxu0 %v10484_v5  ;;  %8374 = vmatprep.subr.bf16.mxu1 %v10486_v6  ;;  %v238_v0 = vld [vmem:[#allocation5 + $0x420] sm:$0xff]  ;;  %v10550_v6 = vcombine.high %v235_v1, %v239_v2  ;;  %v243_v10 = vld [vmem:[#allocation5 + $0x448] sm:$0xff] }
  0x7f   :  { %v10548_v5 = vcombine.high %v234_v63, %v238_v0  ;;  %v242_v7 = vld [vmem:[#allocation5 + $0x440] sm:$0xff]  ;;  %v12029_v18 = vld [vmem:[#allocation2 + $0xc] ss:$80 sps:$4 sm:$0xff]  }
  0x80   :  { %v246_v8 = vld [vmem:[#allocation5 + $0x460] sm:$0xff]  ;;  %v267_v34 = vld [vmem:[#allocation5 + $0x508] sm:$0xff] }
  0x81   :  { %7945 = vmatpush1.bf16.msra.mxu0 %v10483_v11  ;;  %8375 = vmatpush1.bf16.msra.mxu1 %v10485_v12  ;;  %v12028_v9 = vld [vmem:[#allocation2] ss:$80 sps:$4 sm:$0xff]   ;;  %v247_v11 = vld [vmem:[#allocation5 + $0x468] sm:$0xff]  ;;  %v10547_v12 = vcombine.low %v234_v63, %v238_v0 }
  0x82   :  { %7946 = vmatprep.subr.bf16.mxu0 %v10492_v13  ;;  %8376 = vmatprep.subr.bf16.mxu1 %v10494_v14  ;;  %v10549_v13 = vcombine.low %v235_v1, %v239_v2  ;;  %v10556_v14 = vcombine.high %v242_v7, %v246_v8  ;;  %v250_v15 = vld [vmem:[#allocation5 + $0x480] sm:$0xff]  ;;  %v10558_v16 = vcombine.high %v243_v10, %v247_v11  ;;  %v275_v42 = vld [vmem:[#allocation5 + $0x548] sm:$0xff] }
  0x83   :  { %v254_v17 = vld [vmem:[#allocation5 + $0x4a0] sm:$0xff]  ;;  %v283_v50 = vld [vmem:[#allocation5 + $0x588] sm:$0xff] }
  0x84   :  { %v10564_v23 = vcombine.high %v250_v15, %v254_v17  ;;  %v258_v24 = vld [vmem:[#allocation5 + $0x4c0] sm:$0xff]  ;;  %v291_v58 = vld [vmem:[#allocation5 + $0x5c8] sm:$0xff] }
  0x85   :  { %7947 = vmatpush1.bf16.msra.mxu0 %v10491_v19  ;;  %8377 = vmatpush1.bf16.msra.mxu1 %v10493_v20  ;;  %v251_v19 = vld [vmem:[#allocation5 + $0x488] sm:$0xff]  ;;  %v262_v25 = vld [vmem:[#allocation5 + $0x4e0] sm:$0xff] }
  0x86   :  { %7948 = vmatprep.subr.bf16.mxu0 %v10500_v21  ;;  %8378 = vmatprep.subr.bf16.mxu1 %v10502_v22  ;;  %v255_v20 = vld [vmem:[#allocation5 + $0x4a8] sm:$0xff]  ;;  %v10555_v21 = vcombine.low %v242_v7, %v246_v8  ;;  %v10557_v22 = vcombine.low %v243_v10, %v247_v11  ;;  %v10572_v31 = vcombine.high %v258_v24, %v262_v25  ;;  %v266_v32 = vld [vmem:[#allocation5 + $0x500] sm:$0xff] }
  0x87   :  { %v10566_v26 = vcombine.high %v251_v19, %v255_v20  ;;  %v270_v33 = vld [vmem:[#allocation5 + $0x520] sm:$0xff]  ;;  %v299_v2 = vld [vmem:[#allocation5 + $0x608] sm:$0xff] }
  0x88   :  { %v10580_v39 = vcombine.high %v266_v32, %v270_v33  ;;  %v274_v40 = vld [vmem:[#allocation5 + $0x540] sm:$0xff]  ;;  %v307_v10 = vld [vmem:[#allocation5 + $0x648] sm:$0xff] }
  0x89   :  { %7949 = vmatpush1.bf16.msra.mxu0 %v10499_v27  ;;  %8379 = vmatpush1.bf16.msra.mxu1 %v10501_v28  ;;  %v259_v27 = vld [vmem:[#allocation5 + $0x4c8] sm:$0xff]  ;;  %v278_v41 = vld [vmem:[#allocation5 + $0x560] sm:$0xff] }
  0x8a   :  { %7950 = vmatprep.subr.bf16.mxu0 %v10508_v29  ;;  %8380 = vmatprep.subr.bf16.mxu1 %v10510_v30  ;;  %v263_v28 = vld [vmem:[#allocation5 + $0x4e8] sm:$0xff]  ;;  %v10563_v29 = vcombine.low %v250_v15, %v254_v17  ;;  %v10565_v30 = vcombine.low %v251_v19, %v255_v20  ;;  %v10588_v47 = vcombine.high %v274_v40, %v278_v41  ;;  %v282_v48 = vld [vmem:[#allocation5 + $0x580] sm:$0xff] }
  0x8b   :  { %v286_v49 = vld [vmem:[#allocation5 + $0x5a0] sm:$0xff]  ;;  %v319_v20 = vld [vmem:[#allocation5 + $0x6a8] sm:$0xff] }
  0x8c   :  { %v10596_v55 = vcombine.high %v282_v48, %v286_v49  ;;  %v290_v56 = vld [vmem:[#allocation5 + $0x5c0] sm:$0xff] }
  0x8d   :  { %7951 = vmatpush1.bf16.msra.mxu0 %v10507_v35  ;;  %8381 = vmatpush1.bf16.msra.mxu1 %v10509_v36  ;;  %v10574_v35 = vcombine.high %v259_v27, %v263_v28  ;;  %v271_v36 = vld [vmem:[#allocation5 + $0x528] sm:$0xff]  ;;  %v294_v57 = vld [vmem:[#allocation5 + $0x5e0] sm:$0xff] }
  0x8e   :  { %7952 = vmatprep.subr.bf16.mxu0 %v10516_v37  ;;  %8382 = vmatprep.subr.bf16.mxu1 %v10518_v38  ;;  %v10571_v37 = vcombine.low %v258_v24, %v262_v25  ;;  %v10573_v38 = vcombine.low %v259_v27, %v263_v28  ;;  %v10604_v63 = vcombine.high %v290_v56, %v294_v57  ;;  %v298_v0 = vld [vmem:[#allocation5 + $0x600] sm:$0xff]  ;;  %v327_v28 = vld [vmem:[#allocation5 + $0x6e8] sm:$0xff] }
  0x8f   :  { %v302_v1 = vld [vmem:[#allocation5 + $0x620] sm:$0xff] }
  0x90   :  { %v10612_v7 = vcombine.high %v298_v0, %v302_v1  ;;  %v306_v8 = vld [vmem:[#allocation5 + $0x640] sm:$0xff] }
  0x91   :  { %7953 = vmatpush1.bf16.msra.mxu0 %v10515_v43  ;;  %8383 = vmatpush1.bf16.msra.mxu1 %v10517_v44  ;;  %v10582_v43 = vcombine.high %v267_v34, %v271_v36  ;;  %v279_v44 = vld [vmem:[#allocation5 + $0x568] sm:$0xff]  ;;  %v318_v17 = vld [vmem:[#allocation5 + $0x6a0] sm:$0xff] }
  0x92   :  { %7954 = vmatprep.subr.bf16.mxu0 %v10524_v45  ;;  %8384 = vmatprep.subr.bf16.mxu1 %v10526_v46  ;;  %v10579_v45 = vcombine.low %v266_v32, %v270_v33  ;;  %v10581_v46 = vcombine.low %v267_v34, %v271_v36  ;;  %v322_v24 = vld [vmem:[#allocation5 + $0x6c0] sm:$0xff]  ;;  %v331_v34 = vld [vmem:[#allocation5 + $0x708] sm:$0xff] }
  0x93   :  { %v326_v25 = vld [vmem:[#allocation5 + $0x6e0] sm:$0xff]  ;;  %v335_v36 = vld [vmem:[#allocation5 + $0x728] sm:$0xff] }
  0x94   :  { %v330_v32 = vld [vmem:[#allocation5 + $0x700] sm:$0xff] }
  0x95   :  { %7955 = vmatpush1.bf16.msra.mxu0 %v10523_v51  ;;  %8385 = vmatpush1.bf16.msra.mxu1 %v10525_v52  ;;  %v10590_v51 = vcombine.high %v275_v42, %v279_v44  ;;  %v287_v52 = vld [vmem:[#allocation5 + $0x5a8] sm:$0xff]  ;;  %v334_v33 = vld [vmem:[#allocation5 + $0x720] sm:$0xff] }
  0x96   :  { %7956 = vmatprep.subr.bf16.mxu0 %v10532_v53  ;;  %8386 = vmatprep.subr.bf16.mxu1 %v10534_v54  ;;  %v10587_v53 = vcombine.low %v274_v40, %v278_v41  ;;  %v10589_v54 = vcombine.low %v275_v42, %v279_v44  ;;  %v338_v40 = vld [vmem:[#allocation5 + $0x740] sm:$0xff]  ;;  %v339_v42 = vld [vmem:[#allocation5 + $0x748] sm:$0xff] }
  0x97   :  { %v342_v41 = vld [vmem:[#allocation5 + $0x760] sm:$0xff]  ;;  %v343_v44 = vld [vmem:[#allocation5 + $0x768] sm:$0xff] }
  0x99   :  { %7957 = vmatpush1.bf16.msra.mxu0 %v10531_v59  ;;  %8387 = vmatpush1.bf16.msra.mxu1 %v10533_v60  ;;  %v10598_v59 = vcombine.high %v283_v50, %v287_v52  ;;  %v295_v60 = vld [vmem:[#allocation5 + $0x5e8] sm:$0xff] }
  0x9a   :  { %7958 = vmatprep.subr.bf16.mxu0 %v10540_v61  ;;  %8388 = vmatprep.subr.bf16.mxu1 %v10542_v62  ;;  %v10595_v61 = vcombine.low %v282_v48, %v286_v49  ;;  %v10597_v62 = vcombine.low %v283_v50, %v287_v52  ;;  %v346_v48 = vld [vmem:[#allocation5 + $0x780] sm:$0xff]  ;;  %v347_v50 = vld [vmem:[#allocation5 + $0x788] sm:$0xff] }
  0x9b   :  { %v350_v49 = vld [vmem:[#allocation5 + $0x7a0] sm:$0xff]  ;;  %v351_v52 = vld [vmem:[#allocation5 + $0x7a8] sm:$0xff] }
  0x9d   :  { %7959 = vmatpush1.bf16.msra.mxu0 %v10539_v3  ;;  %8389 = vmatpush1.bf16.msra.mxu1 %v10541_v4  ;;  %v10606_v3 = vcombine.high %v291_v58, %v295_v60  ;;  %v303_v4 = vld [vmem:[#allocation5 + $0x628] sm:$0xff] }
  0x9e   :  { %7971 = vmatprep.subr.bf16.mxu0 %v10548_v5  ;;  %8401 = vmatprep.subr.bf16.mxu1 %v10550_v6  ;;  %v10603_v5 = vcombine.low %v290_v56, %v294_v57  ;;  %v10605_v6 = vcombine.low %v291_v58, %v295_v60  ;;  %v10614_v11 = vcombine.high %v299_v2, %v303_v4  ;;  %v354_v56 = vld [vmem:[#allocation5 + $0x7c0] sm:$0xff]  ;;  %v355_v58 = vld [vmem:[#allocation5 + $0x7c8] sm:$0xff] }
  0x9f   :  { %v358_v57 = vld [vmem:[#allocation5 + $0x7e0] sm:$0xff]  ;;  %v359_v60 = vld [vmem:[#allocation5 + $0x7e8] sm:$0xff] }
  0xa0   :  { %7961 = vmatmul.mubr.bf16.vlgmr.msra.gmra.mrb[0].mxu0 %v12028_v9  ;;  %8391 = vmatmul.mubr.bf16.vlgmr.msra.gmra.mrb[0].mxu1 %v12028_v9  ;;  %v310_v9 = vld [vmem:[#allocation5 + $0x660] sm:$0xff] }
  0xa1   :  { %7972 = vmatpush1.bf16.msra.mxu0 %v10547_v12  ;;  %8402 = vmatpush1.bf16.msra.mxu1 %v10549_v13  ;;  %v311_v12 = vld [vmem:[#allocation5 + $0x668] sm:$0xff]  ;;  %v10611_v13 = vcombine.low %v298_v0, %v302_v1  ;;  %v10620_v15 = vcombine.high %v306_v8, %v310_v9  ;;  %v362_v0 = vld [vmem:[#allocation5 + $0x800] sm:$0xff] }
  0xa2   :  { %7973 = vmatprep.subr.bf16.mxu0 %v10556_v14  ;;  %8403 = vmatprep.subr.bf16.mxu1 %v10558_v16  ;;  %v10613_v14 = vcombine.low %v299_v2, %v303_v4  ;;  %v314_v16 = vld [vmem:[#allocation5 + $0x680] sm:$0xff]  ;;  %v10622_v19 = vcombine.high %v307_v10, %v311_v12  ;;  %v363_v2 = vld [vmem:[#allocation5 + $0x808] sm:$0xff] }
  0xa3   :  { %8003 = vmatprep.mubr.bf16.mxu0 %v12029_v18  ;;  %8433 = vmatprep.mubr.bf16.mxu1 %v12029_v18  ;;  %v315_v18 = vld [vmem:[#allocation5 + $0x688] sm:$0xff]  ;;  %v366_v1 = vld [vmem:[#allocation5 + $0x820] sm:$0xff] }
  0xa4   :  { %v10630_v27 = vcombine.high %v315_v18, %v319_v20  ;;  %v367_v4 = vld [vmem:[#allocation5 + $0x828] sm:$0xff] }
  0xa5   :  { %7974 = vmatpush1.bf16.msra.mxu0 %v10555_v21  ;;  %8404 = vmatpush1.bf16.msra.mxu1 %v10557_v22  ;;  %v10619_v21 = vcombine.low %v306_v8, %v310_v9  ;;  %v10621_v22 = vcombine.low %v307_v10, %v311_v12  ;;  %v12031_v8 = vld [vmem:[#allocation2 + $0x8] ss:$80 sps:$4 sm:$0xff]   ;;  %v370_v9 = vld [vmem:[#allocation5 + $0x840] sm:$0xff]  ;;  %v10678_v12 = vcombine.high %v363_v2, %v367_v4 }
  0xa6   :  { %7975 = vmatprep.subr.bf16.mxu0 %v10564_v23  ;;  %8405 = vmatprep.subr.bf16.mxu1 %v10566_v26  ;;  %v10628_v23 = vcombine.high %v314_v16, %v318_v17  ;;  %v323_v26 = vld [vmem:[#allocation5 + $0x6c8] sm:$0xff]  ;;  %v374_v10 = vld [vmem:[#allocation5 + $0x860] sm:$0xff] }
  0xa9   :  { %7976 = vmatpush1.bf16.msra.mxu0 %v10563_v29  ;;  %8406 = vmatpush1.bf16.msra.mxu1 %v10565_v30  ;;  %v10627_v29 = vcombine.low %v314_v16, %v318_v17  ;;  %v10629_v30 = vcombine.low %v315_v18, %v319_v20  ;;  %v10684_v16 = vcombine.high %v370_v9, %v374_v10  ;;  %v378_v17 = vld [vmem:[#allocation5 + $0x880] sm:$0xff]  ;;  %v379_v20 = vld [vmem:[#allocation5 + $0x888] sm:$0xff] }
  0xaa   :  { %7977 = vmatprep.subr.bf16.mxu0 %v10572_v31  ;;  %8407 = vmatprep.subr.bf16.mxu1 %v10574_v35  ;;  %v10636_v31 = vcombine.high %v322_v24, %v326_v25  ;;  %v10638_v35 = vcombine.high %v323_v26, %v327_v28  ;;  %v382_v18 = vld [vmem:[#allocation5 + $0x8a0] sm:$0xff] }
  0xad   :  { %7978 = vmatpush1.bf16.msra.mxu0 %v10571_v37  ;;  %8408 = vmatpush1.bf16.msra.mxu1 %v10573_v38  ;;  %v10635_v37 = vcombine.low %v322_v24, %v326_v25  ;;  %v10637_v38 = vcombine.low %v323_v26, %v327_v28  ;;  %v10692_v25 = vcombine.high %v378_v17, %v382_v18  ;;  %v386_v26 = vld [vmem:[#allocation5 + $0x8c0] sm:$0xff]  ;;  %v387_v28 = vld [vmem:[#allocation5 + $0x8c8] sm:$0xff] }
  0xae   :  { %7979 = vmatprep.subr.bf16.mxu0 %v10580_v39  ;;  %8409 = vmatprep.subr.bf16.mxu1 %v10582_v43  ;;  %v10644_v39 = vcombine.high %v330_v32, %v334_v33  ;;  %v10646_v43 = vcombine.high %v331_v34, %v335_v36 }
  0xb1   :  { %7980 = vmatpush1.bf16.msra.mxu0 %v10579_v45  ;;  %8410 = vmatpush1.bf16.msra.mxu1 %v10581_v46  ;;  %v10643_v45 = vcombine.low %v330_v32, %v334_v33  ;;  %v10645_v46 = vcombine.low %v331_v34, %v335_v36  ;;  %v394_v34 = vld [vmem:[#allocation5 + $0x900] sm:$0xff]  ;;  %v395_v36 = vld [vmem:[#allocation5 + $0x908] sm:$0xff] }
  0xb2   :  { %7981 = vmatprep.subr.bf16.mxu0 %v10588_v47  ;;  %8411 = vmatprep.subr.bf16.mxu1 %v10590_v51  ;;  %v10652_v47 = vcombine.high %v338_v40, %v342_v41  ;;  %v10654_v51 = vcombine.high %v339_v42, %v343_v44 }
  0xb5   :  { %7982 = vmatpush1.bf16.msra.mxu0 %v10587_v53  ;;  %8412 = vmatpush1.bf16.msra.mxu1 %v10589_v54  ;;  %v10651_v53 = vcombine.low %v338_v40, %v342_v41  ;;  %v10653_v54 = vcombine.low %v339_v42, %v343_v44  ;;  %v406_v44 = vld [vmem:[#allocation5 + $0x960] sm:$0xff] }
  0xb6   :  { %7983 = vmatprep.subr.bf16.mxu0 %v10596_v55  ;;  %8413 = vmatprep.subr.bf16.mxu1 %v10598_v59  ;;  %v10660_v55 = vcombine.high %v346_v48, %v350_v49  ;;  %v10662_v59 = vcombine.high %v347_v50, %v351_v52 }
  0xb9   :  { %7984 = vmatpush1.bf16.msra.mxu0 %v10595_v61  ;;  %8414 = vmatpush1.bf16.msra.mxu1 %v10597_v62  ;;  %v10659_v61 = vcombine.low %v346_v48, %v350_v49  ;;  %v10661_v62 = vcombine.low %v347_v50, %v351_v52  ;;  %v414_v52 = vld [vmem:[#allocation5 + $0x9a0] sm:$0xff] }
  0xba   :  { %7985 = vmatprep.subr.bf16.mxu0 %v10604_v63  ;;  %8415 = vmatprep.subr.bf16.mxu1 %v10606_v3  ;;  %v10668_v63 = vcombine.high %v354_v56, %v358_v57  ;;  %v10670_v3 = vcombine.high %v355_v58, %v359_v60 }
  0xbd   :  { %7986 = vmatpush1.bf16.msra.mxu0 %v10603_v5  ;;  %8416 = vmatpush1.bf16.msra.mxu1 %v10605_v6  ;;  %v10667_v5 = vcombine.low %v354_v56, %v358_v57  ;;  %v10669_v6 = vcombine.low %v355_v58, %v359_v60  ;;  %v422_v60 = vld [vmem:[#allocation5 + $0x9e0] sm:$0xff] }
  0xbe   :  { %7987 = vmatprep.subr.bf16.mxu0 %v10612_v7  ;;  %8417 = vmatprep.subr.bf16.mxu1 %v10614_v11  ;;  %v10676_v7 = vcombine.high %v362_v0, %v366_v1  ;;  %v371_v11 = vld [vmem:[#allocation5 + $0x848] sm:$0xff] }
  0xc1   :  { %7988 = vmatpush1.bf16.msra.mxu0 %v10611_v13  ;;  %8418 = vmatpush1.bf16.msra.mxu1 %v10613_v14  ;;  %v375_v13 = vld [vmem:[#allocation5 + $0x868] sm:$0xff]  ;;  %v10675_v14 = vcombine.low %v362_v0, %v366_v1 }
  0xc2   :  { %7989 = vmatprep.subr.bf16.mxu0 %v10620_v15  ;;  %8419 = vmatprep.subr.bf16.mxu1 %v10622_v19  ;;  %v10677_v15 = vcombine.low %v363_v2, %v367_v4  ;;  %v10686_v19 = vcombine.high %v371_v11, %v375_v13  ;;  %v10685_v24 = vcombine.low %v371_v11, %v375_v13  ;;  %v430_v4 = vld [vmem:[#allocation5 + $0xa20] sm:$0xff]  ;;  %v435_v13 = vld [vmem:[#allocation5 + $0xa48] sm:$0xff] }
  0xc3   :  { %v434_v11 = vld [vmem:[#allocation5 + $0xa40] sm:$0xff] }
  0xc5   :  { %7990 = vmatpush1.bf16.msra.mxu0 %v10619_v21  ;;  %8420 = vmatpush1.bf16.msra.mxu1 %v10621_v22  ;;  %v383_v21 = vld [vmem:[#allocation5 + $0x8a8] sm:$0xff]  ;;  %v12032_v22 = vld [vmem:[#allocation2 + $0x14] ss:$80 sps:$4 sm:$0xff]  }
  0xc6   :  { %7991 = vmatprep.subr.bf16.mxu0 %v10628_v23  ;;  %8421 = vmatprep.subr.bf16.mxu1 %v10630_v27  ;;  %v10683_v23 = vcombine.low %v370_v9, %v374_v10  ;;  %v390_v27 = vld [vmem:[#allocation5 + $0x8e0] sm:$0xff]  ;;  %v10693_v32 = vcombine.low %v379_v20, %v383_v21 }
  0xc7   :  { %v10700_v33 = vcombine.high %v386_v26, %v390_v27 }
  0xc9   :  { %7992 = vmatpush1.bf16.msra.mxu0 %v10627_v29  ;;  %8422 = vmatpush1.bf16.msra.mxu1 %v10629_v30  ;;  %v10694_v29 = vcombine.high %v379_v20, %v383_v21  ;;  %v391_v30 = vld [vmem:[#allocation5 + $0x8e8] sm:$0xff]  ;;  %v446_v20 = vld [vmem:[#allocation5 + $0xaa0] sm:$0xff] }
  0xca   :  { %7993 = vmatprep.subr.bf16.mxu0 %v10636_v31  ;;  %8423 = vmatprep.subr.bf16.mxu1 %v10638_v35  ;;  %v10691_v31 = vcombine.low %v378_v17, %v382_v18  ;;  %v398_v35 = vld [vmem:[#allocation5 + $0x920] sm:$0xff]  ;;  %v10701_v40 = vcombine.low %v387_v28, %v391_v30  ;;  %v443_v21 = vld [vmem:[#allocation5 + $0xa88] sm:$0xff] }
  0xcb   :  { %v10708_v41 = vcombine.high %v394_v34, %v398_v35 }
  0xcd   :  { %7994 = vmatpush1.bf16.msra.mxu0 %v10635_v37  ;;  %8424 = vmatpush1.bf16.msra.mxu1 %v10637_v38  ;;  %v10702_v37 = vcombine.high %v387_v28, %v391_v30  ;;  %v399_v38 = vld [vmem:[#allocation5 + $0x928] sm:$0xff]  ;;  %v454_v28 = vld [vmem:[#allocation5 + $0xae0] sm:$0xff] }
  0xce   :  { %7995 = vmatprep.subr.bf16.mxu0 %v10644_v39  ;;  %8425 = vmatprep.subr.bf16.mxu1 %v10646_v43  ;;  %v10699_v39 = vcombine.low %v386_v26, %v390_v27  ;;  %v10710_v42 = vcombine.high %v395_v36, %v399_v38  ;;  %v402_v43 = vld [vmem:[#allocation5 + $0x940] sm:$0xff]  ;;  %v10709_v48 = vcombine.low %v395_v36, %v399_v38  ;;  %v455_v30 = vld [vmem:[#allocation5 + $0xae8] sm:$0xff] }
  0xcf   :  { %v10716_v49 = vcombine.high %v402_v43, %v406_v44  ;;  %v450_v27 = vld [vmem:[#allocation5 + $0xac0] sm:$0xff]  ;;  %v463_v38 = vld [vmem:[#allocation5 + $0xb28] sm:$0xff] }
  0xd0   :  { %v462_v36 = vld [vmem:[#allocation5 + $0xb20] sm:$0xff] }
  0xd1   :  { %7996 = vmatpush1.bf16.msra.mxu0 %v10643_v45  ;;  %8426 = vmatpush1.bf16.msra.mxu1 %v10645_v46  ;;  %v403_v45 = vld [vmem:[#allocation5 + $0x948] sm:$0xff] }
  0xd2   :  { %7997 = vmatprep.subr.bf16.mxu0 %v10652_v47  ;;  %8427 = vmatprep.subr.bf16.mxu1 %v10654_v51  ;;  %v407_v46 = vld [vmem:[#allocation5 + $0x968] sm:$0xff]  ;;  %v10707_v47 = vcombine.low %v394_v34, %v398_v35  ;;  %v410_v51 = vld [vmem:[#allocation5 + $0x980] sm:$0xff] }
  0xd3   :  { %v10718_v50 = vcombine.high %v403_v45, %v407_v46  ;;  %v10717_v56 = vcombine.low %v403_v45, %v407_v46  ;;  %v10724_v57 = vcombine.high %v410_v51, %v414_v52  ;;  %v458_v35 = vld [vmem:[#allocation5 + $0xb00] sm:$0xff]  ;;  %v467_v45 = vld [vmem:[#allocation5 + $0xb48] sm:$0xff] }
  0xd4   :  { %v471_v46 = vld [vmem:[#allocation5 + $0xb68] sm:$0xff] }
  0xd5   :  { %7998 = vmatpush1.bf16.msra.mxu0 %v10651_v53  ;;  %8428 = vmatpush1.bf16.msra.mxu1 %v10653_v54  ;;  %v411_v53 = vld [vmem:[#allocation5 + $0x988] sm:$0xff] }
  0xd6   :  { %7999 = vmatprep.subr.bf16.mxu0 %v10660_v55  ;;  %8429 = vmatprep.subr.bf16.mxu1 %v10662_v59  ;;  %v415_v54 = vld [vmem:[#allocation5 + $0x9a8] sm:$0xff]  ;;  %v10715_v55 = vcombine.low %v402_v43, %v406_v44  ;;  %v418_v59 = vld [vmem:[#allocation5 + $0x9c0] sm:$0xff] }
  0xd7   :  { %v10726_v58 = vcombine.high %v411_v53, %v415_v54  ;;  %v10725_v0 = vcombine.low %v411_v53, %v415_v54  ;;  %v10732_v1 = vcombine.high %v418_v59, %v422_v60  ;;  %v466_v43 = vld [vmem:[#allocation5 + $0xb40] sm:$0xff]  ;;  %v475_v53 = vld [vmem:[#allocation5 + $0xb88] sm:$0xff] }
  0xd8   :  { %v470_v44 = vld [vmem:[#allocation5 + $0xb60] sm:$0xff]  ;;  %v479_v54 = vld [vmem:[#allocation5 + $0xba8] sm:$0xff] }
  0xd9   :  { %8000 = vmatpush1.bf16.msra.mxu0 %v10659_v61  ;;  %8430 = vmatpush1.bf16.msra.mxu1 %v10661_v62  ;;  %v419_v61 = vld [vmem:[#allocation5 + $0x9c8] sm:$0xff] }
  0xda   :  { %8001 = vmatprep.subr.bf16.mxu0 %v10668_v63  ;;  %8431 = vmatprep.subr.bf16.mxu1 %v10670_v3  ;;  %v423_v62 = vld [vmem:[#allocation5 + $0x9e8] sm:$0xff]  ;;  %v10723_v63 = vcombine.low %v410_v51, %v414_v52  ;;  %v426_v3 = vld [vmem:[#allocation5 + $0xa00] sm:$0xff] }
  0xdb   :  { %v10734_v2 = vcombine.high %v419_v61, %v423_v62  ;;  %v10740_v9 = vcombine.high %v426_v3, %v430_v4  ;;  %v474_v51 = vld [vmem:[#allocation5 + $0xb80] sm:$0xff] }
  0xdc   :  { %v478_v52 = vld [vmem:[#allocation5 + $0xba0] sm:$0xff] }
  0xdd   :  { %8002 = vmatpush1.bf16.msra.mxu0 %v10667_v5  ;;  %8432 = vmatpush1.bf16.msra.mxu1 %v10669_v6  ;;  %v427_v5 = vld [vmem:[#allocation5 + $0xa08] sm:$0xff] }
  0xde   :  { %8014 = vmatprep.subr.bf16.mxu0 %v10676_v7  ;;  %8444 = vmatprep.subr.bf16.mxu1 %v10678_v12  ;;  %v431_v6 = vld [vmem:[#allocation5 + $0xa28] sm:$0xff]  ;;  %v10731_v7 = vcombine.low %v418_v59, %v422_v60  ;;  %v438_v12 = vld [vmem:[#allocation5 + $0xa60] sm:$0xff] }
  0xdf   :  { %v10742_v10 = vcombine.high %v427_v5, %v431_v6  ;;  %v10748_v17 = vcombine.high %v434_v11, %v438_v12  ;;  %v482_v59 = vld [vmem:[#allocation5 + $0xbc0] sm:$0xff] }
  0xe0   :  { %8004 = vmatmul.mubr.bf16.vlgmr.msra.gmra.mrb[0].mxu0 %v12031_v8  ;;  %8434 = vmatmul.mubr.bf16.vlgmr.msra.gmra.mrb[0].mxu1 %v12031_v8  ;;  %v10733_v8 = vcombine.low %v419_v61, %v423_v62  ;;  %v486_v60 = vld [vmem:[#allocation5 + $0xbe0] sm:$0xff]  ;;  %v483_v61 = vld [vmem:[#allocation5 + $0xbc8] sm:$0xff] }
  0xe1   :  { %8015 = vmatpush1.bf16.msra.mxu0 %v10675_v14  ;;  %8445 = vmatpush1.bf16.msra.mxu1 %v10677_v15  ;;  %v439_v14 = vld [vmem:[#allocation5 + $0xa68] sm:$0xff]  ;;  %v10739_v15 = vcombine.low %v426_v3, %v430_v4  ;;  %v490_v3 = vld [vmem:[#allocation5 + $0xc00] sm:$0xff] }
  0xe2   :  { %8016 = vmatprep.subr.bf16.mxu0 %v10684_v16  ;;  %8446 = vmatprep.subr.bf16.mxu1 %v10686_v19  ;;  %v10741_v16 = vcombine.low %v427_v5, %v431_v6  ;;  %v10750_v18 = vcombine.high %v435_v13, %v439_v14  ;;  %v442_v19 = vld [vmem:[#allocation5 + $0xa80] sm:$0xff]  ;;  %v487_v62 = vld [vmem:[#allocation5 + $0xbe8] sm:$0xff] }
  0xe3   :  { %8046 = vmatprep.mubr.bf16.mxu0 %v12032_v22  ;;  %8476 = vmatprep.mubr.bf16.mxu1 %v12032_v22  ;;  %v447_v22 = vld [vmem:[#allocation5 + $0xaa8] sm:$0xff]  ;;  %v494_v4 = vld [vmem:[#allocation5 + $0xc20] sm:$0xff] }
  0xe4   :  { %v10758_v26 = vcombine.high %v443_v21, %v447_v22  ;;  %v491_v5 = vld [vmem:[#allocation5 + $0xc08] sm:$0xff] }
  0xe5   :  { %8017 = vmatpush1.bf16.msra.mxu0 %v10683_v23  ;;  %8447 = vmatpush1.bf16.msra.mxu1 %v10685_v24  ;;  %v10747_v23 = vcombine.low %v434_v11, %v438_v12  ;;  %v10749_v24 = vcombine.low %v435_v13, %v439_v14  ;;  %v495_v6 = vld [vmem:[#allocation5 + $0xc28] sm:$0xff]  ;;  %v498_v11 = vld [vmem:[#allocation5 + $0xc40] sm:$0xff] }
  0xe6   :  { %8018 = vmatprep.subr.bf16.mxu0 %v10692_v25  ;;  %8448 = vmatprep.subr.bf16.mxu1 %v10694_v29  ;;  %v10756_v25 = vcombine.high %v442_v19, %v446_v20  ;;  %v451_v29 = vld [vmem:[#allocation5 + $0xac8] sm:$0xff]  ;;  %v502_v12 = vld [vmem:[#allocation5 + $0xc60] sm:$0xff] }
  0xe7   :  { %v10766_v34 = vcombine.high %v451_v29, %v455_v30  ;;  %v12034_v13 = vld [vmem:[#allocation2 + $0x10] ss:$80 sps:$4 sm:$0xff]   ;;  %v499_v14 = vld [vmem:[#allocation5 + $0xc48] sm:$0xff] }
  0xe9   :  { %8019 = vmatpush1.bf16.msra.mxu0 %v10691_v31  ;;  %8449 = vmatpush1.bf16.msra.mxu1 %v10693_v32  ;;  %v10755_v31 = vcombine.low %v442_v19, %v446_v20  ;;  %v10757_v32 = vcombine.low %v443_v21, %v447_v22  ;;  %v506_v20 = vld [vmem:[#allocation5 + $0xc80] sm:$0xff]  ;;  %v12035_v22 = vld [vmem:[#allocation2 + $0x1c] ss:$80 sps:$4 sm:$0xff]  }
  0xea   :  { %8020 = vmatprep.subr.bf16.mxu0 %v10700_v33  ;;  %8450 = vmatprep.subr.bf16.mxu1 %v10702_v37  ;;  %v10764_v33 = vcombine.high %v450_v27, %v454_v28  ;;  %v459_v37 = vld [vmem:[#allocation5 + $0xb08] sm:$0xff]  ;;  %v510_v21 = vld [vmem:[#allocation5 + $0xca0] sm:$0xff] }
  0xed   :  { %8021 = vmatpush1.bf16.msra.mxu0 %v10699_v39  ;;  %8451 = vmatpush1.bf16.msra.mxu1 %v10701_v40  ;;  %v10763_v39 = vcombine.low %v450_v27, %v454_v28  ;;  %v10765_v40 = vcombine.low %v451_v29, %v455_v30  ;;  %v10820_v27 = vcombine.high %v506_v20, %v510_v21  ;;  %v514_v29 = vld [vmem:[#allocation5 + $0xcc0] sm:$0xff] }
  0xee   :  { %8022 = vmatprep.subr.bf16.mxu0 %v10708_v41  ;;  %8452 = vmatprep.subr.bf16.mxu1 %v10710_v42  ;;  %v10772_v41 = vcombine.high %v458_v35, %v462_v36  ;;  %v10774_v42 = vcombine.high %v459_v37, %v463_v38  ;;  %v518_v30 = vld [vmem:[#allocation5 + $0xce0] sm:$0xff] }
  0xf1   :  { %8023 = vmatpush1.bf16.msra.mxu0 %v10707_v47  ;;  %8453 = vmatpush1.bf16.msra.mxu1 %v10709_v48  ;;  %v10771_v47 = vcombine.low %v458_v35, %v462_v36  ;;  %v10773_v48 = vcombine.low %v459_v37, %v463_v38  ;;  %v10828_v35 = vcombine.high %v514_v29, %v518_v30  ;;  %v522_v37 = vld [vmem:[#allocation5 + $0xd00] sm:$0xff] }
  0xf2   :  { %8024 = vmatprep.subr.bf16.mxu0 %v10716_v49  ;;  %8454 = vmatprep.subr.bf16.mxu1 %v10718_v50  ;;  %v10780_v49 = vcombine.high %v466_v43, %v470_v44  ;;  %v10782_v50 = vcombine.high %v467_v45, %v471_v46  ;;  %v526_v38 = vld [vmem:[#allocation5 + $0xd20] sm:$0xff] }
  0xf5   :  { %8025 = vmatpush1.bf16.msra.mxu0 %v10715_v55  ;;  %8455 = vmatpush1.bf16.msra.mxu1 %v10717_v56  ;;  %v10779_v55 = vcombine.low %v466_v43, %v470_v44  ;;  %v10781_v56 = vcombine.low %v467_v45, %v471_v46  ;;  %v10836_v43 = vcombine.high %v522_v37, %v526_v38  ;;  %v530_v45 = vld [vmem:[#allocation5 + $0xd40] sm:$0xff] }
  0xf6   :  { %8026 = vmatprep.subr.bf16.mxu0 %v10724_v57  ;;  %8456 = vmatprep.subr.bf16.mxu1 %v10726_v58  ;;  %v10788_v57 = vcombine.high %v474_v51, %v478_v52  ;;  %v10790_v58 = vcombine.high %v475_v53, %v479_v54  ;;  %v534_v46 = vld [vmem:[#allocation5 + $0xd60] sm:$0xff] }
  0xf9   :  { %8027 = vmatpush1.bf16.msra.mxu0 %v10723_v63  ;;  %8457 = vmatpush1.bf16.msra.mxu1 %v10725_v0  ;;  %v10787_v63 = vcombine.low %v474_v51, %v478_v52  ;;  %v10789_v0 = vcombine.low %v475_v53, %v479_v54  ;;  %v10844_v51 = vcombine.high %v530_v45, %v534_v46  ;;  %v538_v53 = vld [vmem:[#allocation5 + $0xd80] sm:$0xff] }
  0xfa   :  { %8028 = vmatprep.subr.bf16.mxu0 %v10732_v1  ;;  %8458 = vmatprep.subr.bf16.mxu1 %v10734_v2  ;;  %v10796_v1 = vcombine.high %v482_v59, %v486_v60  ;;  %v10798_v2 = vcombine.high %v483_v61, %v487_v62  ;;  %v542_v54 = vld [vmem:[#allocation5 + $0xda0] sm:$0xff] }
  0xfd   :  { %8029 = vmatpush1.bf16.msra.mxu0 %v10731_v7  ;;  %8459 = vmatpush1.bf16.msra.mxu1 %v10733_v8  ;;  %v10795_v7 = vcombine.low %v482_v59, %v486_v60  ;;  %v10797_v8 = vcombine.low %v483_v61, %v487_v62  ;;  %v10852_v59 = vcombine.high %v538_v53, %v542_v54  ;;  %v546_v61 = vld [vmem:[#allocation5 + $0xdc0] sm:$0xff] }
  0xfe   :  { %8030 = vmatprep.subr.bf16.mxu0 %v10740_v9  ;;  %8460 = vmatprep.subr.bf16.mxu1 %v10742_v10  ;;  %v10804_v9 = vcombine.high %v490_v3, %v494_v4  ;;  %v10806_v10 = vcombine.high %v491_v5, %v495_v6  ;;  %v550_v62 = vld [vmem:[#allocation5 + $0xde0] sm:$0xff] }
 0x101   :  { %8031 = vmatpush1.bf16.msra.mxu0 %v10739_v15  ;;  %8461 = vmatpush1.bf16.msra.mxu1 %v10741_v16  ;;  %v503_v15 = vld [vmem:[#allocation5 + $0xc68] sm:$0xff]  ;;  %v10803_v16 = vcombine.low %v490_v3, %v494_v4  ;;  %v10860_v3 = vcombine.high %v546_v61, %v550_v62 }
 0x102   :  { %8032 = vmatprep.subr.bf16.mxu0 %v10748_v17  ;;  %8462 = vmatprep.subr.bf16.mxu1 %v10750_v18  ;;  %v10805_v17 = vcombine.low %v491_v5, %v495_v6  ;;  %v10812_v18 = vcombine.high %v498_v11, %v502_v12  ;;  %v10814_v19 = vcombine.high %v499_v14, %v503_v15  ;;  %v554_v5 = vld [vmem:[#allocation5 + $0xe00] sm:$0xff] }
 0x103   :  { %v558_v6 = vld [vmem:[#allocation5 + $0xe20] sm:$0xff] }
 0x105   :  { %8033 = vmatpush1.bf16.msra.mxu0 %v10747_v23  ;;  %8463 = vmatpush1.bf16.msra.mxu1 %v10749_v24  ;;  %v507_v23 = vld [vmem:[#allocation5 + $0xc88] sm:$0xff] }
 0x106   :  { %8034 = vmatprep.subr.bf16.mxu0 %v10756_v25  ;;  %8464 = vmatprep.subr.bf16.mxu1 %v10758_v26  ;;  %v511_v24 = vld [vmem:[#allocation5 + $0xca8] sm:$0xff]  ;;  %v10811_v25 = vcombine.low %v498_v11, %v502_v12  ;;  %v10813_v26 = vcombine.low %v499_v14, %v503_v15  ;;  %v10868_v11 = vcombine.high %v554_v5, %v558_v6  ;;  %v566_v14 = vld [vmem:[#allocation5 + $0xe60] sm:$0xff] }
 0x107   :  { %v10822_v28 = vcombine.high %v507_v23, %v511_v24  ;;  %v563_v15 = vld [vmem:[#allocation5 + $0xe48] sm:$0xff] }
 0x109   :  { %8035 = vmatpush1.bf16.msra.mxu0 %v10755_v31  ;;  %8465 = vmatpush1.bf16.msra.mxu1 %v10757_v32  ;;  %v515_v31 = vld [vmem:[#allocation5 + $0xcc8] sm:$0xff] }
 0x10a   :  { %8036 = vmatprep.subr.bf16.mxu0 %v10764_v33  ;;  %8466 = vmatprep.subr.bf16.mxu1 %v10766_v34  ;;  %v519_v32 = vld [vmem:[#allocation5 + $0xce8] sm:$0xff]  ;;  %v10819_v33 = vcombine.low %v506_v20, %v510_v21  ;;  %v10821_v34 = vcombine.low %v507_v23, %v511_v24  ;;  %v570_v21 = vld [vmem:[#allocation5 + $0xe80] sm:$0xff] }
 0x10b   :  { %v10830_v36 = vcombine.high %v515_v31, %v519_v32  ;;  %v571_v23 = vld [vmem:[#allocation5 + $0xe88] sm:$0xff] }
 0x10c   :  { %v575_v24 = vld [vmem:[#allocation5 + $0xea8] sm:$0xff] }
 0x10d   :  { %8037 = vmatpush1.bf16.msra.mxu0 %v10763_v39  ;;  %8467 = vmatpush1.bf16.msra.mxu1 %v10765_v40  ;;  %v523_v39 = vld [vmem:[#allocation5 + $0xd08] sm:$0xff] }
 0x10e   :  { %8038 = vmatprep.subr.bf16.mxu0 %v10772_v41  ;;  %8468 = vmatprep.subr.bf16.mxu1 %v10774_v42  ;;  %v527_v40 = vld [vmem:[#allocation5 + $0xd28] sm:$0xff]  ;;  %v10827_v41 = vcombine.low %v514_v29, %v518_v30  ;;  %v10829_v42 = vcombine.low %v515_v31, %v519_v32  ;;  %v578_v29 = vld [vmem:[#allocation5 + $0xec0] sm:$0xff] }
 0x10f   :  { %v10838_v44 = vcombine.high %v523_v39, %v527_v40  ;;  %v582_v30 = vld [vmem:[#allocation5 + $0xee0] sm:$0xff]  ;;  %v579_v31 = vld [vmem:[#allocation5 + $0xec8] sm:$0xff] }
 0x110   :  { %v583_v32 = vld [vmem:[#allocation5 + $0xee8] sm:$0xff] }
 0x111   :  { %8039 = vmatpush1.bf16.msra.mxu0 %v10771_v47  ;;  %8469 = vmatpush1.bf16.msra.mxu1 %v10773_v48  ;;  %v531_v47 = vld [vmem:[#allocation5 + $0xd48] sm:$0xff] }
 0x112   :  { %8040 = vmatprep.subr.bf16.mxu0 %v10780_v49  ;;  %8470 = vmatprep.subr.bf16.mxu1 %v10782_v50  ;;  %v535_v48 = vld [vmem:[#allocation5 + $0xd68] sm:$0xff]  ;;  %v10835_v49 = vcombine.low %v522_v37, %v526_v38  ;;  %v10837_v50 = vcombine.low %v523_v39, %v527_v40  ;;  %v586_v37 = vld [vmem:[#allocation5 + $0xf00] sm:$0xff] }
 0x113   :  { %v10846_v52 = vcombine.high %v531_v47, %v535_v48  ;;  %v590_v38 = vld [vmem:[#allocation5 + $0xf20] sm:$0xff]  ;;  %v587_v39 = vld [vmem:[#allocation5 + $0xf08] sm:$0xff] }
 0x114   :  { %v591_v40 = vld [vmem:[#allocation5 + $0xf28] sm:$0xff] }
 0x115   :  { %8041 = vmatpush1.bf16.msra.mxu0 %v10779_v55  ;;  %8471 = vmatpush1.bf16.msra.mxu1 %v10781_v56  ;;  %v539_v55 = vld [vmem:[#allocation5 + $0xd88] sm:$0xff] }
 0x116   :  { %8042 = vmatprep.subr.bf16.mxu0 %v10788_v57  ;;  %8472 = vmatprep.subr.bf16.mxu1 %v10790_v58  ;;  %v543_v56 = vld [vmem:[#allocation5 + $0xda8] sm:$0xff]  ;;  %v10843_v57 = vcombine.low %v530_v45, %v534_v46  ;;  %v10845_v58 = vcombine.low %v531_v47, %v535_v48  ;;  %v594_v45 = vld [vmem:[#allocation5 + $0xf40] sm:$0xff] }
 0x117   :  { %v10854_v60 = vcombine.high %v539_v55, %v543_v56  ;;  %v598_v46 = vld [vmem:[#allocation5 + $0xf60] sm:$0xff]  ;;  %v595_v47 = vld [vmem:[#allocation5 + $0xf48] sm:$0xff] }
 0x118   :  { %v599_v48 = vld [vmem:[#allocation5 + $0xf68] sm:$0xff] }
 0x119   :  { %8043 = vmatpush1.bf16.msra.mxu0 %v10787_v63  ;;  %8473 = vmatpush1.bf16.msra.mxu1 %v10789_v0  ;;  %v547_v63 = vld [vmem:[#allocation5 + $0xdc8] sm:$0xff] }
 0x11a   :  { %8044 = vmatprep.subr.bf16.mxu0 %v10796_v1  ;;  %8474 = vmatprep.subr.bf16.mxu1 %v10798_v2  ;;  %v551_v0 = vld [vmem:[#allocation5 + $0xde8] sm:$0xff]  ;;  %v10851_v1 = vcombine.low %v538_v53, %v542_v54  ;;  %v10853_v2 = vcombine.low %v539_v55, %v543_v56  ;;  %v602_v53 = vld [vmem:[#allocation5 + $0xf80] sm:$0xff] }
 0x11b   :  { %v10862_v4 = vcombine.high %v547_v63, %v551_v0  ;;  %v606_v54 = vld [vmem:[#allocation5 + $0xfa0] sm:$0xff]  ;;  %v603_v55 = vld [vmem:[#allocation5 + $0xf88] sm:$0xff] }
 0x11c   :  { %v607_v56 = vld [vmem:[#allocation5 + $0xfa8] sm:$0xff] }
 0x11d   :  { %8045 = vmatpush1.bf16.msra.mxu0 %v10795_v7  ;;  %8475 = vmatpush1.bf16.msra.mxu1 %v10797_v8  ;;  %v555_v7 = vld [vmem:[#allocation5 + $0xe08] sm:$0xff] }
 0x11e   :  { %8057 = vmatprep.subr.bf16.mxu0 %v10804_v9  ;;  %8487 = vmatprep.subr.bf16.mxu1 %v10806_v10  ;;  %v559_v8 = vld [vmem:[#allocation5 + $0xe28] sm:$0xff]  ;;  %v10859_v9 = vcombine.low %v546_v61, %v550_v62  ;;  %v10861_v10 = vcombine.low %v547_v63, %v551_v0  ;;  %v610_v61 = vld [vmem:[#allocation5 + $0xfc0] sm:$0xff] }
 0x11f   :  { %v10870_v12 = vcombine.high %v555_v7, %v559_v8  ;;  %v614_v62 = vld [vmem:[#allocation5 + $0xfe0] sm:$0xff]  ;;  %v611_v63 = vld [vmem:[#allocation5 + $0xfc8] sm:$0xff] }
 0x120   :  { %8047 = vmatmul.mubr.bf16.vlgmr.msra.gmra.mrb[0].mxu0 %v12034_v13  ;;  %8477 = vmatmul.mubr.bf16.vlgmr.msra.gmra.mrb[0].mxu1 %v12034_v13  ;;  %v562_v13 = vld [vmem:[#allocation5 + $0xe40] sm:$0xff]  ;;  %v615_v0 = vld [vmem:[#allocation5 + $0xfe8] sm:$0xff] }
 0x121   :  { %8058 = vmatpush1.bf16.msra.mxu0 %v10803_v16  ;;  %8488 = vmatpush1.bf16.msra.mxu1 %v10805_v17  ;;  %v567_v16 = vld [vmem:[#allocation5 + $0xe68] sm:$0xff]  ;;  %v10867_v17 = vcombine.low %v554_v5, %v558_v6  ;;  %v618_v5 = vld [vmem:[#allocation5 + $0x1000] sm:$0xff] }
 0x122   :  { %8059 = vmatprep.subr.bf16.mxu0 %v10812_v18  ;;  %8489 = vmatprep.subr.bf16.mxu1 %v10814_v19  ;;  %v10869_v18 = vcombine.low %v555_v7, %v559_v8  ;;  %v10876_v19 = vcombine.high %v562_v13, %v566_v14  ;;  %v10878_v20 = vcombine.high %v563_v15, %v567_v16  ;;  %v622_v6 = vld [vmem:[#allocation5 + $0x1020] sm:$0xff]  ;;  %v619_v7 = vld [vmem:[#allocation5 + $0x1008] sm:$0xff] }
 0x123   :  { %8089 = vmatprep.mubr.bf16.mxu0 %v12035_v22  ;;  %8519 = vmatprep.mubr.bf16.mxu1 %v12035_v22  ;;  %v574_v22 = vld [vmem:[#allocation5 + $0xea0] sm:$0xff]  ;;  %v623_v8 = vld [vmem:[#allocation5 + $0x1028] sm:$0xff] }
 0x125   :  { %8060 = vmatpush1.bf16.msra.mxu0 %v10811_v25  ;;  %8490 = vmatpush1.bf16.msra.mxu1 %v10813_v26  ;;  %v10875_v25 = vcombine.low %v562_v13, %v566_v14  ;;  %v10877_v26 = vcombine.low %v563_v15, %v567_v16  ;;  %v626_v13 = vld [vmem:[#allocation5 + $0x1040] sm:$0xff]  ;;  %v12037_v15 = vld [vmem:[#allocation2 + $0x18] ss:$80 sps:$4 sm:$0xff]  }
 0x126   :  { %8061 = vmatprep.subr.bf16.mxu0 %v10820_v27  ;;  %8491 = vmatprep.subr.bf16.mxu1 %v10822_v28  ;;  %v10884_v27 = vcombine.high %v570_v21, %v574_v22  ;;  %v10886_v28 = vcombine.high %v571_v23, %v575_v24  ;;  %v630_v14 = vld [vmem:[#allocation5 + $0x1060] sm:$0xff]  ;;  %v627_v16 = vld [vmem:[#allocation5 + $0x1048] sm:$0xff] }
 0x129   :  { %8062 = vmatpush1.bf16.msra.mxu0 %v10819_v33  ;;  %8492 = vmatpush1.bf16.msra.mxu1 %v10821_v34  ;;  %v10883_v33 = vcombine.low %v570_v21, %v574_v22  ;;  %v10885_v34 = vcombine.low %v571_v23, %v575_v24  ;;  %v634_v22 = vld [vmem:[#allocation5 + $0x1080] sm:$0xff] }
 0x12a   :  { %8063 = vmatprep.subr.bf16.mxu0 %v10828_v35  ;;  %8493 = vmatprep.subr.bf16.mxu1 %v10830_v36  ;;  %v10892_v35 = vcombine.high %v578_v29, %v582_v30  ;;  %v10894_v36 = vcombine.high %v579_v31, %v583_v32  ;;  %v638_v23 = vld [vmem:[#allocation5 + $0x10a0] sm:$0xff] }
 0x12b   :  { %v12038_v24 = vld [vmem:[#allocation2 + $0x24] ss:$80 sps:$4 sm:$0xff]  }
 0x12d   :  { %8064 = vmatpush1.bf16.msra.mxu0 %v10827_v41  ;;  %8494 = vmatpush1.bf16.msra.mxu1 %v10829_v42  ;;  %v10891_v41 = vcombine.low %v578_v29, %v582_v30  ;;  %v10893_v42 = vcombine.low %v579_v31, %v583_v32  ;;  %v10948_v29 = vcombine.high %v634_v22, %v638_v23  ;;  %v642_v31 = vld [vmem:[#allocation5 + $0x10c0] sm:$0xff] }
 0x12e   :  { %8065 = vmatprep.subr.bf16.mxu0 %v10836_v43  ;;  %8495 = vmatprep.subr.bf16.mxu1 %v10838_v44  ;;  %v10900_v43 = vcombine.high %v586_v37, %v590_v38  ;;  %v10902_v44 = vcombine.high %v587_v39, %v591_v40  ;;  %v646_v32 = vld [vmem:[#allocation5 + $0x10e0] sm:$0xff] }
 0x131   :  { %8066 = vmatpush1.bf16.msra.mxu0 %v10835_v49  ;;  %8496 = vmatpush1.bf16.msra.mxu1 %v10837_v50  ;;  %v10899_v49 = vcombine.low %v586_v37, %v590_v38  ;;  %v10901_v50 = vcombine.low %v587_v39, %v591_v40  ;;  %v10956_v37 = vcombine.high %v642_v31, %v646_v32  ;;  %v650_v39 = vld [vmem:[#allocation5 + $0x1100] sm:$0xff] }
 0x132   :  { %8067 = vmatprep.subr.bf16.mxu0 %v10844_v51  ;;  %8497 = vmatprep.subr.bf16.mxu1 %v10846_v52  ;;  %v10908_v51 = vcombine.high %v594_v45, %v598_v46  ;;  %v10910_v52 = vcombine.high %v595_v47, %v599_v48  ;;  %v654_v40 = vld [vmem:[#allocation5 + $0x1120] sm:$0xff] }
 0x135   :  { %8068 = vmatpush1.bf16.msra.mxu0 %v10843_v57  ;;  %8498 = vmatpush1.bf16.msra.mxu1 %v10845_v58  ;;  %v10907_v57 = vcombine.low %v594_v45, %v598_v46  ;;  %v10909_v58 = vcombine.low %v595_v47, %v599_v48  ;;  %v10964_v45 = vcombine.high %v650_v39, %v654_v40  ;;  %v658_v47 = vld [vmem:[#allocation5 + $0x1140] sm:$0xff] }
 0x136   :  { %8069 = vmatprep.subr.bf16.mxu0 %v10852_v59  ;;  %8499 = vmatprep.subr.bf16.mxu1 %v10854_v60  ;;  %v10916_v59 = vcombine.high %v602_v53, %v606_v54  ;;  %v10918_v60 = vcombine.high %v603_v55, %v607_v56  ;;  %v662_v48 = vld [vmem:[#allocation5 + $0x1160] sm:$0xff] }
 0x139   :  { %8070 = vmatpush1.bf16.msra.mxu0 %v10851_v1  ;;  %8500 = vmatpush1.bf16.msra.mxu1 %v10853_v2  ;;  %v10915_v1 = vcombine.low %v602_v53, %v606_v54  ;;  %v10917_v2 = vcombine.low %v603_v55, %v607_v56  ;;  %v10972_v53 = vcombine.high %v658_v47, %v662_v48  ;;  %v666_v55 = vld [vmem:[#allocation5 + $0x1180] sm:$0xff] }
 0x13a   :  { %8071 = vmatprep.subr.bf16.mxu0 %v10860_v3  ;;  %8501 = vmatprep.subr.bf16.mxu1 %v10862_v4  ;;  %v10924_v3 = vcombine.high %v610_v61, %v614_v62  ;;  %v10926_v4 = vcombine.high %v611_v63, %v615_v0  ;;  %v670_v56 = vld [vmem:[#allocation5 + $0x11a0] sm:$0xff] }
 0x13d   :  { %8072 = vmatpush1.bf16.msra.mxu0 %v10859_v9  ;;  %8502 = vmatpush1.bf16.msra.mxu1 %v10861_v10  ;;  %v10923_v9 = vcombine.low %v610_v61, %v614_v62  ;;  %v10925_v10 = vcombine.low %v611_v63, %v615_v0  ;;  %v10980_v61 = vcombine.high %v666_v55, %v670_v56  ;;  %v674_v63 = vld [vmem:[#allocation5 + $0x11c0] sm:$0xff] }
 0x13e   :  { %8073 = vmatprep.subr.bf16.mxu0 %v10868_v11  ;;  %8503 = vmatprep.subr.bf16.mxu1 %v10870_v12  ;;  %v10932_v11 = vcombine.high %v618_v5, %v622_v6  ;;  %v10934_v12 = vcombine.high %v619_v7, %v623_v8  ;;  %v678_v0 = vld [vmem:[#allocation5 + $0x11e0] sm:$0xff] }
 0x141   :  { %8074 = vmatpush1.bf16.msra.mxu0 %v10867_v17  ;;  %8504 = vmatpush1.bf16.msra.mxu1 %v10869_v18  ;;  %v631_v17 = vld [vmem:[#allocation5 + $0x1068] sm:$0xff]  ;;  %v10931_v18 = vcombine.low %v618_v5, %v622_v6  ;;  %v10988_v5 = vcombine.high %v674_v63, %v678_v0 }
 0x142   :  { %8075 = vmatprep.subr.bf16.mxu0 %v10876_v19  ;;  %8505 = vmatprep.subr.bf16.mxu1 %v10878_v20  ;;  %v10933_v19 = vcombine.low %v619_v7, %v623_v8  ;;  %v10940_v20 = vcombine.high %v626_v13, %v630_v14  ;;  %v10942_v21 = vcombine.high %v627_v16, %v631_v17  ;;  %v682_v7 = vld [vmem:[#allocation5 + $0x1200] sm:$0xff] }
 0x143   :  { %v686_v8 = vld [vmem:[#allocation5 + $0x1220] sm:$0xff] }
 0x145   :  { %8076 = vmatpush1.bf16.msra.mxu0 %v10875_v25  ;;  %8506 = vmatpush1.bf16.msra.mxu1 %v10877_v26  ;;  %v635_v25 = vld [vmem:[#allocation5 + $0x1088] sm:$0xff] }
 0x146   :  { %8077 = vmatprep.subr.bf16.mxu0 %v10884_v27  ;;  %8507 = vmatprep.subr.bf16.mxu1 %v10886_v28  ;;  %v639_v26 = vld [vmem:[#allocation5 + $0x10a8] sm:$0xff]  ;;  %v10939_v27 = vcombine.low %v626_v13, %v630_v14  ;;  %v10941_v28 = vcombine.low %v627_v16, %v631_v17  ;;  %v10996_v13 = vcombine.high %v682_v7, %v686_v8  ;;  %v694_v16 = vld [vmem:[#allocation5 + $0x1260] sm:$0xff] }
 0x147   :  { %v10950_v30 = vcombine.high %v635_v25, %v639_v26  ;;  %v691_v17 = vld [vmem:[#allocation5 + $0x1248] sm:$0xff] }
 0x149   :  { %8078 = vmatpush1.bf16.msra.mxu0 %v10883_v33  ;;  %8508 = vmatpush1.bf16.msra.mxu1 %v10885_v34  ;;  %v643_v33 = vld [vmem:[#allocation5 + $0x10c8] sm:$0xff] }
 0x14a   :  { %8079 = vmatprep.subr.bf16.mxu0 %v10892_v35  ;;  %8509 = vmatprep.subr.bf16.mxu1 %v10894_v36  ;;  %v647_v34 = vld [vmem:[#allocation5 + $0x10e8] sm:$0xff]  ;;  %v10947_v35 = vcombine.low %v634_v22, %v638_v23  ;;  %v10949_v36 = vcombine.low %v635_v25, %v639_v26  ;;  %v698_v23 = vld [vmem:[#allocation5 + $0x1280] sm:$0xff] }
 0x14b   :  { %v10958_v38 = vcombine.high %v643_v33, %v647_v34  ;;  %v699_v25 = vld [vmem:[#allocation5 + $0x1288] sm:$0xff] }
 0x14c   :  { %v703_v26 = vld [vmem:[#allocation5 + $0x12a8] sm:$0xff] }
 0x14d   :  { %8080 = vmatpush1.bf16.msra.mxu0 %v10891_v41  ;;  %8510 = vmatpush1.bf16.msra.mxu1 %v10893_v42  ;;  %v651_v41 = vld [vmem:[#allocation5 + $0x1108] sm:$0xff] }
 0x14e   :  { %8081 = vmatprep.subr.bf16.mxu0 %v10900_v43  ;;  %8511 = vmatprep.subr.bf16.mxu1 %v10902_v44  ;;  %v655_v42 = vld [vmem:[#allocation5 + $0x1128] sm:$0xff]  ;;  %v10955_v43 = vcombine.low %v642_v31, %v646_v32  ;;  %v10957_v44 = vcombine.low %v643_v33, %v647_v34  ;;  %v706_v31 = vld [vmem:[#allocation5 + $0x12c0] sm:$0xff] }
 0x14f   :  { %v10966_v46 = vcombine.high %v651_v41, %v655_v42  ;;  %v710_v32 = vld [vmem:[#allocation5 + $0x12e0] sm:$0xff]  ;;  %v707_v33 = vld [vmem:[#allocation5 + $0x12c8] sm:$0xff] }
 0x150   :  { %v711_v34 = vld [vmem:[#allocation5 + $0x12e8] sm:$0xff] }
 0x151   :  { %8082 = vmatpush1.bf16.msra.mxu0 %v10899_v49  ;;  %8512 = vmatpush1.bf16.msra.mxu1 %v10901_v50  ;;  %v659_v49 = vld [vmem:[#allocation5 + $0x1148] sm:$0xff] }
 0x152   :  { %8083 = vmatprep.subr.bf16.mxu0 %v10908_v51  ;;  %8513 = vmatprep.subr.bf16.mxu1 %v10910_v52  ;;  %v663_v50 = vld [vmem:[#allocation5 + $0x1168] sm:$0xff]  ;;  %v10963_v51 = vcombine.low %v650_v39, %v654_v40  ;;  %v10965_v52 = vcombine.low %v651_v41, %v655_v42  ;;  %v714_v39 = vld [vmem:[#allocation5 + $0x1300] sm:$0xff] }
 0x153   :  { %v10974_v54 = vcombine.high %v659_v49, %v663_v50  ;;  %v718_v40 = vld [vmem:[#allocation5 + $0x1320] sm:$0xff]  ;;  %v715_v41 = vld [vmem:[#allocation5 + $0x1308] sm:$0xff] }
 0x154   :  { %v719_v42 = vld [vmem:[#allocation5 + $0x1328] sm:$0xff] }
 0x155   :  { %8084 = vmatpush1.bf16.msra.mxu0 %v10907_v57  ;;  %8514 = vmatpush1.bf16.msra.mxu1 %v10909_v58  ;;  %v667_v57 = vld [vmem:[#allocation5 + $0x1188] sm:$0xff] }
 0x156   :  { %8085 = vmatprep.subr.bf16.mxu0 %v10916_v59  ;;  %8515 = vmatprep.subr.bf16.mxu1 %v10918_v60  ;;  %v671_v58 = vld [vmem:[#allocation5 + $0x11a8] sm:$0xff]  ;;  %v10971_v59 = vcombine.low %v658_v47, %v662_v48  ;;  %v10973_v60 = vcombine.low %v659_v49, %v663_v50  ;;  %v722_v47 = vld [vmem:[#allocation5 + $0x1340] sm:$0xff] }
 0x157   :  { %v10982_v62 = vcombine.high %v667_v57, %v671_v58  ;;  %v726_v48 = vld [vmem:[#allocation5 + $0x1360] sm:$0xff]  ;;  %v723_v49 = vld [vmem:[#allocation5 + $0x1348] sm:$0xff] }
 0x158   :  { %v727_v50 = vld [vmem:[#allocation5 + $0x1368] sm:$0xff] }
 0x159   :  { %8086 = vmatpush1.bf16.msra.mxu0 %v10915_v1  ;;  %8516 = vmatpush1.bf16.msra.mxu1 %v10917_v2  ;;  %v675_v1 = vld [vmem:[#allocation5 + $0x11c8] sm:$0xff] }
 0x15a   :  { %8087 = vmatprep.subr.bf16.mxu0 %v10924_v3  ;;  %8517 = vmatprep.subr.bf16.mxu1 %v10926_v4  ;;  %v679_v2 = vld [vmem:[#allocation5 + $0x11e8] sm:$0xff]  ;;  %v10979_v3 = vcombine.low %v666_v55, %v670_v56  ;;  %v10981_v4 = vcombine.low %v667_v57, %v671_v58  ;;  %v730_v55 = vld [vmem:[#allocation5 + $0x1380] sm:$0xff] }
 0x15b   :  { %v10990_v6 = vcombine.high %v675_v1, %v679_v2  ;;  %v734_v56 = vld [vmem:[#allocation5 + $0x13a0] sm:$0xff]  ;;  %v731_v57 = vld [vmem:[#allocation5 + $0x1388] sm:$0xff] }
 0x15c   :  { %v735_v58 = vld [vmem:[#allocation5 + $0x13a8] sm:$0xff] }
 0x15d   :  { %8088 = vmatpush1.bf16.msra.mxu0 %v10923_v9  ;;  %8518 = vmatpush1.bf16.msra.mxu1 %v10925_v10  ;;  %v683_v9 = vld [vmem:[#allocation5 + $0x1208] sm:$0xff] }
 0x15e   :  { %8100 = vmatprep.subr.bf16.mxu0 %v10932_v11  ;;  %8530 = vmatprep.subr.bf16.mxu1 %v10934_v12  ;;  %v687_v10 = vld [vmem:[#allocation5 + $0x1228] sm:$0xff]  ;;  %v10987_v11 = vcombine.low %v674_v63, %v678_v0  ;;  %v10989_v12 = vcombine.low %v675_v1, %v679_v2  ;;  %v738_v63 = vld [vmem:[#allocation5 + $0x13c0] sm:$0xff] }
 0x15f   :  { %v10998_v14 = vcombine.high %v683_v9, %v687_v10  ;;  %v742_v0 = vld [vmem:[#allocation5 + $0x13e0] sm:$0xff]  ;;  %v739_v1 = vld [vmem:[#allocation5 + $0x13c8] sm:$0xff] }
 0x160   :  { %8090 = vmatmul.mubr.bf16.vlgmr.msra.gmra.mrb[0].mxu0 %v12037_v15  ;;  %8520 = vmatmul.mubr.bf16.vlgmr.msra.gmra.mrb[0].mxu1 %v12037_v15  ;;  %v690_v15 = vld [vmem:[#allocation5 + $0x1240] sm:$0xff]  ;;  %v743_v2 = vld [vmem:[#allocation5 + $0x13e8] sm:$0xff] }
 0x161   :  { %8101 = vmatpush1.bf16.msra.mxu0 %v10931_v18  ;;  %8531 = vmatpush1.bf16.msra.mxu1 %v10933_v19  ;;  %v695_v18 = vld [vmem:[#allocation5 + $0x1268] sm:$0xff]  ;;  %v10995_v19 = vcombine.low %v682_v7, %v686_v8  ;;  %v746_v7 = vld [vmem:[#allocation5 + $0x1400] sm:$0xff] }
 0x162   :  { %8102 = vmatprep.subr.bf16.mxu0 %v10940_v20  ;;  %8532 = vmatprep.subr.bf16.mxu1 %v10942_v21  ;;  %v10997_v20 = vcombine.low %v683_v9, %v687_v10  ;;  %v11004_v21 = vcombine.high %v690_v15, %v694_v16  ;;  %v11006_v22 = vcombine.high %v691_v17, %v695_v18  ;;  %v750_v8 = vld [vmem:[#allocation5 + $0x1420] sm:$0xff]  ;;  %v747_v9 = vld [vmem:[#allocation5 + $0x1408] sm:$0xff] }
 0x163   :  { %8132 = vmatprep.mubr.bf16.mxu0 %v12038_v24  ;;  %8562 = vmatprep.mubr.bf16.mxu1 %v12038_v24  ;;  %v702_v24 = vld [vmem:[#allocation5 + $0x12a0] sm:$0xff]  ;;  %v751_v10 = vld [vmem:[#allocation5 + $0x1428] sm:$0xff] }
 0x165   :  { %8103 = vmatpush1.bf16.msra.mxu0 %v10939_v27  ;;  %8533 = vmatpush1.bf16.msra.mxu1 %v10941_v28  ;;  %v11003_v27 = vcombine.low %v690_v15, %v694_v16  ;;  %v11005_v28 = vcombine.low %v691_v17, %v695_v18  ;;  %v754_v15 = vld [vmem:[#allocation5 + $0x1440] sm:$0xff]  ;;  %v755_v18 = vld [vmem:[#allocation5 + $0x1448] sm:$0xff] }
 0x166   :  { %8104 = vmatprep.subr.bf16.mxu0 %v10948_v29  ;;  %8534 = vmatprep.subr.bf16.mxu1 %v10950_v30  ;;  %v11012_v29 = vcombine.high %v698_v23, %v702_v24  ;;  %v11014_v30 = vcombine.high %v699_v25, %v703_v26  ;;  %v758_v16 = vld [vmem:[#allocation5 + $0x1460] sm:$0xff] }
 0x167   :  { %v12040_v17 = vld [vmem:[#allocation2 + $0x20] ss:$80 sps:$4 sm:$0xff]  }
 0x169   :  { %8105 = vmatpush1.bf16.msra.mxu0 %v10947_v35  ;;  %8535 = vmatpush1.bf16.msra.mxu1 %v10949_v36  ;;  %v11011_v35 = vcombine.low %v698_v23, %v702_v24  ;;  %v11013_v36 = vcombine.low %v699_v25, %v703_v26  ;;  %v762_v24 = vld [vmem:[#allocation5 + $0x1480] sm:$0xff]  ;;  %v12041_v26 = vld [vmem:[#allocation2 + $0x2c] ss:$80 sps:$4 sm:$0xff]  }
 0x16a   :  { %8106 = vmatprep.subr.bf16.mxu0 %v10956_v37  ;;  %8536 = vmatprep.subr.bf16.mxu1 %v10958_v38  ;;  %v11020_v37 = vcombine.high %v706_v31, %v710_v32  ;;  %v11022_v38 = vcombine.high %v707_v33, %v711_v34  ;;  %v766_v25 = vld [vmem:[#allocation5 + $0x14a0] sm:$0xff] }
 0x16d   :  { %8107 = vmatpush1.bf16.msra.mxu0 %v10955_v43  ;;  %8537 = vmatpush1.bf16.msra.mxu1 %v10957_v44  ;;  %v11019_v43 = vcombine.low %v706_v31, %v710_v32  ;;  %v11021_v44 = vcombine.low %v707_v33, %v711_v34  ;;  %v11076_v31 = vcombine.high %v762_v24, %v766_v25  ;;  %v770_v33 = vld [vmem:[#allocation5 + $0x14c0] sm:$0xff] }
 0x16e   :  { %8108 = vmatprep.subr.bf16.mxu0 %v10964_v45  ;;  %8538 = vmatprep.subr.bf16.mxu1 %v10966_v46  ;;  %v11028_v45 = vcombine.high %v714_v39, %v718_v40  ;;  %v11030_v46 = vcombine.high %v715_v41, %v719_v42  ;;  %v774_v34 = vld [vmem:[#allocation5 + $0x14e0] sm:$0xff] }
 0x171   :  { %8109 = vmatpush1.bf16.msra.mxu0 %v10963_v51  ;;  %8539 = vmatpush1.bf16.msra.mxu1 %v10965_v52  ;;  %v11027_v51 = vcombine.low %v714_v39, %v718_v40  ;;  %v11029_v52 = vcombine.low %v715_v41, %v719_v42  ;;  %v11084_v39 = vcombine.high %v770_v33, %v774_v34  ;;  %v778_v41 = vld [vmem:[#allocation5 + $0x1500] sm:$0xff] }
 0x172   :  { %8110 = vmatprep.subr.bf16.mxu0 %v10972_v53  ;;  %8540 = vmatprep.subr.bf16.mxu1 %v10974_v54  ;;  %v11036_v53 = vcombine.high %v722_v47, %v726_v48  ;;  %v11038_v54 = vcombine.high %v723_v49, %v727_v50  ;;  %v782_v42 = vld [vmem:[#allocation5 + $0x1520] sm:$0xff] }
 0x175   :  { %8111 = vmatpush1.bf16.msra.mxu0 %v10971_v59  ;;  %8541 = vmatpush1.bf16.msra.mxu1 %v10973_v60  ;;  %v11035_v59 = vcombine.low %v722_v47, %v726_v48  ;;  %v11037_v60 = vcombine.low %v723_v49, %v727_v50  ;;  %v11092_v47 = vcombine.high %v778_v41, %v782_v42  ;;  %v786_v49 = vld [vmem:[#allocation5 + $0x1540] sm:$0xff] }
 0x176   :  { %8112 = vmatprep.subr.bf16.mxu0 %v10980_v61  ;;  %8542 = vmatprep.subr.bf16.mxu1 %v10982_v62  ;;  %v11044_v61 = vcombine.high %v730_v55, %v734_v56  ;;  %v11046_v62 = vcombine.high %v731_v57, %v735_v58  ;;  %v790_v50 = vld [vmem:[#allocation5 + $0x1560] sm:$0xff] }
 0x179   :  { %8113 = vmatpush1.bf16.msra.mxu0 %v10979_v3  ;;  %8543 = vmatpush1.bf16.msra.mxu1 %v10981_v4  ;;  %v11043_v3 = vcombine.low %v730_v55, %v734_v56  ;;  %v11045_v4 = vcombine.low %v731_v57, %v735_v58  ;;  %v11100_v55 = vcombine.high %v786_v49, %v790_v50  ;;  %v794_v57 = vld [vmem:[#allocation5 + $0x1580] sm:$0xff] }
 0x17a   :  { %8114 = vmatprep.subr.bf16.mxu0 %v10988_v5  ;;  %8544 = vmatprep.subr.bf16.mxu1 %v10990_v6  ;;  %v11052_v5 = vcombine.high %v738_v63, %v742_v0  ;;  %v11054_v6 = vcombine.high %v739_v1, %v743_v2  ;;  %v798_v58 = vld [vmem:[#allocation5 + $0x15a0] sm:$0xff] }
 0x17d   :  { %8115 = vmatpush1.bf16.msra.mxu0 %v10987_v11  ;;  %8545 = vmatpush1.bf16.msra.mxu1 %v10989_v12  ;;  %v11051_v11 = vcombine.low %v738_v63, %v742_v0  ;;  %v11053_v12 = vcombine.low %v739_v1, %v743_v2  ;;  %v11108_v63 = vcombine.high %v794_v57, %v798_v58  ;;  %v802_v1 = vld [vmem:[#allocation5 + $0x15c0] sm:$0xff] }
 0x17e   :  { %8116 = vmatprep.subr.bf16.mxu0 %v10996_v13  ;;  %8546 = vmatprep.subr.bf16.mxu1 %v10998_v14  ;;  %v11060_v13 = vcombine.high %v746_v7, %v750_v8  ;;  %v11062_v14 = vcombine.high %v747_v9, %v751_v10  ;;  %v806_v2 = vld [vmem:[#allocation5 + $0x15e0] sm:$0xff] }
 0x181   :  { %8117 = vmatpush1.bf16.msra.mxu0 %v10995_v19  ;;  %8547 = vmatpush1.bf16.msra.mxu1 %v10997_v20  ;;  %v759_v19 = vld [vmem:[#allocation5 + $0x1468] sm:$0xff]  ;;  %v11059_v20 = vcombine.low %v746_v7, %v750_v8  ;;  %v11116_v7 = vcombine.high %v802_v1, %v806_v2 }
 0x182   :  { %8118 = vmatprep.subr.bf16.mxu0 %v11004_v21  ;;  %8548 = vmatprep.subr.bf16.mxu1 %v11006_v22  ;;  %v11061_v21 = vcombine.low %v747_v9, %v751_v10  ;;  %v11068_v22 = vcombine.high %v754_v15, %v758_v16  ;;  %v11070_v23 = vcombine.high %v755_v18, %v759_v19  ;;  %v810_v9 = vld [vmem:[#allocation5 + $0x1600] sm:$0xff] }
 0x183   :  { %v814_v10 = vld [vmem:[#allocation5 + $0x1620] sm:$0xff] }
 0x185   :  { %8119 = vmatpush1.bf16.msra.mxu0 %v11003_v27  ;;  %8549 = vmatpush1.bf16.msra.mxu1 %v11005_v28  ;;  %v763_v27 = vld [vmem:[#allocation5 + $0x1488] sm:$0xff] }
 0x186   :  { %8120 = vmatprep.subr.bf16.mxu0 %v11012_v29  ;;  %8550 = vmatprep.subr.bf16.mxu1 %v11014_v30  ;;  %v767_v28 = vld [vmem:[#allocation5 + $0x14a8] sm:$0xff]  ;;  %v11067_v29 = vcombine.low %v754_v15, %v758_v16  ;;  %v11069_v30 = vcombine.low %v755_v18, %v759_v19  ;;  %v11124_v15 = vcombine.high %v810_v9, %v814_v10  ;;  %v822_v18 = vld [vmem:[#allocation5 + $0x1660] sm:$0xff] }
 0x187   :  { %v11078_v32 = vcombine.high %v763_v27, %v767_v28  ;;  %v819_v19 = vld [vmem:[#allocation5 + $0x1648] sm:$0xff] }
 0x189   :  { %8121 = vmatpush1.bf16.msra.mxu0 %v11011_v35  ;;  %8551 = vmatpush1.bf16.msra.mxu1 %v11013_v36  ;;  %v771_v35 = vld [vmem:[#allocation5 + $0x14c8] sm:$0xff] }
 0x18a   :  { %8122 = vmatprep.subr.bf16.mxu0 %v11020_v37  ;;  %8552 = vmatprep.subr.bf16.mxu1 %v11022_v38  ;;  %v775_v36 = vld [vmem:[#allocation5 + $0x14e8] sm:$0xff]  ;;  %v11075_v37 = vcombine.low %v762_v24, %v766_v25  ;;  %v11077_v38 = vcombine.low %v763_v27, %v767_v28  ;;  %v826_v25 = vld [vmem:[#allocation5 + $0x1680] sm:$0xff] }
 0x18b   :  { %v11086_v40 = vcombine.high %v771_v35, %v775_v36  ;;  %v827_v27 = vld [vmem:[#allocation5 + $0x1688] sm:$0xff] }
 0x18c   :  { %v831_v28 = vld [vmem:[#allocation5 + $0x16a8] sm:$0xff] }
 0x18d   :  { %8123 = vmatpush1.bf16.msra.mxu0 %v11019_v43  ;;  %8553 = vmatpush1.bf16.msra.mxu1 %v11021_v44  ;;  %v779_v43 = vld [vmem:[#allocation5 + $0x1508] sm:$0xff] }
 0x18e   :  { %8124 = vmatprep.subr.bf16.mxu0 %v11028_v45  ;;  %8554 = vmatprep.subr.bf16.mxu1 %v11030_v46  ;;  %v783_v44 = vld [vmem:[#allocation5 + $0x1528] sm:$0xff]  ;;  %v11083_v45 = vcombine.low %v770_v33, %v774_v34  ;;  %v11085_v46 = vcombine.low %v771_v35, %v775_v36  ;;  %v834_v33 = vld [vmem:[#allocation5 + $0x16c0] sm:$0xff] }
 0x18f   :  { %v11094_v48 = vcombine.high %v779_v43, %v783_v44  ;;  %v838_v34 = vld [vmem:[#allocation5 + $0x16e0] sm:$0xff]  ;;  %v835_v35 = vld [vmem:[#allocation5 + $0x16c8] sm:$0xff] }
 0x190   :  { %v839_v36 = vld [vmem:[#allocation5 + $0x16e8] sm:$0xff] }
 0x191   :  { %8125 = vmatpush1.bf16.msra.mxu0 %v11027_v51  ;;  %8555 = vmatpush1.bf16.msra.mxu1 %v11029_v52  ;;  %v787_v51 = vld [vmem:[#allocation5 + $0x1548] sm:$0xff] }
 0x192   :  { %8126 = vmatprep.subr.bf16.mxu0 %v11036_v53  ;;  %8556 = vmatprep.subr.bf16.mxu1 %v11038_v54  ;;  %v791_v52 = vld [vmem:[#allocation5 + $0x1568] sm:$0xff]  ;;  %v11091_v53 = vcombine.low %v778_v41, %v782_v42  ;;  %v11093_v54 = vcombine.low %v779_v43, %v783_v44  ;;  %v842_v41 = vld [vmem:[#allocation5 + $0x1700] sm:$0xff] }
 0x193   :  { %v11102_v56 = vcombine.high %v787_v51, %v791_v52  ;;  %v846_v42 = vld [vmem:[#allocation5 + $0x1720] sm:$0xff]  ;;  %v843_v43 = vld [vmem:[#allocation5 + $0x1708] sm:$0xff] }
 0x194   :  { %v847_v44 = vld [vmem:[#allocation5 + $0x1728] sm:$0xff] }
 0x195   :  { %8127 = vmatpush1.bf16.msra.mxu0 %v11035_v59  ;;  %8557 = vmatpush1.bf16.msra.mxu1 %v11037_v60  ;;  %v795_v59 = vld [vmem:[#allocation5 + $0x1588] sm:$0xff] }
 0x196   :  { %8128 = vmatprep.subr.bf16.mxu0 %v11044_v61  ;;  %8558 = vmatprep.subr.bf16.mxu1 %v11046_v62  ;;  %v799_v60 = vld [vmem:[#allocation5 + $0x15a8] sm:$0xff]  ;;  %v11099_v61 = vcombine.low %v786_v49, %v790_v50  ;;  %v11101_v62 = vcombine.low %v787_v51, %v791_v52  ;;  %v850_v49 = vld [vmem:[#allocation5 + $0x1740] sm:$0xff] }
 0x197   :  { %v11110_v0 = vcombine.high %v795_v59, %v799_v60  ;;  %v854_v50 = vld [vmem:[#allocation5 + $0x1760] sm:$0xff]  ;;  %v851_v51 = vld [vmem:[#allocation5 + $0x1748] sm:$0xff] }
 0x198   :  { %v855_v52 = vld [vmem:[#allocation5 + $0x1768] sm:$0xff] }
 0x199   :  { %8129 = vmatpush1.bf16.msra.mxu0 %v11043_v3  ;;  %8559 = vmatpush1.bf16.msra.mxu1 %v11045_v4  ;;  %v803_v3 = vld [vmem:[#allocation5 + $0x15c8] sm:$0xff] }
 0x19a   :  { %8130 = vmatprep.subr.bf16.mxu0 %v11052_v5  ;;  %8560 = vmatprep.subr.bf16.mxu1 %v11054_v6  ;;  %v807_v4 = vld [vmem:[#allocation5 + $0x15e8] sm:$0xff]  ;;  %v11107_v5 = vcombine.low %v794_v57, %v798_v58  ;;  %v11109_v6 = vcombine.low %v795_v59, %v799_v60  ;;  %v858_v57 = vld [vmem:[#allocation5 + $0x1780] sm:$0xff] }
 0x19b   :  { %v11118_v8 = vcombine.high %v803_v3, %v807_v4  ;;  %v862_v58 = vld [vmem:[#allocation5 + $0x17a0] sm:$0xff]  ;;  %v859_v59 = vld [vmem:[#allocation5 + $0x1788] sm:$0xff] }
 0x19c   :  { %v863_v60 = vld [vmem:[#allocation5 + $0x17a8] sm:$0xff] }
 0x19d   :  { %8131 = vmatpush1.bf16.msra.mxu0 %v11051_v11  ;;  %8561 = vmatpush1.bf16.msra.mxu1 %v11053_v12  ;;  %v811_v11 = vld [vmem:[#allocation5 + $0x1608] sm:$0xff] }
 0x19e   :  { %8143 = vmatprep.subr.bf16.mxu0 %v11060_v13  ;;  %8573 = vmatprep.subr.bf16.mxu1 %v11062_v14  ;;  %v815_v12 = vld [vmem:[#allocation5 + $0x1628] sm:$0xff]  ;;  %v11115_v13 = vcombine.low %v802_v1, %v806_v2  ;;  %v11117_v14 = vcombine.low %v803_v3, %v807_v4  ;;  %v866_v1 = vld [vmem:[#allocation5 + $0x17c0] sm:$0xff] }
 0x19f   :  { %v11126_v16 = vcombine.high %v811_v11, %v815_v12  ;;  %v870_v2 = vld [vmem:[#allocation5 + $0x17e0] sm:$0xff]  ;;  %v867_v3 = vld [vmem:[#allocation5 + $0x17c8] sm:$0xff] }
 0x1a0   :  { %8133 = vmatmul.mubr.bf16.vlgmr.msra.gmra.mrb[0].mxu0 %v12040_v17  ;;  %8563 = vmatmul.mubr.bf16.vlgmr.msra.gmra.mrb[0].mxu1 %v12040_v17  ;;  %v818_v17 = vld [vmem:[#allocation5 + $0x1640] sm:$0xff]  ;;  %v871_v4 = vld [vmem:[#allocation5 + $0x17e8] sm:$0xff] }
 0x1a1   :  { %8144 = vmatpush1.bf16.msra.mxu0 %v11059_v20  ;;  %8574 = vmatpush1.bf16.msra.mxu1 %v11061_v21  ;;  %v823_v20 = vld [vmem:[#allocation5 + $0x1668] sm:$0xff]  ;;  %v11123_v21 = vcombine.low %v810_v9, %v814_v10  ;;  %v874_v9 = vld [vmem:[#allocation5 + $0x1800] sm:$0xff] }
 0x1a2   :  { %8145 = vmatprep.subr.bf16.mxu0 %v11068_v22  ;;  %8575 = vmatprep.subr.bf16.mxu1 %v11070_v23  ;;  %v11125_v22 = vcombine.low %v811_v11, %v815_v12  ;;  %v11132_v23 = vcombine.high %v818_v17, %v822_v18  ;;  %v11134_v24 = vcombine.high %v819_v19, %v823_v20  ;;  %v878_v10 = vld [vmem:[#allocation5 + $0x1820] sm:$0xff]  ;;  %v875_v11 = vld [vmem:[#allocation5 + $0x1808] sm:$0xff] }
 0x1a3   :  { %8175 = vmatprep.mubr.bf16.mxu0 %v12041_v26  ;;  %8605 = vmatprep.mubr.bf16.mxu1 %v12041_v26  ;;  %v830_v26 = vld [vmem:[#allocation5 + $0x16a0] sm:$0xff]  ;;  %v879_v12 = vld [vmem:[#allocation5 + $0x1828] sm:$0xff] }
 0x1a5   :  { %8146 = vmatpush1.bf16.msra.mxu0 %v11067_v29  ;;  %8576 = vmatpush1.bf16.msra.mxu1 %v11069_v30  ;;  %v11131_v29 = vcombine.low %v818_v17, %v822_v18  ;;  %v11133_v30 = vcombine.low %v819_v19, %v823_v20  ;;  %v882_v17 = vld [vmem:[#allocation5 + $0x1840] sm:$0xff]  ;;  %v12043_v19 = vld [vmem:[#allocation2 + $0x28] ss:$80 sps:$4 sm:$0xff]  }
 0x1a6   :  { %8147 = vmatprep.subr.bf16.mxu0 %v11076_v31  ;;  %8577 = vmatprep.subr.bf16.mxu1 %v11078_v32  ;;  %v11140_v31 = vcombine.high %v826_v25, %v830_v26  ;;  %v11142_v32 = vcombine.high %v827_v27, %v831_v28  ;;  %v886_v18 = vld [vmem:[#allocation5 + $0x1860] sm:$0xff]  ;;  %v883_v20 = vld [vmem:[#allocation5 + $0x1848] sm:$0xff] }
 0x1a9   :  { %8148 = vmatpush1.bf16.msra.mxu0 %v11075_v37  ;;  %8578 = vmatpush1.bf16.msra.mxu1 %v11077_v38  ;;  %v11139_v37 = vcombine.low %v826_v25, %v830_v26  ;;  %v11141_v38 = vcombine.low %v827_v27, %v831_v28  ;;  %v890_v26 = vld [vmem:[#allocation5 + $0x1880] sm:$0xff] }
 0x1aa   :  { %8149 = vmatprep.subr.bf16.mxu0 %v11084_v39  ;;  %8579 = vmatprep.subr.bf16.mxu1 %v11086_v40  ;;  %v11148_v39 = vcombine.high %v834_v33, %v838_v34  ;;  %v11150_v40 = vcombine.high %v835_v35, %v839_v36  ;;  %v894_v27 = vld [vmem:[#allocation5 + $0x18a0] sm:$0xff] }
 0x1ab   :  { %v12044_v28 = vld [vmem:[#allocation2 + $0x34] ss:$80 sps:$4 sm:$0xff]  }
 0x1ad   :  { %8150 = vmatpush1.bf16.msra.mxu0 %v11083_v45  ;;  %8580 = vmatpush1.bf16.msra.mxu1 %v11085_v46  ;;  %v11147_v45 = vcombine.low %v834_v33, %v838_v34  ;;  %v11149_v46 = vcombine.low %v835_v35, %v839_v36  ;;  %v11204_v33 = vcombine.high %v890_v26, %v894_v27  ;;  %v898_v35 = vld [vmem:[#allocation5 + $0x18c0] sm:$0xff] }
 0x1ae   :  { %8151 = vmatprep.subr.bf16.mxu0 %v11092_v47  ;;  %8581 = vmatprep.subr.bf16.mxu1 %v11094_v48  ;;  %v11156_v47 = vcombine.high %v842_v41, %v846_v42  ;;  %v11158_v48 = vcombine.high %v843_v43, %v847_v44  ;;  %v902_v36 = vld [vmem:[#allocation5 + $0x18e0] sm:$0xff] }
 0x1b1   :  { %8152 = vmatpush1.bf16.msra.mxu0 %v11091_v53  ;;  %8582 = vmatpush1.bf16.msra.mxu1 %v11093_v54  ;;  %v11155_v53 = vcombine.low %v842_v41, %v846_v42  ;;  %v11157_v54 = vcombine.low %v843_v43, %v847_v44  ;;  %v11212_v41 = vcombine.high %v898_v35, %v902_v36  ;;  %v906_v43 = vld [vmem:[#allocation5 + $0x1900] sm:$0xff] }
 0x1b2   :  { %8153 = vmatprep.subr.bf16.mxu0 %v11100_v55  ;;  %8583 = vmatprep.subr.bf16.mxu1 %v11102_v56  ;;  %v11164_v55 = vcombine.high %v850_v49, %v854_v50  ;;  %v11166_v56 = vcombine.high %v851_v51, %v855_v52  ;;  %v910_v44 = vld [vmem:[#allocation5 + $0x1920] sm:$0xff] }
 0x1b5   :  { %8154 = vmatpush1.bf16.msra.mxu0 %v11099_v61  ;;  %8584 = vmatpush1.bf16.msra.mxu1 %v11101_v62  ;;  %v11163_v61 = vcombine.low %v850_v49, %v854_v50  ;;  %v11165_v62 = vcombine.low %v851_v51, %v855_v52  ;;  %v11220_v49 = vcombine.high %v906_v43, %v910_v44  ;;  %v914_v51 = vld [vmem:[#allocation5 + $0x1940] sm:$0xff] }
 0x1b6   :  { %8155 = vmatprep.subr.bf16.mxu0 %v11108_v63  ;;  %8585 = vmatprep.subr.bf16.mxu1 %v11110_v0  ;;  %v11172_v63 = vcombine.high %v858_v57, %v862_v58  ;;  %v11174_v0 = vcombine.high %v859_v59, %v863_v60  ;;  %v918_v52 = vld [vmem:[#allocation5 + $0x1960] sm:$0xff] }
 0x1b9   :  { %8156 = vmatpush1.bf16.msra.mxu0 %v11107_v5  ;;  %8586 = vmatpush1.bf16.msra.mxu1 %v11109_v6  ;;  %v11171_v5 = vcombine.low %v858_v57, %v862_v58  ;;  %v11173_v6 = vcombine.low %v859_v59, %v863_v60  ;;  %v11228_v57 = vcombine.high %v914_v51, %v918_v52  ;;  %v922_v59 = vld [vmem:[#allocation5 + $0x1980] sm:$0xff] }
 0x1ba   :  { %8157 = vmatprep.subr.bf16.mxu0 %v11116_v7  ;;  %8587 = vmatprep.subr.bf16.mxu1 %v11118_v8  ;;  %v11180_v7 = vcombine.high %v866_v1, %v870_v2  ;;  %v11182_v8 = vcombine.high %v867_v3, %v871_v4  ;;  %v926_v60 = vld [vmem:[#allocation5 + $0x19a0] sm:$0xff] }
 0x1bd   :  { %8158 = vmatpush1.bf16.msra.mxu0 %v11115_v13  ;;  %8588 = vmatpush1.bf16.msra.mxu1 %v11117_v14  ;;  %v11179_v13 = vcombine.low %v866_v1, %v870_v2  ;;  %v11181_v14 = vcombine.low %v867_v3, %v871_v4  ;;  %v11236_v1 = vcombine.high %v922_v59, %v926_v60  ;;  %v930_v3 = vld [vmem:[#allocation5 + $0x19c0] sm:$0xff] }
 0x1be   :  { %8159 = vmatprep.subr.bf16.mxu0 %v11124_v15  ;;  %8589 = vmatprep.subr.bf16.mxu1 %v11126_v16  ;;  %v11188_v15 = vcombine.high %v874_v9, %v878_v10  ;;  %v11190_v16 = vcombine.high %v875_v11, %v879_v12  ;;  %v934_v4 = vld [vmem:[#allocation5 + $0x19e0] sm:$0xff] }
 0x1c1   :  { %8160 = vmatpush1.bf16.msra.mxu0 %v11123_v21  ;;  %8590 = vmatpush1.bf16.msra.mxu1 %v11125_v22  ;;  %v887_v21 = vld [vmem:[#allocation5 + $0x1868] sm:$0xff]  ;;  %v11187_v22 = vcombine.low %v874_v9, %v878_v10  ;;  %v11244_v9 = vcombine.high %v930_v3, %v934_v4 }
 0x1c2   :  { %8161 = vmatprep.subr.bf16.mxu0 %v11132_v23  ;;  %8591 = vmatprep.subr.bf16.mxu1 %v11134_v24  ;;  %v11189_v23 = vcombine.low %v875_v11, %v879_v12  ;;  %v11196_v24 = vcombine.high %v882_v17, %v886_v18  ;;  %v11198_v25 = vcombine.high %v883_v20, %v887_v21  ;;  %v938_v11 = vld [vmem:[#allocation5 + $0x1a00] sm:$0xff] }
 0x1c3   :  { %v942_v12 = vld [vmem:[#allocation5 + $0x1a20] sm:$0xff] }
 0x1c5   :  { %8162 = vmatpush1.bf16.msra.mxu0 %v11131_v29  ;;  %8592 = vmatpush1.bf16.msra.mxu1 %v11133_v30  ;;  %v891_v29 = vld [vmem:[#allocation5 + $0x1888] sm:$0xff] }
 0x1c6   :  { %8163 = vmatprep.subr.bf16.mxu0 %v11140_v31  ;;  %8593 = vmatprep.subr.bf16.mxu1 %v11142_v32  ;;  %v895_v30 = vld [vmem:[#allocation5 + $0x18a8] sm:$0xff]  ;;  %v11195_v31 = vcombine.low %v882_v17, %v886_v18  ;;  %v11197_v32 = vcombine.low %v883_v20, %v887_v21  ;;  %v11252_v17 = vcombine.high %v938_v11, %v942_v12  ;;  %v950_v20 = vld [vmem:[#allocation5 + $0x1a60] sm:$0xff] }
 0x1c7   :  { %v11206_v34 = vcombine.high %v891_v29, %v895_v30  ;;  %v947_v21 = vld [vmem:[#allocation5 + $0x1a48] sm:$0xff] }
 0x1c9   :  { %8164 = vmatpush1.bf16.msra.mxu0 %v11139_v37  ;;  %8594 = vmatpush1.bf16.msra.mxu1 %v11141_v38  ;;  %v899_v37 = vld [vmem:[#allocation5 + $0x18c8] sm:$0xff] }
 0x1ca   :  { %8165 = vmatprep.subr.bf16.mxu0 %v11148_v39  ;;  %8595 = vmatprep.subr.bf16.mxu1 %v11150_v40  ;;  %v903_v38 = vld [vmem:[#allocation5 + $0x18e8] sm:$0xff]  ;;  %v11203_v39 = vcombine.low %v890_v26, %v894_v27  ;;  %v11205_v40 = vcombine.low %v891_v29, %v895_v30  ;;  %v954_v27 = vld [vmem:[#allocation5 + $0x1a80] sm:$0xff] }
 0x1cb   :  { %v11214_v42 = vcombine.high %v899_v37, %v903_v38  ;;  %v955_v29 = vld [vmem:[#allocation5 + $0x1a88] sm:$0xff] }
 0x1cc   :  { %v959_v30 = vld [vmem:[#allocation5 + $0x1aa8] sm:$0xff] }
 0x1cd   :  { %8166 = vmatpush1.bf16.msra.mxu0 %v11147_v45  ;;  %8596 = vmatpush1.bf16.msra.mxu1 %v11149_v46  ;;  %v907_v45 = vld [vmem:[#allocation5 + $0x1908] sm:$0xff] }
 0x1ce   :  { %8167 = vmatprep.subr.bf16.mxu0 %v11156_v47  ;;  %8597 = vmatprep.subr.bf16.mxu1 %v11158_v48  ;;  %v911_v46 = vld [vmem:[#allocation5 + $0x1928] sm:$0xff]  ;;  %v11211_v47 = vcombine.low %v898_v35, %v902_v36  ;;  %v11213_v48 = vcombine.low %v899_v37, %v903_v38  ;;  %v962_v35 = vld [vmem:[#allocation5 + $0x1ac0] sm:$0xff] }
 0x1cf   :  { %v11222_v50 = vcombine.high %v907_v45, %v911_v46  ;;  %v966_v36 = vld [vmem:[#allocation5 + $0x1ae0] sm:$0xff]  ;;  %v963_v37 = vld [vmem:[#allocation5 + $0x1ac8] sm:$0xff] }
 0x1d0   :  { %v967_v38 = vld [vmem:[#allocation5 + $0x1ae8] sm:$0xff] }
 0x1d1   :  { %8168 = vmatpush1.bf16.msra.mxu0 %v11155_v53  ;;  %8598 = vmatpush1.bf16.msra.mxu1 %v11157_v54  ;;  %v915_v53 = vld [vmem:[#allocation5 + $0x1948] sm:$0xff] }
 0x1d2   :  { %8169 = vmatprep.subr.bf16.mxu0 %v11164_v55  ;;  %8599 = vmatprep.subr.bf16.mxu1 %v11166_v56  ;;  %v919_v54 = vld [vmem:[#allocation5 + $0x1968] sm:$0xff]  ;;  %v11219_v55 = vcombine.low %v906_v43, %v910_v44  ;;  %v11221_v56 = vcombine.low %v907_v45, %v911_v46  ;;  %v970_v43 = vld [vmem:[#allocation5 + $0x1b00] sm:$0xff] }
 0x1d3   :  { %v11230_v58 = vcombine.high %v915_v53, %v919_v54  ;;  %v974_v44 = vld [vmem:[#allocation5 + $0x1b20] sm:$0xff]  ;;  %v971_v45 = vld [vmem:[#allocation5 + $0x1b08] sm:$0xff] }
 0x1d4   :  { %v975_v46 = vld [vmem:[#allocation5 + $0x1b28] sm:$0xff] }
 0x1d5   :  { %8170 = vmatpush1.bf16.msra.mxu0 %v11163_v61  ;;  %8600 = vmatpush1.bf16.msra.mxu1 %v11165_v62  ;;  %v923_v61 = vld [vmem:[#allocation5 + $0x1988] sm:$0xff] }
 0x1d6   :  { %8171 = vmatprep.subr.bf16.mxu0 %v11172_v63  ;;  %8601 = vmatprep.subr.bf16.mxu1 %v11174_v0  ;;  %v927_v62 = vld [vmem:[#allocation5 + $0x19a8] sm:$0xff]  ;;  %v11227_v63 = vcombine.low %v914_v51, %v918_v52  ;;  %v11229_v0 = vcombine.low %v915_v53, %v919_v54  ;;  %v978_v51 = vld [vmem:[#allocation5 + $0x1b40] sm:$0xff] }
 0x1d7   :  { %v11238_v2 = vcombine.high %v923_v61, %v927_v62  ;;  %v982_v52 = vld [vmem:[#allocation5 + $0x1b60] sm:$0xff]  ;;  %v979_v53 = vld [vmem:[#allocation5 + $0x1b48] sm:$0xff] }
 0x1d8   :  { %v983_v54 = vld [vmem:[#allocation5 + $0x1b68] sm:$0xff] }
 0x1d9   :  { %8172 = vmatpush1.bf16.msra.mxu0 %v11171_v5  ;;  %8602 = vmatpush1.bf16.msra.mxu1 %v11173_v6  ;;  %v931_v5 = vld [vmem:[#allocation5 + $0x19c8] sm:$0xff] }
 0x1da   :  { %8173 = vmatprep.subr.bf16.mxu0 %v11180_v7  ;;  %8603 = vmatprep.subr.bf16.mxu1 %v11182_v8  ;;  %v935_v6 = vld [vmem:[#allocation5 + $0x19e8] sm:$0xff]  ;;  %v11235_v7 = vcombine.low %v922_v59, %v926_v60  ;;  %v11237_v8 = vcombine.low %v923_v61, %v927_v62  ;;  %v986_v59 = vld [vmem:[#allocation5 + $0x1b80] sm:$0xff] }
 0x1db   :  { %v11246_v10 = vcombine.high %v931_v5, %v935_v6  ;;  %v990_v60 = vld [vmem:[#allocation5 + $0x1ba0] sm:$0xff]  ;;  %v987_v61 = vld [vmem:[#allocation5 + $0x1b88] sm:$0xff] }
 0x1dc   :  { %v991_v62 = vld [vmem:[#allocation5 + $0x1ba8] sm:$0xff] }
 0x1dd   :  { %8174 = vmatpush1.bf16.msra.mxu0 %v11179_v13  ;;  %8604 = vmatpush1.bf16.msra.mxu1 %v11181_v14  ;;  %v939_v13 = vld [vmem:[#allocation5 + $0x1a08] sm:$0xff] }
 0x1de   :  { %8186 = vmatprep.subr.bf16.mxu0 %v11188_v15  ;;  %8616 = vmatprep.subr.bf16.mxu1 %v11190_v16  ;;  %v943_v14 = vld [vmem:[#allocation5 + $0x1a28] sm:$0xff]  ;;  %v11243_v15 = vcombine.low %v930_v3, %v934_v4  ;;  %v11245_v16 = vcombine.low %v931_v5, %v935_v6  ;;  %v994_v3 = vld [vmem:[#allocation5 + $0x1bc0] sm:$0xff] }
 0x1df   :  { %v11254_v18 = vcombine.high %v939_v13, %v943_v14  ;;  %v998_v4 = vld [vmem:[#allocation5 + $0x1be0] sm:$0xff]  ;;  %v995_v5 = vld [vmem:[#allocation5 + $0x1bc8] sm:$0xff] }
 0x1e0   :  { %8176 = vmatmul.mubr.bf16.vlgmr.msra.gmra.mrb[0].mxu0 %v12043_v19  ;;  %8606 = vmatmul.mubr.bf16.vlgmr.msra.gmra.mrb[0].mxu1 %v12043_v19  ;;  %v946_v19 = vld [vmem:[#allocation5 + $0x1a40] sm:$0xff]  ;;  %v999_v6 = vld [vmem:[#allocation5 + $0x1be8] sm:$0xff] }
 0x1e1   :  { %8187 = vmatpush1.bf16.msra.mxu0 %v11187_v22  ;;  %8617 = vmatpush1.bf16.msra.mxu1 %v11189_v23  ;;  %v951_v22 = vld [vmem:[#allocation5 + $0x1a68] sm:$0xff]  ;;  %v11251_v23 = vcombine.low %v938_v11, %v942_v12  ;;  %v1002_v11 = vld [vmem:[#allocation5 + $0x1c00] sm:$0xff] }
 0x1e2   :  { %8188 = vmatprep.subr.bf16.mxu0 %v11196_v24  ;;  %8618 = vmatprep.subr.bf16.mxu1 %v11198_v25  ;;  %v11253_v24 = vcombine.low %v939_v13, %v943_v14  ;;  %v11260_v25 = vcombine.high %v946_v19, %v950_v20  ;;  %v11262_v26 = vcombine.high %v947_v21, %v951_v22  ;;  %v1006_v12 = vld [vmem:[#allocation5 + $0x1c20] sm:$0xff]  ;;  %v1003_v13 = vld [vmem:[#allocation5 + $0x1c08] sm:$0xff] }
 0x1e3   :  { %8218 = vmatprep.mubr.bf16.mxu0 %v12044_v28  ;;  %8648 = vmatprep.mubr.bf16.mxu1 %v12044_v28  ;;  %v958_v28 = vld [vmem:[#allocation5 + $0x1aa0] sm:$0xff]  ;;  %v1007_v14 = vld [vmem:[#allocation5 + $0x1c28] sm:$0xff] }
 0x1e5   :  { %8189 = vmatpush1.bf16.msra.mxu0 %v11195_v31  ;;  %8619 = vmatpush1.bf16.msra.mxu1 %v11197_v32  ;;  %v11259_v31 = vcombine.low %v946_v19, %v950_v20  ;;  %v11261_v32 = vcombine.low %v947_v21, %v951_v22  ;;  %v1010_v19 = vld [vmem:[#allocation5 + $0x1c40] sm:$0xff]  ;;  %v1011_v22 = vld [vmem:[#allocation5 + $0x1c48] sm:$0xff] }
 0x1e6   :  { %8190 = vmatprep.subr.bf16.mxu0 %v11204_v33  ;;  %8620 = vmatprep.subr.bf16.mxu1 %v11206_v34  ;;  %v11268_v33 = vcombine.high %v954_v27, %v958_v28  ;;  %v11270_v34 = vcombine.high %v955_v29, %v959_v30  ;;  %v1014_v20 = vld [vmem:[#allocation5 + $0x1c60] sm:$0xff] }
 0x1e7   :  { %v12046_v21 = vld [vmem:[#allocation2 + $0x30] ss:$80 sps:$4 sm:$0xff]  }
 0x1e9   :  { %8191 = vmatpush1.bf16.msra.mxu0 %v11203_v39  ;;  %8621 = vmatpush1.bf16.msra.mxu1 %v11205_v40  ;;  %v11267_v39 = vcombine.low %v954_v27, %v958_v28  ;;  %v11269_v40 = vcombine.low %v955_v29, %v959_v30  ;;  %v1018_v28 = vld [vmem:[#allocation5 + $0x1c80] sm:$0xff]  ;;  %v12047_v30 = vld [vmem:[#allocation2 + $0x3c] ss:$80 sps:$4 sm:$0xff]  }
 0x1ea   :  { %8192 = vmatprep.subr.bf16.mxu0 %v11212_v41  ;;  %8622 = vmatprep.subr.bf16.mxu1 %v11214_v42  ;;  %v11276_v41 = vcombine.high %v962_v35, %v966_v36  ;;  %v11278_v42 = vcombine.high %v963_v37, %v967_v38  ;;  %v1022_v29 = vld [vmem:[#allocation5 + $0x1ca0] sm:$0xff] }
 0x1ed   :  { %8193 = vmatpush1.bf16.msra.mxu0 %v11211_v47  ;;  %8623 = vmatpush1.bf16.msra.mxu1 %v11213_v48  ;;  %v11275_v47 = vcombine.low %v962_v35, %v966_v36  ;;  %v11277_v48 = vcombine.low %v963_v37, %v967_v38  ;;  %v11332_v35 = vcombine.high %v1018_v28, %v1022_v29  ;;  %v1026_v37 = vld [vmem:[#allocation5 + $0x1cc0] sm:$0xff] }
 0x1ee   :  { %8194 = vmatprep.subr.bf16.mxu0 %v11220_v49  ;;  %8624 = vmatprep.subr.bf16.mxu1 %v11222_v50  ;;  %v11284_v49 = vcombine.high %v970_v43, %v974_v44  ;;  %v11286_v50 = vcombine.high %v971_v45, %v975_v46  ;;  %v1030_v38 = vld [vmem:[#allocation5 + $0x1ce0] sm:$0xff] }
 0x1f1   :  { %8195 = vmatpush1.bf16.msra.mxu0 %v11219_v55  ;;  %8625 = vmatpush1.bf16.msra.mxu1 %v11221_v56  ;;  %v11283_v55 = vcombine.low %v970_v43, %v974_v44  ;;  %v11285_v56 = vcombine.low %v971_v45, %v975_v46  ;;  %v11340_v43 = vcombine.high %v1026_v37, %v1030_v38  ;;  %v1034_v45 = vld [vmem:[#allocation5 + $0x1d00] sm:$0xff] }
 0x1f2   :  { %8196 = vmatprep.subr.bf16.mxu0 %v11228_v57  ;;  %8626 = vmatprep.subr.bf16.mxu1 %v11230_v58  ;;  %v11292_v57 = vcombine.high %v978_v51, %v982_v52  ;;  %v11294_v58 = vcombine.high %v979_v53, %v983_v54  ;;  %v1038_v46 = vld [vmem:[#allocation5 + $0x1d20] sm:$0xff] }
 0x1f5   :  { %8197 = vmatpush1.bf16.msra.mxu0 %v11227_v63  ;;  %8627 = vmatpush1.bf16.msra.mxu1 %v11229_v0  ;;  %v11291_v63 = vcombine.low %v978_v51, %v982_v52  ;;  %v11293_v0 = vcombine.low %v979_v53, %v983_v54  ;;  %v11348_v51 = vcombine.high %v1034_v45, %v1038_v46  ;;  %v1042_v53 = vld [vmem:[#allocation5 + $0x1d40] sm:$0xff] }
 0x1f6   :  { %8198 = vmatprep.subr.bf16.mxu0 %v11236_v1  ;;  %8628 = vmatprep.subr.bf16.mxu1 %v11238_v2  ;;  %v11300_v1 = vcombine.high %v986_v59, %v990_v60  ;;  %v11302_v2 = vcombine.high %v987_v61, %v991_v62  ;;  %v1046_v54 = vld [vmem:[#allocation5 + $0x1d60] sm:$0xff] }
 0x1f9   :  { %8199 = vmatpush1.bf16.msra.mxu0 %v11235_v7  ;;  %8629 = vmatpush1.bf16.msra.mxu1 %v11237_v8  ;;  %v11299_v7 = vcombine.low %v986_v59, %v990_v60  ;;  %v11301_v8 = vcombine.low %v987_v61, %v991_v62  ;;  %v11356_v59 = vcombine.high %v1042_v53, %v1046_v54  ;;  %v1050_v61 = vld [vmem:[#allocation5 + $0x1d80] sm:$0xff] }
 0x1fa   :  { %8200 = vmatprep.subr.bf16.mxu0 %v11244_v9  ;;  %8630 = vmatprep.subr.bf16.mxu1 %v11246_v10  ;;  %v11308_v9 = vcombine.high %v994_v3, %v998_v4  ;;  %v11310_v10 = vcombine.high %v995_v5, %v999_v6  ;;  %v1054_v62 = vld [vmem:[#allocation5 + $0x1da0] sm:$0xff] }
 0x1fd   :  { %8201 = vmatpush1.bf16.msra.mxu0 %v11243_v15  ;;  %8631 = vmatpush1.bf16.msra.mxu1 %v11245_v16  ;;  %v11307_v15 = vcombine.low %v994_v3, %v998_v4  ;;  %v11309_v16 = vcombine.low %v995_v5, %v999_v6  ;;  %v11364_v3 = vcombine.high %v1050_v61, %v1054_v62  ;;  %v1058_v5 = vld [vmem:[#allocation5 + $0x1dc0] sm:$0xff] }
 0x1fe   :  { %8202 = vmatprep.subr.bf16.mxu0 %v11252_v17  ;;  %8632 = vmatprep.subr.bf16.mxu1 %v11254_v18  ;;  %v11316_v17 = vcombine.high %v1002_v11, %v1006_v12  ;;  %v11318_v18 = vcombine.high %v1003_v13, %v1007_v14  ;;  %v1062_v6 = vld [vmem:[#allocation5 + $0x1de0] sm:$0xff] }
 0x201   :  { %8203 = vmatpush1.bf16.msra.mxu0 %v11251_v23  ;;  %8633 = vmatpush1.bf16.msra.mxu1 %v11253_v24  ;;  %v1015_v23 = vld [vmem:[#allocation5 + $0x1c68] sm:$0xff]  ;;  %v11315_v24 = vcombine.low %v1002_v11, %v1006_v12  ;;  %v11372_v11 = vcombine.high %v1058_v5, %v1062_v6 }
 0x202   :  { %8204 = vmatprep.subr.bf16.mxu0 %v11260_v25  ;;  %8634 = vmatprep.subr.bf16.mxu1 %v11262_v26  ;;  %v11317_v25 = vcombine.low %v1003_v13, %v1007_v14  ;;  %v11324_v26 = vcombine.high %v1010_v19, %v1014_v20  ;;  %v11326_v27 = vcombine.high %v1011_v22, %v1015_v23  ;;  %v1066_v13 = vld [vmem:[#allocation5 + $0x1e00] sm:$0xff] }
 0x203   :  { %v1070_v14 = vld [vmem:[#allocation5 + $0x1e20] sm:$0xff] }
 0x205   :  { %8205 = vmatpush1.bf16.msra.mxu0 %v11259_v31  ;;  %8635 = vmatpush1.bf16.msra.mxu1 %v11261_v32  ;;  %v1019_v31 = vld [vmem:[#allocation5 + $0x1c88] sm:$0xff] }
 0x206   :  { %8206 = vmatprep.subr.bf16.mxu0 %v11268_v33  ;;  %8636 = vmatprep.subr.bf16.mxu1 %v11270_v34  ;;  %v1023_v32 = vld [vmem:[#allocation5 + $0x1ca8] sm:$0xff]  ;;  %v11323_v33 = vcombine.low %v1010_v19, %v1014_v20  ;;  %v11325_v34 = vcombine.low %v1011_v22, %v1015_v23  ;;  %v11380_v19 = vcombine.high %v1066_v13, %v1070_v14  ;;  %v1078_v22 = vld [vmem:[#allocation5 + $0x1e60] sm:$0xff] }
 0x207   :  { %v11334_v36 = vcombine.high %v1019_v31, %v1023_v32  ;;  %v1075_v23 = vld [vmem:[#allocation5 + $0x1e48] sm:$0xff] }
 0x209   :  { %8207 = vmatpush1.bf16.msra.mxu0 %v11267_v39  ;;  %8637 = vmatpush1.bf16.msra.mxu1 %v11269_v40  ;;  %v1027_v39 = vld [vmem:[#allocation5 + $0x1cc8] sm:$0xff] }
 0x20a   :  { %8208 = vmatprep.subr.bf16.mxu0 %v11276_v41  ;;  %8638 = vmatprep.subr.bf16.mxu1 %v11278_v42  ;;  %v1031_v40 = vld [vmem:[#allocation5 + $0x1ce8] sm:$0xff]  ;;  %v11331_v41 = vcombine.low %v1018_v28, %v1022_v29  ;;  %v11333_v42 = vcombine.low %v1019_v31, %v1023_v32  ;;  %v1082_v29 = vld [vmem:[#allocation5 + $0x1e80] sm:$0xff] }
 0x20b   :  { %v11342_v44 = vcombine.high %v1027_v39, %v1031_v40  ;;  %v1083_v31 = vld [vmem:[#allocation5 + $0x1e88] sm:$0xff] }
 0x20c   :  { %v1087_v32 = vld [vmem:[#allocation5 + $0x1ea8] sm:$0xff] }
 0x20d   :  { %8209 = vmatpush1.bf16.msra.mxu0 %v11275_v47  ;;  %8639 = vmatpush1.bf16.msra.mxu1 %v11277_v48  ;;  %v1035_v47 = vld [vmem:[#allocation5 + $0x1d08] sm:$0xff] }
 0x20e   :  { %8210 = vmatprep.subr.bf16.mxu0 %v11284_v49  ;;  %8640 = vmatprep.subr.bf16.mxu1 %v11286_v50  ;;  %v1039_v48 = vld [vmem:[#allocation5 + $0x1d28] sm:$0xff]  ;;  %v11339_v49 = vcombine.low %v1026_v37, %v1030_v38  ;;  %v11341_v50 = vcombine.low %v1027_v39, %v1031_v40  ;;  %v1090_v37 = vld [vmem:[#allocation5 + $0x1ec0] sm:$0xff] }
 0x20f   :  { %v11350_v52 = vcombine.high %v1035_v47, %v1039_v48  ;;  %v1094_v38 = vld [vmem:[#allocation5 + $0x1ee0] sm:$0xff]  ;;  %v1091_v39 = vld [vmem:[#allocation5 + $0x1ec8] sm:$0xff] }
 0x210   :  { %v1095_v40 = vld [vmem:[#allocation5 + $0x1ee8] sm:$0xff] }
 0x211   :  { %8211 = vmatpush1.bf16.msra.mxu0 %v11283_v55  ;;  %8641 = vmatpush1.bf16.msra.mxu1 %v11285_v56  ;;  %v1043_v55 = vld [vmem:[#allocation5 + $0x1d48] sm:$0xff] }
 0x212   :  { %8212 = vmatprep.subr.bf16.mxu0 %v11292_v57  ;;  %8642 = vmatprep.subr.bf16.mxu1 %v11294_v58  ;;  %v1047_v56 = vld [vmem:[#allocation5 + $0x1d68] sm:$0xff]  ;;  %v11347_v57 = vcombine.low %v1034_v45, %v1038_v46  ;;  %v11349_v58 = vcombine.low %v1035_v47, %v1039_v48  ;;  %v1098_v45 = vld [vmem:[#allocation5 + $0x1f00] sm:$0xff] }
 0x213   :  { %v11358_v60 = vcombine.high %v1043_v55, %v1047_v56  ;;  %v1102_v46 = vld [vmem:[#allocation5 + $0x1f20] sm:$0xff]  ;;  %v1099_v47 = vld [vmem:[#allocation5 + $0x1f08] sm:$0xff] }
 0x214   :  { %v1103_v48 = vld [vmem:[#allocation5 + $0x1f28] sm:$0xff] }
 0x215   :  { %8213 = vmatpush1.bf16.msra.mxu0 %v11291_v63  ;;  %8643 = vmatpush1.bf16.msra.mxu1 %v11293_v0  ;;  %v1051_v63 = vld [vmem:[#allocation5 + $0x1d88] sm:$0xff] }
 0x216   :  { %8214 = vmatprep.subr.bf16.mxu0 %v11300_v1  ;;  %8644 = vmatprep.subr.bf16.mxu1 %v11302_v2  ;;  %v1055_v0 = vld [vmem:[#allocation5 + $0x1da8] sm:$0xff]  ;;  %v11355_v1 = vcombine.low %v1042_v53, %v1046_v54  ;;  %v11357_v2 = vcombine.low %v1043_v55, %v1047_v56  ;;  %v1106_v53 = vld [vmem:[#allocation5 + $0x1f40] sm:$0xff] }
 0x217   :  { %v11366_v4 = vcombine.high %v1051_v63, %v1055_v0  ;;  %v1110_v54 = vld [vmem:[#allocation5 + $0x1f60] sm:$0xff]  ;;  %v1107_v55 = vld [vmem:[#allocation5 + $0x1f48] sm:$0xff] }
 0x218   :  { %v1111_v56 = vld [vmem:[#allocation5 + $0x1f68] sm:$0xff] }
 0x219   :  { %8215 = vmatpush1.bf16.msra.mxu0 %v11299_v7  ;;  %8645 = vmatpush1.bf16.msra.mxu1 %v11301_v8  ;;  %v1059_v7 = vld [vmem:[#allocation5 + $0x1dc8] sm:$0xff] }
 0x21a   :  { %8216 = vmatprep.subr.bf16.mxu0 %v11308_v9  ;;  %8646 = vmatprep.subr.bf16.mxu1 %v11310_v10  ;;  %v1063_v8 = vld [vmem:[#allocation5 + $0x1de8] sm:$0xff]  ;;  %v11363_v9 = vcombine.low %v1050_v61, %v1054_v62  ;;  %v11365_v10 = vcombine.low %v1051_v63, %v1055_v0  ;;  %v1114_v61 = vld [vmem:[#allocation5 + $0x1f80] sm:$0xff] }
 0x21b   :  { %v11374_v12 = vcombine.high %v1059_v7, %v1063_v8  ;;  %v1118_v62 = vld [vmem:[#allocation5 + $0x1fa0] sm:$0xff]  ;;  %v1115_v63 = vld [vmem:[#allocation5 + $0x1f88] sm:$0xff] }
 0x21c   :  { %v1119_v0 = vld [vmem:[#allocation5 + $0x1fa8] sm:$0xff] }
 0x21d   :  { %8217 = vmatpush1.bf16.msra.mxu0 %v11307_v15  ;;  %8647 = vmatpush1.bf16.msra.mxu1 %v11309_v16  ;;  %v1067_v15 = vld [vmem:[#allocation5 + $0x1e08] sm:$0xff] }
 0x21e   :  { %8229 = vmatprep.subr.bf16.mxu0 %v11316_v17  ;;  %8659 = vmatprep.subr.bf16.mxu1 %v11318_v18  ;;  %v1071_v16 = vld [vmem:[#allocation5 + $0x1e28] sm:$0xff]  ;;  %v11371_v17 = vcombine.low %v1058_v5, %v1062_v6  ;;  %v11373_v18 = vcombine.low %v1059_v7, %v1063_v8  ;;  %v1122_v5 = vld [vmem:[#allocation5 + $0x1fc0] sm:$0xff] }
 0x21f   :  { %v11382_v20 = vcombine.high %v1067_v15, %v1071_v16  ;;  %v1126_v6 = vld [vmem:[#allocation5 + $0x1fe0] sm:$0xff]  ;;  %v1123_v7 = vld [vmem:[#allocation5 + $0x1fc8] sm:$0xff] }
 0x220   :  { %8219 = vmatmul.mubr.bf16.vlgmr.msra.gmra.mrb[0].mxu0 %v12046_v21  ;;  %8649 = vmatmul.mubr.bf16.vlgmr.msra.gmra.mrb[0].mxu1 %v12046_v21  ;;  %v1074_v21 = vld [vmem:[#allocation5 + $0x1e40] sm:$0xff]  ;;  %v1127_v8 = vld [vmem:[#allocation5 + $0x1fe8] sm:$0xff] }
 0x221   :  { %8230 = vmatpush1.bf16.msra.mxu0 %v11315_v24  ;;  %8660 = vmatpush1.bf16.msra.mxu1 %v11317_v25  ;;  %v1079_v24 = vld [vmem:[#allocation5 + $0x1e68] sm:$0xff]  ;;  %v11379_v25 = vcombine.low %v1066_v13, %v1070_v14  ;;  %v1130_v13 = vld [vmem:[#allocation5 + $0x2000] sm:$0xff] }
 0x222   :  { %8231 = vmatprep.subr.bf16.mxu0 %v11324_v26  ;;  %8661 = vmatprep.subr.bf16.mxu1 %v11326_v27  ;;  %v11381_v26 = vcombine.low %v1067_v15, %v1071_v16  ;;  %v11388_v27 = vcombine.high %v1074_v21, %v1078_v22  ;;  %v11390_v28 = vcombine.high %v1075_v23, %v1079_v24  ;;  %v1134_v14 = vld [vmem:[#allocation5 + $0x2020] sm:$0xff]  ;;  %v1131_v15 = vld [vmem:[#allocation5 + $0x2008] sm:$0xff] }
 0x223   :  { %8261 = vmatprep.mubr.bf16.mxu0 %v12047_v30  ;;  %8691 = vmatprep.mubr.bf16.mxu1 %v12047_v30  ;;  %v1086_v30 = vld [vmem:[#allocation5 + $0x1ea0] sm:$0xff]  ;;  %v1135_v16 = vld [vmem:[#allocation5 + $0x2028] sm:$0xff] }
 0x225   :  { %8232 = vmatpush1.bf16.msra.mxu0 %v11323_v33  ;;  %8662 = vmatpush1.bf16.msra.mxu1 %v11325_v34  ;;  %v11387_v33 = vcombine.low %v1074_v21, %v1078_v22  ;;  %v11389_v34 = vcombine.low %v1075_v23, %v1079_v24  ;;  %v1138_v21 = vld [vmem:[#allocation5 + $0x2040] sm:$0xff]  ;;  %v12049_v23 = vld [vmem:[#allocation2 + $0x38] ss:$80 sps:$4 sm:$0xff]  }
 0x226   :  { %8233 = vmatprep.subr.bf16.mxu0 %v11332_v35  ;;  %8663 = vmatprep.subr.bf16.mxu1 %v11334_v36  ;;  %v11396_v35 = vcombine.high %v1082_v29, %v1086_v30  ;;  %v11398_v36 = vcombine.high %v1083_v31, %v1087_v32  ;;  %v1142_v22 = vld [vmem:[#allocation5 + $0x2060] sm:$0xff]  ;;  %v1139_v24 = vld [vmem:[#allocation5 + $0x2048] sm:$0xff] }
 0x229   :  { %8234 = vmatpush1.bf16.msra.mxu0 %v11331_v41  ;;  %8664 = vmatpush1.bf16.msra.mxu1 %v11333_v42  ;;  %v11395_v41 = vcombine.low %v1082_v29, %v1086_v30  ;;  %v11397_v42 = vcombine.low %v1083_v31, %v1087_v32  ;;  %v1146_v30 = vld [vmem:[#allocation5 + $0x2080] sm:$0xff] }
 0x22a   :  { %8235 = vmatprep.subr.bf16.mxu0 %v11340_v43  ;;  %8665 = vmatprep.subr.bf16.mxu1 %v11342_v44  ;;  %v11404_v43 = vcombine.high %v1090_v37, %v1094_v38  ;;  %v11406_v44 = vcombine.high %v1091_v39, %v1095_v40  ;;  %v1150_v31 = vld [vmem:[#allocation5 + $0x20a0] sm:$0xff] }
 0x22b   :  { %v12050_v32 = vld [vmem:[#allocation2 + $0x44] ss:$80 sps:$4 sm:$0xff]  }
 0x22d   :  { %8236 = vmatpush1.bf16.msra.mxu0 %v11339_v49  ;;  %8666 = vmatpush1.bf16.msra.mxu1 %v11341_v50  ;;  %v11403_v49 = vcombine.low %v1090_v37, %v1094_v38  ;;  %v11405_v50 = vcombine.low %v1091_v39, %v1095_v40  ;;  %v11460_v37 = vcombine.high %v1146_v30, %v1150_v31  ;;  %v1154_v39 = vld [vmem:[#allocation5 + $0x20c0] sm:$0xff] }
 0x22e   :  { %8237 = vmatprep.subr.bf16.mxu0 %v11348_v51  ;;  %8667 = vmatprep.subr.bf16.mxu1 %v11350_v52  ;;  %v11412_v51 = vcombine.high %v1098_v45, %v1102_v46  ;;  %v11414_v52 = vcombine.high %v1099_v47, %v1103_v48  ;;  %v1158_v40 = vld [vmem:[#allocation5 + $0x20e0] sm:$0xff] }
 0x231   :  { %8238 = vmatpush1.bf16.msra.mxu0 %v11347_v57  ;;  %8668 = vmatpush1.bf16.msra.mxu1 %v11349_v58  ;;  %v11411_v57 = vcombine.low %v1098_v45, %v1102_v46  ;;  %v11413_v58 = vcombine.low %v1099_v47, %v1103_v48  ;;  %v11468_v45 = vcombine.high %v1154_v39, %v1158_v40  ;;  %v1162_v47 = vld [vmem:[#allocation5 + $0x2100] sm:$0xff] }
 0x232   :  { %8239 = vmatprep.subr.bf16.mxu0 %v11356_v59  ;;  %8669 = vmatprep.subr.bf16.mxu1 %v11358_v60  ;;  %v11420_v59 = vcombine.high %v1106_v53, %v1110_v54  ;;  %v11422_v60 = vcombine.high %v1107_v55, %v1111_v56  ;;  %v1166_v48 = vld [vmem:[#allocation5 + $0x2120] sm:$0xff] }
 0x235   :  { %8240 = vmatpush1.bf16.msra.mxu0 %v11355_v1  ;;  %8670 = vmatpush1.bf16.msra.mxu1 %v11357_v2  ;;  %v11419_v1 = vcombine.low %v1106_v53, %v1110_v54  ;;  %v11421_v2 = vcombine.low %v1107_v55, %v1111_v56  ;;  %v11476_v53 = vcombine.high %v1162_v47, %v1166_v48  ;;  %v1170_v55 = vld [vmem:[#allocation5 + $0x2140] sm:$0xff] }
 0x236   :  { %8241 = vmatprep.subr.bf16.mxu0 %v11364_v3  ;;  %8671 = vmatprep.subr.bf16.mxu1 %v11366_v4  ;;  %v11428_v3 = vcombine.high %v1114_v61, %v1118_v62  ;;  %v11430_v4 = vcombine.high %v1115_v63, %v1119_v0  ;;  %v1174_v56 = vld [vmem:[#allocation5 + $0x2160] sm:$0xff] }
 0x239   :  { %8242 = vmatpush1.bf16.msra.mxu0 %v11363_v9  ;;  %8672 = vmatpush1.bf16.msra.mxu1 %v11365_v10  ;;  %v11427_v9 = vcombine.low %v1114_v61, %v1118_v62  ;;  %v11429_v10 = vcombine.low %v1115_v63, %v1119_v0  ;;  %v11484_v61 = vcombine.high %v1170_v55, %v1174_v56  ;;  %v1178_v63 = vld [vmem:[#allocation5 + $0x2180] sm:$0xff] }
 0x23a   :  { %8243 = vmatprep.subr.bf16.mxu0 %v11372_v11  ;;  %8673 = vmatprep.subr.bf16.mxu1 %v11374_v12  ;;  %v11436_v11 = vcombine.high %v1122_v5, %v1126_v6  ;;  %v11438_v12 = vcombine.high %v1123_v7, %v1127_v8  ;;  %v1182_v0 = vld [vmem:[#allocation5 + $0x21a0] sm:$0xff] }
 0x23d   :  { %8244 = vmatpush1.bf16.msra.mxu0 %v11371_v17  ;;  %8674 = vmatpush1.bf16.msra.mxu1 %v11373_v18  ;;  %v11435_v17 = vcombine.low %v1122_v5, %v1126_v6  ;;  %v11437_v18 = vcombine.low %v1123_v7, %v1127_v8  ;;  %v11492_v5 = vcombine.high %v1178_v63, %v1182_v0  ;;  %v1186_v7 = vld [vmem:[#allocation5 + $0x21c0] sm:$0xff] }
 0x23e   :  { %8245 = vmatprep.subr.bf16.mxu0 %v11380_v19  ;;  %8675 = vmatprep.subr.bf16.mxu1 %v11382_v20  ;;  %v11444_v19 = vcombine.high %v1130_v13, %v1134_v14  ;;  %v11446_v20 = vcombine.high %v1131_v15, %v1135_v16  ;;  %v1190_v8 = vld [vmem:[#allocation5 + $0x21e0] sm:$0xff] }
 0x241   :  { %8246 = vmatpush1.bf16.msra.mxu0 %v11379_v25  ;;  %8676 = vmatpush1.bf16.msra.mxu1 %v11381_v26  ;;  %v1143_v25 = vld [vmem:[#allocation5 + $0x2068] sm:$0xff]  ;;  %v11443_v26 = vcombine.low %v1130_v13, %v1134_v14  ;;  %v11500_v13 = vcombine.high %v1186_v7, %v1190_v8 }
 0x242   :  { %8247 = vmatprep.subr.bf16.mxu0 %v11388_v27  ;;  %8677 = vmatprep.subr.bf16.mxu1 %v11390_v28  ;;  %v11445_v27 = vcombine.low %v1131_v15, %v1135_v16  ;;  %v11452_v28 = vcombine.high %v1138_v21, %v1142_v22  ;;  %v11454_v29 = vcombine.high %v1139_v24, %v1143_v25  ;;  %v1194_v15 = vld [vmem:[#allocation5 + $0x2200] sm:$0xff] }
 0x243   :  { %v1198_v16 = vld [vmem:[#allocation5 + $0x2220] sm:$0xff] }
 0x245   :  { %8248 = vmatpush1.bf16.msra.mxu0 %v11387_v33  ;;  %8678 = vmatpush1.bf16.msra.mxu1 %v11389_v34  ;;  %v1147_v33 = vld [vmem:[#allocation5 + $0x2088] sm:$0xff] }
 0x246   :  { %8249 = vmatprep.subr.bf16.mxu0 %v11396_v35  ;;  %8679 = vmatprep.subr.bf16.mxu1 %v11398_v36  ;;  %v1151_v34 = vld [vmem:[#allocation5 + $0x20a8] sm:$0xff]  ;;  %v11451_v35 = vcombine.low %v1138_v21, %v1142_v22  ;;  %v11453_v36 = vcombine.low %v1139_v24, %v1143_v25  ;;  %v11508_v21 = vcombine.high %v1194_v15, %v1198_v16  ;;  %v1206_v24 = vld [vmem:[#allocation5 + $0x2260] sm:$0xff] }
 0x247   :  { %v11462_v38 = vcombine.high %v1147_v33, %v1151_v34  ;;  %v1203_v25 = vld [vmem:[#allocation5 + $0x2248] sm:$0xff] }
 0x249   :  { %8250 = vmatpush1.bf16.msra.mxu0 %v11395_v41  ;;  %8680 = vmatpush1.bf16.msra.mxu1 %v11397_v42  ;;  %v1155_v41 = vld [vmem:[#allocation5 + $0x20c8] sm:$0xff] }
 0x24a   :  { %8251 = vmatprep.subr.bf16.mxu0 %v11404_v43  ;;  %8681 = vmatprep.subr.bf16.mxu1 %v11406_v44  ;;  %v1159_v42 = vld [vmem:[#allocation5 + $0x20e8] sm:$0xff]  ;;  %v11459_v43 = vcombine.low %v1146_v30, %v1150_v31  ;;  %v11461_v44 = vcombine.low %v1147_v33, %v1151_v34  ;;  %v1210_v31 = vld [vmem:[#allocation5 + $0x2280] sm:$0xff] }
 0x24b   :  { %v11470_v46 = vcombine.high %v1155_v41, %v1159_v42  ;;  %v1211_v33 = vld [vmem:[#allocation5 + $0x2288] sm:$0xff] }
 0x24c   :  { %v1215_v34 = vld [vmem:[#allocation5 + $0x22a8] sm:$0xff] }
 0x24d   :  { %8252 = vmatpush1.bf16.msra.mxu0 %v11403_v49  ;;  %8682 = vmatpush1.bf16.msra.mxu1 %v11405_v50  ;;  %v1163_v49 = vld [vmem:[#allocation5 + $0x2108] sm:$0xff] }
 0x24e   :  { %8253 = vmatprep.subr.bf16.mxu0 %v11412_v51  ;;  %8683 = vmatprep.subr.bf16.mxu1 %v11414_v52  ;;  %v1167_v50 = vld [vmem:[#allocation5 + $0x2128] sm:$0xff]  ;;  %v11467_v51 = vcombine.low %v1154_v39, %v1158_v40  ;;  %v11469_v52 = vcombine.low %v1155_v41, %v1159_v42  ;;  %v1218_v39 = vld [vmem:[#allocation5 + $0x22c0] sm:$0xff] }
 0x24f   :  { %v11478_v54 = vcombine.high %v1163_v49, %v1167_v50  ;;  %v1222_v40 = vld [vmem:[#allocation5 + $0x22e0] sm:$0xff]  ;;  %v1219_v41 = vld [vmem:[#allocation5 + $0x22c8] sm:$0xff] }
 0x250   :  { %v1223_v42 = vld [vmem:[#allocation5 + $0x22e8] sm:$0xff] }
 0x251   :  { %8254 = vmatpush1.bf16.msra.mxu0 %v11411_v57  ;;  %8684 = vmatpush1.bf16.msra.mxu1 %v11413_v58  ;;  %v1171_v57 = vld [vmem:[#allocation5 + $0x2148] sm:$0xff] }
 0x252   :  { %8255 = vmatprep.subr.bf16.mxu0 %v11420_v59  ;;  %8685 = vmatprep.subr.bf16.mxu1 %v11422_v60  ;;  %v1175_v58 = vld [vmem:[#allocation5 + $0x2168] sm:$0xff]  ;;  %v11475_v59 = vcombine.low %v1162_v47, %v1166_v48  ;;  %v11477_v60 = vcombine.low %v1163_v49, %v1167_v50  ;;  %v1226_v47 = vld [vmem:[#allocation5 + $0x2300] sm:$0xff] }
 0x253   :  { %v11486_v62 = vcombine.high %v1171_v57, %v1175_v58  ;;  %v1230_v48 = vld [vmem:[#allocation5 + $0x2320] sm:$0xff]  ;;  %v1227_v49 = vld [vmem:[#allocation5 + $0x2308] sm:$0xff] }
 0x254   :  { %v1231_v50 = vld [vmem:[#allocation5 + $0x2328] sm:$0xff] }
 0x255   :  { %8256 = vmatpush1.bf16.msra.mxu0 %v11419_v1  ;;  %8686 = vmatpush1.bf16.msra.mxu1 %v11421_v2  ;;  %v1179_v1 = vld [vmem:[#allocation5 + $0x2188] sm:$0xff] }
 0x256   :  { %8257 = vmatprep.subr.bf16.mxu0 %v11428_v3  ;;  %8687 = vmatprep.subr.bf16.mxu1 %v11430_v4  ;;  %v1183_v2 = vld [vmem:[#allocation5 + $0x21a8] sm:$0xff]  ;;  %v11483_v3 = vcombine.low %v1170_v55, %v1174_v56  ;;  %v11485_v4 = vcombine.low %v1171_v57, %v1175_v58  ;;  %v1234_v55 = vld [vmem:[#allocation5 + $0x2340] sm:$0xff] }
 0x257   :  { %v11494_v6 = vcombine.high %v1179_v1, %v1183_v2  ;;  %v1238_v56 = vld [vmem:[#allocation5 + $0x2360] sm:$0xff]  ;;  %v1235_v57 = vld [vmem:[#allocation5 + $0x2348] sm:$0xff] }
 0x258   :  { %v1239_v58 = vld [vmem:[#allocation5 + $0x2368] sm:$0xff] }
 0x259   :  { %8258 = vmatpush1.bf16.msra.mxu0 %v11427_v9  ;;  %8688 = vmatpush1.bf16.msra.mxu1 %v11429_v10  ;;  %v1187_v9 = vld [vmem:[#allocation5 + $0x21c8] sm:$0xff] }
 0x25a   :  { %8259 = vmatprep.subr.bf16.mxu0 %v11436_v11  ;;  %8689 = vmatprep.subr.bf16.mxu1 %v11438_v12  ;;  %v1191_v10 = vld [vmem:[#allocation5 + $0x21e8] sm:$0xff]  ;;  %v11491_v11 = vcombine.low %v1178_v63, %v1182_v0  ;;  %v11493_v12 = vcombine.low %v1179_v1, %v1183_v2  ;;  %v1242_v63 = vld [vmem:[#allocation5 + $0x2380] sm:$0xff] }
 0x25b   :  { %v11502_v14 = vcombine.high %v1187_v9, %v1191_v10  ;;  %v1246_v0 = vld [vmem:[#allocation5 + $0x23a0] sm:$0xff]  ;;  %v1243_v1 = vld [vmem:[#allocation5 + $0x2388] sm:$0xff] }
 0x25c   :  { %v1247_v2 = vld [vmem:[#allocation5 + $0x23a8] sm:$0xff] }
 0x25d   :  { %8260 = vmatpush1.bf16.msra.mxu0 %v11435_v17  ;;  %8690 = vmatpush1.bf16.msra.mxu1 %v11437_v18  ;;  %v1195_v17 = vld [vmem:[#allocation5 + $0x2208] sm:$0xff] }
 0x25e   :  { %8272 = vmatprep.subr.bf16.mxu0 %v11444_v19  ;;  %8702 = vmatprep.subr.bf16.mxu1 %v11446_v20  ;;  %v1199_v18 = vld [vmem:[#allocation5 + $0x2228] sm:$0xff]  ;;  %v11499_v19 = vcombine.low %v1186_v7, %v1190_v8  ;;  %v11501_v20 = vcombine.low %v1187_v9, %v1191_v10  ;;  %v1250_v7 = vld [vmem:[#allocation5 + $0x23c0] sm:$0xff] }
 0x25f   :  { %v11510_v22 = vcombine.high %v1195_v17, %v1199_v18  ;;  %v1254_v8 = vld [vmem:[#allocation5 + $0x23e0] sm:$0xff]  ;;  %v1251_v9 = vld [vmem:[#allocation5 + $0x23c8] sm:$0xff] }
 0x260   :  { %8262 = vmatmul.mubr.bf16.vlgmr.msra.gmra.mrb[0].mxu0 %v12049_v23  ;;  %8692 = vmatmul.mubr.bf16.vlgmr.msra.gmra.mrb[0].mxu1 %v12049_v23  ;;  %v1202_v23 = vld [vmem:[#allocation5 + $0x2240] sm:$0xff]  ;;  %v1255_v10 = vld [vmem:[#allocation5 + $0x23e8] sm:$0xff] }
 0x261   :  { %8273 = vmatpush1.bf16.msra.mxu0 %v11443_v26  ;;  %8703 = vmatpush1.bf16.msra.mxu1 %v11445_v27  ;;  %v1207_v26 = vld [vmem:[#allocation5 + $0x2268] sm:$0xff]  ;;  %v11507_v27 = vcombine.low %v1194_v15, %v1198_v16  ;;  %v1258_v15 = vld [vmem:[#allocation5 + $0x2400] sm:$0xff] }
 0x262   :  { %8274 = vmatprep.subr.bf16.mxu0 %v11452_v28  ;;  %8704 = vmatprep.subr.bf16.mxu1 %v11454_v29  ;;  %v11509_v28 = vcombine.low %v1195_v17, %v1199_v18  ;;  %v11516_v29 = vcombine.high %v1202_v23, %v1206_v24  ;;  %v11518_v30 = vcombine.high %v1203_v25, %v1207_v26  ;;  %v1262_v16 = vld [vmem:[#allocation5 + $0x2420] sm:$0xff]  ;;  %v1259_v17 = vld [vmem:[#allocation5 + $0x2408] sm:$0xff] }
 0x263   :  { %8304 = vmatprep.mubr.bf16.mxu0 %v12050_v32  ;;  %8734 = vmatprep.mubr.bf16.mxu1 %v12050_v32  ;;  %v1214_v32 = vld [vmem:[#allocation5 + $0x22a0] sm:$0xff]  ;;  %v1263_v18 = vld [vmem:[#allocation5 + $0x2428] sm:$0xff] }
 0x265   :  { %8275 = vmatpush1.bf16.msra.mxu0 %v11451_v35  ;;  %8705 = vmatpush1.bf16.msra.mxu1 %v11453_v36  ;;  %v11515_v35 = vcombine.low %v1202_v23, %v1206_v24  ;;  %v11517_v36 = vcombine.low %v1203_v25, %v1207_v26  ;;  %v1266_v23 = vld [vmem:[#allocation5 + $0x2440] sm:$0xff]  ;;  %v1267_v26 = vld [vmem:[#allocation5 + $0x2448] sm:$0xff] }
 0x266   :  { %8276 = vmatprep.subr.bf16.mxu0 %v11460_v37  ;;  %8706 = vmatprep.subr.bf16.mxu1 %v11462_v38  ;;  %v11524_v37 = vcombine.high %v1210_v31, %v1214_v32  ;;  %v11526_v38 = vcombine.high %v1211_v33, %v1215_v34  ;;  %v1270_v24 = vld [vmem:[#allocation5 + $0x2460] sm:$0xff] }
 0x267   :  { %v12052_v25 = vld [vmem:[#allocation2 + $0x40] ss:$80 sps:$4 sm:$0xff]  }
 0x269   :  { %8277 = vmatpush1.bf16.msra.mxu0 %v11459_v43  ;;  %8707 = vmatpush1.bf16.msra.mxu1 %v11461_v44  ;;  %v11523_v43 = vcombine.low %v1210_v31, %v1214_v32  ;;  %v11525_v44 = vcombine.low %v1211_v33, %v1215_v34  ;;  %v1274_v32 = vld [vmem:[#allocation5 + $0x2480] sm:$0xff]  ;;  %v12053_v34 = vld [vmem:[#allocation2 + $0x4c] ss:$80 sps:$4 sm:$0xff]  }
 0x26a   :  { %8278 = vmatprep.subr.bf16.mxu0 %v11468_v45  ;;  %8708 = vmatprep.subr.bf16.mxu1 %v11470_v46  ;;  %v11532_v45 = vcombine.high %v1218_v39, %v1222_v40  ;;  %v11534_v46 = vcombine.high %v1219_v41, %v1223_v42  ;;  %v1278_v33 = vld [vmem:[#allocation5 + $0x24a0] sm:$0xff] }
 0x26d   :  { %8279 = vmatpush1.bf16.msra.mxu0 %v11467_v51  ;;  %8709 = vmatpush1.bf16.msra.mxu1 %v11469_v52  ;;  %v11531_v51 = vcombine.low %v1218_v39, %v1222_v40  ;;  %v11533_v52 = vcombine.low %v1219_v41, %v1223_v42  ;;  %v11588_v39 = vcombine.high %v1274_v32, %v1278_v33  ;;  %v1282_v41 = vld [vmem:[#allocation5 + $0x24c0] sm:$0xff] }
 0x26e   :  { %8280 = vmatprep.subr.bf16.mxu0 %v11476_v53  ;;  %8710 = vmatprep.subr.bf16.mxu1 %v11478_v54  ;;  %v11540_v53 = vcombine.high %v1226_v47, %v1230_v48  ;;  %v11542_v54 = vcombine.high %v1227_v49, %v1231_v50  ;;  %v1286_v42 = vld [vmem:[#allocation5 + $0x24e0] sm:$0xff] }
 0x271   :  { %8281 = vmatpush1.bf16.msra.mxu0 %v11475_v59  ;;  %8711 = vmatpush1.bf16.msra.mxu1 %v11477_v60  ;;  %v11539_v59 = vcombine.low %v1226_v47, %v1230_v48  ;;  %v11541_v60 = vcombine.low %v1227_v49, %v1231_v50  ;;  %v11596_v47 = vcombine.high %v1282_v41, %v1286_v42  ;;  %v1290_v49 = vld [vmem:[#allocation5 + $0x2500] sm:$0xff] }
 0x272   :  { %8282 = vmatprep.subr.bf16.mxu0 %v11484_v61  ;;  %8712 = vmatprep.subr.bf16.mxu1 %v11486_v62  ;;  %v11548_v61 = vcombine.high %v1234_v55, %v1238_v56  ;;  %v11550_v62 = vcombine.high %v1235_v57, %v1239_v58  ;;  %v1294_v50 = vld [vmem:[#allocation5 + $0x2520] sm:$0xff] }
 0x275   :  { %8283 = vmatpush1.bf16.msra.mxu0 %v11483_v3  ;;  %8713 = vmatpush1.bf16.msra.mxu1 %v11485_v4  ;;  %v11547_v3 = vcombine.low %v1234_v55, %v1238_v56  ;;  %v11549_v4 = vcombine.low %v1235_v57, %v1239_v58  ;;  %v11604_v55 = vcombine.high %v1290_v49, %v1294_v50  ;;  %v1298_v57 = vld [vmem:[#allocation5 + $0x2540] sm:$0xff] }
 0x276   :  { %8284 = vmatprep.subr.bf16.mxu0 %v11492_v5  ;;  %8714 = vmatprep.subr.bf16.mxu1 %v11494_v6  ;;  %v11556_v5 = vcombine.high %v1242_v63, %v1246_v0  ;;  %v11558_v6 = vcombine.high %v1243_v1, %v1247_v2  ;;  %v1302_v58 = vld [vmem:[#allocation5 + $0x2560] sm:$0xff] }
 0x279   :  { %8285 = vmatpush1.bf16.msra.mxu0 %v11491_v11  ;;  %8715 = vmatpush1.bf16.msra.mxu1 %v11493_v12  ;;  %v11555_v11 = vcombine.low %v1242_v63, %v1246_v0  ;;  %v11557_v12 = vcombine.low %v1243_v1, %v1247_v2  ;;  %v11612_v63 = vcombine.high %v1298_v57, %v1302_v58  ;;  %v1306_v1 = vld [vmem:[#allocation5 + $0x2580] sm:$0xff] }
 0x27a   :  { %8286 = vmatprep.subr.bf16.mxu0 %v11500_v13  ;;  %8716 = vmatprep.subr.bf16.mxu1 %v11502_v14  ;;  %v11564_v13 = vcombine.high %v1250_v7, %v1254_v8  ;;  %v11566_v14 = vcombine.high %v1251_v9, %v1255_v10  ;;  %v1310_v2 = vld [vmem:[#allocation5 + $0x25a0] sm:$0xff] }
 0x27d   :  { %8287 = vmatpush1.bf16.msra.mxu0 %v11499_v19  ;;  %8717 = vmatpush1.bf16.msra.mxu1 %v11501_v20  ;;  %v11563_v19 = vcombine.low %v1250_v7, %v1254_v8  ;;  %v11565_v20 = vcombine.low %v1251_v9, %v1255_v10  ;;  %v11620_v7 = vcombine.high %v1306_v1, %v1310_v2  ;;  %v1314_v9 = vld [vmem:[#allocation5 + $0x25c0] sm:$0xff] }
 0x27e   :  { %8288 = vmatprep.subr.bf16.mxu0 %v11508_v21  ;;  %8718 = vmatprep.subr.bf16.mxu1 %v11510_v22  ;;  %v11572_v21 = vcombine.high %v1258_v15, %v1262_v16  ;;  %v11574_v22 = vcombine.high %v1259_v17, %v1263_v18  ;;  %v1318_v10 = vld [vmem:[#allocation5 + $0x25e0] sm:$0xff] }
 0x281   :  { %8289 = vmatpush1.bf16.msra.mxu0 %v11507_v27  ;;  %8719 = vmatpush1.bf16.msra.mxu1 %v11509_v28  ;;  %v1271_v27 = vld [vmem:[#allocation5 + $0x2468] sm:$0xff]  ;;  %v11571_v28 = vcombine.low %v1258_v15, %v1262_v16  ;;  %v11628_v15 = vcombine.high %v1314_v9, %v1318_v10 }
 0x282   :  { %8290 = vmatprep.subr.bf16.mxu0 %v11516_v29  ;;  %8720 = vmatprep.subr.bf16.mxu1 %v11518_v30  ;;  %v11573_v29 = vcombine.low %v1259_v17, %v1263_v18  ;;  %v11580_v30 = vcombine.high %v1266_v23, %v1270_v24  ;;  %v11582_v31 = vcombine.high %v1267_v26, %v1271_v27  ;;  %v1322_v17 = vld [vmem:[#allocation5 + $0x2600] sm:$0xff] }
 0x283   :  { %v1326_v18 = vld [vmem:[#allocation5 + $0x2620] sm:$0xff] }
 0x285   :  { %8291 = vmatpush1.bf16.msra.mxu0 %v11515_v35  ;;  %8721 = vmatpush1.bf16.msra.mxu1 %v11517_v36  ;;  %v1275_v35 = vld [vmem:[#allocation5 + $0x2488] sm:$0xff] }
 0x286   :  { %8292 = vmatprep.subr.bf16.mxu0 %v11524_v37  ;;  %8722 = vmatprep.subr.bf16.mxu1 %v11526_v38  ;;  %v1279_v36 = vld [vmem:[#allocation5 + $0x24a8] sm:$0xff]  ;;  %v11579_v37 = vcombine.low %v1266_v23, %v1270_v24  ;;  %v11581_v38 = vcombine.low %v1267_v26, %v1271_v27  ;;  %v11636_v23 = vcombine.high %v1322_v17, %v1326_v18  ;;  %v1334_v26 = vld [vmem:[#allocation5 + $0x2660] sm:$0xff] }
 0x287   :  { %v11590_v40 = vcombine.high %v1275_v35, %v1279_v36  ;;  %v1331_v27 = vld [vmem:[#allocation5 + $0x2648] sm:$0xff] }
 0x289   :  { %8293 = vmatpush1.bf16.msra.mxu0 %v11523_v43  ;;  %8723 = vmatpush1.bf16.msra.mxu1 %v11525_v44  ;;  %v1283_v43 = vld [vmem:[#allocation5 + $0x24c8] sm:$0xff] }
 0x28a   :  { %8294 = vmatprep.subr.bf16.mxu0 %v11532_v45  ;;  %8724 = vmatprep.subr.bf16.mxu1 %v11534_v46  ;;  %v1287_v44 = vld [vmem:[#allocation5 + $0x24e8] sm:$0xff]  ;;  %v11587_v45 = vcombine.low %v1274_v32, %v1278_v33  ;;  %v11589_v46 = vcombine.low %v1275_v35, %v1279_v36  ;;  %v1338_v33 = vld [vmem:[#allocation5 + $0x2680] sm:$0xff] }
 0x28b   :  { %v11598_v48 = vcombine.high %v1283_v43, %v1287_v44  ;;  %v1339_v35 = vld [vmem:[#allocation5 + $0x2688] sm:$0xff] }
 0x28c   :  { %v1343_v36 = vld [vmem:[#allocation5 + $0x26a8] sm:$0xff] }
 0x28d   :  { %8295 = vmatpush1.bf16.msra.mxu0 %v11531_v51  ;;  %8725 = vmatpush1.bf16.msra.mxu1 %v11533_v52  ;;  %v1291_v51 = vld [vmem:[#allocation5 + $0x2508] sm:$0xff] }
 0x28e   :  { %8296 = vmatprep.subr.bf16.mxu0 %v11540_v53  ;;  %8726 = vmatprep.subr.bf16.mxu1 %v11542_v54  ;;  %v1295_v52 = vld [vmem:[#allocation5 + $0x2528] sm:$0xff]  ;;  %v11595_v53 = vcombine.low %v1282_v41, %v1286_v42  ;;  %v11597_v54 = vcombine.low %v1283_v43, %v1287_v44  ;;  %v1346_v41 = vld [vmem:[#allocation5 + $0x26c0] sm:$0xff] }
 0x28f   :  { %v11606_v56 = vcombine.high %v1291_v51, %v1295_v52  ;;  %v1350_v42 = vld [vmem:[#allocation5 + $0x26e0] sm:$0xff]  ;;  %v1347_v43 = vld [vmem:[#allocation5 + $0x26c8] sm:$0xff] }
 0x290   :  { %v1351_v44 = vld [vmem:[#allocation5 + $0x26e8] sm:$0xff] }
 0x291   :  { %8297 = vmatpush1.bf16.msra.mxu0 %v11539_v59  ;;  %8727 = vmatpush1.bf16.msra.mxu1 %v11541_v60  ;;  %v1299_v59 = vld [vmem:[#allocation5 + $0x2548] sm:$0xff] }
 0x292   :  { %8298 = vmatprep.subr.bf16.mxu0 %v11548_v61  ;;  %8728 = vmatprep.subr.bf16.mxu1 %v11550_v62  ;;  %v1303_v60 = vld [vmem:[#allocation5 + $0x2568] sm:$0xff]  ;;  %v11603_v61 = vcombine.low %v1290_v49, %v1294_v50  ;;  %v11605_v62 = vcombine.low %v1291_v51, %v1295_v52  ;;  %v1354_v49 = vld [vmem:[#allocation5 + $0x2700] sm:$0xff] }
 0x293   :  { %v11614_v0 = vcombine.high %v1299_v59, %v1303_v60  ;;  %v1358_v50 = vld [vmem:[#allocation5 + $0x2720] sm:$0xff]  ;;  %v1355_v51 = vld [vmem:[#allocation5 + $0x2708] sm:$0xff] }
 0x294   :  { %v1359_v52 = vld [vmem:[#allocation5 + $0x2728] sm:$0xff] }
 0x295   :  { %8299 = vmatpush1.bf16.msra.mxu0 %v11547_v3  ;;  %8729 = vmatpush1.bf16.msra.mxu1 %v11549_v4  ;;  %v1307_v3 = vld [vmem:[#allocation5 + $0x2588] sm:$0xff] }
 0x296   :  { %8300 = vmatprep.subr.bf16.mxu0 %v11556_v5  ;;  %8730 = vmatprep.subr.bf16.mxu1 %v11558_v6  ;;  %v1311_v4 = vld [vmem:[#allocation5 + $0x25a8] sm:$0xff]  ;;  %v11611_v5 = vcombine.low %v1298_v57, %v1302_v58  ;;  %v11613_v6 = vcombine.low %v1299_v59, %v1303_v60  ;;  %v1362_v57 = vld [vmem:[#allocation5 + $0x2740] sm:$0xff] }
 0x297   :  { %v11622_v8 = vcombine.high %v1307_v3, %v1311_v4  ;;  %v1366_v58 = vld [vmem:[#allocation5 + $0x2760] sm:$0xff]  ;;  %v1363_v59 = vld [vmem:[#allocation5 + $0x2748] sm:$0xff] }
 0x298   :  { %v1367_v60 = vld [vmem:[#allocation5 + $0x2768] sm:$0xff] }
 0x299   :  { %8301 = vmatpush1.bf16.msra.mxu0 %v11555_v11  ;;  %8731 = vmatpush1.bf16.msra.mxu1 %v11557_v12  ;;  %v1315_v11 = vld [vmem:[#allocation5 + $0x25c8] sm:$0xff] }
 0x29a   :  { %8302 = vmatprep.subr.bf16.mxu0 %v11564_v13  ;;  %8732 = vmatprep.subr.bf16.mxu1 %v11566_v14  ;;  %v1319_v12 = vld [vmem:[#allocation5 + $0x25e8] sm:$0xff]  ;;  %v11619_v13 = vcombine.low %v1306_v1, %v1310_v2  ;;  %v11621_v14 = vcombine.low %v1307_v3, %v1311_v4  ;;  %v1370_v1 = vld [vmem:[#allocation5 + $0x2780] sm:$0xff] }
 0x29b   :  { %v11630_v16 = vcombine.high %v1315_v11, %v1319_v12  ;;  %v1374_v2 = vld [vmem:[#allocation5 + $0x27a0] sm:$0xff]  ;;  %v1371_v3 = vld [vmem:[#allocation5 + $0x2788] sm:$0xff] }
 0x29c   :  { %v1375_v4 = vld [vmem:[#allocation5 + $0x27a8] sm:$0xff] }
 0x29d   :  { %8303 = vmatpush1.bf16.msra.mxu0 %v11563_v19  ;;  %8733 = vmatpush1.bf16.msra.mxu1 %v11565_v20  ;;  %v1323_v19 = vld [vmem:[#allocation5 + $0x2608] sm:$0xff] }
 0x29e   :  { %8315 = vmatprep.subr.bf16.mxu0 %v11572_v21  ;;  %8745 = vmatprep.subr.bf16.mxu1 %v11574_v22  ;;  %v1327_v20 = vld [vmem:[#allocation5 + $0x2628] sm:$0xff]  ;;  %v11627_v21 = vcombine.low %v1314_v9, %v1318_v10  ;;  %v11629_v22 = vcombine.low %v1315_v11, %v1319_v12  ;;  %v1378_v9 = vld [vmem:[#allocation5 + $0x27c0] sm:$0xff] }
 0x29f   :  { %v11638_v24 = vcombine.high %v1323_v19, %v1327_v20  ;;  %v1382_v10 = vld [vmem:[#allocation5 + $0x27e0] sm:$0xff]  ;;  %v1379_v11 = vld [vmem:[#allocation5 + $0x27c8] sm:$0xff] }
 0x2a0   :  { %8305 = vmatmul.mubr.bf16.vlgmr.msra.gmra.mrb[0].mxu0 %v12052_v25  ;;  %8735 = vmatmul.mubr.bf16.vlgmr.msra.gmra.mrb[0].mxu1 %v12052_v25  ;;  %v1330_v25 = vld [vmem:[#allocation5 + $0x2640] sm:$0xff]  ;;  %v1383_v12 = vld [vmem:[#allocation5 + $0x27e8] sm:$0xff] }
 0x2a1   :  { %8316 = vmatpush1.bf16.msra.mxu0 %v11571_v28  ;;  %8746 = vmatpush1.bf16.msra.mxu1 %v11573_v29  ;;  %v1335_v28 = vld [vmem:[#allocation5 + $0x2668] sm:$0xff]  ;;  %v11635_v29 = vcombine.low %v1322_v17, %v1326_v18  ;;  %v108_v17 = vld [vmem:[#allocation5 + $0x10] sm:$0xff] }
 0x2a2   :  { %8317 = vmatprep.subr.bf16.mxu0 %v11580_v30  ;;  %8747 = vmatprep.subr.bf16.mxu1 %v11582_v31  ;;  %v11637_v30 = vcombine.low %v1323_v19, %v1327_v20  ;;  %v11644_v31 = vcombine.high %v1330_v25, %v1334_v26  ;;  %v11646_v32 = vcombine.high %v1331_v27, %v1335_v28  ;;  %v112_v18 = vld [vmem:[#allocation5 + $0x30] sm:$0xff]  ;;  %v109_v19 = vld [vmem:[#allocation5 + $0x18] sm:$0xff] }
 0x2a3   :  { %8347 = vmatprep.mubr.bf16.mxu0 %v12053_v34  ;;  %8777 = vmatprep.mubr.bf16.mxu1 %v12053_v34  ;;  %v1342_v34 = vld [vmem:[#allocation5 + $0x26a0] sm:$0xff]  ;;  %v113_v20 = vld [vmem:[#allocation5 + $0x38] sm:$0xff] }
 0x2a5   :  { %8318 = vmatpush1.bf16.msra.mxu0 %v11579_v37  ;;  %8748 = vmatpush1.bf16.msra.mxu1 %v11581_v38  ;;  %v11643_v37 = vcombine.low %v1330_v25, %v1334_v26  ;;  %v11645_v38 = vcombine.low %v1331_v27, %v1335_v28  ;;  %v116_v25 = vld [vmem:[#allocation5 + $0x50] sm:$0xff]  ;;  %v12055_v27 = vld [vmem:[#allocation2 + $0x48] ss:$80 sps:$4 sm:$0xff]  }
 0x2a6   :  { %8319 = vmatprep.subr.bf16.mxu0 %v11588_v39  ;;  %8749 = vmatprep.subr.bf16.mxu1 %v11590_v40  ;;  %v11652_v39 = vcombine.high %v1338_v33, %v1342_v34  ;;  %v11654_v40 = vcombine.high %v1339_v35, %v1343_v36  ;;  %v120_v26 = vld [vmem:[#allocation5 + $0x70] sm:$0xff]  ;;  %v117_v28 = vld [vmem:[#allocation5 + $0x58] sm:$0xff] }
 0x2a9   :  { %8320 = vmatpush1.bf16.msra.mxu0 %v11587_v45  ;;  %8750 = vmatpush1.bf16.msra.mxu1 %v11589_v46  ;;  %v11651_v45 = vcombine.low %v1338_v33, %v1342_v34  ;;  %v11653_v46 = vcombine.low %v1339_v35, %v1343_v36  ;;  %v124_v34 = vld [vmem:[#allocation5 + $0x90] sm:$0xff]  ;;  %v125_v36 = vld [vmem:[#allocation5 + $0x98] sm:$0xff] }
 0x2aa   :  { %8321 = vmatprep.subr.bf16.mxu0 %v11596_v47  ;;  %8751 = vmatprep.subr.bf16.mxu1 %v11598_v48  ;;  %v11660_v47 = vcombine.high %v1346_v41, %v1350_v42  ;;  %v11662_v48 = vcombine.high %v1347_v43, %v1351_v44  ;;  %v128_v35 = vld [vmem:[#allocation5 + $0xb0] sm:$0xff] }
 0x2ad   :  { %8322 = vmatpush1.bf16.msra.mxu0 %v11595_v53  ;;  %8752 = vmatpush1.bf16.msra.mxu1 %v11597_v54  ;;  %v11659_v53 = vcombine.low %v1346_v41, %v1350_v42  ;;  %v11661_v54 = vcombine.low %v1347_v43, %v1351_v44  ;;  %v132_v42 = vld [vmem:[#allocation5 + $0xd0] sm:$0xff] }
 0x2ae   :  { %8323 = vmatprep.subr.bf16.mxu0 %v11604_v55  ;;  %8753 = vmatprep.subr.bf16.mxu1 %v11606_v56  ;;  %v11668_v55 = vcombine.high %v1354_v49, %v1358_v50  ;;  %v11670_v56 = vcombine.high %v1355_v51, %v1359_v52  ;;  %v136_v43 = vld [vmem:[#allocation5 + $0xf0] sm:$0xff] }
 0x2af   :  { %v12128_v44 = vld [vmem:[#allocation2 + $0x4] ss:$80 sps:$4 sm:$0xff]  }
 0x2b1   :  { %8324 = vmatpush1.bf16.msra.mxu0 %v11603_v61  ;;  %8754 = vmatpush1.bf16.msra.mxu1 %v11605_v62  ;;  %v11667_v61 = vcombine.low %v1354_v49, %v1358_v50  ;;  %v11669_v62 = vcombine.low %v1355_v51, %v1359_v52  ;;  %v10448_v49 = vcombine.high %v132_v42, %v136_v43  ;;  %v140_v51 = vld [vmem:[#allocation5 + $0x110] sm:$0xff] }
 0x2b2   :  { %8325 = vmatprep.subr.bf16.mxu0 %v11612_v63  ;;  %8755 = vmatprep.subr.bf16.mxu1 %v11614_v0  ;;  %v11676_v63 = vcombine.high %v1362_v57, %v1366_v58  ;;  %v11678_v0 = vcombine.high %v1363_v59, %v1367_v60  ;;  %v144_v52 = vld [vmem:[#allocation5 + $0x130] sm:$0xff] }
 0x2b5   :  { %8326 = vmatpush1.bf16.msra.mxu0 %v11611_v5  ;;  %8756 = vmatpush1.bf16.msra.mxu1 %v11613_v6  ;;  %v11675_v5 = vcombine.low %v1362_v57, %v1366_v58  ;;  %v11677_v6 = vcombine.low %v1363_v59, %v1367_v60  ;;  %v10456_v57 = vcombine.high %v140_v51, %v144_v52  ;;  %v148_v59 = vld [vmem:[#allocation5 + $0x150] sm:$0xff] }
 0x2b6   :  { %8327 = vmatprep.subr.bf16.mxu0 %v11620_v7  ;;  %8757 = vmatprep.subr.bf16.mxu1 %v11622_v8  ;;  %v11684_v7 = vcombine.high %v1370_v1, %v1374_v2  ;;  %v11686_v8 = vcombine.high %v1371_v3, %v1375_v4  ;;  %v152_v60 = vld [vmem:[#allocation5 + $0x170] sm:$0xff] }
 0x2b9   :  { %8328 = vmatpush1.bf16.msra.mxu0 %v11619_v13  ;;  %8758 = vmatpush1.bf16.msra.mxu1 %v11621_v14  ;;  %v11683_v13 = vcombine.low %v1370_v1, %v1374_v2  ;;  %v11685_v14 = vcombine.low %v1371_v3, %v1375_v4  ;;  %v10464_v1 = vcombine.high %v148_v59, %v152_v60  ;;  %v156_v3 = vld [vmem:[#allocation5 + $0x190] sm:$0xff] }
 0x2ba   :  { %8329 = vmatprep.subr.bf16.mxu0 %v11628_v15  ;;  %8759 = vmatprep.subr.bf16.mxu1 %v11630_v16  ;;  %v11692_v15 = vcombine.high %v1378_v9, %v1382_v10  ;;  %v11694_v16 = vcombine.high %v1379_v11, %v1383_v12  ;;  %v160_v4 = vld [vmem:[#allocation5 + $0x1b0] sm:$0xff] }
 0x2bd   :  { %8330 = vmatpush1.bf16.msra.mxu0 %v11627_v21  ;;  %8760 = vmatpush1.bf16.msra.mxu1 %v11629_v22  ;;  %v11691_v21 = vcombine.low %v1378_v9, %v1382_v10  ;;  %v11693_v22 = vcombine.low %v1379_v11, %v1383_v12  ;;  %v10472_v9 = vcombine.high %v156_v3, %v160_v4  ;;  %v164_v11 = vld [vmem:[#allocation5 + $0x1d0] sm:$0xff] }
 0x2be   :  { %8331 = vmatprep.subr.bf16.mxu0 %v11636_v23  ;;  %8761 = vmatprep.subr.bf16.mxu1 %v11638_v24  ;;  %v10424_v23 = vcombine.high %v108_v17, %v112_v18  ;;  %v10426_v24 = vcombine.high %v109_v19, %v113_v20  ;;  %v168_v12 = vld [vmem:[#allocation5 + $0x1f0] sm:$0xff] }
 0x2c1   :  { %8332 = vmatpush1.bf16.msra.mxu0 %v11635_v29  ;;  %8762 = vmatpush1.bf16.msra.mxu1 %v11637_v30  ;;  %v121_v29 = vld [vmem:[#allocation5 + $0x78] sm:$0xff]  ;;  %v10423_v30 = vcombine.low %v108_v17, %v112_v18  ;;  %v10480_v17 = vcombine.high %v164_v11, %v168_v12 }
 0x2c2   :  { %8333 = vmatprep.subr.bf16.mxu0 %v11644_v31  ;;  %8763 = vmatprep.subr.bf16.mxu1 %v11646_v32  ;;  %v10425_v31 = vcombine.low %v109_v19, %v113_v20  ;;  %v10432_v32 = vcombine.high %v116_v25, %v120_v26  ;;  %v10434_v33 = vcombine.high %v117_v28, %v121_v29  ;;  %v172_v19 = vld [vmem:[#allocation5 + $0x210] sm:$0xff] }
 0x2c3   :  { %v176_v20 = vld [vmem:[#allocation5 + $0x230] sm:$0xff] }
 0x2c5   :  { %8334 = vmatpush1.bf16.msra.mxu0 %v11643_v37  ;;  %8764 = vmatpush1.bf16.msra.mxu1 %v11645_v38  ;;  %v129_v37 = vld [vmem:[#allocation5 + $0xb8] sm:$0xff]  ;;  %v10431_v38 = vcombine.low %v116_v25, %v120_v26  ;;  %v10488_v25 = vcombine.high %v172_v19, %v176_v20 }
 0x2c6   :  { %8335 = vmatprep.subr.bf16.mxu0 %v11652_v39  ;;  %8765 = vmatprep.subr.bf16.mxu1 %v11654_v40  ;;  %v10433_v39 = vcombine.low %v117_v28, %v121_v29  ;;  %v10440_v40 = vcombine.high %v124_v34, %v128_v35  ;;  %v10442_v41 = vcombine.high %v125_v36, %v129_v37  ;;  %v184_v28 = vld [vmem:[#allocation5 + $0x270] sm:$0xff]  ;;  %v181_v29 = vld [vmem:[#allocation5 + $0x258] sm:$0xff] }
 0x2c9   :  { %8336 = vmatpush1.bf16.msra.mxu0 %v11651_v45  ;;  %8766 = vmatpush1.bf16.msra.mxu1 %v11653_v46  ;;  %v133_v45 = vld [vmem:[#allocation5 + $0xd8] sm:$0xff] }
 0x2ca   :  { %8337 = vmatprep.subr.bf16.mxu0 %v11660_v47  ;;  %8767 = vmatprep.subr.bf16.mxu1 %v11662_v48  ;;  %v137_v46 = vld [vmem:[#allocation5 + $0xf8] sm:$0xff]  ;;  %v10439_v47 = vcombine.low %v124_v34, %v128_v35  ;;  %v10441_v48 = vcombine.low %v125_v36, %v129_v37  ;;  %v188_v35 = vld [vmem:[#allocation5 + $0x290] sm:$0xff] }
 0x2cb   :  { %v10450_v50 = vcombine.high %v133_v45, %v137_v46  ;;  %v192_v36 = vld [vmem:[#allocation5 + $0x2b0] sm:$0xff]  ;;  %v189_v37 = vld [vmem:[#allocation5 + $0x298] sm:$0xff] }
 0x2cd   :  { %8338 = vmatpush1.bf16.msra.mxu0 %v11659_v53  ;;  %8768 = vmatpush1.bf16.msra.mxu1 %v11661_v54  ;;  %v141_v53 = vld [vmem:[#allocation5 + $0x118] sm:$0xff] }
 0x2ce   :  { %8339 = vmatprep.subr.bf16.mxu0 %v11668_v55  ;;  %8769 = vmatprep.subr.bf16.mxu1 %v11670_v56  ;;  %v145_v54 = vld [vmem:[#allocation5 + $0x138] sm:$0xff]  ;;  %v10447_v55 = vcombine.low %v132_v42, %v136_v43  ;;  %v10449_v56 = vcombine.low %v133_v45, %v137_v46  ;;  %v196_v43 = vld [vmem:[#allocation5 + $0x2d0] sm:$0xff] }
 0x2cf   :  { %v10458_v58 = vcombine.high %v141_v53, %v145_v54  ;;  %v197_v45 = vld [vmem:[#allocation5 + $0x2d8] sm:$0xff] }
 0x2d0   :  { %v201_v46 = vld [vmem:[#allocation5 + $0x2f8] sm:$0xff] }
 0x2d1   :  { %8340 = vmatpush1.bf16.msra.mxu0 %v11667_v61  ;;  %8770 = vmatpush1.bf16.msra.mxu1 %v11669_v62  ;;  %v149_v61 = vld [vmem:[#allocation5 + $0x158] sm:$0xff] }
 0x2d2   :  { %8341 = vmatprep.subr.bf16.mxu0 %v11676_v63  ;;  %8771 = vmatprep.subr.bf16.mxu1 %v11678_v0  ;;  %v153_v62 = vld [vmem:[#allocation5 + $0x178] sm:$0xff]  ;;  %v10455_v63 = vcombine.low %v140_v51, %v144_v52  ;;  %v10457_v0 = vcombine.low %v141_v53, %v145_v54  ;;  %v204_v51 = vld [vmem:[#allocation5 + $0x310] sm:$0xff] }
 0x2d3   :  { %v10466_v2 = vcombine.high %v149_v61, %v153_v62  ;;  %v208_v52 = vld [vmem:[#allocation5 + $0x330] sm:$0xff]  ;;  %v205_v53 = vld [vmem:[#allocation5 + $0x318] sm:$0xff] }
 0x2d4   :  { %v209_v54 = vld [vmem:[#allocation5 + $0x338] sm:$0xff] }
 0x2d5   :  { %8342 = vmatpush1.bf16.msra.mxu0 %v11675_v5  ;;  %8772 = vmatpush1.bf16.msra.mxu1 %v11677_v6  ;;  %v157_v5 = vld [vmem:[#allocation5 + $0x198] sm:$0xff] }
 0x2d6   :  { %8343 = vmatprep.subr.bf16.mxu0 %v11684_v7  ;;  %8773 = vmatprep.subr.bf16.mxu1 %v11686_v8  ;;  %v161_v6 = vld [vmem:[#allocation5 + $0x1b8] sm:$0xff]  ;;  %v10463_v7 = vcombine.low %v148_v59, %v152_v60  ;;  %v10465_v8 = vcombine.low %v149_v61, %v153_v62  ;;  %v212_v59 = vld [vmem:[#allocation5 + $0x350] sm:$0xff] }
 0x2d7   :  { %v10474_v10 = vcombine.high %v157_v5, %v161_v6  ;;  %v216_v60 = vld [vmem:[#allocation5 + $0x370] sm:$0xff]  ;;  %v213_v61 = vld [vmem:[#allocation5 + $0x358] sm:$0xff] }
 0x2d8   :  { %v217_v62 = vld [vmem:[#allocation5 + $0x378] sm:$0xff] }
 0x2d9   :  { %8344 = vmatpush1.bf16.msra.mxu0 %v11683_v13  ;;  %8774 = vmatpush1.bf16.msra.mxu1 %v11685_v14  ;;  %v165_v13 = vld [vmem:[#allocation5 + $0x1d8] sm:$0xff] }
 0x2da   :  { %8345 = vmatprep.subr.bf16.mxu0 %v11692_v15  ;;  %8775 = vmatprep.subr.bf16.mxu1 %v11694_v16  ;;  %v169_v14 = vld [vmem:[#allocation5 + $0x1f8] sm:$0xff]  ;;  %v10471_v15 = vcombine.low %v156_v3, %v160_v4  ;;  %v10473_v16 = vcombine.low %v157_v5, %v161_v6  ;;  %v220_v3 = vld [vmem:[#allocation5 + $0x390] sm:$0xff] }
 0x2db   :  { %v10482_v18 = vcombine.high %v165_v13, %v169_v14  ;;  %v224_v4 = vld [vmem:[#allocation5 + $0x3b0] sm:$0xff]  ;;  %v221_v5 = vld [vmem:[#allocation5 + $0x398] sm:$0xff] }
 0x2dc   :  { %v225_v6 = vld [vmem:[#allocation5 + $0x3b8] sm:$0xff] }
 0x2dd   :  { %8346 = vmatpush1.bf16.msra.mxu0 %v11691_v21  ;;  %8776 = vmatpush1.bf16.msra.mxu1 %v11693_v22  ;;  %v173_v21 = vld [vmem:[#allocation5 + $0x218] sm:$0xff] }
 0x2de   :  { %8788 = vmatprep.subr.bf16.mxu0 %v10424_v23  ;;  %9218 = vmatprep.subr.bf16.mxu1 %v10426_v24  ;;  %v177_v22 = vld [vmem:[#allocation5 + $0x238] sm:$0xff]  ;;  %v10479_v23 = vcombine.low %v164_v11, %v168_v12  ;;  %v10481_v24 = vcombine.low %v165_v13, %v169_v14  ;;  %v228_v11 = vld [vmem:[#allocation5 + $0x3d0] sm:$0xff] }
 0x2df   :  { %v10490_v26 = vcombine.high %v173_v21, %v177_v22  ;;  %v232_v12 = vld [vmem:[#allocation5 + $0x3f0] sm:$0xff]  ;;  %v229_v13 = vld [vmem:[#allocation5 + $0x3d8] sm:$0xff] }
 0x2e0   :  { %8348 = vmatmul.mubr.bf16.vlgmr.msra.gmra.mrb[0].mxu0 %v12055_v27  ;;  %8778 = vmatmul.mubr.bf16.vlgmr.msra.gmra.mrb[0].mxu1 %v12055_v27  ;;  %v180_v27 = vld [vmem:[#allocation5 + $0x250] sm:$0xff]  ;;  %v233_v14 = vld [vmem:[#allocation5 + $0x3f8] sm:$0xff] }
 0x2e1   :  { %8789 = vmatpush1.bf16.msra.mxu0 %v10423_v30  ;;  %9219 = vmatpush1.bf16.msra.mxu1 %v10425_v31  ;;  %v185_v30 = vld [vmem:[#allocation5 + $0x278] sm:$0xff]  ;;  %v10487_v31 = vcombine.low %v172_v19, %v176_v20  ;;  %v236_v19 = vld [vmem:[#allocation5 + $0x410] sm:$0xff] }
 0x2e2   :  { %8790 = vmatprep.subr.bf16.mxu0 %v10432_v32  ;;  %9220 = vmatprep.subr.bf16.mxu1 %v10434_v33  ;;  %v10489_v32 = vcombine.low %v173_v21, %v177_v22  ;;  %v10496_v33 = vcombine.high %v180_v27, %v184_v28  ;;  %v10498_v34 = vcombine.high %v181_v29, %v185_v30  ;;  %v240_v20 = vld [vmem:[#allocation5 + $0x430] sm:$0xff]  ;;  %v237_v21 = vld [vmem:[#allocation5 + $0x418] sm:$0xff] }
 0x2e3   :  { %8820 = vmatprep.mubr.bf16.mxu0 %v12128_v44  ;;  %9250 = vmatprep.mubr.bf16.mxu1 %v12128_v44  ;;  %v200_v44 = vld [vmem:[#allocation5 + $0x2f0] sm:$0xff]  ;;  %v241_v22 = vld [vmem:[#allocation5 + $0x438] sm:$0xff] }
 0x2e5   :  { %8791 = vmatpush1.bf16.msra.mxu0 %v10431_v38  ;;  %9221 = vmatpush1.bf16.msra.mxu1 %v10433_v39  ;;  %v193_v38 = vld [vmem:[#allocation5 + $0x2b8] sm:$0xff]  ;;  %v10495_v39 = vcombine.low %v180_v27, %v184_v28  ;;  %v244_v27 = vld [vmem:[#allocation5 + $0x450] sm:$0xff] }
 0x2e6   :  { %8792 = vmatprep.subr.bf16.mxu0 %v10440_v40  ;;  %9222 = vmatprep.subr.bf16.mxu1 %v10442_v41  ;;  %v10497_v40 = vcombine.low %v181_v29, %v185_v30  ;;  %v10504_v41 = vcombine.high %v188_v35, %v192_v36  ;;  %v10506_v42 = vcombine.high %v189_v37, %v193_v38  ;;  %v248_v28 = vld [vmem:[#allocation5 + $0x470] sm:$0xff]  ;;  %v245_v29 = vld [vmem:[#allocation5 + $0x458] sm:$0xff] }
 0x2e7   :  { %v249_v30 = vld [vmem:[#allocation5 + $0x478] sm:$0xff] }
 0x2e9   :  { %8793 = vmatpush1.bf16.msra.mxu0 %v10439_v47  ;;  %9223 = vmatpush1.bf16.msra.mxu1 %v10441_v48  ;;  %v10503_v47 = vcombine.low %v188_v35, %v192_v36  ;;  %v10505_v48 = vcombine.low %v189_v37, %v193_v38  ;;  %v252_v35 = vld [vmem:[#allocation5 + $0x490] sm:$0xff]  ;;  %v253_v38 = vld [vmem:[#allocation5 + $0x498] sm:$0xff] }
 0x2ea   :  { %8794 = vmatprep.subr.bf16.mxu0 %v10448_v49  ;;  %9224 = vmatprep.subr.bf16.mxu1 %v10450_v50  ;;  %v10512_v49 = vcombine.high %v196_v43, %v200_v44  ;;  %v10514_v50 = vcombine.high %v197_v45, %v201_v46  ;;  %v256_v36 = vld [vmem:[#allocation5 + $0x4b0] sm:$0xff] }
 0x2eb   :  { %v12129_v37 = vld [vmem:[#allocation2] ss:$80 sps:$4 sm:$0xff]  }
 0x2ed   :  { %8795 = vmatpush1.bf16.msra.mxu0 %v10447_v55  ;;  %9225 = vmatpush1.bf16.msra.mxu1 %v10449_v56  ;;  %v10511_v55 = vcombine.low %v196_v43, %v200_v44  ;;  %v10513_v56 = vcombine.low %v197_v45, %v201_v46  ;;  %v260_v44 = vld [vmem:[#allocation5 + $0x4d0] sm:$0xff]  ;;  %v12130_v46 = vld [vmem:[#allocation2 + $0xc] ss:$80 sps:$4 sm:$0xff]  }
 0x2ee   :  { %8796 = vmatprep.subr.bf16.mxu0 %v10456_v57  ;;  %9226 = vmatprep.subr.bf16.mxu1 %v10458_v58  ;;  %v10520_v57 = vcombine.high %v204_v51, %v208_v52  ;;  %v10522_v58 = vcombine.high %v205_v53, %v209_v54  ;;  %v264_v45 = vld [vmem:[#allocation5 + $0x4f0] sm:$0xff] }
 0x2f1   :  { %8797 = vmatpush1.bf16.msra.mxu0 %v10455_v63  ;;  %9227 = vmatpush1.bf16.msra.mxu1 %v10457_v0  ;;  %v10519_v63 = vcombine.low %v204_v51, %v208_v52  ;;  %v10521_v0 = vcombine.low %v205_v53, %v209_v54  ;;  %v10576_v51 = vcombine.high %v260_v44, %v264_v45  ;;  %v268_v53 = vld [vmem:[#allocation5 + $0x510] sm:$0xff] }
 0x2f2   :  { %8798 = vmatprep.subr.bf16.mxu0 %v10464_v1  ;;  %9228 = vmatprep.subr.bf16.mxu1 %v10466_v2  ;;  %v10528_v1 = vcombine.high %v212_v59, %v216_v60  ;;  %v10530_v2 = vcombine.high %v213_v61, %v217_v62  ;;  %v272_v54 = vld [vmem:[#allocation5 + $0x530] sm:$0xff] }
 0x2f5   :  { %8799 = vmatpush1.bf16.msra.mxu0 %v10463_v7  ;;  %9229 = vmatpush1.bf16.msra.mxu1 %v10465_v8  ;;  %v10527_v7 = vcombine.low %v212_v59, %v216_v60  ;;  %v10529_v8 = vcombine.low %v213_v61, %v217_v62  ;;  %v10584_v59 = vcombine.high %v268_v53, %v272_v54  ;;  %v276_v61 = vld [vmem:[#allocation5 + $0x550] sm:$0xff] }
 0x2f6   :  { %8800 = vmatprep.subr.bf16.mxu0 %v10472_v9  ;;  %9230 = vmatprep.subr.bf16.mxu1 %v10474_v10  ;;  %v10536_v9 = vcombine.high %v220_v3, %v224_v4  ;;  %v10538_v10 = vcombine.high %v221_v5, %v225_v6  ;;  %v280_v62 = vld [vmem:[#allocation5 + $0x570] sm:$0xff] }
 0x2f9   :  { %8801 = vmatpush1.bf16.msra.mxu0 %v10471_v15  ;;  %9231 = vmatpush1.bf16.msra.mxu1 %v10473_v16  ;;  %v10535_v15 = vcombine.low %v220_v3, %v224_v4  ;;  %v10537_v16 = vcombine.low %v221_v5, %v225_v6  ;;  %v10592_v3 = vcombine.high %v276_v61, %v280_v62  ;;  %v284_v5 = vld [vmem:[#allocation5 + $0x590] sm:$0xff] }
 0x2fa   :  { %8802 = vmatprep.subr.bf16.mxu0 %v10480_v17  ;;  %9232 = vmatprep.subr.bf16.mxu1 %v10482_v18  ;;  %v10544_v17 = vcombine.high %v228_v11, %v232_v12  ;;  %v10546_v18 = vcombine.high %v229_v13, %v233_v14  ;;  %v288_v6 = vld [vmem:[#allocation5 + $0x5b0] sm:$0xff] }
 0x2fd   :  { %8803 = vmatpush1.bf16.msra.mxu0 %v10479_v23  ;;  %9233 = vmatpush1.bf16.msra.mxu1 %v10481_v24  ;;  %v10543_v23 = vcombine.low %v228_v11, %v232_v12  ;;  %v10545_v24 = vcombine.low %v229_v13, %v233_v14  ;;  %v10600_v11 = vcombine.high %v284_v5, %v288_v6  ;;  %v292_v13 = vld [vmem:[#allocation5 + $0x5d0] sm:$0xff] }
 0x2fe   :  { %8804 = vmatprep.subr.bf16.mxu0 %v10488_v25  ;;  %9234 = vmatprep.subr.bf16.mxu1 %v10490_v26  ;;  %v10552_v25 = vcombine.high %v236_v19, %v240_v20  ;;  %v10554_v26 = vcombine.high %v237_v21, %v241_v22  ;;  %v296_v14 = vld [vmem:[#allocation5 + $0x5f0] sm:$0xff] }
 0x301   :  { %8805 = vmatpush1.bf16.msra.mxu0 %v10487_v31  ;;  %9235 = vmatpush1.bf16.msra.mxu1 %v10489_v32  ;;  %v10551_v31 = vcombine.low %v236_v19, %v240_v20  ;;  %v10553_v32 = vcombine.low %v237_v21, %v241_v22  ;;  %v10608_v19 = vcombine.high %v292_v13, %v296_v14  ;;  %v300_v21 = vld [vmem:[#allocation5 + $0x610] sm:$0xff] }
 0x302   :  { %8806 = vmatprep.subr.bf16.mxu0 %v10496_v33  ;;  %9236 = vmatprep.subr.bf16.mxu1 %v10498_v34  ;;  %v10560_v33 = vcombine.high %v244_v27, %v248_v28  ;;  %v10562_v34 = vcombine.high %v245_v29, %v249_v30  ;;  %v304_v22 = vld [vmem:[#allocation5 + $0x630] sm:$0xff] }
 0x305   :  { %8807 = vmatpush1.bf16.msra.mxu0 %v10495_v39  ;;  %9237 = vmatpush1.bf16.msra.mxu1 %v10497_v40  ;;  %v257_v39 = vld [vmem:[#allocation5 + $0x4b8] sm:$0xff]  ;;  %v10559_v40 = vcombine.low %v244_v27, %v248_v28  ;;  %v10616_v27 = vcombine.high %v300_v21, %v304_v22 }
 0x306   :  { %8808 = vmatprep.subr.bf16.mxu0 %v10504_v41  ;;  %9238 = vmatprep.subr.bf16.mxu1 %v10506_v42  ;;  %v10561_v41 = vcombine.low %v245_v29, %v249_v30  ;;  %v10568_v42 = vcombine.high %v252_v35, %v256_v36  ;;  %v10570_v43 = vcombine.high %v253_v38, %v257_v39  ;;  %v308_v29 = vld [vmem:[#allocation5 + $0x650] sm:$0xff] }
 0x307   :  { %v312_v30 = vld [vmem:[#allocation5 + $0x670] sm:$0xff] }
 0x309   :  { %8809 = vmatpush1.bf16.msra.mxu0 %v10503_v47  ;;  %9239 = vmatpush1.bf16.msra.mxu1 %v10505_v48  ;;  %v261_v47 = vld [vmem:[#allocation5 + $0x4d8] sm:$0xff] }
 0x30a   :  { %8810 = vmatprep.subr.bf16.mxu0 %v10512_v49  ;;  %9240 = vmatprep.subr.bf16.mxu1 %v10514_v50  ;;  %v265_v48 = vld [vmem:[#allocation5 + $0x4f8] sm:$0xff]  ;;  %v10567_v49 = vcombine.low %v252_v35, %v256_v36  ;;  %v10569_v50 = vcombine.low %v253_v38, %v257_v39  ;;  %v10624_v35 = vcombine.high %v308_v29, %v312_v30  ;;  %v320_v38 = vld [vmem:[#allocation5 + $0x6b0] sm:$0xff] }
 0x30b   :  { %v10578_v52 = vcombine.high %v261_v47, %v265_v48  ;;  %v317_v39 = vld [vmem:[#allocation5 + $0x698] sm:$0xff] }
 0x30d   :  { %8811 = vmatpush1.bf16.msra.mxu0 %v10511_v55  ;;  %9241 = vmatpush1.bf16.msra.mxu1 %v10513_v56  ;;  %v269_v55 = vld [vmem:[#allocation5 + $0x518] sm:$0xff] }
 0x30e   :  { %8812 = vmatprep.subr.bf16.mxu0 %v10520_v57  ;;  %9242 = vmatprep.subr.bf16.mxu1 %v10522_v58  ;;  %v273_v56 = vld [vmem:[#allocation5 + $0x538] sm:$0xff]  ;;  %v10575_v57 = vcombine.low %v260_v44, %v264_v45  ;;  %v10577_v58 = vcombine.low %v261_v47, %v265_v48  ;;  %v324_v45 = vld [vmem:[#allocation5 + $0x6d0] sm:$0xff] }
 0x30f   :  { %v10586_v60 = vcombine.high %v269_v55, %v273_v56  ;;  %v325_v47 = vld [vmem:[#allocation5 + $0x6d8] sm:$0xff] }
 0x310   :  { %v329_v48 = vld [vmem:[#allocation5 + $0x6f8] sm:$0xff] }
 0x311   :  { %8813 = vmatpush1.bf16.msra.mxu0 %v10519_v63  ;;  %9243 = vmatpush1.bf16.msra.mxu1 %v10521_v0  ;;  %v277_v63 = vld [vmem:[#allocation5 + $0x558] sm:$0xff] }
 0x312   :  { %8814 = vmatprep.subr.bf16.mxu0 %v10528_v1  ;;  %9244 = vmatprep.subr.bf16.mxu1 %v10530_v2  ;;  %v281_v0 = vld [vmem:[#allocation5 + $0x578] sm:$0xff]  ;;  %v10583_v1 = vcombine.low %v268_v53, %v272_v54  ;;  %v10585_v2 = vcombine.low %v269_v55, %v273_v56  ;;  %v332_v53 = vld [vmem:[#allocation5 + $0x710] sm:$0xff] }
 0x313   :  { %v10594_v4 = vcombine.high %v277_v63, %v281_v0  ;;  %v336_v54 = vld [vmem:[#allocation5 + $0x730] sm:$0xff]  ;;  %v333_v55 = vld [vmem:[#allocation5 + $0x718] sm:$0xff] }
 0x314   :  { %v337_v56 = vld [vmem:[#allocation5 + $0x738] sm:$0xff] }
 0x315   :  { %8815 = vmatpush1.bf16.msra.mxu0 %v10527_v7  ;;  %9245 = vmatpush1.bf16.msra.mxu1 %v10529_v8  ;;  %v285_v7 = vld [vmem:[#allocation5 + $0x598] sm:$0xff] }
 0x316   :  { %8816 = vmatprep.subr.bf16.mxu0 %v10536_v9  ;;  %9246 = vmatprep.subr.bf16.mxu1 %v10538_v10  ;;  %v289_v8 = vld [vmem:[#allocation5 + $0x5b8] sm:$0xff]  ;;  %v10591_v9 = vcombine.low %v276_v61, %v280_v62  ;;  %v10593_v10 = vcombine.low %v277_v63, %v281_v0  ;;  %v340_v61 = vld [vmem:[#allocation5 + $0x750] sm:$0xff] }
 0x317   :  { %v10602_v12 = vcombine.high %v285_v7, %v289_v8  ;;  %v344_v62 = vld [vmem:[#allocation5 + $0x770] sm:$0xff]  ;;  %v341_v63 = vld [vmem:[#allocation5 + $0x758] sm:$0xff] }
 0x318   :  { %v345_v0 = vld [vmem:[#allocation5 + $0x778] sm:$0xff] }
 0x319   :  { %8817 = vmatpush1.bf16.msra.mxu0 %v10535_v15  ;;  %9247 = vmatpush1.bf16.msra.mxu1 %v10537_v16  ;;  %v293_v15 = vld [vmem:[#allocation5 + $0x5d8] sm:$0xff] }
 0x31a   :  { %8818 = vmatprep.subr.bf16.mxu0 %v10544_v17  ;;  %9248 = vmatprep.subr.bf16.mxu1 %v10546_v18  ;;  %v297_v16 = vld [vmem:[#allocation5 + $0x5f8] sm:$0xff]  ;;  %v10599_v17 = vcombine.low %v284_v5, %v288_v6  ;;  %v10601_v18 = vcombine.low %v285_v7, %v289_v8  ;;  %v348_v5 = vld [vmem:[#allocation5 + $0x790] sm:$0xff] }
 0x31b   :  { %v10610_v20 = vcombine.high %v293_v15, %v297_v16  ;;  %v352_v6 = vld [vmem:[#allocation5 + $0x7b0] sm:$0xff]  ;;  %v349_v7 = vld [vmem:[#allocation5 + $0x798] sm:$0xff] }
 0x31c   :  { %v353_v8 = vld [vmem:[#allocation5 + $0x7b8] sm:$0xff] }
 0x31d   :  { %8819 = vmatpush1.bf16.msra.mxu0 %v10543_v23  ;;  %9249 = vmatpush1.bf16.msra.mxu1 %v10545_v24  ;;  %v301_v23 = vld [vmem:[#allocation5 + $0x618] sm:$0xff] }
 0x31e   :  { %8831 = vmatprep.subr.bf16.mxu0 %v10552_v25  ;;  %9261 = vmatprep.subr.bf16.mxu1 %v10554_v26  ;;  %v305_v24 = vld [vmem:[#allocation5 + $0x638] sm:$0xff]  ;;  %v10607_v25 = vcombine.low %v292_v13, %v296_v14  ;;  %v10609_v26 = vcombine.low %v293_v15, %v297_v16  ;;  %v356_v13 = vld [vmem:[#allocation5 + $0x7d0] sm:$0xff] }
 0x31f   :  { %v10618_v28 = vcombine.high %v301_v23, %v305_v24  ;;  %v360_v14 = vld [vmem:[#allocation5 + $0x7f0] sm:$0xff]  ;;  %v357_v15 = vld [vmem:[#allocation5 + $0x7d8] sm:$0xff] }
 0x320   :  { %8821 = vmatmul.mubr.bf16.vlgmr.msra.gmra.mrb[4].mxu0 %v12129_v37  ;;  %9251 = vmatmul.mubr.bf16.vlgmr.msra.gmra.mrb[4].mxu1 %v12129_v37  ;;  %v316_v37 = vld [vmem:[#allocation5 + $0x690] sm:$0xff]  ;;  %v361_v16 = vld [vmem:[#allocation5 + $0x7f8] sm:$0xff] }
 0x321   :  { %8832 = vmatpush1.bf16.msra.mxu0 %v10551_v31  ;;  %9262 = vmatpush1.bf16.msra.mxu1 %v10553_v32  ;;  %v309_v31 = vld [vmem:[#allocation5 + $0x658] sm:$0xff] }
 0x322   :  { %8833 = vmatprep.subr.bf16.mxu0 %v10560_v33  ;;  %9263 = vmatprep.subr.bf16.mxu1 %v10562_v34  ;;  %v313_v32 = vld [vmem:[#allocation5 + $0x678] sm:$0xff]  ;;  %v10615_v33 = vcombine.low %v300_v21, %v304_v22  ;;  %v10617_v34 = vcombine.low %v301_v23, %v305_v24  ;;  %v364_v21 = vld [vmem:[#allocation5 + $0x810] sm:$0xff] }
 0x323   :  { %8863 = vmatprep.mubr.bf16.mxu0 %v12130_v46  ;;  %9293 = vmatprep.mubr.bf16.mxu1 %v12130_v46  ;;  %v10626_v36 = vcombine.high %v309_v31, %v313_v32  ;;  %v328_v46 = vld [vmem:[#allocation5 + $0x6f0] sm:$0xff]  ;;  %v365_v23 = vld [vmem:[#allocation5 + $0x818] sm:$0xff] }
 0x324   :  { %v368_v22 = vld [vmem:[#allocation5 + $0x830] sm:$0xff]  ;;  %v369_v24 = vld [vmem:[#allocation5 + $0x838] sm:$0xff] }
 0x325   :  { %8834 = vmatpush1.bf16.msra.mxu0 %v10559_v40  ;;  %9264 = vmatpush1.bf16.msra.mxu1 %v10561_v41  ;;  %v321_v40 = vld [vmem:[#allocation5 + $0x6b8] sm:$0xff]  ;;  %v10623_v41 = vcombine.low %v308_v29, %v312_v30  ;;  %v372_v29 = vld [vmem:[#allocation5 + $0x850] sm:$0xff] }
 0x326   :  { %8835 = vmatprep.subr.bf16.mxu0 %v10568_v42  ;;  %9265 = vmatprep.subr.bf16.mxu1 %v10570_v43  ;;  %v10625_v42 = vcombine.low %v309_v31, %v313_v32  ;;  %v10632_v43 = vcombine.high %v316_v37, %v320_v38  ;;  %v10634_v44 = vcombine.high %v317_v39, %v321_v40  ;;  %v376_v30 = vld [vmem:[#allocation5 + $0x870] sm:$0xff]  ;;  %v373_v31 = vld [vmem:[#allocation5 + $0x858] sm:$0xff] }
 0x327   :  { %v377_v32 = vld [vmem:[#allocation5 + $0x878] sm:$0xff] }
 0x329   :  { %8836 = vmatpush1.bf16.msra.mxu0 %v10567_v49  ;;  %9266 = vmatpush1.bf16.msra.mxu1 %v10569_v50  ;;  %v10631_v49 = vcombine.low %v316_v37, %v320_v38  ;;  %v10633_v50 = vcombine.low %v317_v39, %v321_v40  ;;  %v380_v37 = vld [vmem:[#allocation5 + $0x890] sm:$0xff]  ;;  %v12131_v39 = vld [vmem:[#allocation2 + $0x8] ss:$80 sps:$4 sm:$0xff]  }
 0x32a   :  { %8837 = vmatprep.subr.bf16.mxu0 %v10576_v51  ;;  %9267 = vmatprep.subr.bf16.mxu1 %v10578_v52  ;;  %v10640_v51 = vcombine.high %v324_v45, %v328_v46  ;;  %v10642_v52 = vcombine.high %v325_v47, %v329_v48  ;;  %v384_v38 = vld [vmem:[#allocation5 + $0x8b0] sm:$0xff]  ;;  %v381_v40 = vld [vmem:[#allocation5 + $0x898] sm:$0xff] }
 0x32d   :  { %8838 = vmatpush1.bf16.msra.mxu0 %v10575_v57  ;;  %9268 = vmatpush1.bf16.msra.mxu1 %v10577_v58  ;;  %v10639_v57 = vcombine.low %v324_v45, %v328_v46  ;;  %v10641_v58 = vcombine.low %v325_v47, %v329_v48  ;;  %v388_v46 = vld [vmem:[#allocation5 + $0x8d0] sm:$0xff] }
 0x32e   :  { %8839 = vmatprep.subr.bf16.mxu0 %v10584_v59  ;;  %9269 = vmatprep.subr.bf16.mxu1 %v10586_v60  ;;  %v10648_v59 = vcombine.high %v332_v53, %v336_v54  ;;  %v10650_v60 = vcombine.high %v333_v55, %v337_v56  ;;  %v392_v47 = vld [vmem:[#allocation5 + $0x8f0] sm:$0xff] }
 0x32f   :  { %v12132_v48 = vld [vmem:[#allocation2 + $0x14] ss:$80 sps:$4 sm:$0xff]  }
 0x331   :  { %8840 = vmatpush1.bf16.msra.mxu0 %v10583_v1  ;;  %9270 = vmatpush1.bf16.msra.mxu1 %v10585_v2  ;;  %v10647_v1 = vcombine.low %v332_v53, %v336_v54  ;;  %v10649_v2 = vcombine.low %v333_v55, %v337_v56  ;;  %v10704_v53 = vcombine.high %v388_v46, %v392_v47  ;;  %v396_v55 = vld [vmem:[#allocation5 + $0x910] sm:$0xff] }
 0x332   :  { %8841 = vmatprep.subr.bf16.mxu0 %v10592_v3  ;;  %9271 = vmatprep.subr.bf16.mxu1 %v10594_v4  ;;  %v10656_v3 = vcombine.high %v340_v61, %v344_v62  ;;  %v10658_v4 = vcombine.high %v341_v63, %v345_v0  ;;  %v400_v56 = vld [vmem:[#allocation5 + $0x930] sm:$0xff] }
 0x335   :  { %8842 = vmatpush1.bf16.msra.mxu0 %v10591_v9  ;;  %9272 = vmatpush1.bf16.msra.mxu1 %v10593_v10  ;;  %v10655_v9 = vcombine.low %v340_v61, %v344_v62  ;;  %v10657_v10 = vcombine.low %v341_v63, %v345_v0  ;;  %v10712_v61 = vcombine.high %v396_v55, %v400_v56  ;;  %v404_v63 = vld [vmem:[#allocation5 + $0x950] sm:$0xff] }
 0x336   :  { %8843 = vmatprep.subr.bf16.mxu0 %v10600_v11  ;;  %9273 = vmatprep.subr.bf16.mxu1 %v10602_v12  ;;  %v10664_v11 = vcombine.high %v348_v5, %v352_v6  ;;  %v10666_v12 = vcombine.high %v349_v7, %v353_v8  ;;  %v408_v0 = vld [vmem:[#allocation5 + $0x970] sm:$0xff] }
 0x339   :  { %8844 = vmatpush1.bf16.msra.mxu0 %v10599_v17  ;;  %9274 = vmatpush1.bf16.msra.mxu1 %v10601_v18  ;;  %v10663_v17 = vcombine.low %v348_v5, %v352_v6  ;;  %v10665_v18 = vcombine.low %v349_v7, %v353_v8  ;;  %v10720_v5 = vcombine.high %v404_v63, %v408_v0  ;;  %v412_v7 = vld [vmem:[#allocation5 + $0x990] sm:$0xff] }
 0x33a   :  { %8845 = vmatprep.subr.bf16.mxu0 %v10608_v19  ;;  %9275 = vmatprep.subr.bf16.mxu1 %v10610_v20  ;;  %v10672_v19 = vcombine.high %v356_v13, %v360_v14  ;;  %v10674_v20 = vcombine.high %v357_v15, %v361_v16  ;;  %v416_v8 = vld [vmem:[#allocation5 + $0x9b0] sm:$0xff] }
 0x33d   :  { %8846 = vmatpush1.bf16.msra.mxu0 %v10607_v25  ;;  %9276 = vmatpush1.bf16.msra.mxu1 %v10609_v26  ;;  %v10671_v25 = vcombine.low %v356_v13, %v360_v14  ;;  %v10673_v26 = vcombine.low %v357_v15, %v361_v16  ;;  %v10728_v13 = vcombine.high %v412_v7, %v416_v8  ;;  %v420_v15 = vld [vmem:[#allocation5 + $0x9d0] sm:$0xff] }
 0x33e   :  { %8847 = vmatprep.subr.bf16.mxu0 %v10616_v27  ;;  %9277 = vmatprep.subr.bf16.mxu1 %v10618_v28  ;;  %v10680_v27 = vcombine.high %v364_v21, %v368_v22  ;;  %v10682_v28 = vcombine.high %v365_v23, %v369_v24  ;;  %v424_v16 = vld [vmem:[#allocation5 + $0x9f0] sm:$0xff] }
 0x341   :  { %8848 = vmatpush1.bf16.msra.mxu0 %v10615_v33  ;;  %9278 = vmatpush1.bf16.msra.mxu1 %v10617_v34  ;;  %v10679_v33 = vcombine.low %v364_v21, %v368_v22  ;;  %v10681_v34 = vcombine.low %v365_v23, %v369_v24  ;;  %v10736_v21 = vcombine.high %v420_v15, %v424_v16  ;;  %v428_v23 = vld [vmem:[#allocation5 + $0xa10] sm:$0xff] }
 0x342   :  { %8849 = vmatprep.subr.bf16.mxu0 %v10624_v35  ;;  %9279 = vmatprep.subr.bf16.mxu1 %v10626_v36  ;;  %v10688_v35 = vcombine.high %v372_v29, %v376_v30  ;;  %v10690_v36 = vcombine.high %v373_v31, %v377_v32  ;;  %v432_v24 = vld [vmem:[#allocation5 + $0xa30] sm:$0xff] }
 0x345   :  { %8850 = vmatpush1.bf16.msra.mxu0 %v10623_v41  ;;  %9280 = vmatpush1.bf16.msra.mxu1 %v10625_v42  ;;  %v385_v41 = vld [vmem:[#allocation5 + $0x8b8] sm:$0xff]  ;;  %v10687_v42 = vcombine.low %v372_v29, %v376_v30  ;;  %v10744_v29 = vcombine.high %v428_v23, %v432_v24 }
 0x346   :  { %8851 = vmatprep.subr.bf16.mxu0 %v10632_v43  ;;  %9281 = vmatprep.subr.bf16.mxu1 %v10634_v44  ;;  %v10689_v43 = vcombine.low %v373_v31, %v377_v32  ;;  %v10696_v44 = vcombine.high %v380_v37, %v384_v38  ;;  %v10698_v45 = vcombine.high %v381_v40, %v385_v41  ;;  %v436_v31 = vld [vmem:[#allocation5 + $0xa50] sm:$0xff] }
 0x347   :  { %v440_v32 = vld [vmem:[#allocation5 + $0xa70] sm:$0xff] }
 0x349   :  { %8852 = vmatpush1.bf16.msra.mxu0 %v10631_v49  ;;  %9282 = vmatpush1.bf16.msra.mxu1 %v10633_v50  ;;  %v389_v49 = vld [vmem:[#allocation5 + $0x8d8] sm:$0xff] }
 0x34a   :  { %8853 = vmatprep.subr.bf16.mxu0 %v10640_v51  ;;  %9283 = vmatprep.subr.bf16.mxu1 %v10642_v52  ;;  %v393_v50 = vld [vmem:[#allocation5 + $0x8f8] sm:$0xff]  ;;  %v10695_v51 = vcombine.low %v380_v37, %v384_v38  ;;  %v10697_v52 = vcombine.low %v381_v40, %v385_v41  ;;  %v10752_v37 = vcombine.high %v436_v31, %v440_v32  ;;  %v448_v40 = vld [vmem:[#allocation5 + $0xab0] sm:$0xff] }
 0x34b   :  { %v10706_v54 = vcombine.high %v389_v49, %v393_v50  ;;  %v445_v41 = vld [vmem:[#allocation5 + $0xa98] sm:$0xff] }
 0x34d   :  { %8854 = vmatpush1.bf16.msra.mxu0 %v10639_v57  ;;  %9284 = vmatpush1.bf16.msra.mxu1 %v10641_v58  ;;  %v397_v57 = vld [vmem:[#allocation5 + $0x918] sm:$0xff] }
 0x34e   :  { %8855 = vmatprep.subr.bf16.mxu0 %v10648_v59  ;;  %9285 = vmatprep.subr.bf16.mxu1 %v10650_v60  ;;  %v401_v58 = vld [vmem:[#allocation5 + $0x938] sm:$0xff]  ;;  %v10703_v59 = vcombine.low %v388_v46, %v392_v47  ;;  %v10705_v60 = vcombine.low %v389_v49, %v393_v50  ;;  %v452_v47 = vld [vmem:[#allocation5 + $0xad0] sm:$0xff] }
 0x34f   :  { %v10714_v62 = vcombine.high %v397_v57, %v401_v58  ;;  %v453_v49 = vld [vmem:[#allocation5 + $0xad8] sm:$0xff] }
 0x350   :  { %v457_v50 = vld [vmem:[#allocation5 + $0xaf8] sm:$0xff] }
 0x351   :  { %8856 = vmatpush1.bf16.msra.mxu0 %v10647_v1  ;;  %9286 = vmatpush1.bf16.msra.mxu1 %v10649_v2  ;;  %v405_v1 = vld [vmem:[#allocation5 + $0x958] sm:$0xff] }
 0x352   :  { %8857 = vmatprep.subr.bf16.mxu0 %v10656_v3  ;;  %9287 = vmatprep.subr.bf16.mxu1 %v10658_v4  ;;  %v409_v2 = vld [vmem:[#allocation5 + $0x978] sm:$0xff]  ;;  %v10711_v3 = vcombine.low %v396_v55, %v400_v56  ;;  %v10713_v4 = vcombine.low %v397_v57, %v401_v58  ;;  %v460_v55 = vld [vmem:[#allocation5 + $0xb10] sm:$0xff] }
 0x353   :  { %v10722_v6 = vcombine.high %v405_v1, %v409_v2  ;;  %v464_v56 = vld [vmem:[#allocation5 + $0xb30] sm:$0xff]  ;;  %v461_v57 = vld [vmem:[#allocation5 + $0xb18] sm:$0xff] }
 0x354   :  { %v465_v58 = vld [vmem:[#allocation5 + $0xb38] sm:$0xff] }
 0x355   :  { %8858 = vmatpush1.bf16.msra.mxu0 %v10655_v9  ;;  %9288 = vmatpush1.bf16.msra.mxu1 %v10657_v10  ;;  %v413_v9 = vld [vmem:[#allocation5 + $0x998] sm:$0xff] }
 0x356   :  { %8859 = vmatprep.subr.bf16.mxu0 %v10664_v11  ;;  %9289 = vmatprep.subr.bf16.mxu1 %v10666_v12  ;;  %v417_v10 = vld [vmem:[#allocation5 + $0x9b8] sm:$0xff]  ;;  %v10719_v11 = vcombine.low %v404_v63, %v408_v0  ;;  %v10721_v12 = vcombine.low %v405_v1, %v409_v2  ;;  %v468_v63 = vld [vmem:[#allocation5 + $0xb50] sm:$0xff] }
 0x357   :  { %v10730_v14 = vcombine.high %v413_v9, %v417_v10  ;;  %v472_v0 = vld [vmem:[#allocation5 + $0xb70] sm:$0xff]  ;;  %v469_v1 = vld [vmem:[#allocation5 + $0xb58] sm:$0xff] }
 0x358   :  { %v473_v2 = vld [vmem:[#allocation5 + $0xb78] sm:$0xff] }
 0x359   :  { %8860 = vmatpush1.bf16.msra.mxu0 %v10663_v17  ;;  %9290 = vmatpush1.bf16.msra.mxu1 %v10665_v18  ;;  %v421_v17 = vld [vmem:[#allocation5 + $0x9d8] sm:$0xff] }
 0x35a   :  { %8861 = vmatprep.subr.bf16.mxu0 %v10672_v19  ;;  %9291 = vmatprep.subr.bf16.mxu1 %v10674_v20  ;;  %v425_v18 = vld [vmem:[#allocation5 + $0x9f8] sm:$0xff]  ;;  %v10727_v19 = vcombine.low %v412_v7, %v416_v8  ;;  %v10729_v20 = vcombine.low %v413_v9, %v417_v10  ;;  %v476_v7 = vld [vmem:[#allocation5 + $0xb90] sm:$0xff] }
 0x35b   :  { %v10738_v22 = vcombine.high %v421_v17, %v425_v18  ;;  %v480_v8 = vld [vmem:[#allocation5 + $0xbb0] sm:$0xff]  ;;  %v477_v9 = vld [vmem:[#allocation5 + $0xb98] sm:$0xff] }
 0x35c   :  { %v481_v10 = vld [vmem:[#allocation5 + $0xbb8] sm:$0xff] }
 0x35d   :  { %8862 = vmatpush1.bf16.msra.mxu0 %v10671_v25  ;;  %9292 = vmatpush1.bf16.msra.mxu1 %v10673_v26  ;;  %v429_v25 = vld [vmem:[#allocation5 + $0xa18] sm:$0xff] }
 0x35e   :  { %8874 = vmatprep.subr.bf16.mxu0 %v10680_v27  ;;  %9304 = vmatprep.subr.bf16.mxu1 %v10682_v28  ;;  %v433_v26 = vld [vmem:[#allocation5 + $0xa38] sm:$0xff]  ;;  %v10735_v27 = vcombine.low %v420_v15, %v424_v16  ;;  %v10737_v28 = vcombine.low %v421_v17, %v425_v18  ;;  %v484_v15 = vld [vmem:[#allocation5 + $0xbd0] sm:$0xff] }
 0x35f   :  { %v10746_v30 = vcombine.high %v429_v25, %v433_v26  ;;  %v488_v16 = vld [vmem:[#allocation5 + $0xbf0] sm:$0xff]  ;;  %v485_v17 = vld [vmem:[#allocation5 + $0xbd8] sm:$0xff] }
 0x360   :  { %8864 = vmatmul.mubr.bf16.vlgmr.msra.gmra.mrb[4].mxu0 %v12131_v39  ;;  %9294 = vmatmul.mubr.bf16.vlgmr.msra.gmra.mrb[4].mxu1 %v12131_v39  ;;  %v444_v39 = vld [vmem:[#allocation5 + $0xa90] sm:$0xff]  ;;  %v489_v18 = vld [vmem:[#allocation5 + $0xbf8] sm:$0xff] }
 0x361   :  { %8875 = vmatpush1.bf16.msra.mxu0 %v10679_v33  ;;  %9305 = vmatpush1.bf16.msra.mxu1 %v10681_v34  ;;  %v437_v33 = vld [vmem:[#allocation5 + $0xa58] sm:$0xff] }
 0x362   :  { %8876 = vmatprep.subr.bf16.mxu0 %v10688_v35  ;;  %9306 = vmatprep.subr.bf16.mxu1 %v10690_v36  ;;  %v441_v34 = vld [vmem:[#allocation5 + $0xa78] sm:$0xff]  ;;  %v10743_v35 = vcombine.low %v428_v23, %v432_v24  ;;  %v10745_v36 = vcombine.low %v429_v25, %v433_v26  ;;  %v492_v23 = vld [vmem:[#allocation5 + $0xc10] sm:$0xff] }
 0x363   :  { %8906 = vmatprep.mubr.bf16.mxu0 %v12132_v48  ;;  %9336 = vmatprep.mubr.bf16.mxu1 %v12132_v48  ;;  %v10754_v38 = vcombine.high %v437_v33, %v441_v34  ;;  %v456_v48 = vld [vmem:[#allocation5 + $0xaf0] sm:$0xff]  ;;  %v493_v25 = vld [vmem:[#allocation5 + $0xc18] sm:$0xff] }
 0x364   :  { %v496_v24 = vld [vmem:[#allocation5 + $0xc30] sm:$0xff]  ;;  %v497_v26 = vld [vmem:[#allocation5 + $0xc38] sm:$0xff] }
 0x365   :  { %8877 = vmatpush1.bf16.msra.mxu0 %v10687_v42  ;;  %9307 = vmatpush1.bf16.msra.mxu1 %v10689_v43  ;;  %v449_v42 = vld [vmem:[#allocation5 + $0xab8] sm:$0xff]  ;;  %v10751_v43 = vcombine.low %v436_v31, %v440_v32  ;;  %v500_v31 = vld [vmem:[#allocation5 + $0xc50] sm:$0xff] }
 0x366   :  { %8878 = vmatprep.subr.bf16.mxu0 %v10696_v44  ;;  %9308 = vmatprep.subr.bf16.mxu1 %v10698_v45  ;;  %v10753_v44 = vcombine.low %v437_v33, %v441_v34  ;;  %v10760_v45 = vcombine.high %v444_v39, %v448_v40  ;;  %v10762_v46 = vcombine.high %v445_v41, %v449_v42  ;;  %v504_v32 = vld [vmem:[#allocation5 + $0xc70] sm:$0xff]  ;;  %v501_v33 = vld [vmem:[#allocation5 + $0xc58] sm:$0xff] }
 0x367   :  { %v505_v34 = vld [vmem:[#allocation5 + $0xc78] sm:$0xff] }
 0x369   :  { %8879 = vmatpush1.bf16.msra.mxu0 %v10695_v51  ;;  %9309 = vmatpush1.bf16.msra.mxu1 %v10697_v52  ;;  %v10759_v51 = vcombine.low %v444_v39, %v448_v40  ;;  %v10761_v52 = vcombine.low %v445_v41, %v449_v42  ;;  %v508_v39 = vld [vmem:[#allocation5 + $0xc90] sm:$0xff]  ;;  %v509_v42 = vld [vmem:[#allocation5 + $0xc98] sm:$0xff] }
 0x36a   :  { %8880 = vmatprep.subr.bf16.mxu0 %v10704_v53  ;;  %9310 = vmatprep.subr.bf16.mxu1 %v10706_v54  ;;  %v10768_v53 = vcombine.high %v452_v47, %v456_v48  ;;  %v10770_v54 = vcombine.high %v453_v49, %v457_v50  ;;  %v512_v40 = vld [vmem:[#allocation5 + $0xcb0] sm:$0xff] }
 0x36b   :  { %v12133_v41 = vld [vmem:[#allocation2 + $0x10] ss:$80 sps:$4 sm:$0xff]  }
 0x36d   :  { %8881 = vmatpush1.bf16.msra.mxu0 %v10703_v59  ;;  %9311 = vmatpush1.bf16.msra.mxu1 %v10705_v60  ;;  %v10767_v59 = vcombine.low %v452_v47, %v456_v48  ;;  %v10769_v60 = vcombine.low %v453_v49, %v457_v50  ;;  %v516_v48 = vld [vmem:[#allocation5 + $0xcd0] sm:$0xff]  ;;  %v12134_v50 = vld [vmem:[#allocation2 + $0x1c] ss:$80 sps:$4 sm:$0xff]  }
 0x36e   :  { %8882 = vmatprep.subr.bf16.mxu0 %v10712_v61  ;;  %9312 = vmatprep.subr.bf16.mxu1 %v10714_v62  ;;  %v10776_v61 = vcombine.high %v460_v55, %v464_v56  ;;  %v10778_v62 = vcombine.high %v461_v57, %v465_v58  ;;  %v520_v49 = vld [vmem:[#allocation5 + $0xcf0] sm:$0xff] }
 0x371   :  { %8883 = vmatpush1.bf16.msra.mxu0 %v10711_v3  ;;  %9313 = vmatpush1.bf16.msra.mxu1 %v10713_v4  ;;  %v10775_v3 = vcombine.low %v460_v55, %v464_v56  ;;  %v10777_v4 = vcombine.low %v461_v57, %v465_v58  ;;  %v10832_v56 = vcombine.high %v516_v48, %v520_v49  ;;  %v524_v58 = vld [vmem:[#allocation5 + $0xd10] sm:$0xff] }
 0x372   :  { %8884 = vmatprep.subr.bf16.mxu0 %v10720_v5  ;;  %9314 = vmatprep.subr.bf16.mxu1 %v10722_v6  ;;  %v10784_v5 = vcombine.high %v468_v63, %v472_v0  ;;  %v10786_v6 = vcombine.high %v469_v1, %v473_v2 }
 0x375   :  { %8885 = vmatpush1.bf16.msra.mxu0 %v10719_v11  ;;  %9315 = vmatpush1.bf16.msra.mxu1 %v10721_v12  ;;  %v10783_v11 = vcombine.low %v468_v63, %v472_v0  ;;  %v10785_v12 = vcombine.low %v469_v1, %v473_v2  ;;  %v10831_v63 = vcombine.low %v516_v48, %v520_v49 }
 0x376   :  { %8886 = vmatprep.subr.bf16.mxu0 %v10728_v13  ;;  %9316 = vmatprep.subr.bf16.mxu1 %v10730_v14  ;;  %v10792_v13 = vcombine.high %v476_v7, %v480_v8  ;;  %v10794_v14 = vcombine.high %v477_v9, %v481_v10 }
 0x379   :  { %8887 = vmatpush1.bf16.msra.mxu0 %v10727_v19  ;;  %9317 = vmatpush1.bf16.msra.mxu1 %v10729_v20  ;;  %v10791_v19 = vcombine.low %v476_v7, %v480_v8  ;;  %v10793_v20 = vcombine.low %v477_v9, %v481_v10  ;;  %v537_v7 = vld [vmem:[#allocation5 + $0xd78] sm:$0xff]  ;;  %v1386_v9 = vld [vmem:[#allocation7] sm:$0xff] }
 0x37a   :  { %8888 = vmatprep.subr.bf16.mxu0 %v10736_v21  ;;  %9318 = vmatprep.subr.bf16.mxu1 %v10738_v22  ;;  %v10800_v21 = vcombine.high %v484_v15, %v488_v16  ;;  %v10802_v22 = vcombine.high %v485_v17, %v489_v18 }
 0x37d   :  { %8889 = vmatpush1.bf16.msra.mxu0 %v10735_v27  ;;  %9319 = vmatpush1.bf16.msra.mxu1 %v10737_v28  ;;  %v10799_v27 = vcombine.low %v484_v15, %v488_v16  ;;  %v10801_v28 = vcombine.low %v485_v17, %v489_v18  ;;  %v540_v16 = vld [vmem:[#allocation5 + $0xd90] sm:$0xff] }
 0x37e   :  { %8890 = vmatprep.subr.bf16.mxu0 %v10744_v29  ;;  %9320 = vmatprep.subr.bf16.mxu1 %v10746_v30  ;;  %v10808_v29 = vcombine.high %v492_v23, %v496_v24  ;;  %v10810_v30 = vcombine.high %v493_v25, %v497_v26  ;;  %v544_v17 = vld [vmem:[#allocation5 + $0xdb0] sm:$0xff] }
 0x381   :  { %8891 = vmatpush1.bf16.msra.mxu0 %v10743_v35  ;;  %9321 = vmatpush1.bf16.msra.mxu1 %v10745_v36  ;;  %v10807_v35 = vcombine.low %v492_v23, %v496_v24  ;;  %v10809_v36 = vcombine.low %v493_v25, %v497_v26  ;;  %v10856_v26 = vcombine.high %v540_v16, %v544_v17 }
 0x382   :  { %8892 = vmatprep.subr.bf16.mxu0 %v10752_v37  ;;  %9322 = vmatprep.subr.bf16.mxu1 %v10754_v38  ;;  %v10816_v37 = vcombine.high %v500_v31, %v504_v32  ;;  %v10818_v38 = vcombine.high %v501_v33, %v505_v34 }
 0x385   :  { %8893 = vmatpush1.bf16.msra.mxu0 %v10751_v43  ;;  %9323 = vmatpush1.bf16.msra.mxu1 %v10753_v44  ;;  %v513_v43 = vld [vmem:[#allocation5 + $0xcb8] sm:$0xff]  ;;  %v10815_v44 = vcombine.low %v500_v31, %v504_v32 }
 0x386   :  { %8894 = vmatprep.subr.bf16.mxu0 %v10760_v45  ;;  %9324 = vmatprep.subr.bf16.mxu1 %v10762_v46  ;;  %v10817_v45 = vcombine.low %v501_v33, %v505_v34  ;;  %v10824_v46 = vcombine.high %v508_v39, %v512_v40  ;;  %v10826_v47 = vcombine.high %v509_v42, %v513_v43  ;;  %v549_v34 = vld [vmem:[#allocation5 + $0xdd8] sm:$0xff] }
 0x387   :  { %v10825_v55 = vcombine.low %v509_v42, %v513_v43 }
 0x389   :  { %8895 = vmatpush1.bf16.msra.mxu0 %v10759_v51  ;;  %9325 = vmatpush1.bf16.msra.mxu1 %v10761_v52  ;;  %v517_v51 = vld [vmem:[#allocation5 + $0xcd8] sm:$0xff] }
 0x38a   :  { %8896 = vmatprep.subr.bf16.mxu0 %v10768_v53  ;;  %9326 = vmatprep.subr.bf16.mxu1 %v10770_v54  ;;  %v521_v52 = vld [vmem:[#allocation5 + $0xcf8] sm:$0xff]  ;;  %v1388_v53 = vlaneseq  ;;  %v10823_v54 = vcombine.low %v508_v39, %v512_v40  ;;  %v10855_v40 = vcombine.low %v540_v16, %v544_v17 }
 0x38b   :  { %v10834_v57 = vcombine.high %v517_v51, %v521_v52  ;;  %v10833_v0 = vcombine.low %v517_v51, %v521_v52  ;;  %v556_v52 = vld [vmem:[#allocation5 + $0xe10] sm:$0xff] }
 0x38d   :  { %8897 = vmatpush1.bf16.msra.mxu0 %v10767_v59  ;;  %9327 = vmatpush1.bf16.msra.mxu1 %v10769_v60  ;;  %v528_v59 = vld [vmem:[#allocation5 + $0xd30] sm:$0xff]  ;;  %v525_v60 = vld [vmem:[#allocation5 + $0xd18] sm:$0xff] }
 0x38e   :  { %8898 = vmatprep.subr.bf16.mxu0 %v10776_v61  ;;  %9328 = vmatprep.subr.bf16.mxu1 %v10778_v62  ;;  %v529_v61 = vld [vmem:[#allocation5 + $0xd38] sm:$0xff]  ;;  %v12394_v62 = vshrl.u32 %v1388_v53, 7  ;;  %v10840_v1 = vcombine.high %v524_v58, %v528_v59  ;;  %v10839_v8 = vcombine.low %v524_v58, %v528_v59 }
 0x38f   :  { %v10842_v2 = vcombine.high %v525_v60, %v529_v61  ;;  %v557_v59 = vld [vmem:[#allocation5 + $0xe18] sm:$0xff] }
 0x390   :  { %v1398_v10 = vsub.s32 2, %v12394_v62 }
 0x391   :  { %8899 = vmatpush1.bf16.msra.mxu0 %v10775_v3  ;;  %9329 = vmatpush1.bf16.msra.mxu1 %v10777_v4  ;;  %v532_v3 = vld [vmem:[#allocation5 + $0xd50] sm:$0xff] }
 0x392   :  { %8900 = vmatprep.subr.bf16.mxu0 %v10784_v5  ;;  %9330 = vmatprep.subr.bf16.mxu1 %v10786_v6  ;;  %v536_v4 = vld [vmem:[#allocation5 + $0xd70] sm:$0xff]  ;;  %v1390_v5 = vsub.s32 0, %v12394_v62  ;;  %v533_v6 = vld [vmem:[#allocation5 + $0xd58] sm:$0xff] }
 0x393   :  { %v10850_v15 = vcombine.high %v533_v6, %v537_v7  ;;  %v10847_v23 = vcombine.low %v532_v3, %v536_v4  ;;  %v10849_v25 = vcombine.low %v533_v6, %v537_v7 }
 0x394   :  { %v1391_v18 = vrot.slane %v1386_v9, %v1390_v5 }
 0x395   :  { %8901 = vmatpush1.bf16.msra.mxu0 %v10783_v11  ;;  %9331 = vmatpush1.bf16.msra.mxu1 %v10785_v12  ;;  %v1394_v11 = vsub.s32 1, %v12394_v62  ;;  %v10841_v12 = vcombine.low %v525_v60, %v529_v61  ;;  %v561_v60 = vld [vmem:[#allocation5 + $0xe38] sm:$0xff] }
 0x396   :  { %8902 = vmatprep.subr.bf16.mxu0 %v10792_v13  ;;  %9332 = vmatprep.subr.bf16.mxu1 %v10794_v14  ;;  %v1402_v13 = vsub.s32 3, %v12394_v62  ;;  %v10848_v14 = vcombine.high %v532_v3, %v536_v4 }
 0x398   :  { %v1403_v24 = vrot.slane %v1386_v9, %v1402_v13  ;;  %v569_v13 = vld [vmem:[#allocation5 + $0xe78] sm:$0xff] }
 0x399   :  { %8903 = vmatpush1.bf16.msra.mxu0 %v10791_v19  ;;  %9333 = vmatpush1.bf16.msra.mxu1 %v10793_v20  ;;  %v541_v19 = vld [vmem:[#allocation5 + $0xd98] sm:$0xff] }
 0x39a   :  { %8904 = vmatprep.subr.bf16.mxu0 %v10800_v21  ;;  %9334 = vmatprep.subr.bf16.mxu1 %v10802_v22  ;;  %v545_v20 = vld [vmem:[#allocation5 + $0xdb8] sm:$0xff]  ;;  %v1399_v21 = vrot.slane %v1386_v9, %v1398_v10  ;;  %v1395_v22 = vrot.slane %v1386_v9, %v1394_v11  ;;  %v564_v9 = vld [vmem:[#allocation5 + $0xe50] sm:$0xff] }
 0x39b   :  { %v568_v10 = vld [vmem:[#allocation5 + $0xe70] sm:$0xff] }
 0x39c   :  { %v10880_v16 = vcombine.high %v564_v9, %v568_v10 }
 0x39d   :  { %8905 = vmatpush1.bf16.msra.mxu0 %v10799_v27  ;;  %9335 = vmatpush1.bf16.msra.mxu1 %v10801_v28  ;;  %v10858_v28 = vcombine.high %v541_v19, %v545_v20 }
 0x39e   :  { %8917 = vmatprep.subr.bf16.mxu0 %v10808_v29  ;;  %9347 = vmatprep.subr.bf16.mxu1 %v10810_v30  ;;  %v548_v29 = vld [vmem:[#allocation5 + $0xdd0] sm:$0xff] }
 0x39f   :  { %v552_v30 = vld [vmem:[#allocation5 + $0xdf0] sm:$0xff] }
 0x3a0   :  { %8907 = vmatmul.mubr.bf16.vlgmr.msra.gmra.mrb[4].mxu0 %v12133_v41  ;;  %9337 = vmatmul.mubr.bf16.vlgmr.msra.gmra.mrb[4].mxu1 %v12133_v41  ;;  %v10857_v41 = vcombine.low %v541_v19, %v545_v20  ;;  %v576_v19 = vld [vmem:[#allocation5 + $0xeb0] sm:$0xff]  ;;  %v573_v20 = vld [vmem:[#allocation5 + $0xe98] sm:$0xff] }
 0x3a1   :  { %8918 = vmatpush1.bf16.msra.mxu0 %v10807_v35  ;;  %9348 = vmatpush1.bf16.msra.mxu1 %v10809_v36  ;;  %v553_v35 = vld [vmem:[#allocation5 + $0xdf8] sm:$0xff] }
 0x3a2   :  { %8919 = vmatprep.subr.bf16.mxu0 %v10816_v37  ;;  %9349 = vmatprep.subr.bf16.mxu1 %v10818_v38  ;;  %v10866_v51 = vcombine.high %v549_v34, %v553_v35  ;;  %v10865_v58 = vcombine.low %v549_v34, %v553_v35  ;;  %v588_v34 = vld [vmem:[#allocation5 + $0xf10] sm:$0xff] }
 0x3a3   :  { %8949 = vmatprep.mubr.bf16.mxu0 %v12134_v50  ;;  %9379 = vmatprep.mubr.bf16.mxu1 %v12134_v50  ;;  %v10863_v50 = vcombine.low %v548_v29, %v552_v30  ;;  %v592_v35 = vld [vmem:[#allocation5 + $0xf30] sm:$0xff] }
 0x3a5   :  { %8920 = vmatpush1.bf16.msra.mxu0 %v10815_v44  ;;  %9350 = vmatpush1.bf16.msra.mxu1 %v10817_v45 }
 0x3a6   :  { %8921 = vmatprep.subr.bf16.mxu0 %v10824_v46  ;;  %9351 = vmatprep.subr.bf16.mxu1 %v10826_v47  ;;  %v10864_v46 = vcombine.high %v548_v29, %v552_v30  ;;  %v585_v29 = vld [vmem:[#allocation5 + $0xef8] sm:$0xff] }
 0x3a9   :  { %8922 = vmatpush1.bf16.msra.mxu0 %v10823_v54  ;;  %9352 = vmatpush1.bf16.msra.mxu1 %v10825_v55  ;;  %v560_v54 = vld [vmem:[#allocation5 + $0xe30] sm:$0xff] }
 0x3aa   :  { %8923 = vmatprep.subr.bf16.mxu0 %v10832_v56  ;;  %9353 = vmatprep.subr.bf16.mxu1 %v10834_v57  ;;  %v10872_v5 = vcombine.high %v556_v52, %v560_v54 }
 0x3ad   :  { %8924 = vmatpush1.bf16.msra.mxu0 %v10831_v63  ;;  %9354 = vmatpush1.bf16.msra.mxu1 %v10833_v0 }
 0x3ae   :  { %8925 = vmatprep.subr.bf16.mxu0 %v10840_v1  ;;  %9355 = vmatprep.subr.bf16.mxu1 %v10842_v2 }
 0x3b1   :  { %8926 = vmatpush1.bf16.msra.mxu0 %v10839_v8  ;;  %9356 = vmatpush1.bf16.msra.mxu1 %v10841_v12  ;;  %v10874_v8 = vcombine.high %v557_v59, %v561_v60  ;;  %v565_v12 = vld [vmem:[#allocation5 + $0xe58] sm:$0xff] }
 0x3b2   :  { %8927 = vmatprep.subr.bf16.mxu0 %v10848_v14  ;;  %9357 = vmatprep.subr.bf16.mxu1 %v10850_v15  ;;  %v10871_v14 = vcombine.low %v556_v52, %v560_v54  ;;  %v10873_v15 = vcombine.low %v557_v59, %v561_v60  ;;  %v10882_v17 = vcombine.high %v565_v12, %v569_v13  ;;  %v605_v52 = vld [vmem:[#allocation5 + $0xf98] sm:$0xff]  ;;  %v612_v59 = vld [vmem:[#allocation5 + $0xfd0] sm:$0xff] }
 0x3b3   :  { %v8349_v27 = vpop.f32.mrb[0].mxu0  ;;  %v8779_v32 = vpop.f32.mrb[0].mxu1  ;;  %v609_v54 = vld [vmem:[#allocation5 + $0xfb8] sm:$0xff]  ;;  %v616_v60 = vld [vmem:[#allocation5 + $0xff0] sm:$0xff] }
 0x3b4   :  { %v11852_v31 = vadd.f32 %v8349_v27, %v1391_v18  ;;  %v8351_v33 = vpop.f32.mrb[1].mxu0  ;;  %v11856_v36 = vadd.f32 %v8779_v32, %v1399_v21  ;;  %v8781_v38 = vpop.f32.mrb[1].mxu1  ;;  %v584_v27 = vld [vmem:[#allocation5 + $0xef0] sm:$0xff] }
 0x3b5   :  { %v11853_v37 = vadd.f32 %v8351_v33, %v1395_v22  ;;  %v8353_v39 = vpop.f32.mrb[2].mxu0  ;;  %8928 = vmatpush1.bf16.msra.mxu0 %v10847_v23  ;;  %v11857_v42 = vadd.f32 %v8781_v38, %v1403_v24  ;;  %v8783_v44 = vpop.f32.mrb[2].mxu1  ;;  %9358 = vmatpush1.bf16.msra.mxu1 %v10849_v25  ;;  %v10881_v23 = vcombine.low %v565_v12, %v569_v13 }
 0x3b6   :  { %v11854_v43 = vadd.f32 %v8353_v39, %v1391_v18  ;;  %v8355_v45 = vpop.f32.mrb[3].mxu0  ;;  %8929 = vmatprep.subr.bf16.mxu0 %v10856_v26  ;;  %v11858_v47 = vadd.f32 %v8783_v44, %v1399_v21  ;;  %v8785_v49 = vpop.f32.mrb[3].mxu1  ;;  %9359 = vmatprep.subr.bf16.mxu1 %v10858_v28  ;;  %v9648_v55 = vmax.f32 %v11852_v31, 0.0  ;;  %v9650_v61 = vmax.f32 %v11856_v36, 0.0  ;;  %v572_v18 = vld [vmem:[#allocation5 + $0xe90] sm:$0xff]  ;;  %v577_v21 = vld [vmem:[#allocation5 + $0xeb8] sm:$0xff] }
 0x3b7   :  { %v11855_v48 = vadd.f32 %v8355_v45, %v1395_v22  ;;  %v11859_v57 = vadd.f32 %v8785_v49, %v1403_v24  ;;  %v9649_v63 = vmax.f32 %v11853_v37, 0.0  ;;  %v9651_v2 = vmax.f32 %v11857_v42, 0.0  ;;  %v580_v26 = vld [vmem:[#allocation5 + $0xed0] sm:$0xff]  ;;  %v581_v28 = vld [vmem:[#allocation5 + $0xed8] sm:$0xff] }
 0x3b8   :  { %v9656_v56 = vmax.f32 %v11854_v43, 0.0  ;;  %v9658_v0 = vmax.f32 %v11858_v47, 0.0  ;;  %v10879_v22 = vcombine.low %v564_v9, %v568_v10  ;;  %v10888_v24 = vcombine.high %v572_v18, %v576_v19  ;;  %v589_v36 = vld [vmem:[#allocation5 + $0xf18] sm:$0xff]  ;;  %v596_v42 = vld [vmem:[#allocation5 + $0xf50] sm:$0xff] }
 0x3b9   :  { %v9657_v1 = vmax.f32 %v11855_v48, 0.0  ;;  %8930 = vmatpush1.bf16.msra.mxu0 %v10855_v40  ;;  %v9659_v4 = vmax.f32 %v11859_v57, 0.0  ;;  %9360 = vmatpush1.bf16.msra.mxu1 %v10857_v41  ;;  %v10890_v25 = vcombine.high %v573_v20, %v577_v21  ;;  %v10887_v30 = vcombine.low %v572_v18, %v576_v19  ;;  %v593_v37 = vld [vmem:[#allocation5 + $0xf38] sm:$0xff]  ;;  %v600_v43 = vld [vmem:[#allocation5 + $0xf70] sm:$0xff] }
 0x3ba   :  { %v12400_v3 = vpack.c.bf16 %v9656_v56, %v9648_v55  ;;  %8931 = vmatprep.subr.bf16.mxu0 %v10864_v46  ;;  %v12402_v6 = vpack.c.bf16 %v9658_v0, %v9650_v61  ;;  %9361 = vmatprep.subr.bf16.mxu1 %v10866_v51  ;;  %v10889_v31 = vcombine.low %v573_v20, %v577_v21  ;;  %v597_v44 = vld [vmem:[#allocation5 + $0xf58] sm:$0xff]  ;;  %v608_v51 = vld [vmem:[#allocation5 + $0xfb0] sm:$0xff] }
 0x3bb   :  { %v12404_v7 = vpack.c.bf16 %v9657_v1, %v9649_v63  ;;  %v12406_v11 = vpack.c.bf16 %v9659_v4, %v9651_v2  ;;  %v10896_v32 = vcombine.high %v580_v26, %v584_v27  ;;  %v10898_v33 = vcombine.high %v581_v28, %v585_v29  ;;  %v601_v45 = vld [vmem:[#allocation5 + $0xf78] sm:$0xff] }
 0x3bc   :  { %v10895_v38 = vcombine.low %v580_v26, %v584_v27  ;;  %v10897_v39 = vcombine.low %v581_v28, %v585_v29  ;;  %v10904_v40 = vcombine.high %v588_v34, %v592_v35  ;;  %v10906_v41 = vcombine.high %v589_v36, %v593_v37  ;;  %v613_v61 = vld [vmem:[#allocation5 + $0xfd8] sm:$0xff] }
 0x3bd   :  { %8932 = vmatpush1.bf16.msra.mxu0 %v10863_v50  ;;  %9362 = vmatpush1.bf16.msra.mxu1 %v10865_v58  ;;  %v10903_v46 = vcombine.low %v588_v34, %v592_v35  ;;  %v10905_v47 = vcombine.low %v589_v36, %v593_v37  ;;  %v10912_v48 = vcombine.high %v596_v42, %v600_v43  ;;  %v604_v50 = vld [vmem:[#allocation5 + $0xf90] sm:$0xff]  ;;  %v617_v63 = vld [vmem:[#allocation5 + $0xff8] sm:$0xff] }
 0x3be   :  { %8933 = vmatprep.subr.bf16.mxu0 %v10872_v5  ;;  %9363 = vmatprep.subr.bf16.mxu1 %v10874_v8  ;;  %v10914_v49 = vcombine.high %v597_v44, %v601_v45  ;;  %v10911_v55 = vcombine.low %v596_v42, %v600_v43  ;;  %v10913_v56 = vcombine.low %v597_v44, %v601_v45  ;;  %v620_v5 = vld [vmem:[#allocation5 + $0x1010] sm:$0xff]  ;;  %v621_v9 = vld [vmem:[#allocation5 + $0x1018] sm:$0xff] }
 0x3bf   :  { %v10920_v57 = vcombine.high %v604_v50, %v608_v51  ;;  %v10922_v58 = vcombine.high %v605_v52, %v609_v54  ;;  %v10919_v0 = vcombine.low %v604_v50, %v608_v51  ;;  %v10921_v1 = vcombine.low %v605_v52, %v609_v54  ;;  %v624_v8 = vld [vmem:[#allocation5 + $0x1030] sm:$0xff]  ;;  %v625_v10 = vld [vmem:[#allocation5 + $0x1038] sm:$0xff] }
 0x3c0   :  { %v10928_v2 = vcombine.high %v612_v59, %v616_v60  ;;  %v10930_v4 = vcombine.high %v613_v61, %v617_v63  ;;  %v10927_v12 = vcombine.low %v612_v59, %v616_v60  ;;  %v10929_v13 = vcombine.low %v613_v61, %v617_v63  ;;  %v629_v18 = vld [vmem:[#allocation5 + $0x1058] sm:$0xff]  ;;  %v648_v34 = vld [vmem:[#allocation5 + $0x10f0] sm:$0xff] }
 0x3c1   :  { %8934 = vmatpush1.bf16.msra.mxu0 %v10871_v14  ;;  %9364 = vmatpush1.bf16.msra.mxu1 %v10873_v15  ;;  %v10936_v14 = vcombine.high %v620_v5, %v624_v8  ;;  %v10938_v15 = vcombine.high %v621_v9, %v625_v10  ;;  %v633_v19 = vld [vmem:[#allocation5 + $0x1078] sm:$0xff]  ;;  %v10935_v20 = vcombine.low %v620_v5, %v624_v8  ;;  %v12136_v35 = vld [vmem:[#allocation2 + $0x24] ss:$80 sps:$4 sm:$0xff]  }
 0x3c2   :  { %8935 = vmatprep.subr.bf16.mxu0 %v10880_v16  ;;  %9365 = vmatprep.subr.bf16.mxu1 %v10882_v17  ;;  %v628_v16 = vld [vmem:[#allocation5 + $0x1050] sm:$0xff]  ;;  %v10937_v21 = vcombine.low %v621_v9, %v625_v10  ;;  %v12135_v26 = vld [vmem:[#allocation2 + $0x18] ss:$80 sps:$4 sm:$0xff]  }
 0x3c3   :  { %v632_v17 = vld [vmem:[#allocation5 + $0x1070] sm:$0xff]  ;;  %v637_v27 = vld [vmem:[#allocation5 + $0x1098] sm:$0xff] }
 0x3c4   :  { %v641_v28 = vld [vmem:[#allocation5 + $0x10b8] sm:$0xff]  ;;  %v10943_v29 = vcombine.low %v628_v16, %v632_v17  ;;  %v652_v42 = vld [vmem:[#allocation5 + $0x1110] sm:$0xff] }
 0x3c5   :  { %8936 = vmatpush1.bf16.msra.mxu0 %v10879_v22  ;;  %9366 = vmatpush1.bf16.msra.mxu1 %v10881_v23  ;;  %v10944_v22 = vcombine.high %v628_v16, %v632_v17  ;;  %v10946_v23 = vcombine.high %v629_v18, %v633_v19  ;;  %v645_v36 = vld [vmem:[#allocation5 + $0x10d8] sm:$0xff]  ;;  %v656_v43 = vld [vmem:[#allocation5 + $0x1130] sm:$0xff] }
 0x3c6   :  { %8937 = vmatprep.subr.bf16.mxu0 %v10888_v24  ;;  %9367 = vmatprep.subr.bf16.mxu1 %v10890_v25  ;;  %v636_v24 = vld [vmem:[#allocation5 + $0x1090] sm:$0xff]  ;;  %v649_v37 = vld [vmem:[#allocation5 + $0x10f8] sm:$0xff] }
 0x3c7   :  { %v640_v25 = vld [vmem:[#allocation5 + $0x10b0] sm:$0xff]  ;;  %v653_v44 = vld [vmem:[#allocation5 + $0x1118] sm:$0xff] }
 0x3c8   :  { %v657_v45 = vld [vmem:[#allocation5 + $0x1138] sm:$0xff]  ;;  %v660_v50 = vld [vmem:[#allocation5 + $0x1150] sm:$0xff] }
 0x3c9   :  { %8938 = vmatpush1.bf16.msra.mxu0 %v10887_v30  ;;  %9368 = vmatpush1.bf16.msra.mxu1 %v10889_v31  ;;  %v10945_v30 = vcombine.low %v629_v18, %v633_v19  ;;  %v10952_v31 = vcombine.high %v636_v24, %v640_v25  ;;  %v664_v51 = vld [vmem:[#allocation5 + $0x1170] sm:$0xff]  ;;  %v661_v52 = vld [vmem:[#allocation5 + $0x1158] sm:$0xff] }
 0x3ca   :  { %8939 = vmatprep.subr.bf16.mxu0 %v10896_v32  ;;  %9369 = vmatprep.subr.bf16.mxu1 %v10898_v33  ;;  %v10954_v32 = vcombine.high %v637_v27, %v641_v28  ;;  %v644_v33 = vld [vmem:[#allocation5 + $0x10d0] sm:$0xff]  ;;  %v665_v54 = vld [vmem:[#allocation5 + $0x1178] sm:$0xff] }
 0x3cb   :  { %v668_v59 = vld [vmem:[#allocation5 + $0x1190] sm:$0xff]  ;;  %v669_v61 = vld [vmem:[#allocation5 + $0x1198] sm:$0xff] }
 0x3cc   :  { %v672_v60 = vld [vmem:[#allocation5 + $0x11b0] sm:$0xff]  ;;  %v673_v63 = vld [vmem:[#allocation5 + $0x11b8] sm:$0xff] }
 0x3cd   :  { %8940 = vmatpush1.bf16.msra.mxu0 %v10895_v38  ;;  %9370 = vmatpush1.bf16.msra.mxu1 %v10897_v39  ;;  %v10951_v38 = vcombine.low %v636_v24, %v640_v25  ;;  %v10953_v39 = vcombine.low %v637_v27, %v641_v28  ;;  %v676_v5 = vld [vmem:[#allocation5 + $0x11d0] sm:$0xff]  ;;  %v677_v9 = vld [vmem:[#allocation5 + $0x11d8] sm:$0xff] }
 0x3ce   :  { %8941 = vmatprep.subr.bf16.mxu0 %v10904_v40  ;;  %9371 = vmatprep.subr.bf16.mxu1 %v10906_v41  ;;  %v10960_v40 = vcombine.high %v644_v33, %v648_v34  ;;  %v10962_v41 = vcombine.high %v645_v36, %v649_v37  ;;  %v680_v8 = vld [vmem:[#allocation5 + $0x11f0] sm:$0xff]  ;;  %v681_v10 = vld [vmem:[#allocation5 + $0x11f8] sm:$0xff] }
 0x3cf   :  { %v684_v16 = vld [vmem:[#allocation5 + $0x1210] sm:$0xff]  ;;  %v685_v18 = vld [vmem:[#allocation5 + $0x1218] sm:$0xff] }
 0x3d0   :  { %v688_v17 = vld [vmem:[#allocation5 + $0x1230] sm:$0xff]  ;;  %v689_v19 = vld [vmem:[#allocation5 + $0x1238] sm:$0xff] }
 0x3d1   :  { %8942 = vmatpush1.bf16.msra.mxu0 %v10903_v46  ;;  %9372 = vmatpush1.bf16.msra.mxu1 %v10905_v47  ;;  %v10959_v46 = vcombine.low %v644_v33, %v648_v34  ;;  %v10961_v47 = vcombine.low %v645_v36, %v649_v37  ;;  %v692_v24 = vld [vmem:[#allocation5 + $0x1250] sm:$0xff]  ;;  %v697_v27 = vld [vmem:[#allocation5 + $0x1278] sm:$0xff]  ;;  %v10999_v28 = vcombine.low %v684_v16, %v688_v17 }
 0x3d2   :  { %8943 = vmatprep.subr.bf16.mxu0 %v10912_v48  ;;  %9373 = vmatprep.subr.bf16.mxu1 %v10914_v49  ;;  %v10968_v48 = vcombine.high %v652_v42, %v656_v43  ;;  %v10970_v49 = vcombine.high %v653_v44, %v657_v45  ;;  %v696_v25 = vld [vmem:[#allocation5 + $0x1270] sm:$0xff]  ;;  %v701_v34 = vld [vmem:[#allocation5 + $0x1298] sm:$0xff] }
 0x3d3   :  { %v704_v33 = vld [vmem:[#allocation5 + $0x12b0] sm:$0xff]  ;;  %v11007_v36 = vcombine.low %v692_v24, %v696_v25 }
 0x3d5   :  { %8944 = vmatpush1.bf16.msra.mxu0 %v10911_v55  ;;  %9374 = vmatpush1.bf16.msra.mxu1 %v10913_v56  ;;  %v10967_v55 = vcombine.low %v652_v42, %v656_v43  ;;  %v10969_v56 = vcombine.low %v653_v44, %v657_v45  ;;  %v709_v42 = vld [vmem:[#allocation5 + $0x12d8] sm:$0xff] }
 0x3d6   :  { %8945 = vmatprep.subr.bf16.mxu0 %v10920_v57  ;;  %9375 = vmatprep.subr.bf16.mxu1 %v10922_v58  ;;  %v10976_v57 = vcombine.high %v660_v50, %v664_v51  ;;  %v10978_v58 = vcombine.high %v661_v52, %v665_v54  ;;  %v713_v43 = vld [vmem:[#allocation5 + $0x12f8] sm:$0xff] }
 0x3d9   :  { %8946 = vmatpush1.bf16.msra.mxu0 %v10919_v0  ;;  %9376 = vmatpush1.bf16.msra.mxu1 %v10921_v1  ;;  %v10975_v0 = vcombine.low %v660_v50, %v664_v51  ;;  %v10977_v1 = vcombine.low %v661_v52, %v665_v54  ;;  %v717_v50 = vld [vmem:[#allocation5 + $0x1318] sm:$0xff]  ;;  %v11025_v54 = vcombine.low %v709_v42, %v713_v43 }
 0x3da   :  { %8947 = vmatprep.subr.bf16.mxu0 %v10928_v2  ;;  %9377 = vmatprep.subr.bf16.mxu1 %v10930_v4  ;;  %v10984_v2 = vcombine.high %v668_v59, %v672_v60  ;;  %v10986_v4 = vcombine.high %v669_v61, %v673_v63  ;;  %v721_v51 = vld [vmem:[#allocation5 + $0x1338] sm:$0xff] }
 0x3dd   :  { %8948 = vmatpush1.bf16.msra.mxu0 %v10927_v12  ;;  %9378 = vmatpush1.bf16.msra.mxu1 %v10929_v13  ;;  %v10983_v12 = vcombine.low %v668_v59, %v672_v60  ;;  %v10985_v13 = vcombine.low %v669_v61, %v673_v63  ;;  %v725_v59 = vld [vmem:[#allocation5 + $0x1358] sm:$0xff]  ;;  %v11033_v63 = vcombine.low %v717_v50, %v721_v51 }
 0x3de   :  { %8960 = vmatprep.subr.bf16.mxu0 %v10936_v14  ;;  %9390 = vmatprep.subr.bf16.mxu1 %v10938_v15  ;;  %v10992_v14 = vcombine.high %v676_v5, %v680_v8  ;;  %v10994_v15 = vcombine.high %v677_v9, %v681_v10  ;;  %v729_v60 = vld [vmem:[#allocation5 + $0x1378] sm:$0xff] }
 0x3e0   :  { %8950 = vmatmul.mubr.bf16.vlgmr.msra.gmra.mrb[4].mxu0 %v12135_v26  ;;  %9380 = vmatmul.mubr.bf16.vlgmr.msra.gmra.mrb[4].mxu1 %v12135_v26  ;;  %v693_v26 = vld [vmem:[#allocation5 + $0x1258] sm:$0xff] }
 0x3e1   :  { %8961 = vmatpush1.bf16.msra.mxu0 %v10935_v20  ;;  %9391 = vmatpush1.bf16.msra.mxu1 %v10937_v21  ;;  %v10991_v20 = vcombine.low %v676_v5, %v680_v8  ;;  %v10993_v21 = vcombine.low %v677_v9, %v681_v10  ;;  %v11009_v37 = vcombine.low %v693_v26, %v697_v27  ;;  %v733_v5 = vld [vmem:[#allocation5 + $0x1398] sm:$0xff] }
 0x3e2   :  { %8962 = vmatprep.subr.bf16.mxu0 %v10944_v22  ;;  %9392 = vmatprep.subr.bf16.mxu1 %v10946_v23  ;;  %v11000_v22 = vcombine.high %v684_v16, %v688_v17  ;;  %v11002_v23 = vcombine.high %v685_v18, %v689_v19  ;;  %v737_v8 = vld [vmem:[#allocation5 + $0x13b8] sm:$0xff]  ;;  %v11041_v10 = vcombine.low %v725_v59, %v729_v60 }
 0x3e3   :  { %8992 = vmatprep.mubr.bf16.mxu0 %v12136_v35  ;;  %9422 = vmatprep.mubr.bf16.mxu1 %v12136_v35  ;;  %v705_v35 = vld [vmem:[#allocation5 + $0x12b8] sm:$0xff] }
 0x3e4   :  { %v11017_v45 = vcombine.low %v701_v34, %v705_v35  ;;  %v741_v16 = vld [vmem:[#allocation5 + $0x13d8] sm:$0xff] }
 0x3e5   :  { %8963 = vmatpush1.bf16.msra.mxu0 %v10943_v29  ;;  %9393 = vmatpush1.bf16.msra.mxu1 %v10945_v30  ;;  %v11001_v29 = vcombine.low %v685_v18, %v689_v19  ;;  %v11008_v30 = vcombine.high %v692_v24, %v696_v25  ;;  %v745_v17 = vld [vmem:[#allocation5 + $0x13f8] sm:$0xff]  ;;  %v11049_v19 = vcombine.low %v733_v5, %v737_v8 }
 0x3e6   :  { %8964 = vmatprep.subr.bf16.mxu0 %v10952_v31  ;;  %9394 = vmatprep.subr.bf16.mxu1 %v10954_v32  ;;  %v11010_v31 = vcombine.high %v693_v26, %v697_v27  ;;  %v700_v32 = vld [vmem:[#allocation5 + $0x1290] sm:$0xff]  ;;  %v749_v24 = vld [vmem:[#allocation5 + $0x1418] sm:$0xff]  ;;  %v11057_v27 = vcombine.low %v741_v16, %v745_v17 }
 0x3e7   :  { %v11015_v44 = vcombine.low %v700_v32, %v704_v33  ;;  %v753_v25 = vld [vmem:[#allocation5 + $0x1438] sm:$0xff] }
 0x3e9   :  { %8965 = vmatpush1.bf16.msra.mxu0 %v10951_v38  ;;  %9395 = vmatpush1.bf16.msra.mxu1 %v10953_v39  ;;  %v11016_v38 = vcombine.high %v700_v32, %v704_v33  ;;  %v11018_v39 = vcombine.high %v701_v34, %v705_v35  ;;  %v757_v32 = vld [vmem:[#allocation5 + $0x1458] sm:$0xff]  ;;  %v11065_v35 = vcombine.low %v749_v24, %v753_v25 }
 0x3ea   :  { %8966 = vmatprep.subr.bf16.mxu0 %v10960_v40  ;;  %9396 = vmatprep.subr.bf16.mxu1 %v10962_v41  ;;  %v708_v40 = vld [vmem:[#allocation5 + $0x12d0] sm:$0xff]  ;;  %v761_v33 = vld [vmem:[#allocation5 + $0x1478] sm:$0xff] }
 0x3eb   :  { %v712_v41 = vld [vmem:[#allocation5 + $0x12f0] sm:$0xff] }
 0x3ec   :  { %v11023_v52 = vcombine.low %v708_v40, %v712_v41 }
 0x3ed   :  { %8967 = vmatpush1.bf16.msra.mxu0 %v10959_v46  ;;  %9397 = vmatpush1.bf16.msra.mxu1 %v10961_v47  ;;  %v11024_v46 = vcombine.high %v708_v40, %v712_v41  ;;  %v11026_v47 = vcombine.high %v709_v42, %v713_v43  ;;  %v12137_v40 = vld [vmem:[#allocation2 + $0x20] ss:$80 sps:$4 sm:$0xff]   ;;  %v765_v41 = vld [vmem:[#allocation5 + $0x1498] sm:$0xff] }
 0x3ee   :  { %8968 = vmatprep.subr.bf16.mxu0 %v10968_v48  ;;  %9398 = vmatprep.subr.bf16.mxu1 %v10970_v49  ;;  %v716_v48 = vld [vmem:[#allocation5 + $0x1310] sm:$0xff]  ;;  %v769_v42 = vld [vmem:[#allocation5 + $0x14b8] sm:$0xff] }
 0x3ef   :  { %v720_v49 = vld [vmem:[#allocation5 + $0x1330] sm:$0xff] }
 0x3f0   :  { %v11031_v61 = vcombine.low %v716_v48, %v720_v49 }
 0x3f1   :  { %8969 = vmatpush1.bf16.msra.mxu0 %v10967_v55  ;;  %9399 = vmatpush1.bf16.msra.mxu1 %v10969_v56  ;;  %v11032_v55 = vcombine.high %v716_v48, %v720_v49  ;;  %v11034_v56 = vcombine.high %v717_v50, %v721_v51  ;;  %v776_v48 = vld [vmem:[#allocation5 + $0x14f0] sm:$0xff]  ;;  %v12138_v49 = vld [vmem:[#allocation2 + $0x2c] ss:$80 sps:$4 sm:$0xff]  }
 0x3f2   :  { %8970 = vmatprep.subr.bf16.mxu0 %v10976_v57  ;;  %9400 = vmatprep.subr.bf16.mxu1 %v10978_v58  ;;  %v724_v57 = vld [vmem:[#allocation5 + $0x1350] sm:$0xff]  ;;  %v773_v50 = vld [vmem:[#allocation5 + $0x14d8] sm:$0xff] }
 0x3f3   :  { %v728_v58 = vld [vmem:[#allocation5 + $0x1370] sm:$0xff]  ;;  %v777_v51 = vld [vmem:[#allocation5 + $0x14f8] sm:$0xff] }
 0x3f4   :  { %v11039_v9 = vcombine.low %v724_v57, %v728_v58 }
 0x3f5   :  { %8971 = vmatpush1.bf16.msra.mxu0 %v10975_v0  ;;  %9401 = vmatpush1.bf16.msra.mxu1 %v10977_v1  ;;  %v11040_v0 = vcombine.high %v724_v57, %v728_v58  ;;  %v11042_v1 = vcombine.high %v725_v59, %v729_v60  ;;  %v780_v57 = vld [vmem:[#allocation5 + $0x1510] sm:$0xff]  ;;  %v781_v59 = vld [vmem:[#allocation5 + $0x1518] sm:$0xff] }
 0x3f6   :  { %8972 = vmatprep.subr.bf16.mxu0 %v10984_v2  ;;  %9402 = vmatprep.subr.bf16.mxu1 %v10986_v4  ;;  %v732_v2 = vld [vmem:[#allocation5 + $0x1390] sm:$0xff]  ;;  %v785_v60 = vld [vmem:[#allocation5 + $0x1538] sm:$0xff] }
 0x3f7   :  { %v736_v4 = vld [vmem:[#allocation5 + $0x13b0] sm:$0xff] }
 0x3f8   :  { %v11047_v18 = vcombine.low %v732_v2, %v736_v4  ;;  %v784_v58 = vld [vmem:[#allocation5 + $0x1530] sm:$0xff] }
 0x3f9   :  { %8973 = vmatpush1.bf16.msra.mxu0 %v10983_v12  ;;  %9403 = vmatpush1.bf16.msra.mxu1 %v10985_v13  ;;  %v11048_v12 = vcombine.high %v732_v2, %v736_v4  ;;  %v11050_v13 = vcombine.high %v733_v5, %v737_v8  ;;  %v788_v2 = vld [vmem:[#allocation5 + $0x1550] sm:$0xff]  ;;  %v789_v5 = vld [vmem:[#allocation5 + $0x1558] sm:$0xff] }
 0x3fa   :  { %8974 = vmatprep.subr.bf16.mxu0 %v10992_v14  ;;  %9404 = vmatprep.subr.bf16.mxu1 %v10994_v15  ;;  %v740_v14 = vld [vmem:[#allocation5 + $0x13d0] sm:$0xff]  ;;  %v793_v8 = vld [vmem:[#allocation5 + $0x1578] sm:$0xff] }
 0x3fb   :  { %v744_v15 = vld [vmem:[#allocation5 + $0x13f0] sm:$0xff] }
 0x3fc   :  { %v11055_v26 = vcombine.low %v740_v14, %v744_v15  ;;  %v792_v4 = vld [vmem:[#allocation5 + $0x1570] sm:$0xff] }
 0x3fd   :  { %8975 = vmatpush1.bf16.msra.mxu0 %v10991_v20  ;;  %9405 = vmatpush1.bf16.msra.mxu1 %v10993_v21  ;;  %v11056_v20 = vcombine.high %v740_v14, %v744_v15  ;;  %v11058_v21 = vcombine.high %v741_v16, %v745_v17  ;;  %v796_v14 = vld [vmem:[#allocation5 + $0x1590] sm:$0xff]  ;;  %v797_v16 = vld [vmem:[#allocation5 + $0x1598] sm:$0xff] }
 0x3fe   :  { %8976 = vmatprep.subr.bf16.mxu0 %v11000_v22  ;;  %9406 = vmatprep.subr.bf16.mxu1 %v11002_v23  ;;  %v748_v22 = vld [vmem:[#allocation5 + $0x1410] sm:$0xff]  ;;  %v801_v17 = vld [vmem:[#allocation5 + $0x15b8] sm:$0xff] }
 0x3ff   :  { %v752_v23 = vld [vmem:[#allocation5 + $0x1430] sm:$0xff] }
 0x400   :  { %v11063_v34 = vcombine.low %v748_v22, %v752_v23  ;;  %v800_v15 = vld [vmem:[#allocation5 + $0x15b0] sm:$0xff] }
 0x401   :  { %8977 = vmatpush1.bf16.msra.mxu0 %v10999_v28  ;;  %9407 = vmatpush1.bf16.msra.mxu1 %v11001_v29  ;;  %v11064_v28 = vcombine.high %v748_v22, %v752_v23  ;;  %v11066_v29 = vcombine.high %v749_v24, %v753_v25  ;;  %v804_v22 = vld [vmem:[#allocation5 + $0x15d0] sm:$0xff]  ;;  %v805_v24 = vld [vmem:[#allocation5 + $0x15d8] sm:$0xff] }
 0x402   :  { %8978 = vmatprep.subr.bf16.mxu0 %v11008_v30  ;;  %9408 = vmatprep.subr.bf16.mxu1 %v11010_v31  ;;  %v756_v30 = vld [vmem:[#allocation5 + $0x1450] sm:$0xff]  ;;  %v809_v25 = vld [vmem:[#allocation5 + $0x15f8] sm:$0xff] }
 0x403   :  { %v760_v31 = vld [vmem:[#allocation5 + $0x1470] sm:$0xff] }
 0x404   :  { %v11071_v43 = vcombine.low %v756_v30, %v760_v31  ;;  %v808_v23 = vld [vmem:[#allocation5 + $0x15f0] sm:$0xff] }
 0x405   :  { %8979 = vmatpush1.bf16.msra.mxu0 %v11007_v36  ;;  %9409 = vmatpush1.bf16.msra.mxu1 %v11009_v37  ;;  %v11072_v36 = vcombine.high %v756_v30, %v760_v31  ;;  %v11074_v37 = vcombine.high %v757_v32, %v761_v33  ;;  %v812_v30 = vld [vmem:[#allocation5 + $0x1610] sm:$0xff] }
 0x406   :  { %8980 = vmatprep.subr.bf16.mxu0 %v11016_v38  ;;  %9410 = vmatprep.subr.bf16.mxu1 %v11018_v39  ;;  %v764_v38 = vld [vmem:[#allocation5 + $0x1490] sm:$0xff] }
 0x407   :  { %v768_v39 = vld [vmem:[#allocation5 + $0x14b0] sm:$0xff] }
 0x408   :  { %v816_v31 = vld [vmem:[#allocation5 + $0x1630] sm:$0xff] }
 0x409   :  { %8981 = vmatpush1.bf16.msra.mxu0 %v11015_v44  ;;  %9411 = vmatpush1.bf16.msra.mxu1 %v11017_v45  ;;  %v11073_v44 = vcombine.low %v757_v32, %v761_v33  ;;  %v11080_v45 = vcombine.high %v764_v38, %v768_v39  ;;  %v813_v32 = vld [vmem:[#allocation5 + $0x1618] sm:$0xff] }
 0x40a   :  { %8982 = vmatprep.subr.bf16.mxu0 %v11024_v46  ;;  %9412 = vmatprep.subr.bf16.mxu1 %v11026_v47  ;;  %v11082_v46 = vcombine.high %v765_v41, %v769_v42  ;;  %v772_v47 = vld [vmem:[#allocation5 + $0x14d0] sm:$0xff]  ;;  %v817_v33 = vld [vmem:[#allocation5 + $0x1638] sm:$0xff] }
 0x40d   :  { %8983 = vmatpush1.bf16.msra.mxu0 %v11023_v52  ;;  %9413 = vmatpush1.bf16.msra.mxu1 %v11025_v54  ;;  %v11079_v52 = vcombine.low %v764_v38, %v768_v39  ;;  %v11081_v54 = vcombine.low %v765_v41, %v769_v42  ;;  %v820_v38 = vld [vmem:[#allocation5 + $0x1650] sm:$0xff]  ;;  %v825_v41 = vld [vmem:[#allocation5 + $0x1678] sm:$0xff]  ;;  %v11127_v42 = vcombine.low %v812_v30, %v816_v31 }
 0x40e   :  { %8984 = vmatprep.subr.bf16.mxu0 %v11032_v55  ;;  %9414 = vmatprep.subr.bf16.mxu1 %v11034_v56  ;;  %v11088_v55 = vcombine.high %v772_v47, %v776_v48  ;;  %v11090_v56 = vcombine.high %v773_v50, %v777_v51  ;;  %v824_v39 = vld [vmem:[#allocation5 + $0x1670] sm:$0xff] }
 0x411   :  { %8985 = vmatpush1.bf16.msra.mxu0 %v11031_v61  ;;  %9415 = vmatpush1.bf16.msra.mxu1 %v11033_v63  ;;  %v11087_v61 = vcombine.low %v772_v47, %v776_v48  ;;  %v11089_v63 = vcombine.low %v773_v50, %v777_v51  ;;  %v832_v47 = vld [vmem:[#allocation5 + $0x16b0] sm:$0xff]  ;;  %v829_v48 = vld [vmem:[#allocation5 + $0x1698] sm:$0xff]  ;;  %v11135_v50 = vcombine.low %v820_v38, %v824_v39 }
 0x412   :  { %8986 = vmatprep.subr.bf16.mxu0 %v11040_v0  ;;  %9416 = vmatprep.subr.bf16.mxu1 %v11042_v1  ;;  %v11096_v0 = vcombine.high %v780_v57, %v784_v58  ;;  %v11098_v1 = vcombine.high %v781_v59, %v785_v60 }
 0x415   :  { %8987 = vmatpush1.bf16.msra.mxu0 %v11039_v9  ;;  %9417 = vmatpush1.bf16.msra.mxu1 %v11041_v10  ;;  %v11095_v9 = vcombine.low %v780_v57, %v784_v58  ;;  %v11097_v10 = vcombine.low %v781_v59, %v785_v60  ;;  %v837_v57 = vld [vmem:[#allocation5 + $0x16d8] sm:$0xff] }
 0x416   :  { %8988 = vmatprep.subr.bf16.mxu0 %v11048_v12  ;;  %9418 = vmatprep.subr.bf16.mxu1 %v11050_v13  ;;  %v11104_v12 = vcombine.high %v788_v2, %v792_v4  ;;  %v11106_v13 = vcombine.high %v789_v5, %v793_v8  ;;  %v841_v58 = vld [vmem:[#allocation5 + $0x16f8] sm:$0xff] }
 0x419   :  { %8989 = vmatpush1.bf16.msra.mxu0 %v11047_v18  ;;  %9419 = vmatpush1.bf16.msra.mxu1 %v11049_v19  ;;  %v11103_v18 = vcombine.low %v788_v2, %v792_v4  ;;  %v11105_v19 = vcombine.low %v789_v5, %v793_v8  ;;  %v845_v2 = vld [vmem:[#allocation5 + $0x1718] sm:$0xff]  ;;  %v11153_v8 = vcombine.low %v837_v57, %v841_v58 }
 0x41a   :  { %8990 = vmatprep.subr.bf16.mxu0 %v11056_v20  ;;  %9420 = vmatprep.subr.bf16.mxu1 %v11058_v21  ;;  %v11112_v20 = vcombine.high %v796_v14, %v800_v15  ;;  %v11114_v21 = vcombine.high %v797_v16, %v801_v17  ;;  %v849_v4 = vld [vmem:[#allocation5 + $0x1738] sm:$0xff] }
 0x41d   :  { %8991 = vmatpush1.bf16.msra.mxu0 %v11055_v26  ;;  %9421 = vmatpush1.bf16.msra.mxu1 %v11057_v27  ;;  %v11111_v26 = vcombine.low %v796_v14, %v800_v15  ;;  %v11113_v27 = vcombine.low %v797_v16, %v801_v17  ;;  %v853_v14 = vld [vmem:[#allocation5 + $0x1758] sm:$0xff]  ;;  %v11161_v17 = vcombine.low %v845_v2, %v849_v4 }
 0x41e   :  { %9003 = vmatprep.subr.bf16.mxu0 %v11064_v28  ;;  %9433 = vmatprep.subr.bf16.mxu1 %v11066_v29  ;;  %v11120_v28 = vcombine.high %v804_v22, %v808_v23  ;;  %v11122_v29 = vcombine.high %v805_v24, %v809_v25  ;;  %v857_v15 = vld [vmem:[#allocation5 + $0x1778] sm:$0xff] }
 0x420   :  { %8993 = vmatmul.mubr.bf16.vlgmr.msra.gmra.mrb[4].mxu0 %v12137_v40  ;;  %9423 = vmatmul.mubr.bf16.vlgmr.msra.gmra.mrb[4].mxu1 %v12137_v40  ;;  %v821_v40 = vld [vmem:[#allocation5 + $0x1658] sm:$0xff] }
 0x421   :  { %9004 = vmatpush1.bf16.msra.mxu0 %v11063_v34  ;;  %9434 = vmatpush1.bf16.msra.mxu1 %v11065_v35  ;;  %v11119_v34 = vcombine.low %v804_v22, %v808_v23  ;;  %v11121_v35 = vcombine.low %v805_v24, %v809_v25  ;;  %v11137_v51 = vcombine.low %v821_v40, %v825_v41  ;;  %v861_v22 = vld [vmem:[#allocation5 + $0x1798] sm:$0xff] }
 0x422   :  { %9005 = vmatprep.subr.bf16.mxu0 %v11072_v36  ;;  %9435 = vmatprep.subr.bf16.mxu1 %v11074_v37  ;;  %v11128_v36 = vcombine.high %v812_v30, %v816_v31  ;;  %v11130_v37 = vcombine.high %v813_v32, %v817_v33  ;;  %v865_v23 = vld [vmem:[#allocation5 + $0x17b8] sm:$0xff]  ;;  %v11169_v25 = vcombine.low %v853_v14, %v857_v15 }
 0x423   :  { %9035 = vmatprep.mubr.bf16.mxu0 %v12138_v49  ;;  %9465 = vmatprep.mubr.bf16.mxu1 %v12138_v49  ;;  %v833_v49 = vld [vmem:[#allocation5 + $0x16b8] sm:$0xff] }
 0x424   :  { %v11145_v60 = vcombine.low %v829_v48, %v833_v49  ;;  %v869_v30 = vld [vmem:[#allocation5 + $0x17d8] sm:$0xff] }
 0x425   :  { %9006 = vmatpush1.bf16.msra.mxu0 %v11071_v43  ;;  %9436 = vmatpush1.bf16.msra.mxu1 %v11073_v44  ;;  %v11129_v43 = vcombine.low %v813_v32, %v817_v33  ;;  %v11136_v44 = vcombine.high %v820_v38, %v824_v39  ;;  %v873_v31 = vld [vmem:[#allocation5 + $0x17f8] sm:$0xff]  ;;  %v11177_v33 = vcombine.low %v861_v22, %v865_v23 }
 0x426   :  { %9007 = vmatprep.subr.bf16.mxu0 %v11080_v45  ;;  %9437 = vmatprep.subr.bf16.mxu1 %v11082_v46  ;;  %v11138_v45 = vcombine.high %v821_v40, %v825_v41  ;;  %v828_v46 = vld [vmem:[#allocation5 + $0x1690] sm:$0xff]  ;;  %v877_v38 = vld [vmem:[#allocation5 + $0x1818] sm:$0xff]  ;;  %v11185_v41 = vcombine.low %v869_v30, %v873_v31 }
 0x427   :  { %v11143_v59 = vcombine.low %v828_v46, %v832_v47  ;;  %v881_v39 = vld [vmem:[#allocation5 + $0x1838] sm:$0xff] }
 0x429   :  { %9008 = vmatpush1.bf16.msra.mxu0 %v11079_v52  ;;  %9438 = vmatpush1.bf16.msra.mxu1 %v11081_v54  ;;  %v11144_v52 = vcombine.high %v828_v46, %v832_v47  ;;  %v11146_v54 = vcombine.high %v829_v48, %v833_v49  ;;  %v885_v46 = vld [vmem:[#allocation5 + $0x1858] sm:$0xff]  ;;  %v11193_v49 = vcombine.low %v877_v38, %v881_v39 }
 0x42a   :  { %9009 = vmatprep.subr.bf16.mxu0 %v11088_v55  ;;  %9439 = vmatprep.subr.bf16.mxu1 %v11090_v56  ;;  %v836_v55 = vld [vmem:[#allocation5 + $0x16d0] sm:$0xff]  ;;  %v889_v47 = vld [vmem:[#allocation5 + $0x1878] sm:$0xff] }
 0x42b   :  { %v840_v56 = vld [vmem:[#allocation5 + $0x16f0] sm:$0xff] }
 0x42c   :  { %v11151_v5 = vcombine.low %v836_v55, %v840_v56 }
 0x42d   :  { %9010 = vmatpush1.bf16.msra.mxu0 %v11087_v61  ;;  %9440 = vmatpush1.bf16.msra.mxu1 %v11089_v63  ;;  %v11152_v61 = vcombine.high %v836_v55, %v840_v56  ;;  %v11154_v63 = vcombine.high %v837_v57, %v841_v58  ;;  %v12139_v55 = vld [vmem:[#allocation2 + $0x28] ss:$80 sps:$4 sm:$0xff]  }
 0x42e   :  { %9011 = vmatprep.subr.bf16.mxu0 %v11096_v0  ;;  %9441 = vmatprep.subr.bf16.mxu1 %v11098_v1  ;;  %v844_v0 = vld [vmem:[#allocation5 + $0x1710] sm:$0xff]  ;;  %v893_v56 = vld [vmem:[#allocation5 + $0x1898] sm:$0xff] }
 0x42f   :  { %v848_v1 = vld [vmem:[#allocation5 + $0x1730] sm:$0xff]  ;;  %v897_v57 = vld [vmem:[#allocation5 + $0x18b8] sm:$0xff] }
 0x430   :  { %v11159_v16 = vcombine.low %v844_v0, %v848_v1 }
 0x431   :  { %9012 = vmatpush1.bf16.msra.mxu0 %v11095_v9  ;;  %9442 = vmatpush1.bf16.msra.mxu1 %v11097_v10  ;;  %v11160_v9 = vcombine.high %v844_v0, %v848_v1  ;;  %v11162_v10 = vcombine.high %v845_v2, %v849_v4  ;;  %v904_v0 = vld [vmem:[#allocation5 + $0x18f0] sm:$0xff]  ;;  %v901_v2 = vld [vmem:[#allocation5 + $0x18d8] sm:$0xff] }
 0x432   :  { %9013 = vmatprep.subr.bf16.mxu0 %v11104_v12  ;;  %9443 = vmatprep.subr.bf16.mxu1 %v11106_v13  ;;  %v852_v12 = vld [vmem:[#allocation5 + $0x1750] sm:$0xff]  ;;  %v905_v4 = vld [vmem:[#allocation5 + $0x18f8] sm:$0xff] }
 0x433   :  { %v856_v13 = vld [vmem:[#allocation5 + $0x1770] sm:$0xff] }
 0x434   :  { %v11167_v24 = vcombine.low %v852_v12, %v856_v13  ;;  %v12140_v1 = vld [vmem:[#allocation2 + $0x34] ss:$80 sps:$4 sm:$0xff]  }
 0x435   :  { %9014 = vmatpush1.bf16.msra.mxu0 %v11103_v18  ;;  %9444 = vmatpush1.bf16.msra.mxu1 %v11105_v19  ;;  %v11168_v18 = vcombine.high %v852_v12, %v856_v13  ;;  %v11170_v19 = vcombine.high %v853_v14, %v857_v15  ;;  %v908_v12 = vld [vmem:[#allocation5 + $0x1910] sm:$0xff]  ;;  %v909_v14 = vld [vmem:[#allocation5 + $0x1918] sm:$0xff] }
 0x436   :  { %9015 = vmatprep.subr.bf16.mxu0 %v11112_v20  ;;  %9445 = vmatprep.subr.bf16.mxu1 %v11114_v21  ;;  %v860_v20 = vld [vmem:[#allocation5 + $0x1790] sm:$0xff]  ;;  %v913_v15 = vld [vmem:[#allocation5 + $0x1938] sm:$0xff] }
 0x437   :  { %v864_v21 = vld [vmem:[#allocation5 + $0x17b0] sm:$0xff] }
 0x438   :  { %v11175_v32 = vcombine.low %v860_v20, %v864_v21  ;;  %v912_v13 = vld [vmem:[#allocation5 + $0x1930] sm:$0xff] }
 0x439   :  { %9016 = vmatpush1.bf16.msra.mxu0 %v11111_v26  ;;  %9446 = vmatpush1.bf16.msra.mxu1 %v11113_v27  ;;  %v11176_v26 = vcombine.high %v860_v20, %v864_v21  ;;  %v11178_v27 = vcombine.high %v861_v22, %v865_v23  ;;  %v916_v20 = vld [vmem:[#allocation5 + $0x1950] sm:$0xff]  ;;  %v917_v22 = vld [vmem:[#allocation5 + $0x1958] sm:$0xff] }
 0x43a   :  { %9017 = vmatprep.subr.bf16.mxu0 %v11120_v28  ;;  %9447 = vmatprep.subr.bf16.mxu1 %v11122_v29  ;;  %v868_v28 = vld [vmem:[#allocation5 + $0x17d0] sm:$0xff]  ;;  %v921_v23 = vld [vmem:[#allocation5 + $0x1978] sm:$0xff] }
 0x43b   :  { %v872_v29 = vld [vmem:[#allocation5 + $0x17f0] sm:$0xff] }
 0x43c   :  { %v11183_v40 = vcombine.low %v868_v28, %v872_v29  ;;  %v920_v21 = vld [vmem:[#allocation5 + $0x1970] sm:$0xff] }
 0x43d   :  { %9018 = vmatpush1.bf16.msra.mxu0 %v11119_v34  ;;  %9448 = vmatpush1.bf16.msra.mxu1 %v11121_v35  ;;  %v11184_v34 = vcombine.high %v868_v28, %v872_v29  ;;  %v11186_v35 = vcombine.high %v869_v30, %v873_v31  ;;  %v924_v28 = vld [vmem:[#allocation5 + $0x1990] sm:$0xff]  ;;  %v925_v30 = vld [vmem:[#allocation5 + $0x1998] sm:$0xff] }
 0x43e   :  { %9019 = vmatprep.subr.bf16.mxu0 %v11128_v36  ;;  %9449 = vmatprep.subr.bf16.mxu1 %v11130_v37  ;;  %v876_v36 = vld [vmem:[#allocation5 + $0x1810] sm:$0xff]  ;;  %v929_v31 = vld [vmem:[#allocation5 + $0x19b8] sm:$0xff] }
 0x43f   :  { %v880_v37 = vld [vmem:[#allocation5 + $0x1830] sm:$0xff] }
 0x440   :  { %v11191_v48 = vcombine.low %v876_v36, %v880_v37  ;;  %v928_v29 = vld [vmem:[#allocation5 + $0x19b0] sm:$0xff] }
 0x441   :  { %9020 = vmatpush1.bf16.msra.mxu0 %v11127_v42  ;;  %9450 = vmatpush1.bf16.msra.mxu1 %v11129_v43  ;;  %v11192_v42 = vcombine.high %v876_v36, %v880_v37  ;;  %v11194_v43 = vcombine.high %v877_v38, %v881_v39  ;;  %v932_v36 = vld [vmem:[#allocation5 + $0x19d0] sm:$0xff]  ;;  %v933_v38 = vld [vmem:[#allocation5 + $0x19d8] sm:$0xff] }
 0x442   :  { %9021 = vmatprep.subr.bf16.mxu0 %v11136_v44  ;;  %9451 = vmatprep.subr.bf16.mxu1 %v11138_v45  ;;  %v884_v44 = vld [vmem:[#allocation5 + $0x1850] sm:$0xff]  ;;  %v937_v39 = vld [vmem:[#allocation5 + $0x19f8] sm:$0xff] }
 0x443   :  { %v888_v45 = vld [vmem:[#allocation5 + $0x1870] sm:$0xff] }
 0x444   :  { %v11199_v58 = vcombine.low %v884_v44, %v888_v45  ;;  %v936_v37 = vld [vmem:[#allocation5 + $0x19f0] sm:$0xff] }
 0x445   :  { %9022 = vmatpush1.bf16.msra.mxu0 %v11135_v50  ;;  %9452 = vmatpush1.bf16.msra.mxu1 %v11137_v51  ;;  %v11200_v50 = vcombine.high %v884_v44, %v888_v45  ;;  %v11202_v51 = vcombine.high %v885_v46, %v889_v47  ;;  %v940_v44 = vld [vmem:[#allocation5 + $0x1a10] sm:$0xff] }
 0x446   :  { %9023 = vmatprep.subr.bf16.mxu0 %v11144_v52  ;;  %9453 = vmatprep.subr.bf16.mxu1 %v11146_v54  ;;  %v892_v52 = vld [vmem:[#allocation5 + $0x1890] sm:$0xff] }
 0x447   :  { %v896_v54 = vld [vmem:[#allocation5 + $0x18b0] sm:$0xff] }
 0x448   :  { %v944_v45 = vld [vmem:[#allocation5 + $0x1a30] sm:$0xff] }
 0x449   :  { %9024 = vmatpush1.bf16.msra.mxu0 %v11143_v59  ;;  %9454 = vmatpush1.bf16.msra.mxu1 %v11145_v60  ;;  %v11201_v59 = vcombine.low %v885_v46, %v889_v47  ;;  %v11208_v60 = vcombine.high %v892_v52, %v896_v54  ;;  %v941_v46 = vld [vmem:[#allocation5 + $0x1a18] sm:$0xff] }
 0x44a   :  { %9025 = vmatprep.subr.bf16.mxu0 %v11152_v61  ;;  %9455 = vmatprep.subr.bf16.mxu1 %v11154_v63  ;;  %v11210_v61 = vcombine.high %v893_v56, %v897_v57  ;;  %v900_v63 = vld [vmem:[#allocation5 + $0x18d0] sm:$0xff]  ;;  %v945_v47 = vld [vmem:[#allocation5 + $0x1a38] sm:$0xff] }
 0x44d   :  { %9026 = vmatpush1.bf16.msra.mxu0 %v11151_v5  ;;  %9456 = vmatpush1.bf16.msra.mxu1 %v11153_v8  ;;  %v11207_v5 = vcombine.low %v892_v52, %v896_v54  ;;  %v11209_v8 = vcombine.low %v893_v56, %v897_v57  ;;  %v948_v52 = vld [vmem:[#allocation5 + $0x1a50] sm:$0xff]  ;;  %v953_v56 = vld [vmem:[#allocation5 + $0x1a78] sm:$0xff]  ;;  %v11255_v57 = vcombine.low %v940_v44, %v944_v45 }
 0x44e   :  { %9027 = vmatprep.subr.bf16.mxu0 %v11160_v9  ;;  %9457 = vmatprep.subr.bf16.mxu1 %v11162_v10  ;;  %v11216_v9 = vcombine.high %v900_v63, %v904_v0  ;;  %v11218_v10 = vcombine.high %v901_v2, %v905_v4  ;;  %v952_v54 = vld [vmem:[#allocation5 + $0x1a70] sm:$0xff] }
 0x451   :  { %9028 = vmatpush1.bf16.msra.mxu0 %v11159_v16  ;;  %9458 = vmatpush1.bf16.msra.mxu1 %v11161_v17  ;;  %v11215_v16 = vcombine.low %v900_v63, %v904_v0  ;;  %v11217_v17 = vcombine.low %v901_v2, %v905_v4  ;;  %v960_v63 = vld [vmem:[#allocation5 + $0x1ab0] sm:$0xff]  ;;  %v957_v0 = vld [vmem:[#allocation5 + $0x1a98] sm:$0xff]  ;;  %v11263_v2 = vcombine.low %v948_v52, %v952_v54 }
 0x452   :  { %9029 = vmatprep.subr.bf16.mxu0 %v11168_v18  ;;  %9459 = vmatprep.subr.bf16.mxu1 %v11170_v19  ;;  %v11224_v18 = vcombine.high %v908_v12, %v912_v13  ;;  %v11226_v19 = vcombine.high %v909_v14, %v913_v15 }
 0x455   :  { %9030 = vmatpush1.bf16.msra.mxu0 %v11167_v24  ;;  %9460 = vmatpush1.bf16.msra.mxu1 %v11169_v25  ;;  %v11223_v24 = vcombine.low %v908_v12, %v912_v13  ;;  %v11225_v25 = vcombine.low %v909_v14, %v913_v15  ;;  %v965_v12 = vld [vmem:[#allocation5 + $0x1ad8] sm:$0xff] }
 0x456   :  { %9031 = vmatprep.subr.bf16.mxu0 %v11176_v26  ;;  %9461 = vmatprep.subr.bf16.mxu1 %v11178_v27  ;;  %v11232_v26 = vcombine.high %v916_v20, %v920_v21  ;;  %v11234_v27 = vcombine.high %v917_v22, %v921_v23  ;;  %v969_v13 = vld [vmem:[#allocation5 + $0x1af8] sm:$0xff] }
 0x459   :  { %9032 = vmatpush1.bf16.msra.mxu0 %v11175_v32  ;;  %9462 = vmatpush1.bf16.msra.mxu1 %v11177_v33  ;;  %v11231_v32 = vcombine.low %v916_v20, %v920_v21  ;;  %v11233_v33 = vcombine.low %v917_v22, %v921_v23  ;;  %v973_v20 = vld [vmem:[#allocation5 + $0x1b18] sm:$0xff]  ;;  %v11281_v23 = vcombine.low %v965_v12, %v969_v13 }
 0x45a   :  { %9033 = vmatprep.subr.bf16.mxu0 %v11184_v34  ;;  %9463 = vmatprep.subr.bf16.mxu1 %v11186_v35  ;;  %v11240_v34 = vcombine.high %v924_v28, %v928_v29  ;;  %v11242_v35 = vcombine.high %v925_v30, %v929_v31  ;;  %v977_v21 = vld [vmem:[#allocation5 + $0x1b38] sm:$0xff] }
 0x45d   :  { %9034 = vmatpush1.bf16.msra.mxu0 %v11183_v40  ;;  %9464 = vmatpush1.bf16.msra.mxu1 %v11185_v41  ;;  %v11239_v40 = vcombine.low %v924_v28, %v928_v29  ;;  %v11241_v41 = vcombine.low %v925_v30, %v929_v31  ;;  %v981_v28 = vld [vmem:[#allocation5 + $0x1b58] sm:$0xff]  ;;  %v11289_v31 = vcombine.low %v973_v20, %v977_v21 }
 0x45e   :  { %9046 = vmatprep.subr.bf16.mxu0 %v11192_v42  ;;  %9476 = vmatprep.subr.bf16.mxu1 %v11194_v43  ;;  %v11248_v42 = vcombine.high %v932_v36, %v936_v37  ;;  %v11250_v43 = vcombine.high %v933_v38, %v937_v39  ;;  %v985_v29 = vld [vmem:[#allocation5 + $0x1b78] sm:$0xff] }
 0x460   :  { %9036 = vmatmul.mubr.bf16.vlgmr.msra.gmra.mrb[4].mxu0 %v12139_v55  ;;  %9466 = vmatmul.mubr.bf16.vlgmr.msra.gmra.mrb[4].mxu1 %v12139_v55  ;;  %v949_v55 = vld [vmem:[#allocation5 + $0x1a58] sm:$0xff] }
 0x461   :  { %9047 = vmatpush1.bf16.msra.mxu0 %v11191_v48  ;;  %9477 = vmatpush1.bf16.msra.mxu1 %v11193_v49  ;;  %v11247_v48 = vcombine.low %v932_v36, %v936_v37  ;;  %v11249_v49 = vcombine.low %v933_v38, %v937_v39  ;;  %v11265_v4 = vcombine.low %v949_v55, %v953_v56  ;;  %v989_v36 = vld [vmem:[#allocation5 + $0x1b98] sm:$0xff] }
 0x462   :  { %9048 = vmatprep.subr.bf16.mxu0 %v11200_v50  ;;  %9478 = vmatprep.subr.bf16.mxu1 %v11202_v51  ;;  %v11256_v50 = vcombine.high %v940_v44, %v944_v45  ;;  %v11258_v51 = vcombine.high %v941_v46, %v945_v47  ;;  %v993_v37 = vld [vmem:[#allocation5 + $0x1bb8] sm:$0xff]  ;;  %v11297_v39 = vcombine.low %v981_v28, %v985_v29 }
 0x463   :  { %9078 = vmatprep.mubr.bf16.mxu0 %v12140_v1  ;;  %9508 = vmatprep.mubr.bf16.mxu1 %v12140_v1  ;;  %v961_v1 = vld [vmem:[#allocation5 + $0x1ab8] sm:$0xff] }
 0x464   :  { %v11273_v15 = vcombine.low %v957_v0, %v961_v1  ;;  %v997_v44 = vld [vmem:[#allocation5 + $0x1bd8] sm:$0xff] }
 0x465   :  { %9049 = vmatpush1.bf16.msra.mxu0 %v11199_v58  ;;  %9479 = vmatpush1.bf16.msra.mxu1 %v11201_v59  ;;  %v11257_v58 = vcombine.low %v941_v46, %v945_v47  ;;  %v11264_v59 = vcombine.high %v948_v52, %v952_v54  ;;  %v1001_v45 = vld [vmem:[#allocation5 + $0x1bf8] sm:$0xff]  ;;  %v11305_v47 = vcombine.low %v989_v36, %v993_v37 }
 0x466   :  { %9050 = vmatprep.subr.bf16.mxu0 %v11208_v60  ;;  %9480 = vmatprep.subr.bf16.mxu1 %v11210_v61  ;;  %v11266_v60 = vcombine.high %v949_v55, %v953_v56  ;;  %v956_v61 = vld [vmem:[#allocation5 + $0x1a90] sm:$0xff]  ;;  %v1005_v52 = vld [vmem:[#allocation5 + $0x1c18] sm:$0xff]  ;;  %v11313_v56 = vcombine.low %v997_v44, %v1001_v45 }
 0x467   :  { %v11271_v14 = vcombine.low %v956_v61, %v960_v63  ;;  %v1009_v54 = vld [vmem:[#allocation5 + $0x1c38] sm:$0xff] }
 0x469   :  { %9051 = vmatpush1.bf16.msra.mxu0 %v11207_v5  ;;  %9481 = vmatpush1.bf16.msra.mxu1 %v11209_v8  ;;  %v11272_v5 = vcombine.high %v956_v61, %v960_v63  ;;  %v11274_v8 = vcombine.high %v957_v0, %v961_v1  ;;  %v1013_v61 = vld [vmem:[#allocation5 + $0x1c58] sm:$0xff]  ;;  %v11321_v1 = vcombine.low %v1005_v52, %v1009_v54 }
 0x46a   :  { %9052 = vmatprep.subr.bf16.mxu0 %v11216_v9  ;;  %9482 = vmatprep.subr.bf16.mxu1 %v11218_v10  ;;  %v964_v9 = vld [vmem:[#allocation5 + $0x1ad0] sm:$0xff]  ;;  %v1017_v63 = vld [vmem:[#allocation5 + $0x1c78] sm:$0xff] }
 0x46b   :  { %v968_v10 = vld [vmem:[#allocation5 + $0x1af0] sm:$0xff] }
 0x46c   :  { %v11279_v22 = vcombine.low %v964_v9, %v968_v10 }
 0x46d   :  { %9053 = vmatpush1.bf16.msra.mxu0 %v11215_v16  ;;  %9483 = vmatpush1.bf16.msra.mxu1 %v11217_v17  ;;  %v11280_v16 = vcombine.high %v964_v9, %v968_v10  ;;  %v11282_v17 = vcombine.high %v965_v12, %v969_v13  ;;  %v12141_v9 = vld [vmem:[#allocation2 + $0x30] ss:$80 sps:$4 sm:$0xff]   ;;  %v1021_v10 = vld [vmem:[#allocation5 + $0x1c98] sm:$0xff] }
 0x46e   :  { %9054 = vmatprep.subr.bf16.mxu0 %v11224_v18  ;;  %9484 = vmatprep.subr.bf16.mxu1 %v11226_v19  ;;  %v972_v18 = vld [vmem:[#allocation5 + $0x1b10] sm:$0xff]  ;;  %v1025_v12 = vld [vmem:[#allocation5 + $0x1cb8] sm:$0xff] }
 0x46f   :  { %v976_v19 = vld [vmem:[#allocation5 + $0x1b30] sm:$0xff] }
 0x470   :  { %v11287_v30 = vcombine.low %v972_v18, %v976_v19 }
 0x471   :  { %9055 = vmatpush1.bf16.msra.mxu0 %v11223_v24  ;;  %9485 = vmatpush1.bf16.msra.mxu1 %v11225_v25  ;;  %v11288_v24 = vcombine.high %v972_v18, %v976_v19  ;;  %v11290_v25 = vcombine.high %v973_v20, %v977_v21  ;;  %v1032_v18 = vld [vmem:[#allocation5 + $0x1cf0] sm:$0xff]  ;;  %v12142_v19 = vld [vmem:[#allocation2 + $0x3c] ss:$80 sps:$4 sm:$0xff]  }
 0x472   :  { %9056 = vmatprep.subr.bf16.mxu0 %v11232_v26  ;;  %9486 = vmatprep.subr.bf16.mxu1 %v11234_v27  ;;  %v980_v26 = vld [vmem:[#allocation5 + $0x1b50] sm:$0xff]  ;;  %v1029_v20 = vld [vmem:[#allocation5 + $0x1cd8] sm:$0xff] }
 0x473   :  { %v984_v27 = vld [vmem:[#allocation5 + $0x1b70] sm:$0xff]  ;;  %v1033_v21 = vld [vmem:[#allocation5 + $0x1cf8] sm:$0xff] }
 0x474   :  { %v11295_v38 = vcombine.low %v980_v26, %v984_v27 }
 0x475   :  { %9057 = vmatpush1.bf16.msra.mxu0 %v11231_v32  ;;  %9487 = vmatpush1.bf16.msra.mxu1 %v11233_v33  ;;  %v11296_v32 = vcombine.high %v980_v26, %v984_v27  ;;  %v11298_v33 = vcombine.high %v981_v28, %v985_v29  ;;  %v1036_v26 = vld [vmem:[#allocation5 + $0x1d10] sm:$0xff]  ;;  %v1037_v28 = vld [vmem:[#allocation5 + $0x1d18] sm:$0xff] }
 0x476   :  { %9058 = vmatprep.subr.bf16.mxu0 %v11240_v34  ;;  %9488 = vmatprep.subr.bf16.mxu1 %v11242_v35  ;;  %v988_v34 = vld [vmem:[#allocation5 + $0x1b90] sm:$0xff]  ;;  %v1041_v29 = vld [vmem:[#allocation5 + $0x1d38] sm:$0xff] }
 0x477   :  { %v992_v35 = vld [vmem:[#allocation5 + $0x1bb0] sm:$0xff] }
 0x478   :  { %v11303_v46 = vcombine.low %v988_v34, %v992_v35  ;;  %v1040_v27 = vld [vmem:[#allocation5 + $0x1d30] sm:$0xff] }
 0x479   :  { %9059 = vmatpush1.bf16.msra.mxu0 %v11239_v40  ;;  %9489 = vmatpush1.bf16.msra.mxu1 %v11241_v41  ;;  %v11304_v40 = vcombine.high %v988_v34, %v992_v35  ;;  %v11306_v41 = vcombine.high %v989_v36, %v993_v37  ;;  %v1044_v34 = vld [vmem:[#allocation5 + $0x1d50] sm:$0xff]  ;;  %v1045_v36 = vld [vmem:[#allocation5 + $0x1d58] sm:$0xff] }
 0x47a   :  { %9060 = vmatprep.subr.bf16.mxu0 %v11248_v42  ;;  %9490 = vmatprep.subr.bf16.mxu1 %v11250_v43  ;;  %v996_v42 = vld [vmem:[#allocation5 + $0x1bd0] sm:$0xff]  ;;  %v1049_v37 = vld [vmem:[#allocation5 + $0x1d78] sm:$0xff] }
 0x47b   :  { %v1000_v43 = vld [vmem:[#allocation5 + $0x1bf0] sm:$0xff] }
 0x47c   :  { %v11311_v55 = vcombine.low %v996_v42, %v1000_v43  ;;  %v1048_v35 = vld [vmem:[#allocation5 + $0x1d70] sm:$0xff] }
 0x47d   :  { %9061 = vmatpush1.bf16.msra.mxu0 %v11247_v48  ;;  %9491 = vmatpush1.bf16.msra.mxu1 %v11249_v49  ;;  %v11312_v48 = vcombine.high %v996_v42, %v1000_v43  ;;  %v11314_v49 = vcombine.high %v997_v44, %v1001_v45  ;;  %v1052_v42 = vld [vmem:[#allocation5 + $0x1d90] sm:$0xff]  ;;  %v1053_v44 = vld [vmem:[#allocation5 + $0x1d98] sm:$0xff] }
 0x47e   :  { %9062 = vmatprep.subr.bf16.mxu0 %v11256_v50  ;;  %9492 = vmatprep.subr.bf16.mxu1 %v11258_v51  ;;  %v1004_v50 = vld [vmem:[#allocation5 + $0x1c10] sm:$0xff]  ;;  %v1057_v45 = vld [vmem:[#allocation5 + $0x1db8] sm:$0xff] }
 0x47f   :  { %v1008_v51 = vld [vmem:[#allocation5 + $0x1c30] sm:$0xff] }
 0x480   :  { %v11319_v0 = vcombine.low %v1004_v50, %v1008_v51  ;;  %v1056_v43 = vld [vmem:[#allocation5 + $0x1db0] sm:$0xff] }
 0x481   :  { %9063 = vmatpush1.bf16.msra.mxu0 %v11255_v57  ;;  %9493 = vmatpush1.bf16.msra.mxu1 %v11257_v58  ;;  %v11320_v57 = vcombine.high %v1004_v50, %v1008_v51  ;;  %v11322_v58 = vcombine.high %v1005_v52, %v1009_v54  ;;  %v1060_v50 = vld [vmem:[#allocation5 + $0x1dd0] sm:$0xff]  ;;  %v1061_v52 = vld [vmem:[#allocation5 + $0x1dd8] sm:$0xff] }
 0x482   :  { %9064 = vmatprep.subr.bf16.mxu0 %v11264_v59  ;;  %9494 = vmatprep.subr.bf16.mxu1 %v11266_v60  ;;  %v1012_v59 = vld [vmem:[#allocation5 + $0x1c50] sm:$0xff]  ;;  %v1065_v54 = vld [vmem:[#allocation5 + $0x1df8] sm:$0xff] }
 0x483   :  { %v1016_v60 = vld [vmem:[#allocation5 + $0x1c70] sm:$0xff] }
 0x484   :  { %v11327_v13 = vcombine.low %v1012_v59, %v1016_v60  ;;  %v1064_v51 = vld [vmem:[#allocation5 + $0x1df0] sm:$0xff] }
 0x485   :  { %9065 = vmatpush1.bf16.msra.mxu0 %v11263_v2  ;;  %9495 = vmatpush1.bf16.msra.mxu1 %v11265_v4  ;;  %v11328_v2 = vcombine.high %v1012_v59, %v1016_v60  ;;  %v11330_v4 = vcombine.high %v1013_v61, %v1017_v63  ;;  %v1068_v59 = vld [vmem:[#allocation5 + $0x1e10] sm:$0xff] }
 0x486   :  { %9066 = vmatprep.subr.bf16.mxu0 %v11272_v5  ;;  %9496 = vmatprep.subr.bf16.mxu1 %v11274_v8  ;;  %v1020_v5 = vld [vmem:[#allocation5 + $0x1c90] sm:$0xff] }
 0x487   :  { %v1024_v8 = vld [vmem:[#allocation5 + $0x1cb0] sm:$0xff] }
 0x488   :  { %v1072_v60 = vld [vmem:[#allocation5 + $0x1e30] sm:$0xff] }
 0x489   :  { %9067 = vmatpush1.bf16.msra.mxu0 %v11271_v14  ;;  %9497 = vmatpush1.bf16.msra.mxu1 %v11273_v15  ;;  %v11329_v14 = vcombine.low %v1013_v61, %v1017_v63  ;;  %v11336_v15 = vcombine.high %v1020_v5, %v1024_v8  ;;  %v1069_v61 = vld [vmem:[#allocation5 + $0x1e18] sm:$0xff] }
 0x48a   :  { %9068 = vmatprep.subr.bf16.mxu0 %v11280_v16  ;;  %9498 = vmatprep.subr.bf16.mxu1 %v11282_v17  ;;  %v11338_v16 = vcombine.high %v1021_v10, %v1025_v12  ;;  %v1028_v17 = vld [vmem:[#allocation5 + $0x1cd0] sm:$0xff]  ;;  %v1073_v63 = vld [vmem:[#allocation5 + $0x1e38] sm:$0xff] }
 0x48d   :  { %9069 = vmatpush1.bf16.msra.mxu0 %v11279_v22  ;;  %9499 = vmatpush1.bf16.msra.mxu1 %v11281_v23  ;;  %v11335_v22 = vcombine.low %v1020_v5, %v1024_v8  ;;  %v11337_v23 = vcombine.low %v1021_v10, %v1025_v12  ;;  %v1076_v5 = vld [vmem:[#allocation5 + $0x1e50] sm:$0xff]  ;;  %v1081_v10 = vld [vmem:[#allocation5 + $0x1e78] sm:$0xff]  ;;  %v11383_v12 = vcombine.low %v1068_v59, %v1072_v60 }
 0x48e   :  { %9070 = vmatprep.subr.bf16.mxu0 %v11288_v24  ;;  %9500 = vmatprep.subr.bf16.mxu1 %v11290_v25  ;;  %v11344_v24 = vcombine.high %v1028_v17, %v1032_v18  ;;  %v11346_v25 = vcombine.high %v1029_v20, %v1033_v21  ;;  %v1080_v8 = vld [vmem:[#allocation5 + $0x1e70] sm:$0xff] }
 0x491   :  { %9071 = vmatpush1.bf16.msra.mxu0 %v11287_v30  ;;  %9501 = vmatpush1.bf16.msra.mxu1 %v11289_v31  ;;  %v11343_v30 = vcombine.low %v1028_v17, %v1032_v18  ;;  %v11345_v31 = vcombine.low %v1029_v20, %v1033_v21  ;;  %v1088_v17 = vld [vmem:[#allocation5 + $0x1eb0] sm:$0xff]  ;;  %v1085_v18 = vld [vmem:[#allocation5 + $0x1e98] sm:$0xff]  ;;  %v11391_v20 = vcombine.low %v1076_v5, %v1080_v8 }
 0x492   :  { %9072 = vmatprep.subr.bf16.mxu0 %v11296_v32  ;;  %9502 = vmatprep.subr.bf16.mxu1 %v11298_v33  ;;  %v11352_v32 = vcombine.high %v1036_v26, %v1040_v27  ;;  %v11354_v33 = vcombine.high %v1037_v28, %v1041_v29 }
 0x495   :  { %9073 = vmatpush1.bf16.msra.mxu0 %v11295_v38  ;;  %9503 = vmatpush1.bf16.msra.mxu1 %v11297_v39  ;;  %v11351_v38 = vcombine.low %v1036_v26, %v1040_v27  ;;  %v11353_v39 = vcombine.low %v1037_v28, %v1041_v29  ;;  %v1093_v26 = vld [vmem:[#allocation5 + $0x1ed8] sm:$0xff] }
 0x496   :  { %9074 = vmatprep.subr.bf16.mxu0 %v11304_v40  ;;  %9504 = vmatprep.subr.bf16.mxu1 %v11306_v41  ;;  %v11360_v40 = vcombine.high %v1044_v34, %v1048_v35  ;;  %v11362_v41 = vcombine.high %v1045_v36, %v1049_v37  ;;  %v1097_v27 = vld [vmem:[#allocation5 + $0x1ef8] sm:$0xff] }
 0x499   :  { %9075 = vmatpush1.bf16.msra.mxu0 %v11303_v46  ;;  %9505 = vmatpush1.bf16.msra.mxu1 %v11305_v47  ;;  %v11359_v46 = vcombine.low %v1044_v34, %v1048_v35  ;;  %v11361_v47 = vcombine.low %v1045_v36, %v1049_v37  ;;  %v1101_v34 = vld [vmem:[#allocation5 + $0x1f18] sm:$0xff]  ;;  %v11409_v37 = vcombine.low %v1093_v26, %v1097_v27 }
 0x49a   :  { %9076 = vmatprep.subr.bf16.mxu0 %v11312_v48  ;;  %9506 = vmatprep.subr.bf16.mxu1 %v11314_v49  ;;  %v11368_v48 = vcombine.high %v1052_v42, %v1056_v43  ;;  %v11370_v49 = vcombine.high %v1053_v44, %v1057_v45  ;;  %v1105_v35 = vld [vmem:[#allocation5 + $0x1f38] sm:$0xff] }
 0x49d   :  { %9077 = vmatpush1.bf16.msra.mxu0 %v11311_v55  ;;  %9507 = vmatpush1.bf16.msra.mxu1 %v11313_v56  ;;  %v11367_v55 = vcombine.low %v1052_v42, %v1056_v43  ;;  %v11369_v56 = vcombine.low %v1053_v44, %v1057_v45  ;;  %v1109_v42 = vld [vmem:[#allocation5 + $0x1f58] sm:$0xff]  ;;  %v11417_v45 = vcombine.low %v1101_v34, %v1105_v35 }
 0x49e   :  { %9089 = vmatprep.subr.bf16.mxu0 %v11320_v57  ;;  %9519 = vmatprep.subr.bf16.mxu1 %v11322_v58  ;;  %v11376_v57 = vcombine.high %v1060_v50, %v1064_v51  ;;  %v11378_v58 = vcombine.high %v1061_v52, %v1065_v54  ;;  %v1113_v43 = vld [vmem:[#allocation5 + $0x1f78] sm:$0xff] }
 0x4a0   :  { %9079 = vmatmul.mubr.bf16.vlgmr.msra.gmra.mrb[4].mxu0 %v12141_v9  ;;  %9509 = vmatmul.mubr.bf16.vlgmr.msra.gmra.mrb[4].mxu1 %v12141_v9  ;;  %v1077_v9 = vld [vmem:[#allocation5 + $0x1e58] sm:$0xff] }
 0x4a1   :  { %9090 = vmatpush1.bf16.msra.mxu0 %v11319_v0  ;;  %9520 = vmatpush1.bf16.msra.mxu1 %v11321_v1  ;;  %v11375_v0 = vcombine.low %v1060_v50, %v1064_v51  ;;  %v11377_v1 = vcombine.low %v1061_v52, %v1065_v54  ;;  %v11393_v21 = vcombine.low %v1077_v9, %v1081_v10  ;;  %v1117_v50 = vld [vmem:[#allocation5 + $0x1f98] sm:$0xff] }
 0x4a2   :  { %9091 = vmatprep.subr.bf16.mxu0 %v11328_v2  ;;  %9521 = vmatprep.subr.bf16.mxu1 %v11330_v4  ;;  %v11384_v2 = vcombine.high %v1068_v59, %v1072_v60  ;;  %v11386_v4 = vcombine.high %v1069_v61, %v1073_v63  ;;  %v1121_v51 = vld [vmem:[#allocation5 + $0x1fb8] sm:$0xff]  ;;  %v11425_v54 = vcombine.low %v1109_v42, %v1113_v43 }
 0x4a3   :  { %9121 = vmatprep.mubr.bf16.mxu0 %v12142_v19  ;;  %9551 = vmatprep.mubr.bf16.mxu1 %v12142_v19  ;;  %v1089_v19 = vld [vmem:[#allocation5 + $0x1eb8] sm:$0xff] }
 0x4a4   :  { %v11401_v29 = vcombine.low %v1085_v18, %v1089_v19  ;;  %v1125_v59 = vld [vmem:[#allocation5 + $0x1fd8] sm:$0xff] }
 0x4a5   :  { %9092 = vmatpush1.bf16.msra.mxu0 %v11327_v13  ;;  %9522 = vmatpush1.bf16.msra.mxu1 %v11329_v14  ;;  %v11385_v13 = vcombine.low %v1069_v61, %v1073_v63  ;;  %v11392_v14 = vcombine.high %v1076_v5, %v1080_v8  ;;  %v1129_v60 = vld [vmem:[#allocation5 + $0x1ff8] sm:$0xff]  ;;  %v11433_v63 = vcombine.low %v1117_v50, %v1121_v51 }
 0x4a6   :  { %9093 = vmatprep.subr.bf16.mxu0 %v11336_v15  ;;  %9523 = vmatprep.subr.bf16.mxu1 %v11338_v16  ;;  %v11394_v15 = vcombine.high %v1077_v9, %v1081_v10  ;;  %v1084_v16 = vld [vmem:[#allocation5 + $0x1e90] sm:$0xff]  ;;  %v1133_v5 = vld [vmem:[#allocation5 + $0x2018] sm:$0xff]  ;;  %v11441_v10 = vcombine.low %v1125_v59, %v1129_v60 }
 0x4a7   :  { %v11399_v28 = vcombine.low %v1084_v16, %v1088_v17  ;;  %v1137_v8 = vld [vmem:[#allocation5 + $0x2038] sm:$0xff] }
 0x4a9   :  { %9094 = vmatpush1.bf16.msra.mxu0 %v11335_v22  ;;  %9524 = vmatpush1.bf16.msra.mxu1 %v11337_v23  ;;  %v11400_v22 = vcombine.high %v1084_v16, %v1088_v17  ;;  %v11402_v23 = vcombine.high %v1085_v18, %v1089_v19  ;;  %v1141_v16 = vld [vmem:[#allocation5 + $0x2058] sm:$0xff]  ;;  %v11449_v19 = vcombine.low %v1133_v5, %v1137_v8 }
 0x4aa   :  { %9095 = vmatprep.subr.bf16.mxu0 %v11344_v24  ;;  %9525 = vmatprep.subr.bf16.mxu1 %v11346_v25  ;;  %v1092_v24 = vld [vmem:[#allocation5 + $0x1ed0] sm:$0xff]  ;;  %v1145_v17 = vld [vmem:[#allocation5 + $0x2078] sm:$0xff] }
 0x4ab   :  { %v1096_v25 = vld [vmem:[#allocation5 + $0x1ef0] sm:$0xff] }
 0x4ac   :  { %v11407_v36 = vcombine.low %v1092_v24, %v1096_v25 }
 0x4ad   :  { %9096 = vmatpush1.bf16.msra.mxu0 %v11343_v30  ;;  %9526 = vmatpush1.bf16.msra.mxu1 %v11345_v31  ;;  %v11408_v30 = vcombine.high %v1092_v24, %v1096_v25  ;;  %v11410_v31 = vcombine.high %v1093_v26, %v1097_v27  ;;  %v12143_v24 = vld [vmem:[#allocation2 + $0x38] ss:$80 sps:$4 sm:$0xff]  }
 0x4ae   :  { %9097 = vmatprep.subr.bf16.mxu0 %v11352_v32  ;;  %9527 = vmatprep.subr.bf16.mxu1 %v11354_v33  ;;  %v1100_v32 = vld [vmem:[#allocation5 + $0x1f10] sm:$0xff]  ;;  %v1149_v25 = vld [vmem:[#allocation5 + $0x2098] sm:$0xff] }
 0x4af   :  { %v1104_v33 = vld [vmem:[#allocation5 + $0x1f30] sm:$0xff]  ;;  %v1153_v26 = vld [vmem:[#allocation5 + $0x20b8] sm:$0xff] }
 0x4b0   :  { %v11415_v44 = vcombine.low %v1100_v32, %v1104_v33 }
 0x4b1   :  { %9098 = vmatpush1.bf16.msra.mxu0 %v11351_v38  ;;  %9528 = vmatpush1.bf16.msra.mxu1 %v11353_v39  ;;  %v11416_v38 = vcombine.high %v1100_v32, %v1104_v33  ;;  %v11418_v39 = vcombine.high %v1101_v34, %v1105_v35  ;;  %v1160_v32 = vld [vmem:[#allocation5 + $0x20f0] sm:$0xff]  ;;  %v1157_v34 = vld [vmem:[#allocation5 + $0x20d8] sm:$0xff] }
 0x4b2   :  { %9099 = vmatprep.subr.bf16.mxu0 %v11360_v40  ;;  %9529 = vmatprep.subr.bf16.mxu1 %v11362_v41  ;;  %v1108_v40 = vld [vmem:[#allocation5 + $0x1f50] sm:$0xff]  ;;  %v1161_v35 = vld [vmem:[#allocation5 + $0x20f8] sm:$0xff] }
 0x4b3   :  { %v1112_v41 = vld [vmem:[#allocation5 + $0x1f70] sm:$0xff] }
 0x4b4   :  { %v11423_v52 = vcombine.low %v1108_v40, %v1112_v41  ;;  %v12144_v33 = vld [vmem:[#allocation2 + $0x44] ss:$80 sps:$4 sm:$0xff]  }
 0x4b5   :  { %9100 = vmatpush1.bf16.msra.mxu0 %v11359_v46  ;;  %9530 = vmatpush1.bf16.msra.mxu1 %v11361_v47  ;;  %v11424_v46 = vcombine.high %v1108_v40, %v1112_v41  ;;  %v11426_v47 = vcombine.high %v1109_v42, %v1113_v43  ;;  %v1164_v40 = vld [vmem:[#allocation5 + $0x2110] sm:$0xff]  ;;  %v1165_v42 = vld [vmem:[#allocation5 + $0x2118] sm:$0xff] }
 0x4b6   :  { %9101 = vmatprep.subr.bf16.mxu0 %v11368_v48  ;;  %9531 = vmatprep.subr.bf16.mxu1 %v11370_v49  ;;  %v1116_v48 = vld [vmem:[#allocation5 + $0x1f90] sm:$0xff]  ;;  %v1169_v43 = vld [vmem:[#allocation5 + $0x2138] sm:$0xff] }
 0x4b7   :  { %v1120_v49 = vld [vmem:[#allocation5 + $0x1fb0] sm:$0xff] }
 0x4b8   :  { %v11431_v61 = vcombine.low %v1116_v48, %v1120_v49  ;;  %v1168_v41 = vld [vmem:[#allocation5 + $0x2130] sm:$0xff] }
 0x4b9   :  { %9102 = vmatpush1.bf16.msra.mxu0 %v11367_v55  ;;  %9532 = vmatpush1.bf16.msra.mxu1 %v11369_v56  ;;  %v11432_v55 = vcombine.high %v1116_v48, %v1120_v49  ;;  %v11434_v56 = vcombine.high %v1117_v50, %v1121_v51  ;;  %v1172_v48 = vld [vmem:[#allocation5 + $0x2150] sm:$0xff]  ;;  %v1173_v50 = vld [vmem:[#allocation5 + $0x2158] sm:$0xff] }
 0x4ba   :  { %9103 = vmatprep.subr.bf16.mxu0 %v11376_v57  ;;  %9533 = vmatprep.subr.bf16.mxu1 %v11378_v58  ;;  %v1124_v57 = vld [vmem:[#allocation5 + $0x1fd0] sm:$0xff]  ;;  %v1177_v51 = vld [vmem:[#allocation5 + $0x2178] sm:$0xff] }
 0x4bb   :  { %v1128_v58 = vld [vmem:[#allocation5 + $0x1ff0] sm:$0xff] }
 0x4bc   :  { %v11439_v9 = vcombine.low %v1124_v57, %v1128_v58  ;;  %v1176_v49 = vld [vmem:[#allocation5 + $0x2170] sm:$0xff] }
 0x4bd   :  { %9104 = vmatpush1.bf16.msra.mxu0 %v11375_v0  ;;  %9534 = vmatpush1.bf16.msra.mxu1 %v11377_v1  ;;  %v11440_v0 = vcombine.high %v1124_v57, %v1128_v58  ;;  %v11442_v1 = vcombine.high %v1125_v59, %v1129_v60  ;;  %v1180_v57 = vld [vmem:[#allocation5 + $0x2190] sm:$0xff]  ;;  %v1181_v59 = vld [vmem:[#allocation5 + $0x2198] sm:$0xff] }
 0x4be   :  { %9105 = vmatprep.subr.bf16.mxu0 %v11384_v2  ;;  %9535 = vmatprep.subr.bf16.mxu1 %v11386_v4  ;;  %v1132_v2 = vld [vmem:[#allocation5 + $0x2010] sm:$0xff]  ;;  %v1185_v60 = vld [vmem:[#allocation5 + $0x21b8] sm:$0xff] }
 0x4bf   :  { %v1136_v4 = vld [vmem:[#allocation5 + $0x2030] sm:$0xff] }
 0x4c0   :  { %v11447_v18 = vcombine.low %v1132_v2, %v1136_v4  ;;  %v1184_v58 = vld [vmem:[#allocation5 + $0x21b0] sm:$0xff] }
 0x4c1   :  { %9106 = vmatpush1.bf16.msra.mxu0 %v11383_v12  ;;  %9536 = vmatpush1.bf16.msra.mxu1 %v11385_v13  ;;  %v11448_v12 = vcombine.high %v1132_v2, %v1136_v4  ;;  %v11450_v13 = vcombine.high %v1133_v5, %v1137_v8  ;;  %v1188_v2 = vld [vmem:[#allocation5 + $0x21d0] sm:$0xff]  ;;  %v1189_v5 = vld [vmem:[#allocation5 + $0x21d8] sm:$0xff] }
 0x4c2   :  { %9107 = vmatprep.subr.bf16.mxu0 %v11392_v14  ;;  %9537 = vmatprep.subr.bf16.mxu1 %v11394_v15  ;;  %v1140_v14 = vld [vmem:[#allocation5 + $0x2050] sm:$0xff]  ;;  %v1193_v8 = vld [vmem:[#allocation5 + $0x21f8] sm:$0xff] }
 0x4c3   :  { %v1144_v15 = vld [vmem:[#allocation5 + $0x2070] sm:$0xff] }
 0x4c4   :  { %v11455_v27 = vcombine.low %v1140_v14, %v1144_v15  ;;  %v1192_v4 = vld [vmem:[#allocation5 + $0x21f0] sm:$0xff] }
 0x4c5   :  { %9108 = vmatpush1.bf16.msra.mxu0 %v11391_v20  ;;  %9538 = vmatpush1.bf16.msra.mxu1 %v11393_v21  ;;  %v11456_v20 = vcombine.high %v1140_v14, %v1144_v15  ;;  %v11458_v21 = vcombine.high %v1141_v16, %v1145_v17  ;;  %v1196_v14 = vld [vmem:[#allocation5 + $0x2210] sm:$0xff] }
 0x4c6   :  { %9109 = vmatprep.subr.bf16.mxu0 %v11400_v22  ;;  %9539 = vmatprep.subr.bf16.mxu1 %v11402_v23  ;;  %v1148_v22 = vld [vmem:[#allocation5 + $0x2090] sm:$0xff] }
 0x4c7   :  { %v1152_v23 = vld [vmem:[#allocation5 + $0x20b0] sm:$0xff] }
 0x4c8   :  { %v1200_v15 = vld [vmem:[#allocation5 + $0x2230] sm:$0xff] }
 0x4c9   :  { %9110 = vmatpush1.bf16.msra.mxu0 %v11399_v28  ;;  %9540 = vmatpush1.bf16.msra.mxu1 %v11401_v29  ;;  %v11457_v28 = vcombine.low %v1141_v16, %v1145_v17  ;;  %v11464_v29 = vcombine.high %v1148_v22, %v1152_v23  ;;  %v1197_v16 = vld [vmem:[#allocation5 + $0x2218] sm:$0xff] }
 0x4ca   :  { %9111 = vmatprep.subr.bf16.mxu0 %v11408_v30  ;;  %9541 = vmatprep.subr.bf16.mxu1 %v11410_v31  ;;  %v11466_v30 = vcombine.high %v1149_v25, %v1153_v26  ;;  %v1156_v31 = vld [vmem:[#allocation5 + $0x20d0] sm:$0xff]  ;;  %v1201_v17 = vld [vmem:[#allocation5 + $0x2238] sm:$0xff] }
 0x4cd   :  { %9112 = vmatpush1.bf16.msra.mxu0 %v11407_v36  ;;  %9542 = vmatpush1.bf16.msra.mxu1 %v11409_v37  ;;  %v11463_v36 = vcombine.low %v1148_v22, %v1152_v23  ;;  %v11465_v37 = vcombine.low %v1149_v25, %v1153_v26  ;;  %v1204_v22 = vld [vmem:[#allocation5 + $0x2250] sm:$0xff]  ;;  %v1209_v25 = vld [vmem:[#allocation5 + $0x2278] sm:$0xff]  ;;  %v11511_v26 = vcombine.low %v1196_v14, %v1200_v15 }
 0x4ce   :  { %9113 = vmatprep.subr.bf16.mxu0 %v11416_v38  ;;  %9543 = vmatprep.subr.bf16.mxu1 %v11418_v39  ;;  %v11472_v38 = vcombine.high %v1156_v31, %v1160_v32  ;;  %v11474_v39 = vcombine.high %v1157_v34, %v1161_v35  ;;  %v1208_v23 = vld [vmem:[#allocation5 + $0x2270] sm:$0xff] }
 0x4d1   :  { %9114 = vmatpush1.bf16.msra.mxu0 %v11415_v44  ;;  %9544 = vmatpush1.bf16.msra.mxu1 %v11417_v45  ;;  %v11471_v44 = vcombine.low %v1156_v31, %v1160_v32  ;;  %v11473_v45 = vcombine.low %v1157_v34, %v1161_v35  ;;  %v1216_v31 = vld [vmem:[#allocation5 + $0x22b0] sm:$0xff]  ;;  %v1213_v32 = vld [vmem:[#allocation5 + $0x2298] sm:$0xff]  ;;  %v11519_v34 = vcombine.low %v1204_v22, %v1208_v23 }
 0x4d2   :  { %9115 = vmatprep.subr.bf16.mxu0 %v11424_v46  ;;  %9545 = vmatprep.subr.bf16.mxu1 %v11426_v47  ;;  %v11480_v46 = vcombine.high %v1164_v40, %v1168_v41  ;;  %v11482_v47 = vcombine.high %v1165_v42, %v1169_v43 }
 0x4d5   :  { %9116 = vmatpush1.bf16.msra.mxu0 %v11423_v52  ;;  %9546 = vmatpush1.bf16.msra.mxu1 %v11425_v54  ;;  %v11479_v52 = vcombine.low %v1164_v40, %v1168_v41  ;;  %v11481_v54 = vcombine.low %v1165_v42, %v1169_v43  ;;  %v1221_v40 = vld [vmem:[#allocation5 + $0x22d8] sm:$0xff] }
 0x4d6   :  { %9117 = vmatprep.subr.bf16.mxu0 %v11432_v55  ;;  %9547 = vmatprep.subr.bf16.mxu1 %v11434_v56  ;;  %v11488_v55 = vcombine.high %v1172_v48, %v1176_v49  ;;  %v11490_v56 = vcombine.high %v1173_v50, %v1177_v51  ;;  %v1225_v41 = vld [vmem:[#allocation5 + $0x22f8] sm:$0xff] }
 0x4d9   :  { %9118 = vmatpush1.bf16.msra.mxu0 %v11431_v61  ;;  %9548 = vmatpush1.bf16.msra.mxu1 %v11433_v63  ;;  %v11487_v61 = vcombine.low %v1172_v48, %v1176_v49  ;;  %v11489_v63 = vcombine.low %v1173_v50, %v1177_v51  ;;  %v1229_v48 = vld [vmem:[#allocation5 + $0x2318] sm:$0xff]  ;;  %v11537_v51 = vcombine.low %v1221_v40, %v1225_v41 }
 0x4da   :  { %9119 = vmatprep.subr.bf16.mxu0 %v11440_v0  ;;  %9549 = vmatprep.subr.bf16.mxu1 %v11442_v1  ;;  %v11496_v0 = vcombine.high %v1180_v57, %v1184_v58  ;;  %v11498_v1 = vcombine.high %v1181_v59, %v1185_v60  ;;  %v1233_v49 = vld [vmem:[#allocation5 + $0x2338] sm:$0xff] }
 0x4dd   :  { %9120 = vmatpush1.bf16.msra.mxu0 %v11439_v9  ;;  %9550 = vmatpush1.bf16.msra.mxu1 %v11441_v10  ;;  %v11495_v9 = vcombine.low %v1180_v57, %v1184_v58  ;;  %v11497_v10 = vcombine.low %v1181_v59, %v1185_v60  ;;  %v1237_v57 = vld [vmem:[#allocation5 + $0x2358] sm:$0xff]  ;;  %v11545_v60 = vcombine.low %v1229_v48, %v1233_v49 }
 0x4de   :  { %9132 = vmatprep.subr.bf16.mxu0 %v11448_v12  ;;  %9562 = vmatprep.subr.bf16.mxu1 %v11450_v13  ;;  %v11504_v12 = vcombine.high %v1188_v2, %v1192_v4  ;;  %v11506_v13 = vcombine.high %v1189_v5, %v1193_v8  ;;  %v1241_v58 = vld [vmem:[#allocation5 + $0x2378] sm:$0xff] }
 0x4e0   :  { %9122 = vmatmul.mubr.bf16.vlgmr.msra.gmra.mrb[4].mxu0 %v12143_v24  ;;  %9552 = vmatmul.mubr.bf16.vlgmr.msra.gmra.mrb[4].mxu1 %v12143_v24  ;;  %v1205_v24 = vld [vmem:[#allocation5 + $0x2258] sm:$0xff] }
 0x4e1   :  { %9133 = vmatpush1.bf16.msra.mxu0 %v11447_v18  ;;  %9563 = vmatpush1.bf16.msra.mxu1 %v11449_v19  ;;  %v11503_v18 = vcombine.low %v1188_v2, %v1192_v4  ;;  %v11505_v19 = vcombine.low %v1189_v5, %v1193_v8  ;;  %v11521_v35 = vcombine.low %v1205_v24, %v1209_v25  ;;  %v1245_v2 = vld [vmem:[#allocation5 + $0x2398] sm:$0xff] }
 0x4e2   :  { %9134 = vmatprep.subr.bf16.mxu0 %v11456_v20  ;;  %9564 = vmatprep.subr.bf16.mxu1 %v11458_v21  ;;  %v11512_v20 = vcombine.high %v1196_v14, %v1200_v15  ;;  %v11514_v21 = vcombine.high %v1197_v16, %v1201_v17  ;;  %v1249_v4 = vld [vmem:[#allocation5 + $0x23b8] sm:$0xff]  ;;  %v11553_v8 = vcombine.low %v1237_v57, %v1241_v58 }
 0x4e3   :  { %9164 = vmatprep.mubr.bf16.mxu0 %v12144_v33  ;;  %9594 = vmatprep.mubr.bf16.mxu1 %v12144_v33  ;;  %v1217_v33 = vld [vmem:[#allocation5 + $0x22b8] sm:$0xff] }
 0x4e4   :  { %v11529_v43 = vcombine.low %v1213_v32, %v1217_v33  ;;  %v1253_v14 = vld [vmem:[#allocation5 + $0x23d8] sm:$0xff] }
 0x4e5   :  { %9135 = vmatpush1.bf16.msra.mxu0 %v11455_v27  ;;  %9565 = vmatpush1.bf16.msra.mxu1 %v11457_v28  ;;  %v11513_v27 = vcombine.low %v1197_v16, %v1201_v17  ;;  %v11520_v28 = vcombine.high %v1204_v22, %v1208_v23  ;;  %v1257_v15 = vld [vmem:[#allocation5 + $0x23f8] sm:$0xff]  ;;  %v11561_v17 = vcombine.low %v1245_v2, %v1249_v4 }
 0x4e6   :  { %9136 = vmatprep.subr.bf16.mxu0 %v11464_v29  ;;  %9566 = vmatprep.subr.bf16.mxu1 %v11466_v30  ;;  %v11522_v29 = vcombine.high %v1205_v24, %v1209_v25  ;;  %v1212_v30 = vld [vmem:[#allocation5 + $0x2290] sm:$0xff]  ;;  %v1261_v22 = vld [vmem:[#allocation5 + $0x2418] sm:$0xff]  ;;  %v11569_v25 = vcombine.low %v1253_v14, %v1257_v15 }
 0x4e7   :  { %v11527_v42 = vcombine.low %v1212_v30, %v1216_v31  ;;  %v1265_v23 = vld [vmem:[#allocation5 + $0x2438] sm:$0xff] }
 0x4e9   :  { %9137 = vmatpush1.bf16.msra.mxu0 %v11463_v36  ;;  %9567 = vmatpush1.bf16.msra.mxu1 %v11465_v37  ;;  %v11528_v36 = vcombine.high %v1212_v30, %v1216_v31  ;;  %v11530_v37 = vcombine.high %v1213_v32, %v1217_v33  ;;  %v1269_v30 = vld [vmem:[#allocation5 + $0x2458] sm:$0xff]  ;;  %v11577_v33 = vcombine.low %v1261_v22, %v1265_v23 }
 0x4ea   :  { %9138 = vmatprep.subr.bf16.mxu0 %v11472_v38  ;;  %9568 = vmatprep.subr.bf16.mxu1 %v11474_v39  ;;  %v1220_v38 = vld [vmem:[#allocation5 + $0x22d0] sm:$0xff]  ;;  %v1273_v31 = vld [vmem:[#allocation5 + $0x2478] sm:$0xff] }
 0x4eb   :  { %v1224_v39 = vld [vmem:[#allocation5 + $0x22f0] sm:$0xff] }
 0x4ec   :  { %v11535_v50 = vcombine.low %v1220_v38, %v1224_v39 }
 0x4ed   :  { %9139 = vmatpush1.bf16.msra.mxu0 %v11471_v44  ;;  %9569 = vmatpush1.bf16.msra.mxu1 %v11473_v45  ;;  %v11536_v44 = vcombine.high %v1220_v38, %v1224_v39  ;;  %v11538_v45 = vcombine.high %v1221_v40, %v1225_v41  ;;  %v12145_v38 = vld [vmem:[#allocation2 + $0x40] ss:$80 sps:$4 sm:$0xff]   ;;  %v1277_v39 = vld [vmem:[#allocation5 + $0x2498] sm:$0xff] }
 0x4ee   :  { %9140 = vmatprep.subr.bf16.mxu0 %v11480_v46  ;;  %9570 = vmatprep.subr.bf16.mxu1 %v11482_v47  ;;  %v1228_v46 = vld [vmem:[#allocation5 + $0x2310] sm:$0xff]  ;;  %v1281_v40 = vld [vmem:[#allocation5 + $0x24b8] sm:$0xff] }
 0x4ef   :  { %v1232_v47 = vld [vmem:[#allocation5 + $0x2330] sm:$0xff] }
 0x4f0   :  { %v11543_v59 = vcombine.low %v1228_v46, %v1232_v47 }
 0x4f1   :  { %9141 = vmatpush1.bf16.msra.mxu0 %v11479_v52  ;;  %9571 = vmatpush1.bf16.msra.mxu1 %v11481_v54  ;;  %v11544_v52 = vcombine.high %v1228_v46, %v1232_v47  ;;  %v11546_v54 = vcombine.high %v1229_v48, %v1233_v49  ;;  %v1288_v46 = vld [vmem:[#allocation5 + $0x24f0] sm:$0xff]  ;;  %v12146_v47 = vld [vmem:[#allocation2 + $0x4c] ss:$80 sps:$4 sm:$0xff]  }
 0x4f2   :  { %9142 = vmatprep.subr.bf16.mxu0 %v11488_v55  ;;  %9572 = vmatprep.subr.bf16.mxu1 %v11490_v56  ;;  %v1236_v55 = vld [vmem:[#allocation5 + $0x2350] sm:$0xff]  ;;  %v1285_v48 = vld [vmem:[#allocation5 + $0x24d8] sm:$0xff] }
 0x4f3   :  { %v1240_v56 = vld [vmem:[#allocation5 + $0x2370] sm:$0xff]  ;;  %v1289_v49 = vld [vmem:[#allocation5 + $0x24f8] sm:$0xff] }
 0x4f4   :  { %v11551_v5 = vcombine.low %v1236_v55, %v1240_v56 }
 0x4f5   :  { %9143 = vmatpush1.bf16.msra.mxu0 %v11487_v61  ;;  %9573 = vmatpush1.bf16.msra.mxu1 %v11489_v63  ;;  %v11552_v61 = vcombine.high %v1236_v55, %v1240_v56  ;;  %v11554_v63 = vcombine.high %v1237_v57, %v1241_v58  ;;  %v1292_v55 = vld [vmem:[#allocation5 + $0x2510] sm:$0xff]  ;;  %v1293_v57 = vld [vmem:[#allocation5 + $0x2518] sm:$0xff] }
 0x4f6   :  { %9144 = vmatprep.subr.bf16.mxu0 %v11496_v0  ;;  %9574 = vmatprep.subr.bf16.mxu1 %v11498_v1  ;;  %v1244_v0 = vld [vmem:[#allocation5 + $0x2390] sm:$0xff]  ;;  %v1297_v58 = vld [vmem:[#allocation5 + $0x2538] sm:$0xff] }
 0x4f7   :  { %v1248_v1 = vld [vmem:[#allocation5 + $0x23b0] sm:$0xff] }
 0x4f8   :  { %v11559_v16 = vcombine.low %v1244_v0, %v1248_v1  ;;  %v1296_v56 = vld [vmem:[#allocation5 + $0x2530] sm:$0xff] }
 0x4f9   :  { %9145 = vmatpush1.bf16.msra.mxu0 %v11495_v9  ;;  %9575 = vmatpush1.bf16.msra.mxu1 %v11497_v10  ;;  %v11560_v9 = vcombine.high %v1244_v0, %v1248_v1  ;;  %v11562_v10 = vcombine.high %v1245_v2, %v1249_v4  ;;  %v1300_v0 = vld [vmem:[#allocation5 + $0x2550] sm:$0xff]  ;;  %v1301_v2 = vld [vmem:[#allocation5 + $0x2558] sm:$0xff] }
 0x4fa   :  { %9146 = vmatprep.subr.bf16.mxu0 %v11504_v12  ;;  %9576 = vmatprep.subr.bf16.mxu1 %v11506_v13  ;;  %v1252_v12 = vld [vmem:[#allocation5 + $0x23d0] sm:$0xff]  ;;  %v1305_v4 = vld [vmem:[#allocation5 + $0x2578] sm:$0xff] }
 0x4fb   :  { %v1256_v13 = vld [vmem:[#allocation5 + $0x23f0] sm:$0xff] }
 0x4fc   :  { %v11567_v24 = vcombine.low %v1252_v12, %v1256_v13  ;;  %v1304_v1 = vld [vmem:[#allocation5 + $0x2570] sm:$0xff] }
 0x4fd   :  { %9147 = vmatpush1.bf16.msra.mxu0 %v11503_v18  ;;  %9577 = vmatpush1.bf16.msra.mxu1 %v11505_v19  ;;  %v11568_v18 = vcombine.high %v1252_v12, %v1256_v13  ;;  %v11570_v19 = vcombine.high %v1253_v14, %v1257_v15  ;;  %v1308_v12 = vld [vmem:[#allocation5 + $0x2590] sm:$0xff]  ;;  %v1309_v14 = vld [vmem:[#allocation5 + $0x2598] sm:$0xff] }
 0x4fe   :  { %9148 = vmatprep.subr.bf16.mxu0 %v11512_v20  ;;  %9578 = vmatprep.subr.bf16.mxu1 %v11514_v21  ;;  %v1260_v20 = vld [vmem:[#allocation5 + $0x2410] sm:$0xff]  ;;  %v1313_v15 = vld [vmem:[#allocation5 + $0x25b8] sm:$0xff] }
 0x4ff   :  { %v1264_v21 = vld [vmem:[#allocation5 + $0x2430] sm:$0xff] }
 0x500   :  { %v11575_v32 = vcombine.low %v1260_v20, %v1264_v21  ;;  %v1312_v13 = vld [vmem:[#allocation5 + $0x25b0] sm:$0xff] }
 0x501   :  { %9149 = vmatpush1.bf16.msra.mxu0 %v11511_v26  ;;  %9579 = vmatpush1.bf16.msra.mxu1 %v11513_v27  ;;  %v11576_v26 = vcombine.high %v1260_v20, %v1264_v21  ;;  %v11578_v27 = vcombine.high %v1261_v22, %v1265_v23  ;;  %v1316_v20 = vld [vmem:[#allocation5 + $0x25d0] sm:$0xff]  ;;  %v1317_v22 = vld [vmem:[#allocation5 + $0x25d8] sm:$0xff] }
 0x502   :  { %9150 = vmatprep.subr.bf16.mxu0 %v11520_v28  ;;  %9580 = vmatprep.subr.bf16.mxu1 %v11522_v29  ;;  %v1268_v28 = vld [vmem:[#allocation5 + $0x2450] sm:$0xff]  ;;  %v1321_v23 = vld [vmem:[#allocation5 + $0x25f8] sm:$0xff] }
 0x503   :  { %v1272_v29 = vld [vmem:[#allocation5 + $0x2470] sm:$0xff] }
 0x504   :  { %v11583_v41 = vcombine.low %v1268_v28, %v1272_v29  ;;  %v1320_v21 = vld [vmem:[#allocation5 + $0x25f0] sm:$0xff] }
 0x505   :  { %9151 = vmatpush1.bf16.msra.mxu0 %v11519_v34  ;;  %9581 = vmatpush1.bf16.msra.mxu1 %v11521_v35  ;;  %v11584_v34 = vcombine.high %v1268_v28, %v1272_v29  ;;  %v11586_v35 = vcombine.high %v1269_v30, %v1273_v31  ;;  %v1324_v28 = vld [vmem:[#allocation5 + $0x2610] sm:$0xff] }
 0x506   :  { %9152 = vmatprep.subr.bf16.mxu0 %v11528_v36  ;;  %9582 = vmatprep.subr.bf16.mxu1 %v11530_v37  ;;  %v1276_v36 = vld [vmem:[#allocation5 + $0x2490] sm:$0xff] }
 0x507   :  { %v1280_v37 = vld [vmem:[#allocation5 + $0x24b0] sm:$0xff] }
 0x508   :  { %v1328_v29 = vld [vmem:[#allocation5 + $0x2630] sm:$0xff] }
 0x509   :  { %9153 = vmatpush1.bf16.msra.mxu0 %v11527_v42  ;;  %9583 = vmatpush1.bf16.msra.mxu1 %v11529_v43  ;;  %v11585_v42 = vcombine.low %v1269_v30, %v1273_v31  ;;  %v11592_v43 = vcombine.high %v1276_v36, %v1280_v37  ;;  %v1325_v30 = vld [vmem:[#allocation5 + $0x2618] sm:$0xff] }
 0x50a   :  { %9154 = vmatprep.subr.bf16.mxu0 %v11536_v44  ;;  %9584 = vmatprep.subr.bf16.mxu1 %v11538_v45  ;;  %v11594_v44 = vcombine.high %v1277_v39, %v1281_v40  ;;  %v1284_v45 = vld [vmem:[#allocation5 + $0x24d0] sm:$0xff]  ;;  %v1329_v31 = vld [vmem:[#allocation5 + $0x2638] sm:$0xff] }
 0x50d   :  { %9155 = vmatpush1.bf16.msra.mxu0 %v11535_v50  ;;  %9585 = vmatpush1.bf16.msra.mxu1 %v11537_v51  ;;  %v11591_v50 = vcombine.low %v1276_v36, %v1280_v37  ;;  %v11593_v51 = vcombine.low %v1277_v39, %v1281_v40  ;;  %v1332_v36 = vld [vmem:[#allocation5 + $0x2650] sm:$0xff]  ;;  %v1337_v39 = vld [vmem:[#allocation5 + $0x2678] sm:$0xff]  ;;  %v11639_v40 = vcombine.low %v1324_v28, %v1328_v29 }
 0x50e   :  { %9156 = vmatprep.subr.bf16.mxu0 %v11544_v52  ;;  %9586 = vmatprep.subr.bf16.mxu1 %v11546_v54  ;;  %v11600_v52 = vcombine.high %v1284_v45, %v1288_v46  ;;  %v11602_v54 = vcombine.high %v1285_v48, %v1289_v49  ;;  %v1336_v37 = vld [vmem:[#allocation5 + $0x2670] sm:$0xff] }
 0x511   :  { %9157 = vmatpush1.bf16.msra.mxu0 %v11543_v59  ;;  %9587 = vmatpush1.bf16.msra.mxu1 %v11545_v60  ;;  %v11599_v59 = vcombine.low %v1284_v45, %v1288_v46  ;;  %v11601_v60 = vcombine.low %v1285_v48, %v1289_v49  ;;  %v1344_v45 = vld [vmem:[#allocation5 + $0x26b0] sm:$0xff]  ;;  %v1341_v46 = vld [vmem:[#allocation5 + $0x2698] sm:$0xff]  ;;  %v11647_v48 = vcombine.low %v1332_v36, %v1336_v37 }
 0x512   :  { %9158 = vmatprep.subr.bf16.mxu0 %v11552_v61  ;;  %9588 = vmatprep.subr.bf16.mxu1 %v11554_v63  ;;  %v11608_v61 = vcombine.high %v1292_v55, %v1296_v56  ;;  %v11610_v63 = vcombine.high %v1293_v57, %v1297_v58 }
 0x515   :  { %9159 = vmatpush1.bf16.msra.mxu0 %v11551_v5  ;;  %9589 = vmatpush1.bf16.msra.mxu1 %v11553_v8  ;;  %v11607_v5 = vcombine.low %v1292_v55, %v1296_v56  ;;  %v11609_v8 = vcombine.low %v1293_v57, %v1297_v58  ;;  %v1349_v55 = vld [vmem:[#allocation5 + $0x26d8] sm:$0xff] }
 0x516   :  { %9160 = vmatprep.subr.bf16.mxu0 %v11560_v9  ;;  %9590 = vmatprep.subr.bf16.mxu1 %v11562_v10  ;;  %v11616_v9 = vcombine.high %v1300_v0, %v1304_v1  ;;  %v11618_v10 = vcombine.high %v1301_v2, %v1305_v4  ;;  %v1353_v56 = vld [vmem:[#allocation5 + $0x26f8] sm:$0xff] }
 0x519   :  { %9161 = vmatpush1.bf16.msra.mxu0 %v11559_v16  ;;  %9591 = vmatpush1.bf16.msra.mxu1 %v11561_v17  ;;  %v11615_v16 = vcombine.low %v1300_v0, %v1304_v1  ;;  %v11617_v17 = vcombine.low %v1301_v2, %v1305_v4  ;;  %v1357_v0 = vld [vmem:[#allocation5 + $0x2718] sm:$0xff]  ;;  %v11665_v4 = vcombine.low %v1349_v55, %v1353_v56 }
 0x51a   :  { %9162 = vmatprep.subr.bf16.mxu0 %v11568_v18  ;;  %9592 = vmatprep.subr.bf16.mxu1 %v11570_v19  ;;  %v11624_v18 = vcombine.high %v1308_v12, %v1312_v13  ;;  %v11626_v19 = vcombine.high %v1309_v14, %v1313_v15  ;;  %v1361_v1 = vld [vmem:[#allocation5 + $0x2738] sm:$0xff] }
 0x51d   :  { %9163 = vmatpush1.bf16.msra.mxu0 %v11567_v24  ;;  %9593 = vmatpush1.bf16.msra.mxu1 %v11569_v25  ;;  %v11623_v24 = vcombine.low %v1308_v12, %v1312_v13  ;;  %v11625_v25 = vcombine.low %v1309_v14, %v1313_v15  ;;  %v1365_v12 = vld [vmem:[#allocation5 + $0x2758] sm:$0xff]  ;;  %v11673_v15 = vcombine.low %v1357_v0, %v1361_v1 }
 0x51e   :  { %9175 = vmatprep.subr.bf16.mxu0 %v11576_v26  ;;  %9605 = vmatprep.subr.bf16.mxu1 %v11578_v27  ;;  %v11632_v26 = vcombine.high %v1316_v20, %v1320_v21  ;;  %v11634_v27 = vcombine.high %v1317_v22, %v1321_v23  ;;  %v1369_v13 = vld [vmem:[#allocation5 + $0x2778] sm:$0xff] }
 0x520   :  { %9165 = vmatmul.mubr.bf16.vlgmr.msra.gmra.mrb[4].mxu0 %v12145_v38  ;;  %9595 = vmatmul.mubr.bf16.vlgmr.msra.gmra.mrb[4].mxu1 %v12145_v38  ;;  %v1333_v38 = vld [vmem:[#allocation5 + $0x2658] sm:$0xff] }
 0x521   :  { %9176 = vmatpush1.bf16.msra.mxu0 %v11575_v32  ;;  %9606 = vmatpush1.bf16.msra.mxu1 %v11577_v33  ;;  %v11631_v32 = vcombine.low %v1316_v20, %v1320_v21  ;;  %v11633_v33 = vcombine.low %v1317_v22, %v1321_v23  ;;  %v11649_v49 = vcombine.low %v1333_v38, %v1337_v39  ;;  %v1373_v20 = vld [vmem:[#allocation5 + $0x2798] sm:$0xff] }
 0x522   :  { %9177 = vmatprep.subr.bf16.mxu0 %v11584_v34  ;;  %9607 = vmatprep.subr.bf16.mxu1 %v11586_v35  ;;  %v11640_v34 = vcombine.high %v1324_v28, %v1328_v29  ;;  %v11642_v35 = vcombine.high %v1325_v30, %v1329_v31  ;;  %v1377_v21 = vld [vmem:[#allocation5 + $0x27b8] sm:$0xff]  ;;  %v11681_v23 = vcombine.low %v1365_v12, %v1369_v13 }
 0x523   :  { %9207 = vmatprep.mubr.bf16.mxu0 %v12146_v47  ;;  %9637 = vmatprep.mubr.bf16.mxu1 %v12146_v47  ;;  %v1345_v47 = vld [vmem:[#allocation5 + $0x26b8] sm:$0xff] }
 0x524   :  { %v11657_v58 = vcombine.low %v1341_v46, %v1345_v47  ;;  %v1381_v28 = vld [vmem:[#allocation5 + $0x27d8] sm:$0xff] }
 0x525   :  { %9178 = vmatpush1.bf16.msra.mxu0 %v11583_v41  ;;  %9608 = vmatpush1.bf16.msra.mxu1 %v11585_v42  ;;  %v11641_v41 = vcombine.low %v1325_v30, %v1329_v31  ;;  %v11648_v42 = vcombine.high %v1332_v36, %v1336_v37  ;;  %v1385_v29 = vld [vmem:[#allocation5 + $0x27f8] sm:$0xff]  ;;  %v11689_v31 = vcombine.low %v1373_v20, %v1377_v21  ;;  %v12056_v36 = vld [vmem:[#allocation8 + $0x40] sm:$0xff]  }
 0x526   :  { %9179 = vmatprep.subr.bf16.mxu0 %v11592_v43  ;;  %9609 = vmatprep.subr.bf16.mxu1 %v11594_v44  ;;  %v11650_v43 = vcombine.high %v1333_v38, %v1337_v39  ;;  %v1340_v44 = vld [vmem:[#allocation5 + $0x2690] sm:$0xff]  ;;  %v12057_v37 = vld [vmem:[#allocation8 + $0xc0] sm:$0xff]  }
 0x527   :  { %v11655_v57 = vcombine.low %v1340_v44, %v1344_v45  ;;  %v12058_v38 = vld [vmem:[#allocation8] sm:$0xff]  }
 0x528   :  { %v12059_v39 = vld [vmem:[#allocation8 + $0x80] sm:$0xff]  }
 0x529   :  { %9180 = vmatpush1.bf16.msra.mxu0 %v11591_v50  ;;  %9610 = vmatpush1.bf16.msra.mxu1 %v11593_v51  ;;  %v11656_v50 = vcombine.high %v1340_v44, %v1344_v45  ;;  %v11658_v51 = vcombine.high %v1341_v46, %v1345_v47  ;;  %v12063_v44 = vld [vmem:[#allocation8 + $0x88] sm:$0xff]   ;;  %v12064_v45 = vld [vmem:[#allocation8 + $0x50] sm:$0xff]  }
 0x52a   :  { %9181 = vmatprep.subr.bf16.mxu0 %v11600_v52  ;;  %9611 = vmatprep.subr.bf16.mxu1 %v11602_v54  ;;  %v1348_v52 = vld [vmem:[#allocation5 + $0x26d0] sm:$0xff]  ;;  %v12065_v46 = vld [vmem:[#allocation8 + $0xd0] sm:$0xff]  }
 0x52b   :  { %v1352_v54 = vld [vmem:[#allocation5 + $0x26f0] sm:$0xff]  ;;  %v12066_v47 = vld [vmem:[#allocation8 + $0x10] sm:$0xff]  }
 0x52c   :  { %v11663_v2 = vcombine.low %v1348_v52, %v1352_v54 }
 0x52d   :  { %9182 = vmatpush1.bf16.msra.mxu0 %v11599_v59  ;;  %9612 = vmatpush1.bf16.msra.mxu1 %v11601_v60  ;;  %v11664_v59 = vcombine.high %v1348_v52, %v1352_v54  ;;  %v11666_v60 = vcombine.high %v1349_v55, %v1353_v56  ;;  %v12072_v52 = vld [vmem:[#allocation8 + $0x60] sm:$0xff]   ;;  %v12076_v56 = vld [vmem:[#allocation8 + $0x68] sm:$0xff]  }
 0x52e   :  { %9183 = vmatprep.subr.bf16.mxu0 %v11608_v61  ;;  %9613 = vmatprep.subr.bf16.mxu1 %v11610_v63  ;;  %v1356_v61 = vld [vmem:[#allocation5 + $0x2710] sm:$0xff]  ;;  %v12073_v54 = vld [vmem:[#allocation8 + $0xe0] sm:$0xff]  }
 0x52f   :  { %v1360_v63 = vld [vmem:[#allocation5 + $0x2730] sm:$0xff]  ;;  %v12075_v55 = vld [vmem:[#allocation8 + $0xa0] sm:$0xff]  }
 0x530   :  { %v11671_v14 = vcombine.low %v1356_v61, %v1360_v63 }
 0x531   :  { %9184 = vmatpush1.bf16.msra.mxu0 %v11607_v5  ;;  %9614 = vmatpush1.bf16.msra.mxu1 %v11609_v8  ;;  %v11672_v5 = vcombine.high %v1356_v61, %v1360_v63  ;;  %v11674_v8 = vcombine.high %v1357_v0, %v1361_v1  ;;  %v12081_v61 = vld [vmem:[#allocation8 + $0xf0] sm:$0xff]   ;;  %v12084_v1 = vld [vmem:[#allocation8 + $0x78] sm:$0xff]  }
 0x532   :  { %9185 = vmatprep.subr.bf16.mxu0 %v11616_v9  ;;  %9615 = vmatprep.subr.bf16.mxu1 %v11618_v10  ;;  %v1364_v9 = vld [vmem:[#allocation5 + $0x2750] sm:$0xff]  ;;  %v12082_v63 = vld [vmem:[#allocation8 + $0x30] sm:$0xff]  }
 0x533   :  { %v1368_v10 = vld [vmem:[#allocation5 + $0x2770] sm:$0xff]  ;;  %v12083_v0 = vld [vmem:[#allocation8 + $0xb0] sm:$0xff]  }
 0x534   :  { %v11679_v22 = vcombine.low %v1364_v9, %v1368_v10 }
 0x535   :  { %9186 = vmatpush1.bf16.msra.mxu0 %v11615_v16  ;;  %9616 = vmatpush1.bf16.msra.mxu1 %v11617_v17  ;;  %v11680_v16 = vcombine.high %v1364_v9, %v1368_v10  ;;  %v11682_v17 = vcombine.high %v1365_v12, %v1369_v13  ;;  %v12089_v9 = vld [vmem:[#allocation8 + $0x1c0] sm:$0xff]   ;;  %v12092_v13 = vld [vmem:[#allocation8 + $0x148] sm:$0xff]  }
 0x536   :  { %9187 = vmatprep.subr.bf16.mxu0 %v11624_v18  ;;  %9617 = vmatprep.subr.bf16.mxu1 %v11626_v19  ;;  %v1372_v18 = vld [vmem:[#allocation5 + $0x2790] sm:$0xff]  ;;  %v12090_v10 = vld [vmem:[#allocation8 + $0x100] sm:$0xff]  }
 0x537   :  { %v1376_v19 = vld [vmem:[#allocation5 + $0x27b0] sm:$0xff]  ;;  %v12091_v12 = vld [vmem:[#allocation8 + $0x180] sm:$0xff]  }
 0x538   :  { %v11687_v30 = vcombine.low %v1372_v18, %v1376_v19 }
 0x539   :  { %9188 = vmatpush1.bf16.msra.mxu0 %v11623_v24  ;;  %9618 = vmatpush1.bf16.msra.mxu1 %v11625_v25  ;;  %v11688_v24 = vcombine.high %v1372_v18, %v1376_v19  ;;  %v11690_v25 = vcombine.high %v1373_v20, %v1377_v21  ;;  %v12097_v18 = vld [vmem:[#allocation8 + $0x1d0] sm:$0xff]   ;;  %v12100_v21 = vld [vmem:[#allocation8 + $0x158] sm:$0xff]  }
 0x53a   :  { %9189 = vmatprep.subr.bf16.mxu0 %v11632_v26  ;;  %9619 = vmatprep.subr.bf16.mxu1 %v11634_v27  ;;  %v1380_v26 = vld [vmem:[#allocation5 + $0x27d0] sm:$0xff]  ;;  %v12098_v19 = vld [vmem:[#allocation8 + $0x110] sm:$0xff]  }
 0x53b   :  { %v1384_v27 = vld [vmem:[#allocation5 + $0x27f0] sm:$0xff]  ;;  %v12099_v20 = vld [vmem:[#allocation8 + $0x190] sm:$0xff]  }
 0x53d   :  { %9190 = vmatpush1.bf16.msra.mxu0 %v11631_v32  ;;  %9620 = vmatpush1.bf16.msra.mxu1 %v11633_v33  ;;  %v11696_v32 = vcombine.high %v1380_v26, %v1384_v27  ;;  %v11698_v33 = vcombine.high %v1381_v28, %v1385_v29 }
 0x53e   :  { %9191 = vmatprep.subr.bf16.mxu0 %v11640_v34  ;;  %9621 = vmatprep.subr.bf16.mxu1 %v11642_v35  ;;  %v11695_v34 = vcombine.low %v1380_v26, %v1384_v27  ;;  %v11697_v35 = vcombine.low %v1381_v28, %v1385_v29  ;;  %v12107_v26 = vld [vmem:[#allocation8 + $0x1a0] sm:$0xff]   ;;  %v12108_v27 = vld [vmem:[#allocation8 + $0x168] sm:$0xff]  }
 0x53f   :  { %v12109_v28 = vld [vmem:[#allocation8 + $0x1e8] sm:$0xff]  }
 0x540   :  { %v12110_v29 = vld [vmem:[#allocation8 + $0x128] sm:$0xff]  }
 0x541   :  { %9192 = vmatpush1.bf16.msra.mxu0 %v11639_v40  ;;  %9622 = vmatpush1.bf16.msra.mxu1 %v11641_v41  ;;  %v12060_v40 = vld [vmem:[#allocation8 + $0x48] sm:$0xff]   ;;  %v12147_v41 = vld [vmem:[#allocation2 + $0x48] ss:$80 sps:$4 sm:$0xff]  }
 0x542   :  { %9193 = vmatprep.subr.bf16.mxu0 %v11648_v42  ;;  %9623 = vmatprep.subr.bf16.mxu1 %v11650_v43  ;;  %v12061_v42 = vld [vmem:[#allocation8 + $0xc8] sm:$0xff]  }
 0x543   :  { %v12062_v43 = vld [vmem:[#allocation8 + $0x8] sm:$0xff]  }
 0x545   :  { %9194 = vmatpush1.bf16.msra.mxu0 %v11647_v48  ;;  %9624 = vmatpush1.bf16.msra.mxu1 %v11649_v49  ;;  %v12067_v48 = vld [vmem:[#allocation8 + $0x90] sm:$0xff]   ;;  %v12068_v49 = vld [vmem:[#allocation8 + $0x58] sm:$0xff]  }
 0x546   :  { %9195 = vmatprep.subr.bf16.mxu0 %v11656_v50  ;;  %9625 = vmatprep.subr.bf16.mxu1 %v11658_v51  ;;  %v12069_v50 = vld [vmem:[#allocation8 + $0xd8] sm:$0xff]  }
 0x547   :  { %v12070_v51 = vld [vmem:[#allocation8 + $0x18] sm:$0xff]  }
 0x549   :  { %9196 = vmatpush1.bf16.msra.mxu0 %v11655_v57  ;;  %9626 = vmatpush1.bf16.msra.mxu1 %v11657_v58  ;;  %v12077_v57 = vld [vmem:[#allocation8 + $0xe8] sm:$0xff]  }
 0x54a   :  { %9197 = vmatprep.subr.bf16.mxu0 %v11664_v59  ;;  %9627 = vmatprep.subr.bf16.mxu1 %v11666_v60  ;;  %v12078_v58 = vld [vmem:[#allocation8 + $0x28] sm:$0xff]   ;;  %v12080_v60 = vld [vmem:[#allocation8 + $0x70] sm:$0xff]  }
 0x54b   :  { %v12079_v59 = vld [vmem:[#allocation8 + $0xa8] sm:$0xff]  }
 0x54d   :  { %9198 = vmatpush1.bf16.msra.mxu0 %v11663_v2  ;;  %9628 = vmatpush1.bf16.msra.mxu1 %v11665_v4  ;;  %v12085_v2 = vld [vmem:[#allocation8 + $0xf8] sm:$0xff]  }
 0x54e   :  { %9199 = vmatprep.subr.bf16.mxu0 %v11672_v5  ;;  %9629 = vmatprep.subr.bf16.mxu1 %v11674_v8  ;;  %v12086_v4 = vld [vmem:[#allocation8 + $0x38] sm:$0xff]   ;;  %v12088_v8 = vld [vmem:[#allocation8 + $0x140] sm:$0xff]  }
 0x54f   :  { %v12087_v5 = vld [vmem:[#allocation8 + $0xb8] sm:$0xff]  }
 0x551   :  { %9200 = vmatpush1.bf16.msra.mxu0 %v11671_v14  ;;  %9630 = vmatpush1.bf16.msra.mxu1 %v11673_v15  ;;  %v12093_v14 = vld [vmem:[#allocation8 + $0x1c8] sm:$0xff]  }
 0x552   :  { %9201 = vmatprep.subr.bf16.mxu0 %v11680_v16  ;;  %9631 = vmatprep.subr.bf16.mxu1 %v11682_v17  ;;  %v12094_v15 = vld [vmem:[#allocation8 + $0x108] sm:$0xff]   ;;  %v12096_v17 = vld [vmem:[#allocation8 + $0x150] sm:$0xff]  }
 0x553   :  { %v12095_v16 = vld [vmem:[#allocation8 + $0x188] sm:$0xff]  }
 0x555   :  { %9202 = vmatpush1.bf16.msra.mxu0 %v11679_v22  ;;  %9632 = vmatpush1.bf16.msra.mxu1 %v11681_v23  ;;  %v12101_v22 = vld [vmem:[#allocation8 + $0x1d8] sm:$0xff]   ;;  %v12104_v23 = vld [vmem:[#allocation8 + $0x160] sm:$0xff]  }
 0x556   :  { %9203 = vmatprep.subr.bf16.mxu0 %v11688_v24  ;;  %9633 = vmatprep.subr.bf16.mxu1 %v11690_v25  ;;  %v12105_v24 = vld [vmem:[#allocation8 + $0x1e0] sm:$0xff]  }
 0x557   :  { %v12106_v25 = vld [vmem:[#allocation8 + $0x120] sm:$0xff]  }
 0x559   :  { %9204 = vmatpush1.bf16.msra.mxu0 %v11687_v30  ;;  %9634 = vmatpush1.bf16.msra.mxu1 %v11689_v31  ;;  %v12111_v30 = vld [vmem:[#allocation8 + $0x1a8] sm:$0xff]   ;;  %v12112_v31 = vld [vmem:[#allocation8 + $0x170] sm:$0xff]  }
 0x55a   :  { %9205 = vmatprep.subr.bf16.mxu0 %v11696_v32  ;;  %9635 = vmatprep.subr.bf16.mxu1 %v11698_v33  ;;  %v12113_v32 = vld [vmem:[#allocation8 + $0x1f0] sm:$0xff]  }
 0x55b   :  { %v12114_v33 = vld [vmem:[#allocation8 + $0x130] sm:$0xff]  }
 0x55d   :  { %9206 = vmatpush1.bf16.msra.mxu0 %v11695_v34  ;;  %9636 = vmatpush1.bf16.msra.mxu1 %v11697_v35  ;;  %v12115_v34 = vld [vmem:[#allocation8 + $0x1b0] sm:$0xff]   ;;  %v12116_v35 = vld [vmem:[#allocation8 + $0x178] sm:$0xff]  }
 0x55e   :  { %11764 = vmatprep.subr.bf16.mxu0 %v12056_v36  ;;  %11786 = vmatprep.subr.bf16.mxu1 %v12057_v37  ;;  %v12117_v36 = vld [vmem:[#allocation8 + $0x1f8] sm:$0xff]  }
 0x55f   :  { %v12118_v37 = vld [vmem:[#allocation8 + $0x138] sm:$0xff]  }
 0x560   :  { %9208 = vmatmul.mubr.bf16.vlgmr.msra.gmra.mrb[4].mxu0 %v12147_v41  ;;  %9638 = vmatmul.mubr.bf16.vlgmr.msra.gmra.mrb[4].mxu1 %v12147_v41  ;;  %v1410_v41 = vsub.s32 5, %v12394_v62 }
 0x561   :  { %11765 = vmatpush3.bf16.msra.mxu0 %v12058_v38  ;;  %10223 = vmatprep.mubr.bf16.mxu0 %v12404_v7  ;;  %v12071_v7 = vld [vmem:[#allocation8 + $0x98] sm:$0xff]  }
 0x562   :  { %11787 = vmatpush3.bf16.msra.mxu1 %v12059_v39  ;;  %10264 = vmatprep.mubr.bf16.mxu1 %v12406_v11  ;;  %v12074_v11 = vld [vmem:[#allocation8 + $0x20] sm:$0xff]   ;;  %v12119_v38 = vld [vmem:[#allocation8 + $0x1b8] sm:$0xff]   ;;  %v1406_v39 = vsub.s32 4, %v12394_v62 }
 0x563   :  { %11766 = vmatprep.subr.bf16.mxu0 %v12060_v40  ;;  %11788 = vmatprep.subr.bf16.mxu1 %v12061_v42  ;;  %v1414_v40 = vsub.s32 6, %v12394_v62  ;;  %v1418_v42 = vsub.s32 7, %v12394_v62 }
 0x565   :  { %11767 = vmatpush3.bf16.msra.mxu0 %v12062_v43  ;;  %v12148_v43 = vld [vmem:[#allocation7] sm:$0xff] }
 0x566   :  { %11789 = vmatpush3.bf16.msra.mxu1 %v12063_v44  ;;  %11768 = vmatprep.subr.bf16.mxu0 %v12064_v45  ;;  %v1407_v44 = vrot.slane %v12148_v43, %v1406_v39  ;;  %v1415_v45 = vrot.slane %v12148_v43, %v1414_v40 }
 0x567   :  { %11790 = vmatprep.subr.bf16.mxu1 %v12065_v46  ;;  %v1411_v46 = vrot.slane %v12148_v43, %v1410_v41 }
 0x569   :  { %11769 = vmatpush3.bf16.msra.mxu0 %v12066_v47  ;;  %v1419_v47 = vrot.slane %v12148_v43, %v1418_v42 }
 0x56a   :  { %11791 = vmatpush3.bf16.msra.mxu1 %v12067_v48  ;;  %11770 = vmatprep.subr.bf16.mxu0 %v12068_v49 }
 0x56b   :  { %11792 = vmatprep.subr.bf16.mxu1 %v12069_v50 }
 0x56d   :  { %11771 = vmatpush3.bf16.msra.mxu0 %v12070_v51 }
 0x56e   :  { %11793 = vmatpush3.bf16.msra.mxu1 %v12071_v7  ;;  %11772 = vmatprep.subr.bf16.mxu0 %v12072_v52 }
 0x56f   :  { %11794 = vmatprep.subr.bf16.mxu1 %v12073_v54 }
 0x571   :  { %11773 = vmatpush3.bf16.msra.mxu0 %v12074_v11 }
 0x572   :  { %11795 = vmatpush3.bf16.msra.mxu1 %v12075_v55  ;;  %11774 = vmatprep.subr.bf16.mxu0 %v12076_v56 }
 0x573   :  { %11796 = vmatprep.subr.bf16.mxu1 %v12077_v57 }
 0x575   :  { %11775 = vmatpush3.bf16.msra.mxu0 %v12078_v58 }
 0x576   :  { %11797 = vmatpush3.bf16.msra.mxu1 %v12079_v59  ;;  %11776 = vmatprep.subr.bf16.mxu0 %v12080_v60 }
 0x577   :  { %11798 = vmatprep.subr.bf16.mxu1 %v12081_v61 }
 0x579   :  { %11777 = vmatpush3.bf16.msra.mxu0 %v12082_v63 }
 0x57a   :  { %11799 = vmatpush3.bf16.msra.mxu1 %v12083_v0  ;;  %11778 = vmatprep.subr.bf16.mxu0 %v12084_v1 }
 0x57b   :  { %11800 = vmatprep.subr.bf16.mxu1 %v12085_v2 }
 0x57d   :  { %11779 = vmatpush3.bf16.msra.mxu0 %v12086_v4 }
 0x57e   :  { %11801 = vmatpush3.bf16.msra.mxu1 %v12087_v5  ;;  %11808 = vmatprep.subr.bf16.mxu0 %v12088_v8 }
 0x57f   :  { %11830 = vmatprep.subr.bf16.mxu1 %v12089_v9 }
 0x580   :  { %10224 = vmatmul.mubr.bf16.vlgmr.msra.gmra.mrb[8].mxu0 %v12400_v3  ;;  %v12102_v3 = vld [vmem:[#allocation8 + $0x118] sm:$0xff]  }
 0x581   :  { %10265 = vmatmul.mubr.bf16.vlgmr.msra.gmra.mrb[8].mxu1 %v12402_v6  ;;  %11809 = vmatpush3.bf16.msra.mxu0 %v12090_v10  ;;  %v12103_v6 = vld [vmem:[#allocation8 + $0x198] sm:$0xff]  }
 0x582   :  { %11831 = vmatpush3.bf16.msra.mxu1 %v12091_v12  ;;  %11810 = vmatprep.subr.bf16.mxu0 %v12092_v13 }
 0x583   :  { %11832 = vmatprep.subr.bf16.mxu1 %v12093_v14 }
 0x585   :  { %11811 = vmatpush3.bf16.msra.mxu0 %v12094_v15 }
 0x586   :  { %11833 = vmatpush3.bf16.msra.mxu1 %v12095_v16  ;;  %11812 = vmatprep.subr.bf16.mxu0 %v12096_v17  ;;  %v11699_v17 = vld [vmem:[#allocation10] ss:$0 sm:$0xff] }
 0x587   :  { %11834 = vmatprep.subr.bf16.mxu1 %v12097_v18 }
 0x589   :  { %11813 = vmatpush3.bf16.msra.mxu0 %v12098_v19 }
 0x58a   :  { %11835 = vmatpush3.bf16.msra.mxu1 %v12099_v20  ;;  %11814 = vmatprep.subr.bf16.mxu0 %v12100_v21 }
 0x58b   :  { %11836 = vmatprep.subr.bf16.mxu1 %v12101_v22 }
 0x58d   :  { %11815 = vmatpush3.bf16.msra.mxu0 %v12102_v3 }
 0x58e   :  { %11837 = vmatpush3.bf16.msra.mxu1 %v12103_v6  ;;  %11816 = vmatprep.subr.bf16.mxu0 %v12104_v23 }
 0x58f   :  { %11838 = vmatprep.subr.bf16.mxu1 %v12105_v24 }
 0x591   :  { %11817 = vmatpush3.bf16.msra.mxu0 %v12106_v25 }
 0x592   :  { %11839 = vmatpush3.bf16.msra.mxu1 %v12107_v26  ;;  %11818 = vmatprep.subr.bf16.mxu0 %v12108_v27 }
 0x593   :  { %11840 = vmatprep.subr.bf16.mxu1 %v12109_v28 }
 0x595   :  { %11819 = vmatpush3.bf16.msra.mxu0 %v12110_v29 }
 0x596   :  { %11841 = vmatpush3.bf16.msra.mxu1 %v12111_v30  ;;  %11820 = vmatprep.subr.bf16.mxu0 %v12112_v31 }
 0x597   :  { %11842 = vmatprep.subr.bf16.mxu1 %v12113_v32 }
 0x599   :  { %11821 = vmatpush3.bf16.msra.mxu0 %v12114_v33  ;;  %v10356_v33 = vand.u32 127, %v1388_v53 }
 0x59a   :  { %11843 = vmatpush3.bf16.msra.mxu1 %v12115_v34  ;;  %11822 = vmatprep.subr.bf16.mxu0 %v12116_v35 }
 0x59b   :  { %11844 = vmatprep.subr.bf16.mxu1 %v12117_v36  ;;  %vm10357_vm0 = vcmp.lt.s32.totalorder %v10356_v33, 10 }
 0x59d   :  { %11823 = vmatpush3.bf16.msra.mxu0 %v12118_v37 }
 0x59e   :  { %11845 = vmatpush3.bf16.msra.mxu1 %v12119_v38 }
 0x633   :  { %v9209_v48 = vpop.f32.mrb[4].mxu0  ;;  %v9639_v50 = vpop.f32.mrb[4].mxu1 }
 0x634   :  { %v11860_v49 = vadd.f32 %v9209_v48, %v1407_v44  ;;  %v9211_v51 = vpop.f32.mrb[5].mxu0  ;;  %v11864_v7 = vadd.f32 %v9639_v50, %v1415_v45  ;;  %v9641_v54 = vpop.f32.mrb[5].mxu1 }
 0x635   :  { %v11861_v52 = vadd.f32 %v9211_v51, %v1411_v46  ;;  %v9213_v11 = vpop.f32.mrb[6].mxu0  ;;  %v11865_v55 = vadd.f32 %v9641_v54, %v1419_v47  ;;  %v9643_v57 = vpop.f32.mrb[6].mxu1 }
 0x636   :  { %v11862_v56 = vadd.f32 %v9213_v11, %v1407_v44  ;;  %v9215_v58 = vpop.f32.mrb[7].mxu0  ;;  %v11866_v59 = vadd.f32 %v9643_v57, %v1415_v45  ;;  %v9645_v62 = vpop.f32.mrb[7].mxu1  ;;  %v9652_v61 = vmax.f32 %v11860_v49, 0.0  ;;  %v9654_v1 = vmax.f32 %v11864_v7, 0.0 }
 0x637   :  { %v11863_v60 = vadd.f32 %v9215_v58, %v1411_v46  ;;  %v11867_v0 = vadd.f32 %v9645_v62, %v1419_v47  ;;  %v9653_v2 = vmax.f32 %v11861_v52, 0.0  ;;  %v9655_v8 = vmax.f32 %v11865_v55, 0.0 }
 0x638   :  { %v9660_v63 = vmax.f32 %v11862_v56, 0.0  ;;  %v9662_v4 = vmax.f32 %v11866_v59, 0.0 }
 0x639   :  { %v9661_v5 = vmax.f32 %v11863_v60, 0.0  ;;  %v9663_v10 = vmax.f32 %v11867_v0, 0.0 }
 0x63a   :  { %v9668_v9 = vpack.c.bf16 %v9660_v63, %v9652_v61  ;;  %v9670_v12 = vpack.c.bf16 %v9662_v4, %v9654_v1 }
 0x63b   :  { %v9669_v13 = vpack.c.bf16 %v9661_v5, %v9653_v2  ;;  %v9671_v14 = vpack.c.bf16 %v9663_v10, %v9655_v8 }
 0x63d   :  { %10305 = vmatprep.mubr.bf16.mxu0 %v9669_v13  ;;  %10346 = vmatprep.mubr.bf16.mxu1 %v9671_v14 }
 0x63e   :  { %10306 = vmatmul.mubr.bf16.vlgmr.msra.gmra.mrb[12].mxu0 %v9668_v9  ;;  %10347 = vmatmul.mubr.bf16.vlgmr.msra.gmra.mrb[12].mxu1 %v9670_v12 }
 0x653   :  { %v11780_v15 = vpop.f32.mrb[8].mxu0 }
 0x654   :  { %v11802_v16 = vpop.f32.mrb[8].mxu1  ;;  %v11781_v18 = vpop.f32.mrb[9].mxu0 }
 0x655   :  { %v11782_v19 = vadd.f32 %v11781_v18, %v11780_v15  ;;  %v11803_v20 = vpop.f32.mrb[9].mxu1  ;;  %v11783_v21 = vpop.f32.mrb[10].mxu0 }
 0x656   :  { %v11804_v22 = vadd.f32 %v11803_v20, %v11802_v16  ;;  %v11805_v3 = vpop.f32.mrb[10].mxu1  ;;  %v11784_v6 = vpop.f32.mrb[11].mxu0 }
 0x657   :  { %v10226_v23 = vadd.f32 %v11782_v19, %v11699_v17  ;;  %v11785_v24 = vadd.f32 %v11784_v6, %v11783_v21  ;;  %v11806_v25 = vpop.f32.mrb[11].mxu1 }
 0x658   :  { %v11807_v26 = vadd.f32 %v11806_v25, %v11805_v3 }
 0x659   :  { %v10267_v27 = vadd.f32 %v11804_v22, %v10226_v23  ;;  %v10229_v28 = vadd.f32 %v11785_v24, %v11699_v17 }
 0x65b   :  { %v10270_v29 = vadd.f32 %v11807_v26, %v10229_v28 }
 0x711   :  { %v11824_v30 = vpop.f32.mrb[12].mxu0  ;;  %v11846_v31 = vpop.f32.mrb[12].mxu1 }
 0x712   :  { %v11825_v32 = vpop.f32.mrb[13].mxu0  ;;  %v11847_v35 = vpop.f32.mrb[13].mxu1 }
 0x713   :  { %v11826_v34 = vadd.f32 %v11825_v32, %v11824_v30  ;;  %v11827_v36 = vpop.f32.mrb[14].mxu0  ;;  %v11848_v37 = vadd.f32 %v11847_v35, %v11846_v31  ;;  %v11849_v38 = vpop.f32.mrb[14].mxu1 }
 0x714   :  { %v11828_v39 = vpop.f32.mrb[15].mxu0  ;;  %v11850_v42 = vpop.f32.mrb[15].mxu1 }
 0x715   :  { %v10308_v40 = vadd.f32 %v11826_v34, %v10267_v27  ;;  %v11829_v41 = vadd.f32 %v11828_v39, %v11827_v36  ;;  %v11851_v43 = vadd.f32 %v11850_v42, %v11849_v38 }
 0x717   :  { %v10311_v44 = vadd.f32 %v11829_v41, %v10270_v29  ;;  %v10349_v45 = vadd.f32 %v11848_v37, %v10308_v40 }
 0x719   :  { %v10358_v46 = vsel %vm10357_vm0, %v10349_v45, -1e+30  ;;  %v10352_v47 = vadd.f32 %v11851_v43, %v10311_v44 }
 0x71a   :  { %10360 = vmax.xlane.f32.xlu0 %v10358_v46 }
 0x71b   :  { %v10359_v48 = vsel %vm10357_vm0, %v10352_v47, -1e+30 }
 0x71e   :  { %10362 = vmax.xlane.f32.xlu0 %v10359_v48 }
 0x7a7   :  { %v10361_v49 = vpop.xlane.xlu0 %10360 }
 0x7a8   :  { %v10364_v53 = vsub.f32 %v10358_v46, %v10361_v49 }
 0x7aa   :  { %v10366_v50 = vmul.f32 1.442695, %v10364_v53 }
 0x7ab   :  { %v10363_v51 = vpop.xlane.xlu0 %10362 }
 0x7ac   :  { %12120 = vpow2.f32 %v10366_v50  ;;  %v10365_v7 = vsub.f32 %v10359_v48, %v10363_v51 }
 0x7ae   :  { %v10368_v52 = vmul.f32 1.442695, %v10365_v7 }
 0x7b0   :  { %12122 = vpow2.f32 %v10368_v52 }
 0x7b6   :  { %v12121_v54 = vpop.eup %12120 }
 0x7b7   :  { %10370 = vadd.xlane.f32.xlu1 %v12121_v54 }
 0x7ba   :  { %v12123_v11 = vpop.eup %12122 }
 0x7bb   :  { %10372 = vadd.xlane.f32.xlu1 %v12123_v11 }
 0x844   :  { %v10371_v55 = vpop.xlane.xlu1 %10370 }
 0x845   :  { %12124 = vrcp.f32 %v10371_v55 }
 0x848   :  { %v10373_v56 = vpop.xlane.xlu1 %10372 }
 0x849   :  { %12126 = vrcp.f32 %v10373_v56 }
 0x84f   :  { %v12125_v57 = vpop.eup %12124 }
 0x850   :  { %v10375_v58 = vmul.f32 %v12125_v57, %v12121_v54 }
 0x852   :  { %10378 = vst [vmem:[#allocation11] sm:$0xff] %v10375_v58 }
 0x853   :  { %v12127_v59 = vpop.eup %12126 }
 0x854   :  { %v10377_v60 = vmul.f32 %v12127_v59, %v12123_v11 }
 0x856   :  { %10379 = vst [vmem:[#allocation11 + $0x8] sm:$0xff] %v10377_v60 }
 0x857   :  { %12270 = shalt.err (!%p12267_p2)
}
 0x858   :  { %s12271_s8 = scalar_lea.hbm %s12434_s5, 256 }
 0x859   :  { %p12272_p3 = scmp.ne.s32.totalorder %s12434_s5, %s12271_s8  ;;  %p12275_p4 = scmp.lt.u32.totalorder %s12271_s8, %s12434_s5 }
 0x85b   :  { %p12277_p5 = pnand %p12275_p4, %p12272_p3 }
 0x85d   :  { %12280 = shalt.err (!%p12277_p5)
}
 0x85e   :  { %s12301_s13 = smov 128   ;;  %s12302_s14 = smov 8  }
 0x85f   :  { %10391 = dma.vmem_to_hbm [thread:$0]  %s10386_s3, 256, %s12434_s5, [#allocation4], %s12301_s13, %s12301_s13, %s12302_s14  }
 0x860   :  { %12287 = dma.done.wait [#allocation4], 256  }
 0x861   :  { %12288 = vsyncadd [#allocation4], 4294967040 }
 0x862   :  { %10395 = vsyncpa [#allocation3], 1 }
 0x863   :  { %10396 = vsyncpa [#allocation6], 1 }
 0x864   :  { %10397 = vsyncpa [#allocation9], 1 }
 0x865   :  { %10398 = vsyncpa [#allocation4], 1 }

</bundles_post_ra>
